<compile_context>
chip_gen: v6e
topology: v6e:2x2x1
jax: 0.10.0
libtpu: 0.0.40
codegen_flags: <defaults>
</compile_context>

<pallas_src>
import functools

import jax
import jax.numpy as jnp
from jax import lax
from jax.experimental import pallas as pl
from jax.experimental.pallas import tpu as pltpu


# Halos (in quarter-rate samples) needed by each stage of the fused pipeline.
_HX = 4   # raw input x
_H1 = 3   # h1 = encoder layer 1 output (half rate, kept as 2 stacked phases)
_H2 = 2   # h2 = encoder layer 2 output (quarter rate)
_H3 = 1   # h3 = decoder layer 1 output (half rate, kept as 2 stacked phases)

# If the (double-buffered) per-batch phase-split input row exceeds this, fall
# back to wrapper-side windowing instead of keeping the row VMEM-resident.
_RESIDENT_ROW_BYTES_MAX = 2 << 20


def _fused_kernel(x_ref, w1_ref, b1_ref, w2_ref, b2_ref, w3_ref, b3_ref,
                  w4_ref, b4_ref, perm_ref, out_ref, *, s, lq, resident):
    """Encoder + decoder for one (batch, L-tile) block.

    Activations are channel-major (channels on sublanes, positions on lanes).
    `s`  = tile length in quarter-rate samples (TILE_L == 4 * s).
    `lq` = valid quarter-rate length of the real signal (== L // 4).
    """
    i = pl.program_id(1)
    g0 = i * s                           # first quarter-rate sample of tile
    dot = functools.partial(jnp.dot, preferred_element_type=jnp.float32)

    n1 = s + 2 * _H1
    n2 = s + 2 * _H2
    n3 = s + 2 * _H3

    # ---- input window: 4 quarter-rate phases of x with halo _HX ------------
    if resident:
        # full phase-split row is VMEM-resident; slice the halo'd window here
        hint = 128 if s % 128 == 0 else 32
        start = pl.multiple_of(i * s, hint)
        x = x_ref[0, :, pl.ds(start, s + 2 * _HX)]          # (4, s + 8)
    else:
        x = x_ref[0, 0]                                      # (4, s + 8)

    # ---- single boundary mask, sliced for every layer -----------------------
    g = g0 - _H1 + lax.broadcasted_iota(jnp.int32, (1, n1), 1)
    m1 = (g >= 0) & (g < lq)             # positions of the L1 output columns
    m2 = m1[:, 1:1 + n2]
    m3 = m1[:, 2:2 + n3]

    # ---- encoder L1: Conv1d(1->16, k=5, s=2, p=2) + ReLU --------------------
    # Both half-rate phases in ONE dot: rows 0..15 = h1[2p], 16..31 = h1[2p+1].
    x7 = jnp.concatenate(
        [x[2:4, 0:n1], x[:, 1:1 + n1], x[0:1, 2:2 + n1]], axis=0)   # (7, n1)
    h1 = jnp.where(m1, jnp.maximum(dot(w1_ref[...], x7) + b1_ref[...], 0.0),
                   0.0)                                              # (32, n1)

    # ---- encoder L2: Conv1d(16->32, k=5, s=2, p=2) + ReLU -------------------
    p2 = jnp.concatenate(
        [h1[:, 0:n2], h1[:, 1:1 + n2], h1[0:16, 2:2 + n2]], axis=0)  # (80, n2)
    h2 = jnp.where(m2, jnp.maximum(dot(w2_ref[...], p2) + b2_ref[...], 0.0),
                   0.0)                                              # (32, n2)

    # ---- decoder L1: ConvTranspose1d(32->16, k=4, s=2, p=1) + ReLU ----------
    # Both half-rate phases in ONE dot: rows 0..15 = h3[2p], 16..31 = h3[2p+1].
    p3 = jnp.concatenate(
        [h2[:, 0:n3], h2[:, 1:1 + n3], h2[:, 2:2 + n3]], axis=0)     # (96, n3)
    h3 = jnp.where(m3, jnp.maximum(dot(w3_ref[...], p3) + b3_ref[...], 0.0),
                   0.0)                                              # (32, n3)

    # ---- decoder L2: ConvTranspose1d(16->2, k=4, s=2, p=1) ------------------
    # All four quarter-rate output phases in ONE dot; row 2*j + c of y is
    # output phase j, channel c.  Bias is folded in here.
    p4 = jnp.concatenate(
        [h3[:, 1:1 + s], h3[16:32, 0:s], h3[0:16, 2:2 + s]], axis=0)  # (64, s)
    y = dot(w4_ref[...], p4) + b4_ref[...]                            # (8, s)

    # ---- interleave: out[:, 4p + j] = y[2j + c, p] ---------------------------
    # One (2,128)@(128,128) MXU dot per 128 output lanes with a constant 0/1
    # permutation matrix; stores are 128-lane aligned and lane-dense.
    perm = perm_ref[...]
    for k in range(4 * s // 128):
        sl = slice(32 * k, 32 * k + 32)
        ycat = jnp.concatenate(
            [y[0:2, sl], y[2:4, sl], y[4:6, sl], y[6:8, sl]], axis=1)  # (2,128)
        out_ref[0, :, 128 * k:128 * (k + 1)] = dot(ycat, perm).astype(
            out_ref.dtype)


def _round_up(v, m):
    return (v + m - 1) // m * m


def vocal_separator_forward(x, params, *, tile_l=8192, interpret=False):
    """x: (B, L) with L % 4 == 0  ->  (B, 2, L); matches VocalSeparatorModel."""
    B, L = x.shape
    assert L % 4 == 0, "sequence length must be a multiple of 4"
    x = x.astype(jnp.float32)

    tile_l = _round_up(max(128, min(tile_l, _round_up(L, 128))), 128)
    lpad = _round_up(L, tile_l)
    ntiles = lpad // tile_l
    s = tile_l // 4                       # tile length in quarter-rate samples
    lq = L // 4                           # valid quarter-rate length
    lqp = lpad // 4

    # ---- phase-split input with _HX halo of zeros on both sides -------------
    xp = jnp.pad(x, ((0, 0), (4 * _HX, lpad - L + 4 * _HX)))
    xq = xp.reshape(B, lqp + 2 * _HX, 4).transpose(0, 2, 1)  # (B, 4, lqp + 8)

    row_bytes = 4 * (lqp + 2 * _HX) * 4
    resident = row_bytes <= _RESIDENT_ROW_BYTES_MAX
    if resident:
        # whole quarter-rate row stays VMEM-resident across all length tiles
        x_in = xq
        x_spec = pl.BlockSpec((1, 4, lqp + 2 * _HX), lambda b, i: (b, 0, 0))
    else:
        # fallback for very long signals: wrapper-side halo'd windows
        cols = (jnp.arange(ntiles) * s)[:, None] + \
            jnp.arange(s + 2 * _HX)[None, :]
        x_in = jnp.transpose(xq[:, :, cols], (0, 2, 1, 3))   # (B, nt, 4, s+8)
        x_spec = pl.BlockSpec((1, 1, 4, s + 2 * _HX), lambda b, i: (b, i, 0, 0))

    # ---- repack weights (PyTorch layouts) into merged kernel matrices -------
    f32 = jnp.float32
    e1w = params["e1_w"].astype(f32); e1b = params["e1_b"].astype(f32)
    e2w = params["e2_w"].astype(f32); e2b = params["e2_b"].astype(f32)
    d1w = params["d1_w"].astype(f32); d1b = params["d1_b"].astype(f32)
    d2w = params["d2_w"].astype(f32); d2b = params["d2_b"].astype(f32)

    # encoder L1: rows 0..15 -> even phase (taps x[4p-2..4p+2]),
    #             rows 16..31 -> odd phase (taps x[4p..4p+4])
    w1 = jnp.zeros((32, 7), f32)
    w1 = w1.at[0:16, 0:5].set(e1w[:, 0, :])
    w1 = w1.at[16:32, 2:7].set(e1w[:, 0, :])
    b1 = jnp.concatenate([e1b, e1b]).reshape(32, 1)

    # encoder L2: RHS rows = [h1e(v-1), h1o(v-1), h1e(v), h1o(v), h1e(v+1)]
    w2 = jnp.transpose(e2w, (0, 2, 1)).reshape(32, 80)
    b2 = e2b.reshape(32, 1)

    # decoder L1: RHS rows = [h2(p-1), h2(p), h2(p+1)]; rows 0..15 even phase
    w3 = jnp.zeros((32, 96), f32)
    w3 = w3.at[0:16, 0:32].set(d1w[:, :, 3].T)
    w3 = w3.at[0:16, 32:64].set(d1w[:, :, 1].T)
    w3 = w3.at[16:32, 32:64].set(d1w[:, :, 2].T)
    w3 = w3.at[16:32, 64:96].set(d1w[:, :, 0].T)
    b3 = jnp.concatenate([d1b, d1b]).reshape(32, 1)

    # decoder L2: RHS rows = [h3e(p), h3o(p), h3o(p-1), h3e(p+1)];
    # output row 2*j + c = phase j, channel c
    w4 = jnp.zeros((8, 64), f32)
    w4 = w4.at[0:2, 0:16].set(d2w[:, :, 1].T)
    w4 = w4.at[0:2, 32:48].set(d2w[:, :, 3].T)
    w4 = w4.at[2:4, 0:16].set(d2w[:, :, 2].T)
    w4 = w4.at[2:4, 16:32].set(d2w[:, :, 0].T)
    w4 = w4.at[4:6, 0:16].set(d2w[:, :, 3].T)
    w4 = w4.at[4:6, 16:32].set(d2w[:, :, 1].T)
    w4 = w4.at[6:8, 16:32].set(d2w[:, :, 2].T)
    w4 = w4.at[6:8, 48:64].set(d2w[:, :, 0].T)
    b4 = jnp.tile(d2b, 4).reshape(8, 1)

    # interleave permutation: perm[32*j + q, 4*q + j] = 1
    jj = jnp.arange(4)[:, None]
    qq = jnp.arange(32)[None, :]
    perm = jnp.zeros((128, 128), f32).at[32 * jj + qq, 4 * qq + jj].set(1.0)

    kernel = functools.partial(_fused_kernel, s=s, lq=lq, resident=resident)
    out = pl.pallas_call(
        kernel,
        out_shape=jax.ShapeDtypeStruct((B, 2, lpad), jnp.float32),
        grid=(B, ntiles),
        in_specs=[
            x_spec,
            pl.BlockSpec((32, 7), lambda b, i: (0, 0)),
            pl.BlockSpec((32, 1), lambda b, i: (0, 0)),
            pl.BlockSpec((32, 80), lambda b, i: (0, 0)),
            pl.BlockSpec((32, 1), lambda b, i: (0, 0)),
            pl.BlockSpec((32, 96), lambda b, i: (0, 0)),
            pl.BlockSpec((32, 1), lambda b, i: (0, 0)),
            pl.BlockSpec((8, 64), lambda b, i: (0, 0)),
            pl.BlockSpec((8, 1), lambda b, i: (0, 0)),
            pl.BlockSpec((128, 128), lambda b, i: (0, 0)),
        ],
        out_specs=pl.BlockSpec((1, 2, tile_l), lambda b, i: (b, 0, i)),
        compiler_params=pltpu.CompilerParams(
            dimension_semantics=("parallel", "parallel")),
        interpret=interpret,
    )(x_in, w1, b1, w2, b2, w3, b3, w4, b4, perm)

    return out[:, :, :L]


# -----------------------------------------------------------------------------
# Pure-JAX reference (independent formulation, matches PyTorch semantics).
# -----------------------------------------------------------------------------
def _conv1d_ref(x, w, b, stride, pad):
    _, _, L = x.shape
    _, _, K = w.shape
    lout = (L + 2 * pad - K) // stride + 1
    xp = jnp.pad(x, ((0, 0), (0, 0), (pad, pad)))
    cols = jnp.stack(
        [xp[:, :, k:k + stride * (lout - 1) + 1:stride] for k in range(K)],
        axis=-1)
    return jnp.einsum("bclk,ock->bol", cols, w) + b[None, :, None]


def _conv_transpose1d_ref(x, w, b, stride, pad):
    B, _, L = x.shape
    _, cout, K = w.shape
    lfull = (L - 1) * stride + K
    y = jnp.zeros((B, cout, lfull), x.dtype)
    for k in range(K):
        y = y.at[:, :, k:k + (L - 1) * stride + 1:stride].add(
            jnp.einsum("bcl,co->bol", x, w[:, :, k]))
    return y[:, :, pad:lfull - pad] + b[None, :, None]


def vocal_separator_reference(x, p):
    h = x[:, None, :]
    h = jax.nn.relu(_conv1d_ref(h, p["e1_w"], p["e1_b"], 2, 2))
    h = jax.nn.relu(_conv1d_ref(h, p["e2_w"], p["e2_b"], 2, 2))
    h = jax.nn.relu(_conv_transpose1d_ref(h, p["d1_w"], p["d1_b"], 2, 1))
    return _conv_transpose1d_ref(h, p["d2_w"], p["d2_b"], 2, 1)


def init_params(key):
    ks = jax.random.split(key, 8)
    sdev = 0.1
    return {
        "e1_w": sdev * jax.random.normal(ks[0], (16, 1, 5), jnp.float32),
        "e1_b": sdev * jax.random.normal(ks[1], (16,), jnp.float32),
        "e2_w": sdev * jax.random.normal(ks[2], (32, 16, 5), jnp.float32),
        "e2_b": sdev * jax.random.normal(ks[3], (32,), jnp.float32),
        "d1_w": sdev * jax.random.normal(ks[4], (32, 16, 4), jnp.float32),
        "d1_b": sdev * jax.random.normal(ks[5], (16,), jnp.float32),
        "d2_w": sdev * jax.random.normal(ks[6], (16, 2, 4), jnp.float32),
        "d2_b": sdev * jax.random.normal(ks[7], (2,), jnp.float32),
    }


if __name__ == "__main__":
    key = jax.random.PRNGKey(0)
    k_param, k_x = jax.random.split(key)
    params = init_params(k_param)

    # Small raw-audio batch.  Production default is tile_l=8192 (per review);
    # the self-test uses tile_l=4096 so the grid has several length tiles
    # (exercising halos/masks) while keeping the unrolled interleave short.
    B, L = 2, 16384
    x = jax.random.normal(k_x, (B, L), jnp.float32)

    fwd = jax.jit(functools.partial(vocal_separator_forward, tile_l=4096))
    out = jax.block_until_ready(fwd(x, params))

    assert out.shape == (B, 2, L), out.shape
    assert bool(jnp.all(jnp.isfinite(out)))

    ref = vocal_separator_reference(x, params)
    err = float(jnp.max(jnp.abs(out - ref)))
    # tolerance covers the MXU's default f32 matmul precision vs. XLA einsum
    assert err < 1e-2, f"max |kernel - reference| = {err}"
    print("KERNEL_OK")
</pallas_src>

<mosaic_0001>
module attributes {stable_mosaic.version = 11 : i64} {
  func.func @_fused_kernel(%arg0: i32, %arg1: i32, %arg2: memref<1x4x4104xf32, #tpu.memory_space<vmem>>, %arg3: memref<32x7xf32, #tpu.memory_space<vmem>>, %arg4: memref<32x1xf32, #tpu.memory_space<vmem>>, %arg5: memref<32x80xf32, #tpu.memory_space<vmem>>, %arg6: memref<32x1xf32, #tpu.memory_space<vmem>>, %arg7: memref<32x96xf32, #tpu.memory_space<vmem>>, %arg8: memref<32x1xf32, #tpu.memory_space<vmem>>, %arg9: memref<8x64xf32, #tpu.memory_space<vmem>>, %arg10: memref<8x1xf32, #tpu.memory_space<vmem>>, %arg11: memref<128x128xf32, #tpu.memory_space<vmem>>, %arg12: memref<1x2x4096xf32, #tpu.memory_space<vmem>>) attributes {dimension_semantics = [#tpu.dimension_semantics<parallel>, #tpu.dimension_semantics<parallel>], iteration_bounds = array<i64: 2, 4>, scalar_prefetch = 0 : i64, scratch_operands = 0 : i64, tpu.core_type = #tpu.core_type<tc>, window_params = [{transform_indices = @transform_0, window_bounds = array<i64: 1, 4, 4104>}, {pipeline_mode = #tpu.pipeline_mode<synchronous>, transform_indices = @transform_1, window_bounds = array<i64: 32, 7>}, {pipeline_mode = #tpu.pipeline_mode<synchronous>, transform_indices = @transform_2, window_bounds = array<i64: 32, 1>}, {pipeline_mode = #tpu.pipeline_mode<synchronous>, transform_indices = @transform_3, window_bounds = array<i64: 32, 80>}, {pipeline_mode = #tpu.pipeline_mode<synchronous>, transform_indices = @transform_4, window_bounds = array<i64: 32, 1>}, {pipeline_mode = #tpu.pipeline_mode<synchronous>, transform_indices = @transform_5, window_bounds = array<i64: 32, 96>}, {pipeline_mode = #tpu.pipeline_mode<synchronous>, transform_indices = @transform_6, window_bounds = array<i64: 32, 1>}, {pipeline_mode = #tpu.pipeline_mode<synchronous>, transform_indices = @transform_7, window_bounds = array<i64: 8, 64>}, {pipeline_mode = #tpu.pipeline_mode<synchronous>, transform_indices = @transform_8, window_bounds = array<i64: 8, 1>}, {pipeline_mode = #tpu.pipeline_mode<synchronous>, transform_indices = @transform_9, window_bounds = array<i64: 128, 128>}, {transform_indices = @transform_10, window_bounds = array<i64: 1, 2, 4096>}]} {
    %c1024_i32 = arith.constant 1024 : i32
    %0 = arith.muli %arg1, %c1024_i32 : i32
    %c1024_i32_0 = arith.constant 1024 : i32
    %1 = arith.muli %arg1, %c1024_i32_0 : i32
    %2 = tpu.assume_multiple %1, 128 : i32
    %c0 = arith.constant 0 : index
    %c0_1 = arith.constant 0 : index
    %3 = arith.index_cast %2 : i32 to index
    %4 = vector.load %arg2[%c0, %c0_1, %3] : memref<1x4x4104xf32, #tpu.memory_space<vmem>>, vector<1x4x1032xf32>
    %5 = vector.shape_cast %4 : vector<1x4x1032xf32> to vector<4x1032xf32>
    %c3_i32 = arith.constant 3 : i32
    %6 = arith.subi %0, %c3_i32 : i32
    %7 = tpu.iota {dimensions = array<i32: 1>} : vector<1x1030xi32>
    %8 = vector.broadcast %6 : i32 to vector<1x1030xi32>
    %9 = arith.addi %8, %7 : vector<1x1030xi32>
    %c0_i32 = arith.constant 0 : i32
    %10 = vector.broadcast %c0_i32 : i32 to vector<1x1030xi32>
    %11 = arith.cmpi sge, %9, %10 : vector<1x1030xi32>
    %c4096_i32 = arith.constant 4096 : i32
    %12 = vector.broadcast %c4096_i32 : i32 to vector<1x1030xi32>
    %13 = arith.cmpi slt, %9, %12 : vector<1x1030xi32>
    %14 = arith.andi %11, %13 : vector<1x1030xi1>
    %15 = vector.extract_strided_slice %14 {offsets = [0, 1], sizes = [1, 1028], strides = [1, 1]} : vector<1x1030xi1> to vector<1x1028xi1>
    %16 = vector.extract_strided_slice %14 {offsets = [0, 2], sizes = [1, 1026], strides = [1, 1]} : vector<1x1030xi1> to vector<1x1026xi1>
    %17 = vector.extract_strided_slice %5 {offsets = [2, 0], sizes = [2, 1030], strides = [1, 1]} : vector<4x1032xf32> to vector<2x1030xf32>
    %18 = vector.extract_strided_slice %5 {offsets = [0, 1], sizes = [4, 1030], strides = [1, 1]} : vector<4x1032xf32> to vector<4x1030xf32>
    %19 = vector.extract_strided_slice %5 {offsets = [0, 2], sizes = [1, 1030], strides = [1, 1]} : vector<4x1032xf32> to vector<1x1030xf32>
    %20 = tpu.concatenate %17, %18, %19 in 0 : vector<2x1030xf32>, vector<4x1030xf32>, vector<1x1030xf32> -> vector<7x1030xf32>
    %c0_2 = arith.constant 0 : index
    %c0_3 = arith.constant 0 : index
    %21 = vector.load %arg3[%c0_2, %c0_3] : memref<32x7xf32, #tpu.memory_space<vmem>>, vector<32x7xf32>
    %cst = arith.constant dense<0.000000e+00> : vector<32x1030xf32>
    %22 = tpu.matmul %21, %20, %cst {dimension_numbers = #tpu.dot_dimension_numbers<[1], [0], [0], [1], [0, 0, 1, 1], [], []>} : vector<32x7xf32>, vector<7x1030xf32>, vector<32x1030xf32> -> vector<32x1030xf32>
    %c0_4 = arith.constant 0 : index
    %c0_5 = arith.constant 0 : index
    %23 = vector.load %arg4[%c0_4, %c0_5] : memref<32x1xf32, #tpu.memory_space<vmem>>, vector<32x1xf32>
    %24 = vector.broadcast %23 : vector<32x1xf32> to vector<32x1030xf32>
    %25 = arith.addf %22, %24 : vector<32x1030xf32>
    %cst_6 = arith.constant 0.000000e+00 : f32
    %26 = vector.broadcast %cst_6 : f32 to vector<32x1030xf32>
    %27 = arith.maximumf %25, %26 : vector<32x1030xf32>
    %cst_7 = arith.constant 0.000000e+00 : f32
    %28 = vector.shape_cast %14 : vector<1x1030xi1> to vector<1x1030xi1>
    %29 = vector.broadcast %28 : vector<1x1030xi1> to vector<32x1030xi1>
    %30 = vector.broadcast %cst_7 : f32 to vector<32x1030xf32>
    %31 = arith.select %29, %27, %30 : vector<32x1030xi1>, vector<32x1030xf32>
    %32 = vector.extract_strided_slice %31 {offsets = [0, 0], sizes = [32, 1028], strides = [1, 1]} : vector<32x1030xf32> to vector<32x1028xf32>
    %33 = vector.extract_strided_slice %31 {offsets = [0, 1], sizes = [32, 1028], strides = [1, 1]} : vector<32x1030xf32> to vector<32x1028xf32>
    %34 = vector.extract_strided_slice %31 {offsets = [0, 2], sizes = [16, 1028], strides = [1, 1]} : vector<32x1030xf32> to vector<16x1028xf32>
    %35 = tpu.concatenate %32, %33, %34 in 0 : vector<32x1028xf32>, vector<32x1028xf32>, vector<16x1028xf32> -> vector<80x1028xf32>
    %c0_8 = arith.constant 0 : index
    %c0_9 = arith.constant 0 : index
    %36 = vector.load %arg5[%c0_8, %c0_9] : memref<32x80xf32, #tpu.memory_space<vmem>>, vector<32x80xf32>
    %cst_10 = arith.constant dense<0.000000e+00> : vector<32x1028xf32>
    %37 = tpu.matmul %36, %35, %cst_10 {dimension_numbers = #tpu.dot_dimension_numbers<[1], [0], [0], [1], [0, 0, 1, 1], [], []>} : vector<32x80xf32>, vector<80x1028xf32>, vector<32x1028xf32> -> vector<32x1028xf32>
    %c0_11 = arith.constant 0 : index
    %c0_12 = arith.constant 0 : index
    %38 = vector.load %arg6[%c0_11, %c0_12] : memref<32x1xf32, #tpu.memory_space<vmem>>, vector<32x1xf32>
    %39 = vector.broadcast %38 : vector<32x1xf32> to vector<32x1028xf32>
    %40 = arith.addf %37, %39 : vector<32x1028xf32>
    %cst_13 = arith.constant 0.000000e+00 : f32
    %41 = vector.broadcast %cst_13 : f32 to vector<32x1028xf32>
    %42 = arith.maximumf %40, %41 : vector<32x1028xf32>
    %cst_14 = arith.constant 0.000000e+00 : f32
    %43 = vector.shape_cast %15 : vector<1x1028xi1> to vector<1x1028xi1>
    %44 = vector.broadcast %43 : vector<1x1028xi1> to vector<32x1028xi1>
    %45 = vector.broadcast %cst_14 : f32 to vector<32x1028xf32>
    %46 = arith.select %44, %42, %45 : vector<32x1028xi1>, vector<32x1028xf32>
    %47 = vector.extract_strided_slice %46 {offsets = [0, 0], sizes = [32, 1026], strides = [1, 1]} : vector<32x1028xf32> to vector<32x1026xf32>
    %48 = vector.extract_strided_slice %46 {offsets = [0, 1], sizes = [32, 1026], strides = [1, 1]} : vector<32x1028xf32> to vector<32x1026xf32>
    %49 = vector.extract_strided_slice %46 {offsets = [0, 2], sizes = [32, 1026], strides = [1, 1]} : vector<32x1028xf32> to vector<32x1026xf32>
    %50 = tpu.concatenate %47, %48, %49 in 0 : vector<32x1026xf32>, vector<32x1026xf32>, vector<32x1026xf32> -> vector<96x1026xf32>
    %c0_15 = arith.constant 0 : index
    %c0_16 = arith.constant 0 : index
    %51 = vector.load %arg7[%c0_15, %c0_16] : memref<32x96xf32, #tpu.memory_space<vmem>>, vector<32x96xf32>
    %cst_17 = arith.constant dense<0.000000e+00> : vector<32x1026xf32>
    %52 = tpu.matmul %51, %50, %cst_17 {dimension_numbers = #tpu.dot_dimension_numbers<[1], [0], [0], [1], [0, 0, 1, 1], [], []>} : vector<32x96xf32>, vector<96x1026xf32>, vector<32x1026xf32> -> vector<32x1026xf32>
    %c0_18 = arith.constant 0 : index
    %c0_19 = arith.constant 0 : index
    %53 = vector.load %arg8[%c0_18, %c0_19] : memref<32x1xf32, #tpu.memory_space<vmem>>, vector<32x1xf32>
    %54 = vector.broadcast %53 : vector<32x1xf32> to vector<32x1026xf32>
    %55 = arith.addf %52, %54 : vector<32x1026xf32>
    %cst_20 = arith.constant 0.000000e+00 : f32
    %56 = vector.broadcast %cst_20 : f32 to vector<32x1026xf32>
    %57 = arith.maximumf %55, %56 : vector<32x1026xf32>
    %cst_21 = arith.constant 0.000000e+00 : f32
    %58 = vector.shape_cast %16 : vector<1x1026xi1> to vector<1x1026xi1>
    %59 = vector.broadcast %58 : vector<1x1026xi1> to vector<32x1026xi1>
    %60 = vector.broadcast %cst_21 : f32 to vector<32x1026xf32>
    %61 = arith.select %59, %57, %60 : vector<32x1026xi1>, vector<32x1026xf32>
    %62 = vector.extract_strided_slice %61 {offsets = [0, 1], sizes = [32, 1024], strides = [1, 1]} : vector<32x1026xf32> to vector<32x1024xf32>
    %63 = vector.extract_strided_slice %61 {offsets = [16, 0], sizes = [16, 1024], strides = [1, 1]} : vector<32x1026xf32> to vector<16x1024xf32>
    %64 = vector.extract_strided_slice %61 {offsets = [0, 2], sizes = [16, 1024], strides = [1, 1]} : vector<32x1026xf32> to vector<16x1024xf32>
    %65 = tpu.concatenate %62, %63, %64 in 0 : vector<32x1024xf32>, vector<16x1024xf32>, vector<16x1024xf32> -> vector<64x1024xf32>
    %c0_22 = arith.constant 0 : index
    %c0_23 = arith.constant 0 : index
    %66 = vector.load %arg9[%c0_22, %c0_23] : memref<8x64xf32, #tpu.memory_space<vmem>>, vector<8x64xf32>
    %cst_24 = arith.constant dense<0.000000e+00> : vector<8x1024xf32>
    %67 = tpu.matmul %66, %65, %cst_24 {dimension_numbers = #tpu.dot_dimension_numbers<[1], [0], [0], [1], [0, 0, 1, 1], [], []>} : vector<8x64xf32>, vector<64x1024xf32>, vector<8x1024xf32> -> vector<8x1024xf32>
    %c0_25 = arith.constant 0 : index
    %c0_26 = arith.constant 0 : index
    %68 = vector.load %arg10[%c0_25, %c0_26] : memref<8x1xf32, #tpu.memory_space<vmem>>, vector<8x1xf32>
    %69 = vector.broadcast %68 : vector<8x1xf32> to vector<8x1024xf32>
    %70 = arith.addf %67, %69 : vector<8x1024xf32>
    %c0_27 = arith.constant 0 : index
    %c0_28 = arith.constant 0 : index
    %71 = vector.load %arg11[%c0_27, %c0_28] : memref<128x128xf32, #tpu.memory_space<vmem>>, vector<128x128xf32>
    %72 = vector.extract_strided_slice %70 {offsets = [0, 0], sizes = [2, 32], strides = [1, 1]} : vector<8x1024xf32> to vector<2x32xf32>
    %73 = vector.extract_strided_slice %70 {offsets = [2, 0], sizes = [2, 32], strides = [1, 1]} : vector<8x1024xf32> to vector<2x32xf32>
    %74 = vector.extract_strided_slice %70 {offsets = [4, 0], sizes = [2, 32], strides = [1, 1]} : vector<8x1024xf32> to vector<2x32xf32>
    %75 = vector.extract_strided_slice %70 {offsets = [6, 0], sizes = [2, 32], strides = [1, 1]} : vector<8x1024xf32> to vector<2x32xf32>
    %76 = tpu.concatenate %72, %73, %74, %75 in 1 : vector<2x32xf32>, vector<2x32xf32>, vector<2x32xf32>, vector<2x32xf32> -> vector<2x128xf32>
    %cst_29 = arith.constant dense<0.000000e+00> : vector<2x128xf32>
    %77 = tpu.matmul %76, %71, %cst_29 {dimension_numbers = #tpu.dot_dimension_numbers<[1], [0], [0], [1], [0, 0, 1, 1], [], []>} : vector<2x128xf32>, vector<128x128xf32>, vector<2x128xf32> -> vector<2x128xf32>
    %c0_30 = arith.constant 0 : index
    %c0_31 = arith.constant 0 : index
    %c0_32 = arith.constant 0 : index
    %78 = vector.load %arg12[%c0_30, %c0_31, %c0_32] : memref<1x2x4096xf32, #tpu.memory_space<vmem>>, vector<1x2x128xf32>
    %79 = vector.shape_cast %78 : vector<1x2x128xf32> to vector<2x128xf32>
    %80 = vector.shape_cast %77 : vector<2x128xf32> to vector<1x2x128xf32>
    tpu.vector_store %arg12[%c0_30, %c0_31, %c0_32], %80 {strides = array<i32>} : memref<1x2x4096xf32, #tpu.memory_space<vmem>>, vector<1x2x128xf32>,
    %81 = vector.extract_strided_slice %70 {offsets = [0, 32], sizes = [2, 32], strides = [1, 1]} : vector<8x1024xf32> to vector<2x32xf32>
    %82 = vector.extract_strided_slice %70 {offsets = [2, 32], sizes = [2, 32], strides = [1, 1]} : vector<8x1024xf32> to vector<2x32xf32>
    %83 = vector.extract_strided_slice %70 {offsets = [4, 32], sizes = [2, 32], strides = [1, 1]} : vector<8x1024xf32> to vector<2x32xf32>
    %84 = vector.extract_strided_slice %70 {offsets = [6, 32], sizes = [2, 32], strides = [1, 1]} : vector<8x1024xf32> to vector<2x32xf32>
    %85 = tpu.concatenate %81, %82, %83, %84 in 1 : vector<2x32xf32>, vector<2x32xf32>, vector<2x32xf32>, vector<2x32xf32> -> vector<2x128xf32>
    %cst_33 = arith.constant dense<0.000000e+00> : vector<2x128xf32>
    %86 = tpu.matmul %85, %71, %cst_33 {dimension_numbers = #tpu.dot_dimension_numbers<[1], [0], [0], [1], [0, 0, 1, 1], [], []>} : vector<2x128xf32>, vector<128x128xf32>, vector<2x128xf32> -> vector<2x128xf32>
    %c0_34 = arith.constant 0 : index
    %c0_35 = arith.constant 0 : index
    %c128 = arith.constant 128 : index
    %87 = vector.load %arg12[%c0_34, %c0_35, %c128] : memref<1x2x4096xf32, #tpu.memory_space<vmem>>, vector<1x2x128xf32>
    %88 = vector.shape_cast %87 : vector<1x2x128xf32> to vector<2x128xf32>
    %89 = vector.shape_cast %86 : vector<2x128xf32> to vector<1x2x128xf32>
    tpu.vector_store %arg12[%c0_34, %c0_35, %c128], %89 {strides = array<i32>} : memref<1x2x4096xf32, #tpu.memory_space<vmem>>, vector<1x2x128xf32>,
    %90 = vector.extract_strided_slice %70 {offsets = [0, 64], sizes = [2, 32], strides = [1, 1]} : vector<8x1024xf32> to vector<2x32xf32>
    %91 = vector.extract_strided_slice %70 {offsets = [2, 64], sizes = [2, 32], strides = [1, 1]} : vector<8x1024xf32> to vector<2x32xf32>
    %92 = vector.extract_strided_slice %70 {offsets = [4, 64], sizes = [2, 32], strides = [1, 1]} : vector<8x1024xf32> to vector<2x32xf32>
    %93 = vector.extract_strided_slice %70 {offsets = [6, 64], sizes = [2, 32], strides = [1, 1]} : vector<8x1024xf32> to vector<2x32xf32>
    %94 = tpu.concatenate %90, %91, %92, %93 in 1 : vector<2x32xf32>, vector<2x32xf32>, vector<2x32xf32>, vector<2x32xf32> -> vector<2x128xf32>
    %cst_36 = arith.constant dense<0.000000e+00> : vector<2x128xf32>
    %95 = tpu.matmul %94, %71, %cst_36 {dimension_numbers = #tpu.dot_dimension_numbers<[1], [0], [0], [1], [0, 0, 1, 1], [], []>} : vector<2x128xf32>, vector<128x128xf32>, vector<2x128xf32> -> vector<2x128xf32>
    %c0_37 = arith.constant 0 : index
    %c0_38 = arith.constant 0 : index
    %c256 = arith.constant 256 : index
    %96 = vector.load %arg12[%c0_37, %c0_38, %c256] : memref<1x2x4096xf32, #tpu.memory_space<vmem>>, vector<1x2x128xf32>
    %97 = vector.shape_cast %96 : vector<1x2x128xf32> to vector<2x128xf32>
    %98 = vector.shape_cast %95 : vector<2x128xf32> to vector<1x2x128xf32>
    tpu.vector_store %arg12[%c0_37, %c0_38, %c256], %98 {strides = array<i32>} : memref<1x2x4096xf32, #tpu.memory_space<vmem>>, vector<1x2x128xf32>,
    %99 = vector.extract_strided_slice %70 {offsets = [0, 96], sizes = [2, 32], strides = [1, 1]} : vector<8x1024xf32> to vector<2x32xf32>
    %100 = vector.extract_strided_slice %70 {offsets = [2, 96], sizes = [2, 32], strides = [1, 1]} : vector<8x1024xf32> to vector<2x32xf32>
    %101 = vector.extract_strided_slice %70 {offsets = [4, 96], sizes = [2, 32], strides = [1, 1]} : vector<8x1024xf32> to vector<2x32xf32>
    %102 = vector.extract_strided_slice %70 {offsets = [6, 96], sizes = [2, 32], strides = [1, 1]} : vector<8x1024xf32> to vector<2x32xf32>
    %103 = tpu.concatenate %99, %100, %101, %102 in 1 : vector<2x32xf32>, vector<2x32xf32>, vector<2x32xf32>, vector<2x32xf32> -> vector<2x128xf32>
    %cst_39 = arith.constant dense<0.000000e+00> : vector<2x128xf32>
    %104 = tpu.matmul %103, %71, %cst_39 {dimension_numbers = #tpu.dot_dimension_numbers<[1], [0], [0], [1], [0, 0, 1, 1], [], []>} : vector<2x128xf32>, vector<128x128xf32>, vector<2x128xf32> -> vector<2x128xf32>
    %c0_40 = arith.constant 0 : index
    %c0_41 = arith.constant 0 : index
    %c384 = arith.constant 384 : index
    %105 = vector.load %arg12[%c0_40, %c0_41, %c384] : memref<1x2x4096xf32, #tpu.memory_space<vmem>>, vector<1x2x128xf32>
    %106 = vector.shape_cast %105 : vector<1x2x128xf32> to vector<2x128xf32>
    %107 = vector.shape_cast %104 : vector<2x128xf32> to vector<1x2x128xf32>
    tpu.vector_store %arg12[%c0_40, %c0_41, %c384], %107 {strides = array<i32>} : memref<1x2x4096xf32, #tpu.memory_space<vmem>>, vector<1x2x128xf32>,
    %108 = vector.extract_strided_slice %70 {offsets = [0, 128], sizes = [2, 32], strides = [1, 1]} : vector<8x1024xf32> to vector<2x32xf32>
    %109 = vector.extract_strided_slice %70 {offsets = [2, 128], sizes = [2, 32], strides = [1, 1]} : vector<8x1024xf32> to vector<2x32xf32>
    %110 = vector.extract_strided_slice %70 {offsets = [4, 128], sizes = [2, 32], strides = [1, 1]} : vector<8x1024xf32> to vector<2x32xf32>
    %111 = vector.extract_strided_slice %70 {offsets = [6, 128], sizes = [2, 32], strides = [1, 1]} : vector<8x1024xf32> to vector<2x32xf32>
    %112 = tpu.concatenate %108, %109, %110, %111 in 1 : vector<2x32xf32>, vector<2x32xf32>, vector<2x32xf32>, vector<2x32xf32> -> vector<2x128xf32>
    %cst_42 = arith.constant dense<0.000000e+00> : vector<2x128xf32>
    %113 = tpu.matmul %112, %71, %cst_42 {dimension_numbers = #tpu.dot_dimension_numbers<[1], [0], [0], [1], [0, 0, 1, 1], [], []>} : vector<2x128xf32>, vector<128x128xf32>, vector<2x128xf32> -> vector<2x128xf32>
    %c0_43 = arith.constant 0 : index
    %c0_44 = arith.constant 0 : index
    %c512 = arith.constant 512 : index
    %114 = vector.load %arg12[%c0_43, %c0_44, %c512] : memref<1x2x4096xf32, #tpu.memory_space<vmem>>, vector<1x2x128xf32>
    %115 = vector.shape_cast %114 : vector<1x2x128xf32> to vector<2x128xf32>
    %116 = vector.shape_cast %113 : vector<2x128xf32> to vector<1x2x128xf32>
    tpu.vector_store %arg12[%c0_43, %c0_44, %c512], %116 {strides = array<i32>} : memref<1x2x4096xf32, #tpu.memory_space<vmem>>, vector<1x2x128xf32>,
    %117 = vector.extract_strided_slice %70 {offsets = [0, 160], sizes = [2, 32], strides = [1, 1]} : vector<8x1024xf32> to vector<2x32xf32>
    %118 = vector.extract_strided_slice %70 {offsets = [2, 160], sizes = [2, 32], strides = [1, 1]} : vector<8x1024xf32> to vector<2x32xf32>
    %119 = vector.extract_strided_slice %70 {offsets = [4, 160], sizes = [2, 32], strides = [1, 1]} : vector<8x1024xf32> to vector<2x32xf32>
    %120 = vector.extract_strided_slice %70 {offsets = [6, 160], sizes = [2, 32], strides = [1, 1]} : vector<8x1024xf32> to vector<2x32xf32>
    %121 = tpu.concatenate %117, %118, %119, %120 in 1 : vector<2x32xf32>, vector<2x32xf32>, vector<2x32xf32>, vector<2x32xf32> -> vector<2x128xf32>
    %cst_45 = arith.constant dense<0.000000e+00> : vector<2x128xf32>
    %122 = tpu.matmul %121, %71, %cst_45 {dimension_numbers = #tpu.dot_dimension_numbers<[1], [0], [0], [1], [0, 0, 1, 1], [], []>} : vector<2x128xf32>, vector<128x128xf32>, vector<2x128xf32> -> vector<2x128xf32>
    %c0_46 = arith.constant 0 : index
    %c0_47 = arith.constant 0 : index
    %c640 = arith.constant 640 : index
    %123 = vector.load %arg12[%c0_46, %c0_47, %c640] : memref<1x2x4096xf32, #tpu.memory_space<vmem>>, vector<1x2x128xf32>
    %124 = vector.shape_cast %123 : vector<1x2x128xf32> to vector<2x128xf32>
    %125 = vector.shape_cast %122 : vector<2x128xf32> to vector<1x2x128xf32>
    tpu.vector_store %arg12[%c0_46, %c0_47, %c640], %125 {strides = array<i32>} : memref<1x2x4096xf32, #tpu.memory_space<vmem>>, vector<1x2x128xf32>,
    %126 = vector.extract_strided_slice %70 {offsets = [0, 192], sizes = [2, 32], strides = [1, 1]} : vector<8x1024xf32> to vector<2x32xf32>
    %127 = vector.extract_strided_slice %70 {offsets = [2, 192], sizes = [2, 32], strides = [1, 1]} : vector<8x1024xf32> to vector<2x32xf32>
    %128 = vector.extract_strided_slice %70 {offsets = [4, 192], sizes = [2, 32], strides = [1, 1]} : vector<8x1024xf32> to vector<2x32xf32>
    %129 = vector.extract_strided_slice %70 {offsets = [6, 192], sizes = [2, 32], strides = [1, 1]} : vector<8x1024xf32> to vector<2x32xf32>
    %130 = tpu.concatenate %126, %127, %128, %129 in 1 : vector<2x32xf32>, vector<2x32xf32>, vector<2x32xf32>, vector<2x32xf32> -> vector<2x128xf32>
    %cst_48 = arith.constant dense<0.000000e+00> : vector<2x128xf32>
    %131 = tpu.matmul %130, %71, %cst_48 {dimension_numbers = #tpu.dot_dimension_numbers<[1], [0], [0], [1], [0, 0, 1, 1], [], []>} : vector<2x128xf32>, vector<128x128xf32>, vector<2x128xf32> -> vector<2x128xf32>
    %c0_49 = arith.constant 0 : index
    %c0_50 = arith.constant 0 : index
    %c768 = arith.constant 768 : index
    %132 = vector.load %arg12[%c0_49, %c0_50, %c768] : memref<1x2x4096xf32, #tpu.memory_space<vmem>>, vector<1x2x128xf32>
    %133 = vector.shape_cast %132 : vector<1x2x128xf32> to vector<2x128xf32>
    %134 = vector.shape_cast %131 : vector<2x128xf32> to vector<1x2x128xf32>
    tpu.vector_store %arg12[%c0_49, %c0_50, %c768], %134 {strides = array<i32>} : memref<1x2x4096xf32, #tpu.memory_space<vmem>>, vector<1x2x128xf32>,
    %135 = vector.extract_strided_slice %70 {offsets = [0, 224], sizes = [2, 32], strides = [1, 1]} : vector<8x1024xf32> to vector<2x32xf32>
    %136 = vector.extract_strided_slice %70 {offsets = [2, 224], sizes = [2, 32], strides = [1, 1]} : vector<8x1024xf32> to vector<2x32xf32>
    %137 = vector.extract_strided_slice %70 {offsets = [4, 224], sizes = [2, 32], strides = [1, 1]} : vector<8x1024xf32> to vector<2x32xf32>
    %138 = vector.extract_strided_slice %70 {offsets = [6, 224], sizes = [2, 32], strides = [1, 1]} : vector<8x1024xf32> to vector<2x32xf32>
    %139 = tpu.concatenate %135, %136, %137, %138 in 1 : vector<2x32xf32>, vector<2x32xf32>, vector<2x32xf32>, vector<2x32xf32> -> vector<2x128xf32>
    %cst_51 = arith.constant dense<0.000000e+00> : vector<2x128xf32>
    %140 = tpu.matmul %139, %71, %cst_51 {dimension_numbers = #tpu.dot_dimension_numbers<[1], [0], [0], [1], [0, 0, 1, 1], [], []>} : vector<2x128xf32>, vector<128x128xf32>, vector<2x128xf32> -> vector<2x128xf32>
    %c0_52 = arith.constant 0 : index
    %c0_53 = arith.constant 0 : index
    %c896 = arith.constant 896 : index
    %141 = vector.load %arg12[%c0_52, %c0_53, %c896] : memref<1x2x4096xf32, #tpu.memory_space<vmem>>, vector<1x2x128xf32>
    %142 = vector.shape_cast %141 : vector<1x2x128xf32> to vector<2x128xf32>
    %143 = vector.shape_cast %140 : vector<2x128xf32> to vector<1x2x128xf32>
    tpu.vector_store %arg12[%c0_52, %c0_53, %c896], %143 {strides = array<i32>} : memref<1x2x4096xf32, #tpu.memory_space<vmem>>, vector<1x2x128xf32>,
    %144 = vector.extract_strided_slice %70 {offsets = [0, 256], sizes = [2, 32], strides = [1, 1]} : vector<8x1024xf32> to vector<2x32xf32>
    %145 = vector.extract_strided_slice %70 {offsets = [2, 256], sizes = [2, 32], strides = [1, 1]} : vector<8x1024xf32> to vector<2x32xf32>
    %146 = vector.extract_strided_slice %70 {offsets = [4, 256], sizes = [2, 32], strides = [1, 1]} : vector<8x1024xf32> to vector<2x32xf32>
    %147 = vector.extract_strided_slice %70 {offsets = [6, 256], sizes = [2, 32], strides = [1, 1]} : vector<8x1024xf32> to vector<2x32xf32>
    %148 = tpu.concatenate %144, %145, %146, %147 in 1 : vector<2x32xf32>, vector<2x32xf32>, vector<2x32xf32>, vector<2x32xf32> -> vector<2x128xf32>
    %cst_54 = arith.constant dense<0.000000e+00> : vector<2x128xf32>
    %149 = tpu.matmul %148, %71, %cst_54 {dimension_numbers = #tpu.dot_dimension_numbers<[1], [0], [0], [1], [0, 0, 1, 1], [], []>} : vector<2x128xf32>, vector<128x128xf32>, vector<2x128xf32> -> vector<2x128xf32>
    %c0_55 = arith.constant 0 : index
    %c0_56 = arith.constant 0 : index
    %c1024 = arith.constant 1024 : index
    %150 = vector.load %arg12[%c0_55, %c0_56, %c1024] : memref<1x2x4096xf32, #tpu.memory_space<vmem>>, vector<1x2x128xf32>
    %151 = vector.shape_cast %150 : vector<1x2x128xf32> to vector<2x128xf32>
    %152 = vector.shape_cast %149 : vector<2x128xf32> to vector<1x2x128xf32>
    tpu.vector_store %arg12[%c0_55, %c0_56, %c1024], %152 {strides = array<i32>} : memref<1x2x4096xf32, #tpu.memory_space<vmem>>, vector<1x2x128xf32>,
    %153 = vector.extract_strided_slice %70 {offsets = [0, 288], sizes = [2, 32], strides = [1, 1]} : vector<8x1024xf32> to vector<2x32xf32>
    %154 = vector.extract_strided_slice %70 {offsets = [2, 288], sizes = [2, 32], strides = [1, 1]} : vector<8x1024xf32> to vector<2x32xf32>
    %155 = vector.extract_strided_slice %70 {offsets = [4, 288], sizes = [2, 32], strides = [1, 1]} : vector<8x1024xf32> to vector<2x32xf32>
    %156 = vector.extract_strided_slice %70 {offsets = [6, 288], sizes = [2, 32], strides = [1, 1]} : vector<8x1024xf32> to vector<2x32xf32>
    %157 = tpu.concatenate %153, %154, %155, %156 in 1 : vector<2x32xf32>, vector<2x32xf32>, vector<2x32xf32>, vector<2x32xf32> -> vector<2x128xf32>
    %cst_57 = arith.constant dense<0.000000e+00> : vector<2x128xf32>
    %158 = tpu.matmul %157, %71, %cst_57 {dimension_numbers = #tpu.dot_dimension_numbers<[1], [0], [0], [1], [0, 0, 1, 1], [], []>} : vector<2x128xf32>, vector<128x128xf32>, vector<2x128xf32> -> vector<2x128xf32>
    %c0_58 = arith.constant 0 : index
    %c0_59 = arith.constant 0 : index
    %c1152 = arith.constant 1152 : index
    %159 = vector.load %arg12[%c0_58, %c0_59, %c1152] : memref<1x2x4096xf32, #tpu.memory_space<vmem>>, vector<1x2x128xf32>
    %160 = vector.shape_cast %159 : vector<1x2x128xf32> to vector<2x128xf32>
    %161 = vector.shape_cast %158 : vector<2x128xf32> to vector<1x2x128xf32>
    tpu.vector_store %arg12[%c0_58, %c0_59, %c1152], %161 {strides = array<i32>} : memref<1x2x4096xf32, #tpu.memory_space<vmem>>, vector<1x2x128xf32>,
    %162 = vector.extract_strided_slice %70 {offsets = [0, 320], sizes = [2, 32], strides = [1, 1]} : vector<8x1024xf32> to vector<2x32xf32>
    %163 = vector.extract_strided_slice %70 {offsets = [2, 320], sizes = [2, 32], strides = [1, 1]} : vector<8x1024xf32> to vector<2x32xf32>
    %164 = vector.extract_strided_slice %70 {offsets = [4, 320], sizes = [2, 32], strides = [1, 1]} : vector<8x1024xf32> to vector<2x32xf32>
    %165 = vector.extract_strided_slice %70 {offsets = [6, 320], sizes = [2, 32], strides = [1, 1]} : vector<8x1024xf32> to vector<2x32xf32>
    %166 = tpu.concatenate %162, %163, %164, %165 in 1 : vector<2x32xf32>, vector<2x32xf32>, vector<2x32xf32>, vector<2x32xf32> -> vector<2x128xf32>
    %cst_60 = arith.constant dense<0.000000e+00> : vector<2x128xf32>
    %167 = tpu.matmul %166, %71, %cst_60 {dimension_numbers = #tpu.dot_dimension_numbers<[1], [0], [0], [1], [0, 0, 1, 1], [], []>} : vector<2x128xf32>, vector<128x128xf32>, vector<2x128xf32> -> vector<2x128xf32>
    %c0_61 = arith.constant 0 : index
    %c0_62 = arith.constant 0 : index
    %c1280 = arith.constant 1280 : index
    %168 = vector.load %arg12[%c0_61, %c0_62, %c1280] : memref<1x2x4096xf32, #tpu.memory_space<vmem>>, vector<1x2x128xf32>
    %169 = vector.shape_cast %168 : vector<1x2x128xf32> to vector<2x128xf32>
    %170 = vector.shape_cast %167 : vector<2x128xf32> to vector<1x2x128xf32>
    tpu.vector_store %arg12[%c0_61, %c0_62, %c1280], %170 {strides = array<i32>} : memref<1x2x4096xf32, #tpu.memory_space<vmem>>, vector<1x2x128xf32>,
    %171 = vector.extract_strided_slice %70 {offsets = [0, 352], sizes = [2, 32], strides = [1, 1]} : vector<8x1024xf32> to vector<2x32xf32>
    %172 = vector.extract_strided_slice %70 {offsets = [2, 352], sizes = [2, 32], strides = [1, 1]} : vector<8x1024xf32> to vector<2x32xf32>
    %173 = vector.extract_strided_slice %70 {offsets = [4, 352], sizes = [2, 32], strides = [1, 1]} : vector<8x1024xf32> to vector<2x32xf32>
    %174 = vector.extract_strided_slice %70 {offsets = [6, 352], sizes = [2, 32], strides = [1, 1]} : vector<8x1024xf32> to vector<2x32xf32>
    %175 = tpu.concatenate %171, %172, %173, %174 in 1 : vector<2x32xf32>, vector<2x32xf32>, vector<2x32xf32>, vector<2x32xf32> -> vector<2x128xf32>
    %cst_63 = arith.constant dense<0.000000e+00> : vector<2x128xf32>
    %176 = tpu.matmul %175, %71, %cst_63 {dimension_numbers = #tpu.dot_dimension_numbers<[1], [0], [0], [1], [0, 0, 1, 1], [], []>} : vector<2x128xf32>, vector<128x128xf32>, vector<2x128xf32> -> vector<2x128xf32>
    %c0_64 = arith.constant 0 : index
    %c0_65 = arith.constant 0 : index
    %c1408 = arith.constant 1408 : index
    %177 = vector.load %arg12[%c0_64, %c0_65, %c1408] : memref<1x2x4096xf32, #tpu.memory_space<vmem>>, vector<1x2x128xf32>
    %178 = vector.shape_cast %177 : vector<1x2x128xf32> to vector<2x128xf32>
    %179 = vector.shape_cast %176 : vector<2x128xf32> to vector<1x2x128xf32>
    tpu.vector_store %arg12[%c0_64, %c0_65, %c1408], %179 {strides = array<i32>} : memref<1x2x4096xf32, #tpu.memory_space<vmem>>, vector<1x2x128xf32>,
    %180 = vector.extract_strided_slice %70 {offsets = [0, 384], sizes = [2, 32], strides = [1, 1]} : vector<8x1024xf32> to vector<2x32xf32>
    %181 = vector.extract_strided_slice %70 {offsets = [2, 384], sizes = [2, 32], strides = [1, 1]} : vector<8x1024xf32> to vector<2x32xf32>
    %182 = vector.extract_strided_slice %70 {offsets = [4, 384], sizes = [2, 32], strides = [1, 1]} : vector<8x1024xf32> to vector<2x32xf32>
    %183 = vector.extract_strided_slice %70 {offsets = [6, 384], sizes = [2, 32], strides = [1, 1]} : vector<8x1024xf32> to vector<2x32xf32>
    %184 = tpu.concatenate %180, %181, %182, %183 in 1 : vector<2x32xf32>, vector<2x32xf32>, vector<2x32xf32>, vector<2x32xf32> -> vector<2x128xf32>
    %cst_66 = arith.constant dense<0.000000e+00> : vector<2x128xf32>
    %185 = tpu.matmul %184, %71, %cst_66 {dimension_numbers = #tpu.dot_dimension_numbers<[1], [0], [0], [1], [0, 0, 1, 1], [], []>} : vector<2x128xf32>, vector<128x128xf32>, vector<2x128xf32> -> vector<2x128xf32>
    %c0_67 = arith.constant 0 : index
    %c0_68 = arith.constant 0 : index
    %c1536 = arith.constant 1536 : index
    %186 = vector.load %arg12[%c0_67, %c0_68, %c1536] : memref<1x2x4096xf32, #tpu.memory_space<vmem>>, vector<1x2x128xf32>
    %187 = vector.shape_cast %186 : vector<1x2x128xf32> to vector<2x128xf32>
    %188 = vector.shape_cast %185 : vector<2x128xf32> to vector<1x2x128xf32>
    tpu.vector_store %arg12[%c0_67, %c0_68, %c1536], %188 {strides = array<i32>} : memref<1x2x4096xf32, #tpu.memory_space<vmem>>, vector<1x2x128xf32>,
    %189 = vector.extract_strided_slice %70 {offsets = [0, 416], sizes = [2, 32], strides = [1, 1]} : vector<8x1024xf32> to vector<2x32xf32>
    %190 = vector.extract_strided_slice %70 {offsets = [2, 416], sizes = [2, 32], strides = [1, 1]} : vector<8x1024xf32> to vector<2x32xf32>
    %191 = vector.extract_strided_slice %70 {offsets = [4, 416], sizes = [2, 32], strides = [1, 1]} : vector<8x1024xf32> to vector<2x32xf32>
    %192 = vector.extract_strided_slice %70 {offsets = [6, 416], sizes = [2, 32], strides = [1, 1]} : vector<8x1024xf32> to vector<2x32xf32>
    %193 = tpu.concatenate %189, %190, %191, %192 in 1 : vector<2x32xf32>, vector<2x32xf32>, vector<2x32xf32>, vector<2x32xf32> -> vector<2x128xf32>
    %cst_69 = arith.constant dense<0.000000e+00> : vector<2x128xf32>
    %194 = tpu.matmul %193, %71, %cst_69 {dimension_numbers = #tpu.dot_dimension_numbers<[1], [0], [0], [1], [0, 0, 1, 1], [], []>} : vector<2x128xf32>, vector<128x128xf32>, vector<2x128xf32> -> vector<2x128xf32>
    %c0_70 = arith.constant 0 : index
    %c0_71 = arith.constant 0 : index
    %c1664 = arith.constant 1664 : index
    %195 = vector.load %arg12[%c0_70, %c0_71, %c1664] : memref<1x2x4096xf32, #tpu.memory_space<vmem>>, vector<1x2x128xf32>
    %196 = vector.shape_cast %195 : vector<1x2x128xf32> to vector<2x128xf32>
    %197 = vector.shape_cast %194 : vector<2x128xf32> to vector<1x2x128xf32>
    tpu.vector_store %arg12[%c0_70, %c0_71, %c1664], %197 {strides = array<i32>} : memref<1x2x4096xf32, #tpu.memory_space<vmem>>, vector<1x2x128xf32>,
    %198 = vector.extract_strided_slice %70 {offsets = [0, 448], sizes = [2, 32], strides = [1, 1]} : vector<8x1024xf32> to vector<2x32xf32>
    %199 = vector.extract_strided_slice %70 {offsets = [2, 448], sizes = [2, 32], strides = [1, 1]} : vector<8x1024xf32> to vector<2x32xf32>
    %200 = vector.extract_strided_slice %70 {offsets = [4, 448], sizes = [2, 32], strides = [1, 1]} : vector<8x1024xf32> to vector<2x32xf32>
    %201 = vector.extract_strided_slice %70 {offsets = [6, 448], sizes = [2, 32], strides = [1, 1]} : vector<8x1024xf32> to vector<2x32xf32>
    %202 = tpu.concatenate %198, %199, %200, %201 in 1 : vector<2x32xf32>, vector<2x32xf32>, vector<2x32xf32>, vector<2x32xf32> -> vector<2x128xf32>
    %cst_72 = arith.constant dense<0.000000e+00> : vector<2x128xf32>
    %203 = tpu.matmul %202, %71, %cst_72 {dimension_numbers = #tpu.dot_dimension_numbers<[1], [0], [0], [1], [0, 0, 1, 1], [], []>} : vector<2x128xf32>, vector<128x128xf32>, vector<2x128xf32> -> vector<2x128xf32>
    %c0_73 = arith.constant 0 : index
    %c0_74 = arith.constant 0 : index
    %c1792 = arith.constant 1792 : index
    %204 = vector.load %arg12[%c0_73, %c0_74, %c1792] : memref<1x2x4096xf32, #tpu.memory_space<vmem>>, vector<1x2x128xf32>
    %205 = vector.shape_cast %204 : vector<1x2x128xf32> to vector<2x128xf32>
    %206 = vector.shape_cast %203 : vector<2x128xf32> to vector<1x2x128xf32>
    tpu.vector_store %arg12[%c0_73, %c0_74, %c1792], %206 {strides = array<i32>} : memref<1x2x4096xf32, #tpu.memory_space<vmem>>, vector<1x2x128xf32>,
    %207 = vector.extract_strided_slice %70 {offsets = [0, 480], sizes = [2, 32], strides = [1, 1]} : vector<8x1024xf32> to vector<2x32xf32>
    %208 = vector.extract_strided_slice %70 {offsets = [2, 480], sizes = [2, 32], strides = [1, 1]} : vector<8x1024xf32> to vector<2x32xf32>
    %209 = vector.extract_strided_slice %70 {offsets = [4, 480], sizes = [2, 32], strides = [1, 1]} : vector<8x1024xf32> to vector<2x32xf32>
    %210 = vector.extract_strided_slice %70 {offsets = [6, 480], sizes = [2, 32], strides = [1, 1]} : vector<8x1024xf32> to vector<2x32xf32>
    %211 = tpu.concatenate %207, %208, %209, %210 in 1 : vector<2x32xf32>, vector<2x32xf32>, vector<2x32xf32>, vector<2x32xf32> -> vector<2x128xf32>
    %cst_75 = arith.constant dense<0.000000e+00> : vector<2x128xf32>
    %212 = tpu.matmul %211, %71, %cst_75 {dimension_numbers = #tpu.dot_dimension_numbers<[1], [0], [0], [1], [0, 0, 1, 1], [], []>} : vector<2x128xf32>, vector<128x128xf32>, vector<2x128xf32> -> vector<2x128xf32>
    %c0_76 = arith.constant 0 : index
    %c0_77 = arith.constant 0 : index
    %c1920 = arith.constant 1920 : index
    %213 = vector.load %arg12[%c0_76, %c0_77, %c1920] : memref<1x2x4096xf32, #tpu.memory_space<vmem>>, vector<1x2x128xf32>
    %214 = vector.shape_cast %213 : vector<1x2x128xf32> to vector<2x128xf32>
    %215 = vector.shape_cast %212 : vector<2x128xf32> to vector<1x2x128xf32>
    tpu.vector_store %arg12[%c0_76, %c0_77, %c1920], %215 {strides = array<i32>} : memref<1x2x4096xf32, #tpu.memory_space<vmem>>, vector<1x2x128xf32>,
    %216 = vector.extract_strided_slice %70 {offsets = [0, 512], sizes = [2, 32], strides = [1, 1]} : vector<8x1024xf32> to vector<2x32xf32>
    %217 = vector.extract_strided_slice %70 {offsets = [2, 512], sizes = [2, 32], strides = [1, 1]} : vector<8x1024xf32> to vector<2x32xf32>
    %218 = vector.extract_strided_slice %70 {offsets = [4, 512], sizes = [2, 32], strides = [1, 1]} : vector<8x1024xf32> to vector<2x32xf32>
    %219 = vector.extract_strided_slice %70 {offsets = [6, 512], sizes = [2, 32], strides = [1, 1]} : vector<8x1024xf32> to vector<2x32xf32>
    %220 = tpu.concatenate %216, %217, %218, %219 in 1 : vector<2x32xf32>, vector<2x32xf32>, vector<2x32xf32>, vector<2x32xf32> -> vector<2x128xf32>
    %cst_78 = arith.constant dense<0.000000e+00> : vector<2x128xf32>
    %221 = tpu.matmul %220, %71, %cst_78 {dimension_numbers = #tpu.dot_dimension_numbers<[1], [0], [0], [1], [0, 0, 1, 1], [], []>} : vector<2x128xf32>, vector<128x128xf32>, vector<2x128xf32> -> vector<2x128xf32>
    %c0_79 = arith.constant 0 : index
    %c0_80 = arith.constant 0 : index
    %c2048 = arith.constant 2048 : index
    %222 = vector.load %arg12[%c0_79, %c0_80, %c2048] : memref<1x2x4096xf32, #tpu.memory_space<vmem>>, vector<1x2x128xf32>
    %223 = vector.shape_cast %222 : vector<1x2x128xf32> to vector<2x128xf32>
    %224 = vector.shape_cast %221 : vector<2x128xf32> to vector<1x2x128xf32>
    tpu.vector_store %arg12[%c0_79, %c0_80, %c2048], %224 {strides = array<i32>} : memref<1x2x4096xf32, #tpu.memory_space<vmem>>, vector<1x2x128xf32>,
    %225 = vector.extract_strided_slice %70 {offsets = [0, 544], sizes = [2, 32], strides = [1, 1]} : vector<8x1024xf32> to vector<2x32xf32>
    %226 = vector.extract_strided_slice %70 {offsets = [2, 544], sizes = [2, 32], strides = [1, 1]} : vector<8x1024xf32> to vector<2x32xf32>
    %227 = vector.extract_strided_slice %70 {offsets = [4, 544], sizes = [2, 32], strides = [1, 1]} : vector<8x1024xf32> to vector<2x32xf32>
    %228 = vector.extract_strided_slice %70 {offsets = [6, 544], sizes = [2, 32], strides = [1, 1]} : vector<8x1024xf32> to vector<2x32xf32>
    %229 = tpu.concatenate %225, %226, %227, %228 in 1 : vector<2x32xf32>, vector<2x32xf32>, vector<2x32xf32>, vector<2x32xf32> -> vector<2x128xf32>
    %cst_81 = arith.constant dense<0.000000e+00> : vector<2x128xf32>
    %230 = tpu.matmul %229, %71, %cst_81 {dimension_numbers = #tpu.dot_dimension_numbers<[1], [0], [0], [1], [0, 0, 1, 1], [], []>} : vector<2x128xf32>, vector<128x128xf32>, vector<2x128xf32> -> vector<2x128xf32>
    %c0_82 = arith.constant 0 : index
    %c0_83 = arith.constant 0 : index
    %c2176 = arith.constant 2176 : index
    %231 = vector.load %arg12[%c0_82, %c0_83, %c2176] : memref<1x2x4096xf32, #tpu.memory_space<vmem>>, vector<1x2x128xf32>
    %232 = vector.shape_cast %231 : vector<1x2x128xf32> to vector<2x128xf32>
    %233 = vector.shape_cast %230 : vector<2x128xf32> to vector<1x2x128xf32>
    tpu.vector_store %arg12[%c0_82, %c0_83, %c2176], %233 {strides = array<i32>} : memref<1x2x4096xf32, #tpu.memory_space<vmem>>, vector<1x2x128xf32>,
    %234 = vector.extract_strided_slice %70 {offsets = [0, 576], sizes = [2, 32], strides = [1, 1]} : vector<8x1024xf32> to vector<2x32xf32>
    %235 = vector.extract_strided_slice %70 {offsets = [2, 576], sizes = [2, 32], strides = [1, 1]} : vector<8x1024xf32> to vector<2x32xf32>
    %236 = vector.extract_strided_slice %70 {offsets = [4, 576], sizes = [2, 32], strides = [1, 1]} : vector<8x1024xf32> to vector<2x32xf32>
    %237 = vector.extract_strided_slice %70 {offsets = [6, 576], sizes = [2, 32], strides = [1, 1]} : vector<8x1024xf32> to vector<2x32xf32>
    %238 = tpu.concatenate %234, %235, %236, %237 in 1 : vector<2x32xf32>, vector<2x32xf32>, vector<2x32xf32>, vector<2x32xf32> -> vector<2x128xf32>
    %cst_84 = arith.constant dense<0.000000e+00> : vector<2x128xf32>
    %239 = tpu.matmul %238, %71, %cst_84 {dimension_numbers = #tpu.dot_dimension_numbers<[1], [0], [0], [1], [0, 0, 1, 1], [], []>} : vector<2x128xf32>, vector<128x128xf32>, vector<2x128xf32> -> vector<2x128xf32>
    %c0_85 = arith.constant 0 : index
    %c0_86 = arith.constant 0 : index
    %c2304 = arith.constant 2304 : index
    %240 = vector.load %arg12[%c0_85, %c0_86, %c2304] : memref<1x2x4096xf32, #tpu.memory_space<vmem>>, vector<1x2x128xf32>
    %241 = vector.shape_cast %240 : vector<1x2x128xf32> to vector<2x128xf32>
    %242 = vector.shape_cast %239 : vector<2x128xf32> to vector<1x2x128xf32>
    tpu.vector_store %arg12[%c0_85, %c0_86, %c2304], %242 {strides = array<i32>} : memref<1x2x4096xf32, #tpu.memory_space<vmem>>, vector<1x2x128xf32>,
    %243 = vector.extract_strided_slice %70 {offsets = [0, 608], sizes = [2, 32], strides = [1, 1]} : vector<8x1024xf32> to vector<2x32xf32>
    %244 = vector.extract_strided_slice %70 {offsets = [2, 608], sizes = [2, 32], strides = [1, 1]} : vector<8x1024xf32> to vector<2x32xf32>
    %245 = vector.extract_strided_slice %70 {offsets = [4, 608], sizes = [2, 32], strides = [1, 1]} : vector<8x1024xf32> to vector<2x32xf32>
    %246 = vector.extract_strided_slice %70 {offsets = [6, 608], sizes = [2, 32], strides = [1, 1]} : vector<8x1024xf32> to vector<2x32xf32>
    %247 = tpu.concatenate %243, %244, %245, %246 in 1 : vector<2x32xf32>, vector<2x32xf32>, vector<2x32xf32>, vector<2x32xf32> -> vector<2x128xf32>
    %cst_87 = arith.constant dense<0.000000e+00> : vector<2x128xf32>
    %248 = tpu.matmul %247, %71, %cst_87 {dimension_numbers = #tpu.dot_dimension_numbers<[1], [0], [0], [1], [0, 0, 1, 1], [], []>} : vector<2x128xf32>, vector<128x128xf32>, vector<2x128xf32> -> vector<2x128xf32>
    %c0_88 = arith.constant 0 : index
    %c0_89 = arith.constant 0 : index
    %c2432 = arith.constant 2432 : index
    %249 = vector.load %arg12[%c0_88, %c0_89, %c2432] : memref<1x2x4096xf32, #tpu.memory_space<vmem>>, vector<1x2x128xf32>
    %250 = vector.shape_cast %249 : vector<1x2x128xf32> to vector<2x128xf32>
    %251 = vector.shape_cast %248 : vector<2x128xf32> to vector<1x2x128xf32>
    tpu.vector_store %arg12[%c0_88, %c0_89, %c2432], %251 {strides = array<i32>} : memref<1x2x4096xf32, #tpu.memory_space<vmem>>, vector<1x2x128xf32>,
    %252 = vector.extract_strided_slice %70 {offsets = [0, 640], sizes = [2, 32], strides = [1, 1]} : vector<8x1024xf32> to vector<2x32xf32>
    %253 = vector.extract_strided_slice %70 {offsets = [2, 640], sizes = [2, 32], strides = [1, 1]} : vector<8x1024xf32> to vector<2x32xf32>
    %254 = vector.extract_strided_slice %70 {offsets = [4, 640], sizes = [2, 32], strides = [1, 1]} : vector<8x1024xf32> to vector<2x32xf32>
    %255 = vector.extract_strided_slice %70 {offsets = [6, 640], sizes = [2, 32], strides = [1, 1]} : vector<8x1024xf32> to vector<2x32xf32>
    %256 = tpu.concatenate %252, %253, %254, %255 in 1 : vector<2x32xf32>, vector<2x32xf32>, vector<2x32xf32>, vector<2x32xf32> -> vector<2x128xf32>
    %cst_90 = arith.constant dense<0.000000e+00> : vector<2x128xf32>
    %257 = tpu.matmul %256, %71, %cst_90 {dimension_numbers = #tpu.dot_dimension_numbers<[1], [0], [0], [1], [0, 0, 1, 1], [], []>} : vector<2x128xf32>, vector<128x128xf32>, vector<2x128xf32> -> vector<2x128xf32>
    %c0_91 = arith.constant 0 : index
    %c0_92 = arith.constant 0 : index
    %c2560 = arith.constant 2560 : index
    %258 = vector.load %arg12[%c0_91, %c0_92, %c2560] : memref<1x2x4096xf32, #tpu.memory_space<vmem>>, vector<1x2x128xf32>
    %259 = vector.shape_cast %258 : vector<1x2x128xf32> to vector<2x128xf32>
    %260 = vector.shape_cast %257 : vector<2x128xf32> to vector<1x2x128xf32>
    tpu.vector_store %arg12[%c0_91, %c0_92, %c2560], %260 {strides = array<i32>} : memref<1x2x4096xf32, #tpu.memory_space<vmem>>, vector<1x2x128xf32>,
    %261 = vector.extract_strided_slice %70 {offsets = [0, 672], sizes = [2, 32], strides = [1, 1]} : vector<8x1024xf32> to vector<2x32xf32>
    %262 = vector.extract_strided_slice %70 {offsets = [2, 672], sizes = [2, 32], strides = [1, 1]} : vector<8x1024xf32> to vector<2x32xf32>
    %263 = vector.extract_strided_slice %70 {offsets = [4, 672], sizes = [2, 32], strides = [1, 1]} : vector<8x1024xf32> to vector<2x32xf32>
    %264 = vector.extract_strided_slice %70 {offsets = [6, 672], sizes = [2, 32], strides = [1, 1]} : vector<8x1024xf32> to vector<2x32xf32>
    %265 = tpu.concatenate %261, %262, %263, %264 in 1 : vector<2x32xf32>, vector<2x32xf32>, vector<2x32xf32>, vector<2x32xf32> -> vector<2x128xf32>
    %cst_93 = arith.constant dense<0.000000e+00> : vector<2x128xf32>
    %266 = tpu.matmul %265, %71, %cst_93 {dimension_numbers = #tpu.dot_dimension_numbers<[1], [0], [0], [1], [0, 0, 1, 1], [], []>} : vector<2x128xf32>, vector<128x128xf32>, vector<2x128xf32> -> vector<2x128xf32>
    %c0_94 = arith.constant 0 : index
    %c0_95 = arith.constant 0 : index
    %c2688 = arith.constant 2688 : index
    %267 = vector.load %arg12[%c0_94, %c0_95, %c2688] : memref<1x2x4096xf32, #tpu.memory_space<vmem>>, vector<1x2x128xf32>
    %268 = vector.shape_cast %267 : vector<1x2x128xf32> to vector<2x128xf32>
    %269 = vector.shape_cast %266 : vector<2x128xf32> to vector<1x2x128xf32>
    tpu.vector_store %arg12[%c0_94, %c0_95, %c2688], %269 {strides = array<i32>} : memref<1x2x4096xf32, #tpu.memory_space<vmem>>, vector<1x2x128xf32>,
    %270 = vector.extract_strided_slice %70 {offsets = [0, 704], sizes = [2, 32], strides = [1, 1]} : vector<8x1024xf32> to vector<2x32xf32>
    %271 = vector.extract_strided_slice %70 {offsets = [2, 704], sizes = [2, 32], strides = [1, 1]} : vector<8x1024xf32> to vector<2x32xf32>
    %272 = vector.extract_strided_slice %70 {offsets = [4, 704], sizes = [2, 32], strides = [1, 1]} : vector<8x1024xf32> to vector<2x32xf32>
    %273 = vector.extract_strided_slice %70 {offsets = [6, 704], sizes = [2, 32], strides = [1, 1]} : vector<8x1024xf32> to vector<2x32xf32>
    %274 = tpu.concatenate %270, %271, %272, %273 in 1 : vector<2x32xf32>, vector<2x32xf32>, vector<2x32xf32>, vector<2x32xf32> -> vector<2x128xf32>
    %cst_96 = arith.constant dense<0.000000e+00> : vector<2x128xf32>
    %275 = tpu.matmul %274, %71, %cst_96 {dimension_numbers = #tpu.dot_dimension_numbers<[1], [0], [0], [1], [0, 0, 1, 1], [], []>} : vector<2x128xf32>, vector<128x128xf32>, vector<2x128xf32> -> vector<2x128xf32>
    %c0_97 = arith.constant 0 : index
    %c0_98 = arith.constant 0 : index
    %c2816 = arith.constant 2816 : index
    %276 = vector.load %arg12[%c0_97, %c0_98, %c2816] : memref<1x2x4096xf32, #tpu.memory_space<vmem>>, vector<1x2x128xf32>
    %277 = vector.shape_cast %276 : vector<1x2x128xf32> to vector<2x128xf32>
    %278 = vector.shape_cast %275 : vector<2x128xf32> to vector<1x2x128xf32>
    tpu.vector_store %arg12[%c0_97, %c0_98, %c2816], %278 {strides = array<i32>} : memref<1x2x4096xf32, #tpu.memory_space<vmem>>, vector<1x2x128xf32>,
    %279 = vector.extract_strided_slice %70 {offsets = [0, 736], sizes = [2, 32], strides = [1, 1]} : vector<8x1024xf32> to vector<2x32xf32>
    %280 = vector.extract_strided_slice %70 {offsets = [2, 736], sizes = [2, 32], strides = [1, 1]} : vector<8x1024xf32> to vector<2x32xf32>
    %281 = vector.extract_strided_slice %70 {offsets = [4, 736], sizes = [2, 32], strides = [1, 1]} : vector<8x1024xf32> to vector<2x32xf32>
    %282 = vector.extract_strided_slice %70 {offsets = [6, 736], sizes = [2, 32], strides = [1, 1]} : vector<8x1024xf32> to vector<2x32xf32>
    %283 = tpu.concatenate %279, %280, %281, %282 in 1 : vector<2x32xf32>, vector<2x32xf32>, vector<2x32xf32>, vector<2x32xf32> -> vector<2x128xf32>
    %cst_99 = arith.constant dense<0.000000e+00> : vector<2x128xf32>
    %284 = tpu.matmul %283, %71, %cst_99 {dimension_numbers = #tpu.dot_dimension_numbers<[1], [0], [0], [1], [0, 0, 1, 1], [], []>} : vector<2x128xf32>, vector<128x128xf32>, vector<2x128xf32> -> vector<2x128xf32>
    %c0_100 = arith.constant 0 : index
    %c0_101 = arith.constant 0 : index
    %c2944 = arith.constant 2944 : index
    %285 = vector.load %arg12[%c0_100, %c0_101, %c2944] : memref<1x2x4096xf32, #tpu.memory_space<vmem>>, vector<1x2x128xf32>
    %286 = vector.shape_cast %285 : vector<1x2x128xf32> to vector<2x128xf32>
    %287 = vector.shape_cast %284 : vector<2x128xf32> to vector<1x2x128xf32>
    tpu.vector_store %arg12[%c0_100, %c0_101, %c2944], %287 {strides = array<i32>} : memref<1x2x4096xf32, #tpu.memory_space<vmem>>, vector<1x2x128xf32>,
    %288 = vector.extract_strided_slice %70 {offsets = [0, 768], sizes = [2, 32], strides = [1, 1]} : vector<8x1024xf32> to vector<2x32xf32>
    %289 = vector.extract_strided_slice %70 {offsets = [2, 768], sizes = [2, 32], strides = [1, 1]} : vector<8x1024xf32> to vector<2x32xf32>
    %290 = vector.extract_strided_slice %70 {offsets = [4, 768], sizes = [2, 32], strides = [1, 1]} : vector<8x1024xf32> to vector<2x32xf32>
    %291 = vector.extract_strided_slice %70 {offsets = [6, 768], sizes = [2, 32], strides = [1, 1]} : vector<8x1024xf32> to vector<2x32xf32>
    %292 = tpu.concatenate %288, %289, %290, %291 in 1 : vector<2x32xf32>, vector<2x32xf32>, vector<2x32xf32>, vector<2x32xf32> -> vector<2x128xf32>
    %cst_102 = arith.constant dense<0.000000e+00> : vector<2x128xf32>
    %293 = tpu.matmul %292, %71, %cst_102 {dimension_numbers = #tpu.dot_dimension_numbers<[1], [0], [0], [1], [0, 0, 1, 1], [], []>} : vector<2x128xf32>, vector<128x128xf32>, vector<2x128xf32> -> vector<2x128xf32>
    %c0_103 = arith.constant 0 : index
    %c0_104 = arith.constant 0 : index
    %c3072 = arith.constant 3072 : index
    %294 = vector.load %arg12[%c0_103, %c0_104, %c3072] : memref<1x2x4096xf32, #tpu.memory_space<vmem>>, vector<1x2x128xf32>
    %295 = vector.shape_cast %294 : vector<1x2x128xf32> to vector<2x128xf32>
    %296 = vector.shape_cast %293 : vector<2x128xf32> to vector<1x2x128xf32>
    tpu.vector_store %arg12[%c0_103, %c0_104, %c3072], %296 {strides = array<i32>} : memref<1x2x4096xf32, #tpu.memory_space<vmem>>, vector<1x2x128xf32>,
    %297 = vector.extract_strided_slice %70 {offsets = [0, 800], sizes = [2, 32], strides = [1, 1]} : vector<8x1024xf32> to vector<2x32xf32>
    %298 = vector.extract_strided_slice %70 {offsets = [2, 800], sizes = [2, 32], strides = [1, 1]} : vector<8x1024xf32> to vector<2x32xf32>
    %299 = vector.extract_strided_slice %70 {offsets = [4, 800], sizes = [2, 32], strides = [1, 1]} : vector<8x1024xf32> to vector<2x32xf32>
    %300 = vector.extract_strided_slice %70 {offsets = [6, 800], sizes = [2, 32], strides = [1, 1]} : vector<8x1024xf32> to vector<2x32xf32>
    %301 = tpu.concatenate %297, %298, %299, %300 in 1 : vector<2x32xf32>, vector<2x32xf32>, vector<2x32xf32>, vector<2x32xf32> -> vector<2x128xf32>
    %cst_105 = arith.constant dense<0.000000e+00> : vector<2x128xf32>
    %302 = tpu.matmul %301, %71, %cst_105 {dimension_numbers = #tpu.dot_dimension_numbers<[1], [0], [0], [1], [0, 0, 1, 1], [], []>} : vector<2x128xf32>, vector<128x128xf32>, vector<2x128xf32> -> vector<2x128xf32>
    %c0_106 = arith.constant 0 : index
    %c0_107 = arith.constant 0 : index
    %c3200 = arith.constant 3200 : index
    %303 = vector.load %arg12[%c0_106, %c0_107, %c3200] : memref<1x2x4096xf32, #tpu.memory_space<vmem>>, vector<1x2x128xf32>
    %304 = vector.shape_cast %303 : vector<1x2x128xf32> to vector<2x128xf32>
    %305 = vector.shape_cast %302 : vector<2x128xf32> to vector<1x2x128xf32>
    tpu.vector_store %arg12[%c0_106, %c0_107, %c3200], %305 {strides = array<i32>} : memref<1x2x4096xf32, #tpu.memory_space<vmem>>, vector<1x2x128xf32>,
    %306 = vector.extract_strided_slice %70 {offsets = [0, 832], sizes = [2, 32], strides = [1, 1]} : vector<8x1024xf32> to vector<2x32xf32>
    %307 = vector.extract_strided_slice %70 {offsets = [2, 832], sizes = [2, 32], strides = [1, 1]} : vector<8x1024xf32> to vector<2x32xf32>
    %308 = vector.extract_strided_slice %70 {offsets = [4, 832], sizes = [2, 32], strides = [1, 1]} : vector<8x1024xf32> to vector<2x32xf32>
    %309 = vector.extract_strided_slice %70 {offsets = [6, 832], sizes = [2, 32], strides = [1, 1]} : vector<8x1024xf32> to vector<2x32xf32>
    %310 = tpu.concatenate %306, %307, %308, %309 in 1 : vector<2x32xf32>, vector<2x32xf32>, vector<2x32xf32>, vector<2x32xf32> -> vector<2x128xf32>
    %cst_108 = arith.constant dense<0.000000e+00> : vector<2x128xf32>
    %311 = tpu.matmul %310, %71, %cst_108 {dimension_numbers = #tpu.dot_dimension_numbers<[1], [0], [0], [1], [0, 0, 1, 1], [], []>} : vector<2x128xf32>, vector<128x128xf32>, vector<2x128xf32> -> vector<2x128xf32>
    %c0_109 = arith.constant 0 : index
    %c0_110 = arith.constant 0 : index
    %c3328 = arith.constant 3328 : index
    %312 = vector.load %arg12[%c0_109, %c0_110, %c3328] : memref<1x2x4096xf32, #tpu.memory_space<vmem>>, vector<1x2x128xf32>
    %313 = vector.shape_cast %312 : vector<1x2x128xf32> to vector<2x128xf32>
    %314 = vector.shape_cast %311 : vector<2x128xf32> to vector<1x2x128xf32>
    tpu.vector_store %arg12[%c0_109, %c0_110, %c3328], %314 {strides = array<i32>} : memref<1x2x4096xf32, #tpu.memory_space<vmem>>, vector<1x2x128xf32>,
    %315 = vector.extract_strided_slice %70 {offsets = [0, 864], sizes = [2, 32], strides = [1, 1]} : vector<8x1024xf32> to vector<2x32xf32>
    %316 = vector.extract_strided_slice %70 {offsets = [2, 864], sizes = [2, 32], strides = [1, 1]} : vector<8x1024xf32> to vector<2x32xf32>
    %317 = vector.extract_strided_slice %70 {offsets = [4, 864], sizes = [2, 32], strides = [1, 1]} : vector<8x1024xf32> to vector<2x32xf32>
    %318 = vector.extract_strided_slice %70 {offsets = [6, 864], sizes = [2, 32], strides = [1, 1]} : vector<8x1024xf32> to vector<2x32xf32>
    %319 = tpu.concatenate %315, %316, %317, %318 in 1 : vector<2x32xf32>, vector<2x32xf32>, vector<2x32xf32>, vector<2x32xf32> -> vector<2x128xf32>
    %cst_111 = arith.constant dense<0.000000e+00> : vector<2x128xf32>
    %320 = tpu.matmul %319, %71, %cst_111 {dimension_numbers = #tpu.dot_dimension_numbers<[1], [0], [0], [1], [0, 0, 1, 1], [], []>} : vector<2x128xf32>, vector<128x128xf32>, vector<2x128xf32> -> vector<2x128xf32>
    %c0_112 = arith.constant 0 : index
    %c0_113 = arith.constant 0 : index
    %c3456 = arith.constant 3456 : index
    %321 = vector.load %arg12[%c0_112, %c0_113, %c3456] : memref<1x2x4096xf32, #tpu.memory_space<vmem>>, vector<1x2x128xf32>
    %322 = vector.shape_cast %321 : vector<1x2x128xf32> to vector<2x128xf32>
    %323 = vector.shape_cast %320 : vector<2x128xf32> to vector<1x2x128xf32>
    tpu.vector_store %arg12[%c0_112, %c0_113, %c3456], %323 {strides = array<i32>} : memref<1x2x4096xf32, #tpu.memory_space<vmem>>, vector<1x2x128xf32>,
    %324 = vector.extract_strided_slice %70 {offsets = [0, 896], sizes = [2, 32], strides = [1, 1]} : vector<8x1024xf32> to vector<2x32xf32>
    %325 = vector.extract_strided_slice %70 {offsets = [2, 896], sizes = [2, 32], strides = [1, 1]} : vector<8x1024xf32> to vector<2x32xf32>
    %326 = vector.extract_strided_slice %70 {offsets = [4, 896], sizes = [2, 32], strides = [1, 1]} : vector<8x1024xf32> to vector<2x32xf32>
    %327 = vector.extract_strided_slice %70 {offsets = [6, 896], sizes = [2, 32], strides = [1, 1]} : vector<8x1024xf32> to vector<2x32xf32>
    %328 = tpu.concatenate %324, %325, %326, %327 in 1 : vector<2x32xf32>, vector<2x32xf32>, vector<2x32xf32>, vector<2x32xf32> -> vector<2x128xf32>
    %cst_114 = arith.constant dense<0.000000e+00> : vector<2x128xf32>
    %329 = tpu.matmul %328, %71, %cst_114 {dimension_numbers = #tpu.dot_dimension_numbers<[1], [0], [0], [1], [0, 0, 1, 1], [], []>} : vector<2x128xf32>, vector<128x128xf32>, vector<2x128xf32> -> vector<2x128xf32>
    %c0_115 = arith.constant 0 : index
    %c0_116 = arith.constant 0 : index
    %c3584 = arith.constant 3584 : index
    %330 = vector.load %arg12[%c0_115, %c0_116, %c3584] : memref<1x2x4096xf32, #tpu.memory_space<vmem>>, vector<1x2x128xf32>
    %331 = vector.shape_cast %330 : vector<1x2x128xf32> to vector<2x128xf32>
    %332 = vector.shape_cast %329 : vector<2x128xf32> to vector<1x2x128xf32>
    tpu.vector_store %arg12[%c0_115, %c0_116, %c3584], %332 {strides = array<i32>} : memref<1x2x4096xf32, #tpu.memory_space<vmem>>, vector<1x2x128xf32>,
    %333 = vector.extract_strided_slice %70 {offsets = [0, 928], sizes = [2, 32], strides = [1, 1]} : vector<8x1024xf32> to vector<2x32xf32>
    %334 = vector.extract_strided_slice %70 {offsets = [2, 928], sizes = [2, 32], strides = [1, 1]} : vector<8x1024xf32> to vector<2x32xf32>
    %335 = vector.extract_strided_slice %70 {offsets = [4, 928], sizes = [2, 32], strides = [1, 1]} : vector<8x1024xf32> to vector<2x32xf32>
    %336 = vector.extract_strided_slice %70 {offsets = [6, 928], sizes = [2, 32], strides = [1, 1]} : vector<8x1024xf32> to vector<2x32xf32>
    %337 = tpu.concatenate %333, %334, %335, %336 in 1 : vector<2x32xf32>, vector<2x32xf32>, vector<2x32xf32>, vector<2x32xf32> -> vector<2x128xf32>
    %cst_117 = arith.constant dense<0.000000e+00> : vector<2x128xf32>
    %338 = tpu.matmul %337, %71, %cst_117 {dimension_numbers = #tpu.dot_dimension_numbers<[1], [0], [0], [1], [0, 0, 1, 1], [], []>} : vector<2x128xf32>, vector<128x128xf32>, vector<2x128xf32> -> vector<2x128xf32>
    %c0_118 = arith.constant 0 : index
    %c0_119 = arith.constant 0 : index
    %c3712 = arith.constant 3712 : index
    %339 = vector.load %arg12[%c0_118, %c0_119, %c3712] : memref<1x2x4096xf32, #tpu.memory_space<vmem>>, vector<1x2x128xf32>
    %340 = vector.shape_cast %339 : vector<1x2x128xf32> to vector<2x128xf32>
    %341 = vector.shape_cast %338 : vector<2x128xf32> to vector<1x2x128xf32>
    tpu.vector_store %arg12[%c0_118, %c0_119, %c3712], %341 {strides = array<i32>} : memref<1x2x4096xf32, #tpu.memory_space<vmem>>, vector<1x2x128xf32>,
    %342 = vector.extract_strided_slice %70 {offsets = [0, 960], sizes = [2, 32], strides = [1, 1]} : vector<8x1024xf32> to vector<2x32xf32>
    %343 = vector.extract_strided_slice %70 {offsets = [2, 960], sizes = [2, 32], strides = [1, 1]} : vector<8x1024xf32> to vector<2x32xf32>
    %344 = vector.extract_strided_slice %70 {offsets = [4, 960], sizes = [2, 32], strides = [1, 1]} : vector<8x1024xf32> to vector<2x32xf32>
    %345 = vector.extract_strided_slice %70 {offsets = [6, 960], sizes = [2, 32], strides = [1, 1]} : vector<8x1024xf32> to vector<2x32xf32>
    %346 = tpu.concatenate %342, %343, %344, %345 in 1 : vector<2x32xf32>, vector<2x32xf32>, vector<2x32xf32>, vector<2x32xf32> -> vector<2x128xf32>
    %cst_120 = arith.constant dense<0.000000e+00> : vector<2x128xf32>
    %347 = tpu.matmul %346, %71, %cst_120 {dimension_numbers = #tpu.dot_dimension_numbers<[1], [0], [0], [1], [0, 0, 1, 1], [], []>} : vector<2x128xf32>, vector<128x128xf32>, vector<2x128xf32> -> vector<2x128xf32>
    %c0_121 = arith.constant 0 : index
    %c0_122 = arith.constant 0 : index
    %c3840 = arith.constant 3840 : index
    %348 = vector.load %arg12[%c0_121, %c0_122, %c3840] : memref<1x2x4096xf32, #tpu.memory_space<vmem>>, vector<1x2x128xf32>
    %349 = vector.shape_cast %348 : vector<1x2x128xf32> to vector<2x128xf32>
    %350 = vector.shape_cast %347 : vector<2x128xf32> to vector<1x2x128xf32>
    tpu.vector_store %arg12[%c0_121, %c0_122, %c3840], %350 {strides = array<i32>} : memref<1x2x4096xf32, #tpu.memory_space<vmem>>, vector<1x2x128xf32>,
    %351 = vector.extract_strided_slice %70 {offsets = [0, 992], sizes = [2, 32], strides = [1, 1]} : vector<8x1024xf32> to vector<2x32xf32>
    %352 = vector.extract_strided_slice %70 {offsets = [2, 992], sizes = [2, 32], strides = [1, 1]} : vector<8x1024xf32> to vector<2x32xf32>
    %353 = vector.extract_strided_slice %70 {offsets = [4, 992], sizes = [2, 32], strides = [1, 1]} : vector<8x1024xf32> to vector<2x32xf32>
    %354 = vector.extract_strided_slice %70 {offsets = [6, 992], sizes = [2, 32], strides = [1, 1]} : vector<8x1024xf32> to vector<2x32xf32>
    %355 = tpu.concatenate %351, %352, %353, %354 in 1 : vector<2x32xf32>, vector<2x32xf32>, vector<2x32xf32>, vector<2x32xf32> -> vector<2x128xf32>
    %cst_123 = arith.constant dense<0.000000e+00> : vector<2x128xf32>
    %356 = tpu.matmul %355, %71, %cst_123 {dimension_numbers = #tpu.dot_dimension_numbers<[1], [0], [0], [1], [0, 0, 1, 1], [], []>} : vector<2x128xf32>, vector<128x128xf32>, vector<2x128xf32> -> vector<2x128xf32>
    %c0_124 = arith.constant 0 : index
    %c0_125 = arith.constant 0 : index
    %c3968 = arith.constant 3968 : index
    %357 = vector.load %arg12[%c0_124, %c0_125, %c3968] : memref<1x2x4096xf32, #tpu.memory_space<vmem>>, vector<1x2x128xf32>
    %358 = vector.shape_cast %357 : vector<1x2x128xf32> to vector<2x128xf32>
    %359 = vector.shape_cast %356 : vector<2x128xf32> to vector<1x2x128xf32>
    tpu.vector_store %arg12[%c0_124, %c0_125, %c3968], %359 {strides = array<i32>} : memref<1x2x4096xf32, #tpu.memory_space<vmem>>, vector<1x2x128xf32>,
    return
  }
  func.func @transform_0(%arg0: i32, %arg1: i32) -> (i32, i32, i32) {
    %c0_i32 = arith.constant 0 : i32
    %c0_i32_0 = arith.constant 0 : i32
    %c0_i32_1 = arith.constant 0 : i32
    return %arg0, %c0_i32, %c0_i32_0 : i32, i32, i32
  }
  func.func @transform_1(%arg0: i32, %arg1: i32) -> (i32, i32) {
    %c0_i32 = arith.constant 0 : i32
    %c0_i32_0 = arith.constant 0 : i32
    %c0_i32_1 = arith.constant 0 : i32
    return %c0_i32, %c0_i32_0 : i32, i32
  }
  func.func @transform_2(%arg0: i32, %arg1: i32) -> (i32, i32) {
    %c0_i32 = arith.constant 0 : i32
    %c0_i32_0 = arith.constant 0 : i32
    %c0_i32_1 = arith.constant 0 : i32
    return %c0_i32, %c0_i32_0 : i32, i32
  }
  func.func @transform_3(%arg0: i32, %arg1: i32) -> (i32, i32) {
    %c0_i32 = arith.constant 0 : i32
    %c0_i32_0 = arith.constant 0 : i32
    %c0_i32_1 = arith.constant 0 : i32
    return %c0_i32, %c0_i32_0 : i32, i32
  }
  func.func @transform_4(%arg0: i32, %arg1: i32) -> (i32, i32) {
    %c0_i32 = arith.constant 0 : i32
    %c0_i32_0 = arith.constant 0 : i32
    %c0_i32_1 = arith.constant 0 : i32
    return %c0_i32, %c0_i32_0 : i32, i32
  }
  func.func @transform_5(%arg0: i32, %arg1: i32) -> (i32, i32) {
    %c0_i32 = arith.constant 0 : i32
    %c0_i32_0 = arith.constant 0 : i32
    %c0_i32_1 = arith.constant 0 : i32
    return %c0_i32, %c0_i32_0 : i32, i32
  }
  func.func @transform_6(%arg0: i32, %arg1: i32) -> (i32, i32) {
    %c0_i32 = arith.constant 0 : i32
    %c0_i32_0 = arith.constant 0 : i32
    %c0_i32_1 = arith.constant 0 : i32
    return %c0_i32, %c0_i32_0 : i32, i32
  }
  func.func @transform_7(%arg0: i32, %arg1: i32) -> (i32, i32) {
    %c0_i32 = arith.constant 0 : i32
    %c0_i32_0 = arith.constant 0 : i32
    %c0_i32_1 = arith.constant 0 : i32
    return %c0_i32, %c0_i32_0 : i32, i32
  }
  func.func @transform_8(%arg0: i32, %arg1: i32) -> (i32, i32) {
    %c0_i32 = arith.constant 0 : i32
    %c0_i32_0 = arith.constant 0 : i32
    %c0_i32_1 = arith.constant 0 : i32
    return %c0_i32, %c0_i32_0 : i32, i32
  }
  func.func @transform_9(%arg0: i32, %arg1: i32) -> (i32, i32) {
    %c0_i32 = arith.constant 0 : i32
    %c0_i32_0 = arith.constant 0 : i32
    %c0_i32_1 = arith.constant 0 : i32
    return %c0_i32, %c0_i32_0 : i32, i32
  }
  func.func @transform_10(%arg0: i32, %arg1: i32) -> (i32, i32, i32) {
    %c0_i32 = arith.constant 0 : i32
    %c0_i32_0 = arith.constant 0 : i32
    return %arg0, %c0_i32, %arg1 : i32, i32, i32
  }
}

</mosaic_0001>

<bundles_post_ra>
// kernel: tile.8
= control target key start
LH: loop header
LB: loop body
LE: loop exit
PB: predicated region body
PF: predicated region fallthrough
CT: control target
= control target key end

     0   :  { %s22_s0 = inlined_call_operand.vmem [shape: f32[2], index: 0, kind: input, shape index: {}]   ;;  %s23_s1 = inlined_call_operand.vmem [shape: f32[4,2], index: 1, kind: output, shape index: {}]  }
   0x1   :  { %v4_v0 = vld [vmem:[%s22_s0] ss:$0 sm:$0xff] }
   0x2   :  { %5 = vst [vmem:[%s23_s1] sm:$0xf] %v4_v0 }

// kernel: tile.0
= control target key start
LH: loop header
LB: loop body
LE: loop exit
PB: predicated region body
PF: predicated region fallthrough
CT: control target
= control target key end

     0   :  { %vm8_vm0 = vcmask 7168   ;;  %s38_s0 = inlined_call_operand.vmem [shape: f32[4,2], index: 0, kind: input, shape index: {}]   ;;  %s39_s1 = inlined_call_operand.vmem [shape: f32[8,1], index: 1, kind: output, shape index: {}]  }
   0x1   :  { %v5_v0 = vld [vmem:[%s38_s0] sm:$0xf]  ;;  %s18_s0 = smov 127  }
   0x2   :  { %6 = vst [vmem:[#allocation0] sm:$0xf] %v5_v0 }
   0x9   :  { %v10_v1 = vld [vmem:[#allocation0] sm:$0xf]  }
   0xa   :  { %v7_v2 = vld [vmem:[#allocation0] sm:$0xf]   ;;  %11 = vrot.lane.b32.xlu0 %v10_v1, %s18_s0 }
   0xb   :  { %9 = vst.msk [vmem:[%s39_s1] ss:$2 sm:$0xf] %vm8_vm0, %v7_v2  }
  0x7c   :  { %v12_v3 = vpop.permute.xlu0 %11  }
  0x7d   :  { %16 = vst.msk [vmem:[%s39_s1 + $0x1] ss:$2 sm:$0xf] %vm8_vm0, %v12_v3  }

// kernel: vocal_separator_forward.1
= control target key start
LH: loop header
LB: loop body
LE: loop exit
PB: predicated region body
PF: predicated region fallthrough
CT: control target
= control target key end

     0   :  { %15 = vsyncpa [#allocation3], 0  ;;  %s13898_s0 = inlined_call_operand.vmem [shape: f32[2,4,4104], index: 0, kind: input, shape index: {}]   ;;  %s13899_s1 = inlined_call_operand.vmem [shape: f32[32,7], index: 1, kind: input, shape index: {}]   ;;  %s13900_s2 = inlined_call_operand.vmem [shape: f32[32,1], index: 2, kind: input, shape index: {}]   ;;  %s13901_s3 = inlined_call_operand.vmem [shape: f32[32,80], index: 3, kind: input, shape index: {}]   ;;  %s13902_s4 = inlined_call_operand.vmem [shape: f32[32,1], index: 4, kind: input, shape index: {}]   ;;  %s13903_s5 = inlined_call_operand.vmem [shape: f32[32,96], index: 5, kind: input, shape index: {}]   ;;  %s13904_s6 = inlined_call_operand.vmem [shape: f32[32,1], index: 6, kind: input, shape index: {}]   ;;  %s13905_s7 = inlined_call_operand.vmem [shape: f32[8,64], index: 7, kind: input, shape index: {}]   ;;  %s13906_s8 = inlined_call_operand.vmem [shape: f32[8,1], index: 8, kind: input, shape index: {}]   ;;  %s13907_s9 = inlined_call_operand.vmem [shape: f32[128,128], index: 9, kind: input, shape index: {}]   ;;  %s13908_s10 = inlined_call_operand.hbm [shape: f32[2,2,16384], index: 10, kind: output, shape index: {}]  }
   0x1   :  { %17 = vsyncpa [#allocation3 + $0x1], 0  ;;  %s9364_s13 = smov 0   ;;  %s9366_s14 = smov 0  }
   0x2   :  { %s9368_s15 = smov 0   ;;  %s9370_s16 = smov 0  }
   0x3   :  { %s9372_s17 = smov 0   ;;  %s9374_s18 = smov 0  }
   0x4   :  { %s9376_s19 = smov 0   ;;  %s9378_s20 = smov 0  }
   0x5 LB: > { %13989 = sst [smem:[#allocation5_spill]] %s9287_s18  ;;  %s6992_s21 = sadd.s32 4294967295, %s9295_s20   ;;  %s9295_s20 = sphi %s9378_s20, %s23_s20   ;;  %s9291_s19 = sphi %s9376_s19, %s14116_s19   ;;  %s9287_s18 = sphi %s9374_s18, %s14110_s18   ;;  %s9283_s17 = sphi %s9372_s17, %s14115_s17   ;;  %s9279_s16 = sphi %s9370_s16, %s14109_s16   ;;  %s9275_s15 = sphi %s9368_s15, %s14114_s15   ;;  %s9271_s14 = sphi %s9366_s14, %s14113_s14   ;;  %s9267_s13 = sphi %s9364_s13, %s14112_s13  }
   0x6   : > { %s6993_s22 = sadd.s32 4294967294, %s9295_s20   ;;  %s32_s23 = sadd.s32 1, %s9287_s18 }
   0x7   : > { %p33_p0 = scmp.ge.s32.totalorder %s32_s23, 4  ;;  %s35_s24 = sadd.s32 1, %s9291_s19 }
   0x8   : > { %p269_p1 = scmp.ne.s32.totalorder %s9275_s15, %s9271_s14  ;;  %p270_p2 = scmp.eq.s32.totalorder %s6992_s21, 7 }
   0x9   : > { %s14118_s23 = smov (%p33_p0, %s32_s23), 0  ;;  %s14120_s24 = smov (!%p33_p0, %s35_s24), %s9291_s19 }
   0xa   : > { %13990 = sst [smem:[#allocation6_spill]] %s14118_s23  ;;  %s255_s25 = ssub.s32 %s9287_s18, %s14118_s23 }
   0xb   : > { %p9415_p3 = por %p270_p2, %p269_p1  ;;  %p37_p4 = scmp.ge.s32.totalorder %s14120_s24, 2 }
   0xc   : > { %p275_p5 = scmp.ne.s32.totalorder %s9271_s14, %s9267_s13  ;;  %p276_p6 = scmp.eq.s32.totalorder %s6993_s22, 7 }
   0xd   : > { %p6996_p7 = scmp.ge.s32.totalorder %s9295_s20, 1  ;;  %s14122_s24 = smov (%p37_p4, %s14120_s24), 0 }
   0xe   : > { %13992 = sst [smem:[#allocation7_spill]] %s14122_s24  ;;  %p9424_p8 = por %p276_p6, %p275_p5 }
   0xf   : > { %p329_p9 = scmp.lt.s32.totalorder %s9295_s20, 9  ;;  %s254_s28 = ssub.s32 %s9291_s19, %s14122_s24 }
  0x10   : > { %s259_s29 = sadd.s32 1, %s9275_s15  ;;  %s256_s30 = sor.u32 %s255_s25, %s254_s28 }
  0x11   : > { %p330_p10 = pnand %p6996_p7, %p329_p9  ;;  %p257_p11 = scmp.eq.s32.totalorder %s256_s30, 0 }
  0x13   : > { %s9433_s11 = scalar_select %p257_p11, %s9275_s15, %s259_s29  }
  0x14   : > { %333 = sbr.rel (%p330_p10) target bundleno = 3223 (0xc97), region = 60 }
  0x19   : > { %p367_p12 = scmp.lt.s32.totalorder %s9283_s17, 1  ;;  %s6999_s12 = sshll.u32 %s9279_s16, 10  ;;  %v384_v0 = vlaneseq  ;;  %v13928_v36 = vmov 0.0   ;;  %v600_v51 = vld [vmem:[%s13900_s2 + $0x8] sm:$0xff]  ;;  %v599_v52 = vld [vmem:[%s13900_s2] sm:$0xff]  ;;  %v9300_v53 = vmov 0  }
  0x1a   : > { %s374_s21 = sshra.s32 %s6999_s12, 7  ;;  %s7001_s22 = sadd.s32 4294967293, %s6999_s12  ;;  %728 = vmatprep.mubr.f32.mxu0 %v13928_v36  ;;  %823 = vmatprep.mubr.f32.mxu1 %v13928_v36  ;;  %v601_v54 = vld [vmem:[%s13900_s2 + $0x10] sm:$0xff]  ;;  %v602_v55 = vld [vmem:[%s13900_s2 + $0x18] sm:$0xff]  ;;  %vm485_vm0 = vcmask 1039360   ;;  %vm557_vm1 = vcmask 1031168  }
  0x1b   : > { %s368_s23 = scalar_select %p367_p12, %s9283_s17, 1  ;;  %v385_v1 = vand.u32 127, %v384_v0  ;;  %v394_v2 = vstv %s7001_s22  ;;  %v504_v24 = vshrl.u32 %v384_v0, 7  ;;  %8965 = vset.pattern.permute.xlu0 %v9300_v53  ;;  %8966 = vset.pattern.permute.xlu1 %v9300_v53  ;;  %vm575_vm2 = vcmask 1041408  }
  0x1c   : > { %s7000_s24 = sshll.u32 %s374_s21, 2  ;;  %vm585_vm3 = vcmask 1045504   ;;  %vm636_vm4 = vcmask 1046528   ;;  %vm623_vm5 = vcmask 56320   ;;  %s9301_s30 = smov 1  }
  0x1d   : > { %s8882_s18 = smul.u32 132, %s368_s23  ;;  %v386_v3 = vadd.s32 128, %v385_v1  ;;  %v387_v4 = vadd.s32 256, %v385_v1  ;;  %v388_v5 = vadd.s32 384, %v385_v1  ;;  %v389_v6 = vadd.s32 512, %v385_v1  ;;  %s9302_s21 = smov 2  }
  0x1e   : > { %v390_v7 = vadd.s32 640, %v385_v1  ;;  %v391_v8 = vadd.s32 768, %v385_v1  ;;  %v392_v9 = vadd.s32 896, %v385_v1  ;;  %v393_v10 = vadd.s32 1024, %v385_v1  ;;  %s9303_s22 = smov 125   ;;  %s364_s12 = sand.u32 1, %s9271_s14  }
  0x1f   : > { %s371_s29 = scalar_lea.vmem %s13898_s0, %s8882_s18  ;;  %v9441_v11 = vadd.s32 %v394_v2, %v385_v1  ;;  %v9443_v12 = vadd.s32 %v394_v2, %v386_v3  ;;  %v9445_v13 = vadd.s32 %v394_v2, %v387_v4  ;;  %v9447_v14 = vadd.s32 %v394_v2, %v388_v5  ;;  %s9297_s18 = smov 127  }
  0x20   : > { %s9449_s23 = scalar_lea.vmem %s371_s29, %s7000_s24  ;;  %v9451_v15 = vadd.s32 %v394_v2, %v389_v6  ;;  %v9453_v16 = vadd.s32 %v394_v2, %v390_v7  ;;  %v9455_v17 = vadd.s32 %v394_v2, %v391_v8  ;;  %v9457_v18 = vadd.s32 %v394_v2, %v392_v9  ;;  %s9298_s24 = smov 126   ;;  %v9555_v8 = vld [vmem:[%s13899_s1] sm:$0xff] }
  0x21   : > { %v9460_v19 = vld [vmem:[%s9449_s23 + $0x8] sm:$0xff]  ;;  %v9463_v20 = vld [vmem:[%s9449_s23] sm:$0xff]  ;;  %v9465_v21 = vadd.s32 %v394_v2, %v393_v10  ;;  %v505_v25 = vsub.s32 0, %v504_v24  ;;  %v509_v26 = vsub.s32 4, %v504_v24  ;;  %v9486_v33 = vld [vmem:[%s9449_s23 + $0x10] sm:$0xff]  ;;  %vm406_vm6 = vcmp.ge.s32.totalorder %v9445_v13, 0 }
  0x22   : > { %v460_v22 = vrot.slane %v9460_v19, 6  ;;  %v458_v23 = vrot.slane %v9463_v20, 6  ;;  %v9473_v27 = vcombine.high %v9463_v20, %v9463_v20  ;;  %v9483_v32 = vcombine.high %v9460_v19, %v9460_v19  ;;  %v9503_v40 = vld [vmem:[%s9449_s23 + $0x18] sm:$0xff]  ;;  %v9518_v46 = vld [vmem:[%s9449_s23 + $0x20] sm:$0xf]  ;;  %s9306_s23 = smov 32  }
  0x23   : > { %v510_v28 = vrot.slane %v9463_v20, %v509_v26  ;;  %v506_v30 = vrot.slane %v9463_v20, %v505_v25  ;;  %v514_v31 = vrot.slane %v9460_v19, %v505_v25  ;;  %v462_v34 = vrot.slane %v9486_v33, 6  ;;  %s6997_s25 = sshll.u32 %s364_s12, 6 }
  0x24   : > { %471 = vrot.lane.b32.xlu0 %v460_v22, %s9297_s18  ;;  %467 = vrot.lane.b32.xlu1 %v458_v23, %s9297_s18  ;;  %v459_v29 = vrot.slane %v9473_v27, 6  ;;  %v461_v35 = vrot.slane %v9483_v32, 6  ;;  %v522_v37 = vrot.slane %v9486_v33, %v505_v25  ;;  %v518_v38 = vrot.slane %v9460_v19, %v509_v26 }
  0x25   : > { %v9500_v39 = vcombine.high %v9486_v33, %v9486_v33  ;;  %v464_v41 = vrot.slane %v9503_v40, 6  ;;  %v530_v43 = vrot.slane %v9503_v40, %v505_v25  ;;  %v526_v44 = vrot.slane %v9486_v33, %v509_v26 }
  0x26   : > { %v9515_v45 = vcombine.high %v9503_v40, %v9503_v40  ;;  %v466_v47 = vrot.slane %v9518_v46, 6  ;;  %v538_v49 = vrot.slane %v9518_v46, %v505_v25  ;;  %v534_v50 = vrot.slane %v9503_v40, %v509_v26  ;;  %v9569_v25 = vld [vmem:[%s13899_s1 + $0x8] sm:$0xff] }
  0x27   : > { %v463_v42 = vrot.slane %v9500_v39, 6  ;;  %v441_v60 = vrot.slane %v9473_v27, 2  ;;  %v440_v61 = vrot.slane %v9463_v20, 2  ;;  %v443_v20 = vrot.slane %v9483_v32, 2 }
  0x28   : > { %541 = vrot.lane.b32.xlu1 %v510_v28, %s9298_s24  ;;  %469 = vrot.lane.b32.xlu0 %v459_v29, %s9297_s18  ;;  %v465_v48 = vrot.slane %v9515_v45, 6  ;;  %v442_v22 = vrot.slane %v9460_v19, 2  ;;  %v446_v53 = vrot.slane %v9503_v40, 2  ;;  %vm415_vm7 = vcmp.lt.s32.totalorder %v9445_v13, 4096 }
  0x29   : > { %vm407_vm8 = vcmp.ge.s32.totalorder %v9447_v14, 0  ;;  %vm416_vm9 = vcmp.lt.s32.totalorder %v9447_v14, 4096  ;;  %vm404_vm10 = vcmp.ge.s32.totalorder %v9441_v11, 0  ;;  %vm9681_vm11 = vmand %vm406_vm6, %vm415_vm7  ;;  %vm413_vm12 = vcmp.lt.s32.totalorder %v9441_v11, 4096 }
  0x2a   : > { %vm9691_vm13 = vmand %vm407_vm8, %vm416_vm9  ;;  %v14000_v11 = vmov 0  ;;  %vm405_vm15 = vcmp.ge.s32.totalorder %v9443_v12, 0  ;;  %vm408_vm7 = vcmp.ge.s32.totalorder %v9451_v15, 0  ;;  %vm417_vm8 = vcmp.lt.s32.totalorder %v9451_v15, 4096 }
  0x2b   : > { %vm9700_vm14 = vmand %vm404_vm10, %vm413_vm12  ;;  %vm409_vm10 = vcmp.ge.s32.totalorder %v9453_v16, 0  ;;  %vm418_vm12 = vcmp.lt.s32.totalorder %v9453_v16, 4096 }
  0x2c   : > { %539 = vrot.lane.b32.xlu1 %v506_v30, %s9298_s24  ;;  %543 = vrot.lane.b32.xlu0 %v514_v31, %s9298_s24  ;;  %v14001_v11 = vsel %vm9700_vm14, 4294967295, %v14000_v11  ;;  %vm9869_vm9 = vmand %vm408_vm7, %vm417_vm8  ;;  %vm411_vm7 = vcmp.ge.s32.totalorder %v9457_v18, 0  ;;  %vm420_vm8 = vcmp.lt.s32.totalorder %v9457_v18, 4096 }
  0x2d   : > { %14002 = vst [vmem:[#allocation10_spill] sm:$0xff] %v14001_v11 }
  0x30   : > { %475 = vrot.lane.b32.xlu1 %v462_v34, %s9297_s18  ;;  %473 = vrot.lane.b32.xlu0 %v461_v35, %s9297_s18  ;;  %v9583_v34 = vld [vmem:[%s13899_s1 + $0x10] sm:$0xff]  ;;  %v445_v35 = vrot.slane %v9500_v39, 2  ;;  %v598_v39 = vld [vmem:[%s13899_s1 + $0x18] sm:$0xff] }
  0x34   : > { %547 = vrot.lane.b32.xlu1 %v522_v37, %s9298_s24  ;;  %545 = vrot.lane.b32.xlu0 %v518_v38, %s9298_s24 }
  0x38   : > { %479 = vrot.lane.b32.xlu1 %v464_v41, %s9297_s18  ;;  %477 = vrot.lane.b32.xlu0 %v463_v42, %s9297_s18 }
  0x3c   : > { %551 = vrot.lane.b32.xlu1 %v530_v43, %s9298_s24  ;;  %549 = vrot.lane.b32.xlu0 %v526_v44, %s9298_s24  ;;  %v444_v43 = vrot.slane %v9486_v33, 2  ;;  %v447_v33 = vrot.slane %v9515_v45, 2 }
  0x40   : > { %483 = vrot.lane.b32.xlu1 %v466_v47, %s9297_s18  ;;  %481 = vrot.lane.b32.xlu0 %v465_v48, %s9297_s18 }
  0x44   : > { %555 = vrot.lane.b32.xlu1 %v538_v49, %s9298_s24  ;;  %553 = vrot.lane.b32.xlu0 %v534_v50, %s9298_s24 }
  0x48   : > { %610 = vperm.xlu0 %8965, %v600_v51   ;;  %605 = vperm.xlu1 %8966, %v599_v52   ;;  %v448_v51 = vrot.slane %v9518_v46, 2 }
  0x4c   : > { %615 = vperm.xlu0 %8965, %v601_v54   ;;  %620 = vperm.xlu1 %8966, %v602_v55  }
  0x96   : > { %v472_v56 = vpop.permute.xlu0 %471  ;;  %v468_v57 = vpop.permute.xlu1 %467 }
  0x9a   : > { %v542_v58 = vpop.permute.xlu1 %541  ;;  %v470_v59 = vpop.permute.xlu0 %469 }
  0x9b   : > { %v486_v62 = vsel %vm485_vm0, %v468_v57, %v470_v59  ;;  %v487_v63 = vsel %vm485_vm0, %v470_v59, %v472_v56 }
  0x9c   : > { %v577_v4 = vsel %vm575_vm2, %v441_v60, %v487_v63  ;;  %v576_v5 = vsel %vm575_vm2, %v440_v61, %v486_v62 }
  0x9e   : > { %v540_v0 = vpop.permute.xlu1 %539  ;;  %v544_v1 = vpop.permute.xlu0 %543 }
  0x9f   : > { %v558_v2 = vsel %vm557_vm1, %v540_v0, %v542_v58  ;;  %v559_v3 = vsel %vm557_vm1, %v542_v58, %v544_v1 }
  0xa0   : > { %v587_v6 = vsel %vm585_vm3, %v577_v4, %v559_v3  ;;  %v586_v7 = vsel %vm585_vm3, %v576_v5, %v558_v2 }
  0xa1   : > { %7002 = vmatprep.subr.msk.mxu0 %vm636_vm4, %v587_v6 }
  0xa2   : > { %v476_v9 = vpop.permute.xlu1 %475  ;;  %v474_v10 = vpop.permute.xlu0 %473  ;;  %7003 = vmatpush1.msk.msra.mxu0 %vm636_vm4, %v586_v7 }
  0xa3   : > { %7004 = vmatmul.mubr.msk.f32.vlgmr.msra.gmra.mxu0 %vm623_vm5, %v9555_v8  ;;  %v488_v23 = vsel %vm485_vm0, %v472_v56, %v474_v10  ;;  %v489_v24 = vsel %vm485_vm0, %v474_v10, %v476_v9 }
  0xa4   : > { %734 = vmatprep.mubr.f32.mxu0 %v13928_v36  ;;  %v579_v19 = vsel %vm575_vm2, %v443_v20, %v489_v24  ;;  %v578_v30 = vsel %vm575_vm2, %v442_v22, %v488_v23  ;;  %v13997_v23 = vmov 0 }
  0xa5   : > { %v13998_v23 = vsel %vm9691_vm13, 4294967295, %v13997_v23 }
  0xa6   : > { %v548_v26 = vpop.permute.xlu1 %547  ;;  %v546_v27 = vpop.permute.xlu0 %545  ;;  %13999 = vst [vmem:[#allocation9_spill] sm:$0xff] %v13998_v23 }
  0xa7   : > { %v560_v28 = vsel %vm557_vm1, %v544_v1, %v546_v27  ;;  %v561_v29 = vsel %vm557_vm1, %v546_v27, %v548_v26  ;;  %7005 = vmatmul.mubr.msk.f32.gmra.mxu0 %vm623_vm5, %v9569_v25 }
  0xa8   : > { %v589_v31 = vsel %vm585_vm3, %v579_v19, %v561_v29  ;;  %v588_v32 = vsel %vm585_vm3, %v578_v30, %v560_v28  ;;  %740 = vmatprep.mubr.f32.mxu0 %v13928_v36 }
  0xa9   : > { %7008 = vmatprep.subr.msk.mxu0 %vm636_vm4, %v589_v31  ;;  %8880 = vmatprep.subr.msk.mxu1 %vm636_vm4, %v589_v31 }
  0xaa   : > { %v480_v37 = vpop.permute.xlu1 %479  ;;  %8881 = vmatpush1.msk.msra.mxu1 %vm636_vm4, %v588_v32  ;;  %v478_v38 = vpop.permute.xlu0 %477  ;;  %7009 = vmatpush1.msk.msra.mxu0 %vm636_vm4, %v588_v32 }
  0xab   : > { %v491_v41 = vsel %vm485_vm0, %v478_v38, %v480_v37  ;;  %7006 = vmatmul.mubr.msk.f32.gmra.mxu0 %vm623_vm5, %v9583_v34  ;;  %7011 = vmatmul.mubr.msk.f32.vlgmr.msra.gmra.mxu1 %vm623_vm5, %v9569_v25  ;;  %v490_v48 = vsel %vm485_vm0, %v476_v9, %v478_v38  ;;  %v13994_v9 = vmov 0 }
  0xac   : > { %829 = vmatprep.mubr.f32.mxu1 %v13928_v36  ;;  %746 = vmatprep.mubr.f32.mxu0 %v13928_v36  ;;  %v581_v42 = vsel %vm575_vm2, %v445_v35, %v491_v41  ;;  %v580_v54 = vsel %vm575_vm2, %v444_v43, %v490_v48  ;;  %v13995_v9 = vsel %vm9681_vm11, 4294967295, %v13994_v9 }
  0xad   : > { %13996 = vst [vmem:[#allocation8_spill] sm:$0xff] %v13995_v9 }
  0xae   : > { %v552_v44 = vpop.permute.xlu1 %551  ;;  %v550_v47 = vpop.permute.xlu0 %549 }
  0xaf   : > { %v563_v49 = vsel %vm557_vm1, %v550_v47, %v552_v44  ;;  %7007 = vmatmul.mubr.msk.f32.gmra.mxu0 %vm623_vm5, %v598_v39  ;;  %7012 = vmatmul.mubr.msk.f32.gmra.mxu1 %vm623_vm5, %v9583_v34  ;;  %v562_v50 = vsel %vm557_vm1, %v548_v26, %v550_v47 }
  0xb0   : > { %817 = vmatprep.mubr.f32.mxu0 %v13928_v36  ;;  %v591_v52 = vsel %vm585_vm3, %v581_v42, %v563_v49  ;;  %835 = vmatprep.mubr.f32.mxu1 %v13928_v36  ;;  %v590_v58 = vsel %vm585_vm3, %v580_v54, %v562_v50  ;;  %v14003_v49 = vmov 0 }
  0xb1   : > { %7014 = vmatprep.subr.msk.mxu0 %vm636_vm4, %v591_v52 }
  0xb2   : > { %v484_v55 = vpop.permute.xlu1 %483  ;;  %v482_v56 = vpop.permute.xlu0 %481 }
  0xb3   : > { %v492_v57 = vsel %vm485_vm0, %v480_v37, %v482_v56  ;;  %v493_v46 = vsel %vm485_vm0, %v482_v56, %v484_v55  ;;  %7010 = vmatmul.mubr.msk.f32.vlgmr.msra.gmra.mxu0 %vm623_vm5, %v9555_v8  ;;  %7013 = vmatmul.mubr.msk.f32.gmra.mxu1 %vm623_vm5, %v598_v39  ;;  %v584_v45 = vsel %vm575_vm2, %v448_v51, %v484_v55 }
  0xb4   : > { %7015 = vmatpush1.msk.msra.mxu0 %vm636_vm4, %v590_v58  ;;  %906 = vmatprep.mubr.f32.mxu0 %v13928_v36  ;;  %v582_v40 = vsel %vm575_vm2, %v446_v53, %v492_v57  ;;  %v583_v59 = vsel %vm575_vm2, %v447_v33, %v493_v46  ;;  %vm414_vm2 = vcmp.lt.s32.totalorder %v9443_v12, 4096 }
  0xb5   : > { %995 = vmatprep.mubr.f32.mxu1 %v13928_v36 }
  0xb6   : > { %v556_v60 = vpop.permute.xlu1 %555  ;;  %v554_v61 = vpop.permute.xlu0 %553 }
  0xb7   : > { %v564_v62 = vsel %vm557_vm1, %v552_v44, %v554_v61  ;;  %v565_v63 = vsel %vm557_vm1, %v554_v61, %v556_v60  ;;  %7016 = vmatmul.mubr.msk.f32.vlgmr.msra.gmra.mxu0 %vm623_vm5, %v9555_v8  ;;  %v594_v0 = vsel %vm585_vm3, %v584_v45, %v556_v60 }
  0xb8   : > { %v593_v1 = vsel %vm585_vm3, %v583_v59, %v565_v63  ;;  %912 = vmatprep.mubr.f32.mxu0 %v13928_v36  ;;  %v592_v2 = vsel %vm585_vm3, %v582_v40, %v564_v62  ;;  %7696 = vmatprep.subr.msk.mxu0 %vm636_vm4, %v594_v0  ;;  %vm9748_vm3 = vmand %vm405_vm15, %vm414_vm2  ;;  %vm412_vm2 = vcmp.ge.s32.totalorder %v9465_v21, 0 }
  0xb9   : > { %7020 = vmatprep.subr.msk.mxu1 %vm636_vm4, %v593_v1  ;;  %7697 = vmatpush3.msk.msra.mxu0 %vm636_vm4, %v594_v0  ;;  %v14004_v49 = vsel %vm9748_vm3, 4294967295, %v14003_v49  ;;  %vm9932_vm15 = vmand %vm409_vm10, %vm418_vm12  ;;  %vm1469_vm12 = vcmask 654336  }
  0xba   : > { %7021 = vmatpush1.msk.msra.mxu1 %vm636_vm4, %v592_v2  ;;  %14005 = vst [vmem:[#allocation11_spill] sm:$0xff] %v14004_v49  ;;  %vm410_vm4 = vcmp.ge.s32.totalorder %v9455_v17, 0  ;;  %vm10020_vm10 = vmand %vm411_vm7, %vm420_vm8 }
  0xbb   : > { %7017 = vmatmul.mubr.msk.f32.gmra.mxu0 %vm623_vm5, %v9569_v25  ;;  %7022 = vmatmul.mubr.msk.f32.vlgmr.msra.gmra.mxu1 %vm623_vm5, %v9555_v8 }
  0xbc   : > { %918 = vmatprep.mubr.f32.mxu0 %v13928_v36  ;;  %1001 = vmatprep.mubr.f32.mxu1 %v13928_v36 }
  0xbf   : > { %7018 = vmatmul.mubr.msk.f32.gmra.mxu0 %vm623_vm5, %v9583_v34  ;;  %7023 = vmatmul.mubr.msk.f32.gmra.mxu1 %vm623_vm5, %v9569_v25 }
  0xc0   : > { %924 = vmatprep.mubr.f32.mxu0 %v13928_v36  ;;  %1007 = vmatprep.mubr.f32.mxu1 %v13928_v36 }
  0xc3   : > { %7019 = vmatmul.mubr.msk.f32.gmra.mxu0 %vm623_vm5, %v598_v39  ;;  %7024 = vmatmul.mubr.msk.f32.gmra.mxu1 %vm623_vm5, %v9583_v34  ;;  %v9666_v3 = vpop.permute.xlu1 %605  ;;  %v9673_v6 = vpop.permute.xlu0 %610 }
  0xc4   : > { %1013 = vmatprep.mubr.f32.mxu1 %v13928_v36  ;;  %7698 = vmatprep.mubr.msk.f32.mxu0 %vm623_vm5, %v9555_v8 }
  0xc7   : > { %7025 = vmatmul.mubr.msk.f32.gmra.mxu1 %vm623_vm5, %v598_v39  ;;  %7699 = vmatmul.mubr.msk.f32.vlgmr.msra.gmra.mxu0 %vm623_vm5, %v9569_v25  ;;  %v9717_v31 = vpop.permute.xlu0 %615  ;;  %v9738_v44 = vpop.permute.xlu1 %620 }
  0xc8   : > { %7701 = vmatprep.mubr.msk.f32.mxu0 %vm623_vm5, %v9583_v34  ;;  %1546 = vmatprep.mubr.f32.mxu1 %v13928_v36 }
  0xcb   : > { %7702 = vmatmul.mubr.msk.f32.gmra.mxu0 %vm623_vm5, %v598_v39  ;;  %vm419_vm5 = vcmp.lt.s32.totalorder %v9455_v17, 4096 }
  0xcc   : > { %1635 = vmatprep.mubr.f32.mxu0 %v13928_v36  ;;  %vm9820_vm6 = vmand %vm410_vm4, %vm419_vm5  ;;  %vm421_vm4 = vcmp.lt.s32.totalorder %v9465_v21, 4096 }
  0xcd   : > { %vm10002_vm5 = vmand %vm412_vm2, %vm421_vm4  ;;  %vm2067_vm2 = vcmask 7168   ;;  %vm2760_vm4 = vcmask 785408  }
 0x163   : > { %v730_v4 = vpop.f32.mrf.mxu0 }
 0x164   : > { %v9671_v5 = vadd.f32 %v730_v4, %v9666_v3 }
 0x165   : > { %v732_v13 = vpop.f32.mrf.mxu0 }
 0x166   : > { %v13938_v14 = vmax.f32 %v9671_v5, 0.0  ;;  %v9726_v35 = vadd.f32 %v732_v13, %v9666_v3 }
 0x167   : > { %v736_v26 = vpop.f32.mrf.mxu0 }
 0x168   : > { %v1159_v28 = vsel %vm9700_vm14, %v13938_v14, 0.0  ;;  %v9714_v29 = vadd.f32 %v736_v26, %v9673_v6  ;;  %v13939_v42 = vmax.f32 %v9726_v35, 0.0 }
 0x169   : > { %v738_v30 = vpop.f32.mrf.mxu0 }
 0x16a   : > { %v13940_v34 = vmax.f32 %v9714_v29, 0.0  ;;  %v9742_v47 = vadd.f32 %v738_v30, %v9673_v6  ;;  %v1160_v50 = vsel %vm9748_vm3, %v13939_v42, 0.0 }
 0x16b   : > { %v825_v7 = vpop.f32.mrf.mxu1  ;;  %v742_v37 = vpop.f32.mrf.mxu0 }
 0x16c   : > { %v9678_v8 = vadd.f32 %v825_v7, %v9673_v6  ;;  %v1168_v41 = vsel %vm9700_vm14, %v13940_v34, 0.0  ;;  %v13941_v33 = vmax.f32 %v9742_v47, 0.0  ;;  %v9765_v55 = vadd.f32 %v742_v37, %v9717_v31 }
 0x16d   : > { %v827_v10 = vpop.f32.mrf.mxu1  ;;  %v744_v43 = vpop.f32.mrf.mxu0 }
 0x16e   : > { %v13915_v20 = vmax.f32 %v9678_v8, 0.0  ;;  %v9688_v22 = vadd.f32 %v827_v10, %v9673_v6  ;;  %v1169_v58 = vsel %vm9748_vm3, %v13941_v33, 0.0  ;;  %v9777_v45 = vadd.f32 %v744_v43, %v9717_v31 }
 0x16f   : > { %v831_v19 = vpop.f32.mrf.mxu1  ;;  %v748_v52 = vpop.f32.mrf.mxu0  ;;  %v13942_v59 = vmax.f32 %v9765_v55, 0.0 }
 0x170   : > { %v13917_v24 = vmax.f32 %v9688_v22, 0.0  ;;  %v1170_v25 = vsel %vm9681_vm11, %v13915_v20, 0.0  ;;  %v9721_v32 = vadd.f32 %v831_v19, %v9717_v31  ;;  %v13943_v0 = vmax.f32 %v9777_v45, 0.0 }
 0x171   : > { %1393 = vrot.lane.b32.xlu0 %v1170_v25, %s9298_s24  ;;  %v833_v39 = vpop.f32.mrf.mxu1  ;;  %v750_v56 = vpop.f32.mrf.mxu0  ;;  %v1177_v2 = vsel %vm9700_vm14, %v13942_v59, 0.0 }
 0x172   : > { %v1171_v27 = vsel %vm9691_vm13, %v13917_v24, 0.0  ;;  %v13920_v38 = vmax.f32 %v9721_v32, 0.0  ;;  %v9769_v46 = vadd.f32 %v833_v39, %v9717_v31  ;;  %v1178_v17 = vsel %vm9748_vm3, %v13943_v0, 0.0 }
 0x173   : > { %1395 = vrot.lane.b32.xlu1 %v1171_v27, %s9298_s24  ;;  %v837_v12 = vpop.f32.mrf.mxu1  ;;  %v819_v60 = vpop.f32.mrf.mxu0  ;;  %v9833_v39 = vadd.f32 %v750_v56, %v9738_v44 }
 0x174   : > { %v1179_v48 = vsel %vm9681_vm11, %v13920_v38, 0.0  ;;  %v9758_v51 = vadd.f32 %v837_v12, %v9738_v44  ;;  %v13922_v62 = vmax.f32 %v9769_v46, 0.0 }
 0x175   : > { %1371 = vrot.lane.b32.xlu0 %v1159_v28, %s9298_s24  ;;  %v839_v53 = vpop.f32.mrf.mxu1  ;;  %v821_v4 = vpop.f32.mrf.mxu0  ;;  %v13945_v56 = vmax.f32 %v9833_v39, 0.0 }
 0x176   : > { %v13923_v54 = vmax.f32 %v9758_v51, 0.0  ;;  %v9789_v63 = vadd.f32 %v839_v53, %v9738_v44  ;;  %v1180_v10 = vsel %vm9691_vm13, %v13922_v62, 0.0 }
 0x177   : > { %1255 = vrot.lane.b32.xlu1 %v1171_v27, %s9297_s18  ;;  %v908_v19 = vpop.f32.mrf.mxu0 }
 0x178   : > { %v1188_v40 = vsel %vm9681_vm11, %v13923_v54, 0.0  ;;  %v13924_v13 = vmax.f32 %v9789_v63, 0.0  ;;  %v9837_v43 = vadd.f32 %v908_v19, %v9666_v3 }
 0x179   : > { %1253 = vrot.lane.b32.xlu0 %v1170_v25, %s9297_s18  ;;  %v9809_v25 = vadd.f32 %v748_v52, %v9738_v44  ;;  %v9851_v52 = vadd.f32 %v819_v60, %v9666_v3  ;;  %v14012_v60 = vmov 0 }
 0x17a   : > { %v1189_v37 = vsel %vm9691_vm13, %v13924_v13, 0.0  ;;  %v14013_v60 = vsel %vm9869_vm9, 4294967295, %v14012_v60 }
 0x17b   : > { %1389 = vrot.lane.b32.xlu1 %v1168_v41, %s9298_s24  ;;  %v997_v57 = vpop.f32.mrf.mxu1  ;;  %14014 = vst [vmem:[#allocation16_spill] sm:$0xff] %v14013_v60 }
 0x17c   : > { %v9794_v1 = vadd.f32 %v997_v57, %v9666_v3  ;;  %v910_v57 = vpop.f32.mrf.mxu0 }
 0x17d   : > { %1231 = vrot.lane.b32.xlu0 %v1159_v28, %s9297_s18  ;;  %v9784_v61 = vpop.f32.mrf.mxu1  ;;  %v14008_v28 = vmov 0 }
 0x17e   : > { %14006 = vst [vmem:[#allocation12_spill] sm:$0xff] %v9794_v1  ;;  %v13912_v26 = vmax.f32 %v9794_v1, 0.0  ;;  %v14009_v28 = vsel %vm9820_vm6, 4294967295, %v14008_v28  ;;  %v10012_v21 = vadd.f32 %v9784_v61, %v9666_v3 }
 0x17f   : > { %1271 = vrot.lane.b32.xlu1 %v1179_v48, %s9297_s18  ;;  %v1003_v7 = vpop.f32.mrf.mxu1  ;;  %14010 = vst [vmem:[#allocation14_spill] sm:$0xff] %v14009_v28 }
 0x180   : > { %v9814_v27 = vadd.f32 %v1003_v7, %v9673_v6  ;;  %v9844_v12 = vsel %vm9820_vm6, %v13912_v26, 0.0  ;;  %v1187_v7 = vsel %vm9748_vm3, %v13945_v56, 0.0  ;;  %14024 = vst [vmem:[#allocation22_spill] sm:$0xff] %v10012_v21  ;;  %v13934_v61 = vmax.f32 %v10012_v21, 0.0 }
 0x181   : > { %1373 = vrot.lane.b32.xlu0 %v1160_v50, %s9298_s24  ;;  %v9824_v30 = vpop.f32.mrf.mxu1 }
 0x182   : > { %14007 = vst [vmem:[#allocation13_spill] sm:$0xff] %v9814_v27  ;;  %v13913_v48 = vmax.f32 %v9814_v27, 0.0 }
 0x183   : > { %1249 = vrot.lane.b32.xlu1 %v1168_v41, %s9297_s18  ;;  %v13944_v41 = vmax.f32 %v9809_v25, 0.0 }
 0x184   : > { %v9867_v15 = vsel %vm9820_vm6, %v13913_v48, 0.0 }
 0x185   : > { %1233 = vrot.lane.b32.xlu0 %v1160_v50, %s9297_s18  ;;  %v1009_v50 = vpop.f32.mrf.mxu1  ;;  %v1186_v53 = vsel %vm9700_vm14, %v13944_v41, 0.0 }
 0x187   : > { %1391 = vrot.lane.b32.xlu1 %v1169_v58, %s9298_s24 }
 0x189   : > { %1289 = vrot.lane.b32.xlu0 %v1188_v40, %s9297_s18  ;;  %v9861_v40 = vadd.f32 %v1009_v50, %v9717_v31  ;;  %v9890_v50 = vadd.f32 %v821_v4, %v9666_v3 }
 0x18b   : > { %1251 = vrot.lane.b32.xlu1 %v1169_v58, %s9297_s18  ;;  %v13914_v58 = vmax.f32 %v9837_v43, 0.0  ;;  %14011 = vst [vmem:[#allocation15_spill] sm:$0xff] %v9861_v40  ;;  %v13919_v4 = vmax.f32 %v9890_v50, 0.0 }
 0x18d   : > { %1267 = vrot.lane.b32.xlu0 %v1177_v2, %s9297_s18  ;;  %v13916_v2 = vmax.f32 %v9851_v52, 0.0  ;;  %v1163_v19 = vsel %vm9869_vm9, %v13914_v58, 0.0 }
 0x18f   : > { %1273 = vrot.lane.b32.xlu1 %v1180_v10, %s9297_s18  ;;  %v914_v10 = vpop.f32.mrf.mxu0 }
 0x190   : > { %v9898_v26 = vadd.f32 %v914_v10, %v9673_v6  ;;  %v9913_v10 = vadd.f32 %v910_v57, %v9666_v3 }
 0x191   : > { %1269 = vrot.lane.b32.xlu0 %v1178_v17, %s9297_s18  ;;  %v13918_v17 = vmax.f32 %v9861_v40, 0.0 }
 0x193   : > { %1291 = vrot.lane.b32.xlu1 %v1189_v37, %s9297_s18  ;;  %v9886_v37 = vpop.f32.mrf.mxu1  ;;  %v1183_v48 = vsel %vm9820_vm6, %v13918_v17, 0.0 }
 0x195   : > { %1383 = vrot.lane.b32.xlu0 %v9844_v12, %s9298_s24  ;;  %v1015_v58 = vpop.f32.mrf.mxu1 }
 0x196   : > { %v9909_v24 = vadd.f32 %v1015_v58, %v9738_v44 }
 0x197   : > { %1285 = vrot.lane.b32.xlu1 %v1186_v53, %s9297_s18  ;;  %v1161_v53 = vsel %vm9681_vm11, %v13916_v2, 0.0  ;;  %v13921_v2 = vmax.f32 %v9898_v26, 0.0 }
 0x198   : > { %14015 = vst [vmem:[#allocation17_spill] sm:$0xff] %v9909_v24  ;;  %v13925_v58 = vmax.f32 %v9909_v24, 0.0 }
 0x199   : > { %1401 = vrot.lane.b32.xlu0 %v9867_v15, %s9298_s24  ;;  %v1172_v57 = vsel %vm9869_vm9, %v13921_v2, 0.0 }
 0x19a   : > { %v1192_v2 = vsel %vm9820_vm6, %v13925_v58, 0.0 }
 0x19b   : > { %1287 = vrot.lane.b32.xlu1 %v1187_v7, %s9297_s18  ;;  %v916_v7 = vpop.f32.mrf.mxu0 }
 0x19d   : > { %1379 = vrot.lane.b32.xlu0 %v1163_v19, %s9298_s24  ;;  %v920_v20 = vpop.f32.mrf.mxu0 }
 0x19e   : > { %v9938_v16 = vadd.f32 %v920_v20, %v9717_v31 }
 0x19f   : > { %1375 = vrot.lane.b32.xlu1 %v1161_v53, %s9298_s24  ;;  %v922_v17 = vpop.f32.mrf.mxu0 }
 0x1a0   : > { %v9947_v62 = vadd.f32 %v922_v17, %v9717_v31  ;;  %v13930_v20 = vmax.f32 %v9938_v16, 0.0 }
 0x1a1   : > { %1279 = vrot.lane.b32.xlu0 %v1183_v48, %s9297_s18  ;;  %v1162_v48 = vsel %vm9691_vm13, %v13919_v4, 0.0  ;;  %v14016_v4 = vmov 0  ;;  %v926_v38 = vpop.f32.mrf.mxu0 }
 0x1a2   : > { %v14017_v4 = vsel %vm9932_vm15, 4294967295, %v14016_v4  ;;  %v9956_v13 = vadd.f32 %v926_v38, %v9738_v44  ;;  %v1181_v38 = vsel %vm9869_vm9, %v13930_v20, 0.0 }
 0x1a3   : > { %1235 = vrot.lane.b32.xlu1 %v1161_v53, %s9297_s18  ;;  %v9930_v53 = vadd.f32 %v916_v7, %v9673_v6  ;;  %14018 = vst [vmem:[#allocation18_spill] sm:$0xff] %v14017_v4  ;;  %v928_v54 = vpop.f32.mrf.mxu0 }
 0x1a4   : > { %v9961_v17 = vadd.f32 %v928_v54, %v9738_v44 }
 0x1a5   : > { %1239 = vrot.lane.b32.xlu0 %v1163_v19, %s9297_s18  ;;  %v13926_v19 = vmax.f32 %v9913_v10, 0.0  ;;  %v13927_v7 = vmax.f32 %v9930_v53, 0.0  ;;  %v7700_v36 = vpop.f32.mrf.mxu0 }
 0x1a6   : > { %v1092_v20 = vadd.f32 %v7700_v36, %v9673_v6 }
 0x1a7   : > { %1377 = vrot.lane.b32.xlu1 %v1162_v48, %s9298_s24  ;;  %v1173_v58 = vsel %vm9932_vm15, %v13927_v7, 0.0  ;;  %v1086_v36 = vpop.f32.mrf.mxu0 }
 0x1a9   : > { %1397 = vrot.lane.b32.xlu0 %v1172_v57, %s9298_s24  ;;  %v7703_v18 = vpop.f32.mrf.mxu0 }
 0x1ab   : > { %1237 = vrot.lane.b32.xlu1 %v1162_v48, %s9297_s18  ;;  %v1164_v48 = vsel %vm9932_vm15, %v13926_v19, 0.0  ;;  %v13932_v19 = vmax.f32 %v9956_v13, 0.0 }
 0x1ad   : > { %1297 = vrot.lane.b32.xlu0 %v1192_v2, %s9297_s18  ;;  %v13931_v2 = vmax.f32 %v9947_v62, 0.0  ;;  %v1190_v7 = vsel %vm9869_vm9, %v13932_v19, 0.0  ;;  %v10040_v19 = vadd.f32 %v9886_v37, %v9717_v31 }
 0x1af   : > { %1381 = vrot.lane.b32.xlu1 %v1164_v48, %s9298_s24  ;;  %v1182_v54 = vsel %vm9932_vm15, %v13931_v2, 0.0  ;;  %v14021_v2 = vmov 0  ;;  %14028 = vst [vmem:[#allocation24_spill] sm:$0xff] %v10040_v19  ;;  %v13935_v37 = vmax.f32 %v10040_v19, 0.0 }
 0x1b0   : > { %v14022_v2 = vsel %vm10002_vm5, 4294967295, %v14021_v2 }
 0x1b1   : > { %1257 = vrot.lane.b32.xlu0 %v1172_v57, %s9297_s18  ;;  %v13937_v57 = vmax.f32 %v9961_v17, 0.0  ;;  %14023 = vst [vmem:[#allocation21_spill] sm:$0xff] %v14022_v2 }
 0x1b3   : > { %1399 = vrot.lane.b32.xlu1 %v1173_v58, %s9298_s24 }
 0x1b5   : > { %1275 = vrot.lane.b32.xlu0 %v1181_v38, %s9297_s18  ;;  %v1191_v38 = vsel %vm9932_vm15, %v13937_v57, 0.0 }
 0x1b7   : > { %1277 = vrot.lane.b32.xlu1 %v1182_v54, %s9297_s18  ;;  %v9997_v54 = vadd.f32 %v9824_v30, %v9673_v6  ;;  %v1017_v30 = vpop.f32.mrf.mxu1 }
 0x1b9   : > { %1293 = vrot.lane.b32.xlu0 %v1190_v7, %s9297_s18  ;;  %14019 = vst [vmem:[#allocation19_spill] sm:$0xff] %v9997_v54  ;;  %v10000_v7 = vmax.f32 %v1092_v20, 0.0  ;;  %v13933_v6 = vmax.f32 %v9997_v54, 0.0  ;;  %v10027_v20 = vadd.f32 %v1017_v30, %v9738_v44 }
 0x1bb   : > { %1295 = vrot.lane.b32.xlu1 %v1191_v38, %s9297_s18  ;;  %14020 = vst [vmem:[#allocation20_spill] sm:$0xff] %v10000_v7  ;;  %v1102_v38 = vadd.f32 %v7703_v18, %v9738_v44  ;;  %v13936_v30 = vmax.f32 %v10027_v20, 0.0 }
 0x1bd   : > { %1261 = vrot.lane.b32.xlu0 %v9867_v15, %s9297_s18  ;;  %v1087_v15 = vadd.f32 %v1086_v36, %v9666_v3  ;;  %v1175_v3 = vsel %vm10020_vm10, %v13933_v6, 0.0  ;;  %v1096_v36 = vpop.f32.mrf.mxu0  ;;  %v1166_v6 = vsel %vm10020_vm10, %v13934_v61, 0.0  ;;  %v1193_v18 = vsel %vm10020_vm10, %v13936_v30, 0.0 }
 0x1be   : > { %v1097_v44 = vadd.f32 %v1096_v36, %v9717_v31 }
 0x1bf   : > { %1259 = vrot.lane.b32.xlu1 %v1173_v58, %s9297_s18  ;;  %v1176_v58 = vsel %vm10002_vm5, %v10000_v7, 0.0 }
 0x1c0   : > { %v10061_v61 = vmax.f32 %v1097_v44, 0.0  ;;  %v1447_v44 = vld [vmem:[%s13902_s4 + $0x10] sm:$0xff] }
 0x1c1   : > { %1243 = vrot.lane.b32.xlu0 %v9844_v12, %s9297_s18 }
 0x1c2   : > { %14029 = vst [vmem:[#allocation25_spill] sm:$0xff] %v10061_v61  ;;  %v1185_v36 = vsel %vm10002_vm5, %v10061_v61, 0.0 }
 0x1c3   : > { %1241 = vrot.lane.b32.xlu1 %v1164_v48, %s9297_s18  ;;  %v10034_v48 = vmax.f32 %v1087_v15, 0.0  ;;  %v10048_v15 = vmax.f32 %v1102_v38, 0.0  ;;  %v1184_v38 = vsel %vm10020_vm10, %v13935_v37, 0.0 }
 0x1c5   : > { %1405 = vrot.lane.b32.xlu0 %v1176_v58, %s9298_s24  ;;  %14027 = vst [vmem:[#allocation23_spill] sm:$0xff] %v10034_v48  ;;  %v1194_v31 = vsel %vm10002_vm5, %v10048_v15, 0.0 }
 0x1c7   : > { %1403 = vrot.lane.b32.xlu1 %v1175_v3, %s9298_s24 }
 0x1c9   : > { %1265 = vrot.lane.b32.xlu0 %v1176_v58, %s9297_s18  ;;  %v1167_v58 = vsel %vm10002_vm5, %v10034_v48, 0.0 }
 0x1cb   : > { %1385 = vrot.lane.b32.xlu1 %v1166_v6, %s9298_s24 }
 0x1cd   : > { %1387 = vrot.lane.b32.xlu0 %v1167_v58, %s9298_s24 }
 0x1cf   : > { %1299 = vrot.lane.b32.xlu1 %v1193_v18, %s9297_s18  ;;  %v1448_v18 = vld [vmem:[%s13902_s4 + $0x18] sm:$0xff] }
 0x1d1   : > { %1301 = vrot.lane.b32.xlu0 %v1194_v31, %s9297_s18  ;;  %v1445_v31 = vld [vmem:[%s13902_s4] sm:$0xff] }
 0x1d3   : > { %1281 = vrot.lane.b32.xlu1 %v1184_v38, %s9297_s18 }
 0x1d5   : > { %1283 = vrot.lane.b32.xlu0 %v1185_v36, %s9297_s18 }
 0x1d7   : > { %1263 = vrot.lane.b32.xlu1 %v1175_v3, %s9297_s18  ;;  %v1446_v3 = vld [vmem:[%s13902_s4 + $0x8] sm:$0xff] }
 0x1d9   : > { %1247 = vrot.lane.b32.xlu0 %v1167_v58, %s9297_s18 }
 0x1db   : > { %1245 = vrot.lane.b32.xlu1 %v1166_v6, %s9297_s18 }
 0x1dd   : > { %1461 = vperm.xlu0 %8965, %v1447_v44  }
 0x1df   : > { %1466 = vperm.xlu1 %8966, %v1448_v18  }
 0x1e1   : > { %1451 = vperm.xlu0 %8965, %v1445_v31  }
 0x1e3   : > { %v1394_v58 = vpop.permute.xlu0 %1393  ;;  %1456 = vperm.xlu1 %8966, %v1446_v3  }
 0x1e5   : > { %v1396_v38 = vpop.permute.xlu1 %1395 }
 0x1e7   : > { %v1372_v36 = vpop.permute.xlu0 %1371 }
 0x1e9   : > { %v10091_v6 = vpop.permute.xlu1 %1255 }
 0x1eb   : > { %v10093_v37 = vpop.permute.xlu0 %1253 }
 0x1ed   : > { %v1390_v30 = vpop.permute.xlu1 %1389 }
 0x1ef   : > { %v1232_v44 = vpop.permute.xlu0 %1231 }
 0x1f1   : > { %v10095_v57 = vpop.permute.xlu1 %1271 }
 0x1f3   : > { %v1374_v14 = vpop.permute.xlu0 %1373 }
 0x1f5   : > { %v1250_v42 = vpop.permute.xlu1 %1249 }
 0x1f7   : > { %v1234_v18 = vpop.permute.xlu0 %1233 }
 0x1f9   : > { %v1392_v34 = vpop.permute.xlu1 %1391 }
 0x1fa   : > { %v1416_v33 = vsel %vm557_vm1, %v1392_v34, %v1394_v58  ;;  %v1415_v31 = vsel %vm557_vm1, %v1390_v30, %v1392_v34 }
 0x1fb   : > { %1494 = vmatprep.subr.mxu1 %v1416_v33  ;;  %v10099_v3 = vpop.permute.xlu0 %1289 }
 0x1fc   : > { %1495 = vmatpush1.msra.mxu1 %v1415_v31  ;;  %v1407_v31 = vsel %vm557_vm1, %v1372_v36, %v1374_v14 }
 0x1fd   : > { %v1252_v59 = vpop.permute.xlu1 %1251 }
 0x1ff   : > { %v1268_v0 = vpop.permute.xlu0 %1267 }
 0x201   : > { %v10101_v41 = vpop.permute.xlu1 %1273 }
 0x203   : > { %v1270_v56 = vpop.permute.xlu0 %1269 }
 0x204   : > { %v1320_v28 = vsel %vm485_vm0, %v1270_v56, %v10095_v57 }
 0x205   : > { %v10103_v1 = vpop.permute.xlu1 %1291 }
 0x207   : > { %v10105_v21 = vpop.permute.xlu0 %1383 }
 0x209   : > { %v1286_v27 = vpop.permute.xlu1 %1285 }
 0x20b   : > { %v10107_v48 = vpop.permute.xlu0 %1401 }
 0x20d   : > { %v1288_v54 = vpop.permute.xlu1 %1287 }
 0x20e   : > { %v1328_v40 = vsel %vm485_vm0, %v1288_v54, %v10099_v3  ;;  %v1327_v61 = vsel %vm485_vm0, %v1286_v27, %v1288_v54 }
 0x20f   : > { %v10109_v7 = vpop.permute.xlu0 %1379 }
 0x211   : > { %v1376_v34 = vpop.permute.xlu1 %1375 }
 0x212   : > { %v1408_v33 = vsel %vm557_vm1, %v1374_v14, %v1376_v34  ;;  %v1312_v14 = vsel %vm485_vm0, %v1252_v59, %v10093_v37 }
 0x213   : > { %1496 = vmatprep.subr.mxu1 %v1408_v33  ;;  %v10112_v30 = vpop.permute.xlu0 %1279  ;;  %v1319_v33 = vsel %vm485_vm0, %v1268_v0, %v1270_v56  ;;  %v14030_v56 = vmax.f32 %v9833_v39, 0.0 }
 0x214   : > { %1497 = vmatpush1.msra.mxu1 %v1407_v31  ;;  %v1311_v31 = vsel %vm485_vm0, %v1250_v42, %v1252_v59  ;;  %v1417_v42 = vsel %vm557_vm1, %v1394_v58, %v1396_v38  ;;  %v14031_v59 = vmax.f32 %v9809_v25, 0.0  ;;  %v14033_v58 = vmax.f32 %v9765_v55, 0.0 }
 0x215   : > { %v10117_v19 = vpop.permute.xlu1 %1235  ;;  %1498 = vmatprep.subr.mxu1 %v1328_v40  ;;  %v14036_v55 = vmax.f32 %v9726_v35, 0.0 }
 0x216   : > { %1499 = vmatpush1.msra.mxu1 %v1327_v61  ;;  %v1304_v27 = vsel %vm485_vm0, %v1234_v18, %v10117_v19 }
 0x217   : > { %1500 = vmatprep.subr.mxu1 %v1320_v28  ;;  %v10122_v24 = vpop.permute.xlu0 %1239  ;;  %v1303_v28 = vsel %vm485_vm0, %v1232_v44, %v1234_v18  ;;  %v14032_v44 = vmax.f32 %v9777_v45, 0.0  ;;  %v14035_v45 = vmax.f32 %v9714_v29, 0.0 }
 0x218   : > { %1501 = vmatpush1.msra.mxu1 %v1319_v33  ;;  %v14037_v33 = vmax.f32 %v9671_v5, 0.0 }
 0x219   : > { %v1378_v36 = vpop.permute.xlu1 %1377  ;;  %1502 = vmatprep.subr.mxu1 %v1312_v14 }
 0x21a   : > { %1503 = vmatpush1.msra.mxu1 %v1311_v31  ;;  %v1410_v61 = vsel %vm557_vm1, %v1378_v36, %v10109_v7  ;;  %v1409_v18 = vsel %vm557_vm1, %v1376_v34, %v1378_v36  ;;  %v10167_v34 = vld [vmem:[%s13901_s3] sm:$0xff]  ;;  %v14038_v36 = vmov 0.0   ;;  %v10186_v31 = vld [vmem:[%s13901_s3 + $0x8] sm:$0xff] }
 0x21b   : > { %1504 = vmatprep.subr.mxu1 %v1304_v27  ;;  %v1398_v40 = vpop.permute.xlu0 %1397 }
 0x21c   : > { %1505 = vmatpush1.msra.mxu1 %v1303_v28  ;;  %v1418_v54 = vsel %vm557_vm1, %v1396_v38, %v1398_v40  ;;  %v14034_v38 = vmax.f32 %v9742_v47, 0.0 }
 0x21d   : > { %v10132_v0 = vpop.permute.xlu1 %1237  ;;  %7031 = vmatprep.subr.msk.mxu1 %vm9748_vm3, %v14030_v56  ;;  %1583 = vmatprep.subr.mxu0 %v1418_v54 }
 0x21e   : > { %7032 = vmatpush1.msk.msra.mxu1 %vm9700_vm14, %v14031_v59  ;;  %1584 = vmatpush1.msra.mxu0 %v1417_v42 }
 0x21f   : > { %7033 = vmatprep.subr.msk.mxu1 %vm9748_vm3, %v14032_v44  ;;  %1585 = vmatprep.subr.mxu0 %v1410_v61  ;;  %v10149_v39 = vpop.permute.xlu0 %1297 }
 0x220   : > { %7034 = vmatpush1.msk.msra.mxu1 %vm9700_vm14, %v14033_v58  ;;  %1586 = vmatpush1.msra.mxu0 %v1409_v18  ;;  %v10216_v58 = vld [vmem:[%s13901_s3 + $0x18] sm:$0xff] }
 0x221   : > { %v1382_v25 = vpop.permute.xlu1 %1381  ;;  %7035 = vmatprep.subr.msk.mxu1 %vm9748_vm3, %v14034_v38 }
 0x222   : > { %7036 = vmatpush1.msk.msra.mxu1 %vm9700_vm14, %v14035_v45  ;;  %v1412_v27 = vsel %vm557_vm1, %v1382_v25, %v10105_v21  ;;  %v1411_v54 = vsel %vm557_vm1, %v10109_v7, %v1382_v25  ;;  %v1329_v7 = vsel %vm485_vm0, %v10099_v3, %v10103_v1 }
 0x223   : > { %7037 = vmatprep.subr.msk.mxu1 %vm9748_vm3, %v14036_v55  ;;  %v1258_v47 = vpop.permute.xlu0 %1257  ;;  %v1313_v55 = vsel %vm485_vm0, %v10093_v37, %v10091_v6  ;;  %v1305_v37 = vsel %vm485_vm0, %v10117_v19, %v10132_v0 }
 0x224   : > { %7038 = vmatpush1.msk.msra.mxu1 %vm9700_vm14, %v14037_v33  ;;  %v1314_v3 = vsel %vm485_vm0, %v10091_v6, %v1258_v47 }
 0x225   : > { %v1400_v29 = vpop.permute.xlu1 %1399  ;;  %7039 = vmatmul.mubr.msk.f32.vlgmr.msra.gmra.mxu1 %vm1469_vm12, %v10167_v34 }
 0x226   : > { %v1420_v14 = vsel %vm557_vm1, %v1400_v29, %v10107_v48  ;;  %1552 = vmatprep.mubr.f32.mxu1 %v14038_v36  ;;  %v1419_v35 = vsel %vm557_vm1, %v1398_v40, %v1400_v29  ;;  %v10198_v40 = vld [vmem:[%s13901_s3 + $0x10] sm:$0xff] }
 0x227   : > { %1672 = vmatprep.subr.mxu1 %v1420_v14  ;;  %v1276_v5 = vpop.permute.xlu0 %1275 }
 0x228   : > { %1673 = vmatpush1.msra.mxu1 %v1419_v35  ;;  %v1322_v61 = vsel %vm485_vm0, %v10101_v41, %v1276_v5  ;;  %v14039_v35 = vmax.f32 %v9789_v63, 0.0 }
 0x229   : > { %v1278_v28 = vpop.permute.xlu1 %1277  ;;  %7040 = vmatmul.mubr.msk.f32.gmra.mxu1 %vm1469_vm12, %v10186_v31  ;;  %1674 = vmatprep.subr.mxu1 %v1412_v27 }
 0x22a   : > { %1675 = vmatpush1.msra.mxu1 %v1411_v54  ;;  %1558 = vmatprep.mubr.f32.mxu1 %v14038_v36  ;;  %v1324_v45 = vsel %vm485_vm0, %v1278_v28, %v10112_v30 }
 0x22b   : > { %v1294_v56 = vpop.permute.xlu0 %1293 }
 0x22c   : > { %v1330_v42 = vsel %vm485_vm0, %v10103_v1, %v1294_v56  ;;  %v1321_v1 = vsel %vm485_vm0, %v10095_v57, %v10101_v41  ;;  %v1306_v41 = vsel %vm485_vm0, %v10132_v0, %v10122_v24  ;;  %v1323_v57 = vsel %vm485_vm0, %v1276_v5, %v1278_v28 }
 0x22d   : > { %v1296_v59 = vpop.permute.xlu1 %1295  ;;  %7041 = vmatmul.mubr.msk.f32.gmra.mxu1 %vm1469_vm12, %v10198_v40  ;;  %1587 = vmatprep.subr.mxu0 %v1330_v42  ;;  %v14040_v5 = vmax.f32 %v9758_v51, 0.0  ;;  %v14041_v0 = vmax.f32 %v9769_v46, 0.0  ;;  %v14042_v51 = vmax.f32 %v9721_v32, 0.0  ;;  %v14043_v28 = vmax.f32 %v9688_v22, 0.0 }
 0x22e   : > { %1588 = vmatpush1.msra.mxu0 %v1329_v7  ;;  %v1332_v44 = vsel %vm485_vm0, %v1296_v59, %v10149_v39  ;;  %1564 = vmatprep.mubr.f32.mxu1 %v14038_v36  ;;  %v1331_v18 = vsel %vm485_vm0, %v1294_v56, %v1296_v59  ;;  %v14045_v46 = vmax.f32 %v9678_v8, 0.0  ;;  %v14046_v32 = vmax.f32 %v9956_v13, 0.0 }
 0x22f   : > { %1589 = vmatprep.subr.mxu0 %v1322_v61  ;;  %1676 = vmatprep.subr.mxu1 %v1332_v44  ;;  %v10218_v25 = vpop.permute.xlu0 %1261  ;;  %v14047_v22 = vmax.f32 %v9890_v50, 0.0  ;;  %v14049_v8 = vmax.f32 %v9851_v52, 0.0  ;;  %v14050_v13 = vmax.f32 %v9938_v16, 0.0  ;;  %v14052_v52 = vmax.f32 %v9898_v26, 0.0 }
 0x230   : > { %1590 = vmatpush1.msra.mxu0 %v1321_v1  ;;  %1677 = vmatpush1.msra.mxu1 %v1331_v18  ;;  %v14053_v42 = vmax.f32 %v9913_v10, 0.0  ;;  %v14054_v59 = vmax.f32 %v9837_v43, 0.0 }
 0x231   : > { %v1260_v38 = vpop.permute.xlu1 %1259  ;;  %7042 = vmatmul.mubr.msk.f32.gmra.mxu1 %vm1469_vm12, %v10216_v58  ;;  %1591 = vmatprep.subr.mxu0 %v1314_v3 }
 0x232   : > { %1678 = vmatprep.subr.mxu1 %v1324_v45  ;;  %1592 = vmatpush1.msra.mxu0 %v1313_v55  ;;  %v1316_v33 = vsel %vm485_vm0, %v1260_v38, %v10218_v25  ;;  %v1315_v29 = vsel %vm485_vm0, %v1258_v47, %v1260_v38 }
 0x233   : > { %1679 = vmatpush1.msra.mxu1 %v1323_v57  ;;  %1593 = vmatprep.subr.mxu0 %v1306_v41  ;;  %v10239_v14 = vpop.permute.xlu0 %1243 }
 0x234   : > { %1680 = vmatprep.subr.mxu1 %v1316_v33  ;;  %1594 = vmatpush1.msra.mxu0 %v1305_v37  ;;  %v14060_v37 = vld [vmem:[#allocation24_spill] sm:$0xff] }
 0x235   : > { %1681 = vmatpush1.msra.mxu1 %v1315_v29  ;;  %v1242_v6 = vpop.permute.xlu1 %1241  ;;  %7043 = vmatprep.subr.msk.mxu0 %vm9691_vm13, %v14039_v35  ;;  %v14064_v35 = vld [vmem:[#allocation20_spill] sm:$0xff] }
 0x236   : > { %7044 = vmatpush1.msk.msra.mxu0 %vm9681_vm11, %v14040_v5  ;;  %v1308_v47 = vsel %vm485_vm0, %v1242_v6, %v10239_v14  ;;  %v1307_v19 = vsel %vm485_vm0, %v10122_v24, %v1242_v6  ;;  %1724 = vmatprep.mubr.f32.mxu1 %v14038_v36  ;;  %v14044_v24 = vmax.f32 %v9961_v17, 0.0  ;;  %v14048_v17 = vmax.f32 %v9947_v62, 0.0  ;;  %v14065_v5 = vld [vmem:[#allocation19_spill] sm:$0xff] }
 0x237   : > { %7045 = vmatprep.subr.msk.mxu0 %vm9691_vm13, %v14041_v0  ;;  %1682 = vmatprep.subr.mxu1 %v1308_v47  ;;  %v1406_v63 = vpop.permute.xlu0 %1405  ;;  %v14051_v62 = vmax.f32 %v9930_v53, 0.0  ;;  %v14061_v6 = vmax.f32 %v14060_v37, 0.0  ;;  %v14066_v47 = vmax.f32 %v14065_v5, 0.0  ;;  %v14068_v0 = vld [vmem:[#allocation13_spill] sm:$0xff] }
 0x238   : > { %7046 = vmatpush1.msk.msra.mxu0 %vm9681_vm11, %v14042_v51  ;;  %1683 = vmatpush1.msra.mxu1 %v1307_v19  ;;  %v14067_v19 = vld [vmem:[#allocation23_spill] sm:$0xff]  ;;  %v14070_v51 = vld [vmem:[#allocation22_spill] sm:$0xff] }
 0x239   : > { %v1404_v27 = vpop.permute.xlu1 %1403  ;;  %7047 = vmatprep.subr.msk.mxu0 %vm9691_vm13, %v14043_v28  ;;  %7055 = vmatprep.subr.msk.mxu1 %vm9932_vm15, %v14044_v24  ;;  %v14072_v28 = vld [vmem:[#allocation12_spill] sm:$0xff] }
 0x23a   : > { %7048 = vmatpush1.msk.msra.mxu0 %vm9681_vm11, %v14045_v46  ;;  %7056 = vmatpush1.msk.msra.mxu1 %vm9869_vm9, %v14046_v32  ;;  %v1422_v56 = vsel %vm557_vm1, %v1404_v27, %v1406_v63  ;;  %v1421_v16 = vsel %vm557_vm1, %v10107_v48, %v1404_v27  ;;  %v14071_v27 = vmax.f32 %v14070_v51, 0.0  ;;  %v14073_v24 = vmax.f32 %v14072_v28, 0.0 }
 0x23b   : > { %7049 = vmatprep.subr.msk.mxu0 %vm9691_vm13, %v14047_v22  ;;  %7057 = vmatprep.subr.msk.mxu1 %vm9932_vm15, %v14048_v17  ;;  %v1266_v54 = vpop.permute.xlu0 %1265 }
 0x23c   : > { %7050 = vmatpush1.msk.msra.mxu0 %vm9681_vm11, %v14049_v8  ;;  %7058 = vmatpush1.msk.msra.mxu1 %vm9869_vm9, %v14050_v13 }
 0x23d   : > { %v1386_v50 = vpop.permute.xlu1 %1385  ;;  %7051 = vmatmul.mubr.msk.f32.vlgmr.msra.gmra.mxu0 %vm1469_vm12, %v10167_v34  ;;  %7059 = vmatprep.subr.msk.mxu1 %vm9932_vm15, %v14051_v62 }
 0x23e   : > { %1761 = vmatprep.subr.mxu0 %v1422_v56  ;;  %7060 = vmatpush1.msk.msra.mxu1 %vm9869_vm9, %v14052_v52  ;;  %v1413_v10 = vsel %vm557_vm1, %v10105_v21, %v1386_v50 }
 0x23f   : > { %1762 = vmatpush1.msra.mxu0 %v1421_v16  ;;  %7061 = vmatprep.subr.msk.mxu1 %vm9932_vm15, %v14053_v42  ;;  %v1388_v53 = vpop.permute.xlu0 %1387 }
 0x240   : > { %1641 = vmatprep.mubr.f32.mxu0 %v14038_v36  ;;  %7062 = vmatpush1.msk.msra.mxu1 %vm9869_vm9, %v14054_v59  ;;  %v1414_v26 = vsel %vm557_vm1, %v1386_v50, %v1388_v53 }
 0x241   : > { %v1300_v7 = vpop.permute.xlu1 %1299  ;;  %7052 = vmatmul.mubr.msk.f32.gmra.mxu0 %vm1469_vm12, %v10186_v31  ;;  %7063 = vmatmul.mubr.msk.f32.vlgmr.msra.gmra.mxu1 %vm1469_vm12, %v10167_v34 }
 0x242   : > { %1763 = vmatprep.subr.mxu0 %v1414_v26  ;;  %7704 = vmatprep.subr.mxu1 %v1406_v63  ;;  %v1333_v21 = vsel %vm485_vm0, %v10149_v39, %v1300_v7 }
 0x243   : > { %1764 = vmatpush1.msra.mxu0 %v1413_v10  ;;  %7705 = vmatpush3.msra.mxu1 %v1406_v63  ;;  %v1302_v43 = vpop.permute.xlu0 %1301  ;;  %v14069_v63 = vmax.f32 %v14068_v0, 0.0 }
 0x244   : > { %7706 = vmatprep.subr.mxu1 %v1388_v53  ;;  %1647 = vmatprep.mubr.f32.mxu0 %v14038_v36  ;;  %v1334_v48 = vsel %vm485_vm0, %v1300_v7, %v1302_v43 }
 0x245   : > { %1730 = vmatprep.mubr.f32.mxu1 %v14038_v36  ;;  %7707 = vmatpush3.msra.mxu1 %v1388_v53  ;;  %v1282_v61 = vpop.permute.xlu1 %1281 }
 0x246   : > { %7053 = vmatmul.mubr.msk.f32.gmra.mxu0 %vm1469_vm12, %v10198_v40  ;;  %7064 = vmatmul.mubr.msk.f32.gmra.mxu1 %vm1469_vm12, %v10186_v31  ;;  %v1325_v39 = vsel %vm485_vm0, %v10112_v30, %v1282_v61  ;;  %v14055_v30 = vmax.f32 %v10027_v20, 0.0  ;;  %v14062_v20 = vld [vmem:[#allocation15_spill] sm:$0xff] }
 0x247   : > { %1765 = vmatprep.subr.mxu0 %v1334_v48  ;;  %7708 = vmatprep.subr.mxu1 %v1302_v43  ;;  %v1284_v44 = vpop.permute.xlu0 %1283 }
 0x248   : > { %1766 = vmatpush1.msra.mxu0 %v1333_v21  ;;  %7709 = vmatpush3.msra.mxu1 %v1302_v43  ;;  %v1326_v18 = vsel %vm485_vm0, %v1282_v61, %v1284_v44 }
 0x249   : > { %1653 = vmatprep.mubr.f32.mxu0 %v14038_v36  ;;  %1736 = vmatprep.mubr.f32.mxu1 %v14038_v36  ;;  %v1264_v1 = vpop.permute.xlu1 %1263 }
 0x24a   : > { %7710 = vmatprep.subr.mxu1 %v1284_v44  ;;  %7054 = vmatmul.mubr.msk.f32.gmra.mxu0 %vm1469_vm12, %v10216_v58  ;;  %v1318_v3 = vsel %vm485_vm0, %v1264_v1, %v1266_v54  ;;  %v1317_v45 = vsel %vm485_vm0, %v10218_v25, %v1264_v1  ;;  %v14056_v25 = vld [vmem:[#allocation17_spill] sm:$0xff] }
 0x24b   : > { %7065 = vmatmul.mubr.msk.f32.gmra.mxu1 %vm1469_vm12, %v10198_v40  ;;  %1767 = vmatprep.subr.mxu0 %v1326_v18  ;;  %v1248_v38 = vpop.permute.xlu0 %1247  ;;  %v14057_v33 = vmax.f32 %v14056_v25, 0.0 }
 0x24c   : > { %7711 = vmatpush3.msra.mxu1 %v1284_v44  ;;  %1768 = vmatpush1.msra.mxu0 %v1325_v39 }
 0x24d   : > { %7712 = vmatprep.subr.mxu1 %v1266_v54  ;;  %1769 = vmatprep.subr.mxu0 %v1318_v3  ;;  %v1246_v55 = vpop.permute.xlu1 %1245 }
 0x24e   : > { %7713 = vmatpush3.msra.mxu1 %v1266_v54  ;;  %1742 = vmatprep.mubr.f32.mxu1 %v14038_v36  ;;  %v1310_v41 = vsel %vm485_vm0, %v1246_v55, %v1248_v38  ;;  %v1309_v57 = vsel %vm485_vm0, %v10239_v14, %v1246_v55  ;;  %v14059_v14 = vld [vmem:[#allocation25_spill] sm:$0xff] }
 0x24f   : > { %1770 = vmatpush1.msra.mxu0 %v1317_v45  ;;  %7714 = vmatprep.subr.mxu1 %v1248_v38 }
 0x250   : > { %7066 = vmatmul.mubr.msk.f32.gmra.mxu1 %vm1469_vm12, %v10216_v58  ;;  %1771 = vmatprep.subr.mxu0 %v1310_v41 }
 0x251   : > { %7715 = vmatpush3.msra.mxu1 %v1248_v38  ;;  %1772 = vmatpush1.msra.mxu0 %v1309_v57 }
 0x252   : > { %7716 = vmatprep.subr.msk.mxu1 %vm10002_vm5, %v10048_v15  ;;  %7067 = vmatprep.subr.msk.mxu0 %vm10020_vm10, %v14055_v30 }
 0x253   : > { %7717 = vmatpush3.msk.msra.mxu1 %vm10002_vm5, %v10048_v15  ;;  %7068 = vmatpush1.msk.msra.mxu0 %vm9820_vm6, %v14057_v33  ;;  %v14063_v15 = vmax.f32 %v14062_v20, 0.0 }
 0x254   : > { %7718 = vmatprep.subr.msk.mxu1 %vm10002_vm5, %v14059_v14  ;;  %7069 = vmatprep.subr.msk.mxu0 %vm10020_vm10, %v14061_v6 }
 0x255   : > { %7719 = vmatpush3.msk.msra.mxu1 %vm10002_vm5, %v14059_v14  ;;  %7070 = vmatpush1.msk.msra.mxu0 %vm9820_vm6, %v14063_v15 }
 0x256   : > { %7720 = vmatprep.subr.msk.mxu1 %vm10002_vm5, %v14064_v35  ;;  %7071 = vmatprep.subr.msk.mxu0 %vm10020_vm10, %v14066_v47 }
 0x257   : > { %7721 = vmatpush3.msk.msra.mxu1 %vm10002_vm5, %v14064_v35  ;;  %7724 = vmatprep.mubr.msk.f32.mxu1 %vm1469_vm12, %v10167_v34 }
 0x258   : > { %7722 = vmatprep.subr.msk.mxu1 %vm10002_vm5, %v14067_v19  ;;  %7072 = vmatpush1.msk.msra.mxu0 %vm9820_vm6, %v14069_v63 }
 0x259   : > { %7723 = vmatpush3.msk.msra.mxu1 %vm10002_vm5, %v14067_v19  ;;  %7073 = vmatprep.subr.msk.mxu0 %vm10020_vm10, %v14071_v27 }
 0x25a   : > { %7725 = vmatmul.mubr.msk.f32.vlgmr.msra.gmra.mxu1 %vm1469_vm12, %v10186_v31  ;;  %7074 = vmatpush1.msk.msra.mxu0 %vm9820_vm6, %v14073_v24  ;;  %v10433_v46 = vpop.permute.xlu1 %1466 }
 0x25b   : > { %1813 = vmatprep.mubr.f32.mxu0 %v14038_v36  ;;  %7727 = vmatprep.mubr.msk.f32.mxu1 %vm1469_vm12, %v10198_v40 }
 0x25c   : > { %7075 = vmatmul.mubr.msk.f32.vlgmr.msra.gmra.mxu0 %vm1469_vm12, %v10167_v34  ;;  %v10431_v34 = vpop.permute.xlu0 %1461 }
 0x25d   : > { %1819 = vmatprep.mubr.f32.mxu0 %v14038_v36 }
 0x25e   : > { %7728 = vmatmul.mubr.msk.f32.gmra.mxu1 %vm1469_vm12, %v10216_v58  ;;  %v10439_v8 = vpop.permute.xlu1 %1456 }
 0x25f   : > { %2926 = vmatprep.mubr.f32.mxu1 %v14038_v36 }
 0x260   : > { %7076 = vmatmul.mubr.msk.f32.gmra.mxu0 %vm1469_vm12, %v10186_v31  ;;  %v10435_v32 = vpop.permute.xlu0 %1451 }
 0x261   : > { %1825 = vmatprep.mubr.f32.mxu0 %v14038_v36 }
 0x264   : > { %7077 = vmatmul.mubr.msk.f32.gmra.mxu0 %vm1469_vm12, %v10198_v40 }
 0x265   : > { %1831 = vmatprep.mubr.f32.mxu0 %v14038_v36 }
 0x268   : > { %7078 = vmatmul.mubr.msk.f32.gmra.mxu0 %vm1469_vm12, %v10216_v58 }
 0x269   : > { %2837 = vmatprep.mubr.f32.mxu0 %v14038_v36 }
 0x2e5   : > { %v1548_v22 = vpop.f32.mrf.mxu1 }
 0x2e6   : > { %v1549_v31 = vadd.f32 %v1548_v22, %v10435_v32 }
 0x2e7   : > { %v1550_v17 = vpop.f32.mrf.mxu1 }
 0x2e8   : > { %v1923_v54 = vmax.f32 %v1549_v31, 0.0  ;;  %v1551_v40 = vadd.f32 %v1550_v17, %v10435_v32 }
 0x2e9   : > { %v1554_v13 = vpop.f32.mrf.mxu1 }
 0x2ea   : > { %v1924_v50 = vmax.f32 %v1551_v40, 0.0  ;;  %v1555_v58 = vadd.f32 %v1554_v13, %v10439_v8  ;;  %1995 = vrot.lane.b32.xlu1 %v1923_v54, %s9301_s30 }
 0x2eb   : > { %v1556_v62 = vpop.f32.mrf.mxu1 }
 0x2ec   : > { %v1932_v56 = vmax.f32 %v1555_v58, 0.0  ;;  %v1557_v52 = vadd.f32 %v1556_v62, %v10439_v8  ;;  %1997 = vrot.lane.b32.xlu0 %v1924_v50, %s9301_s30 }
 0x2ed   : > { %v1560_v16 = vpop.f32.mrf.mxu1 }
 0x2ee   : > { %v1933_v42 = vmax.f32 %v1557_v52, 0.0  ;;  %v1561_v53 = vadd.f32 %v1560_v16, %v10431_v34  ;;  %2013 = vrot.lane.b32.xlu1 %v1932_v56, %s9301_s30 }
 0x2ef   : > { %v1562_v59 = vpop.f32.mrf.mxu1 }
 0x2f0   : > { %v1941_v26 = vmax.f32 %v1561_v53, 0.0  ;;  %v1563_v7 = vadd.f32 %v1562_v59, %v10431_v34  ;;  %2015 = vrot.lane.b32.xlu0 %v1933_v42, %s9301_s30 }
 0x2f1   : > { %v1566_v10 = vpop.f32.mrf.mxu1 }
 0x2f2   : > { %v1942_v43 = vmax.f32 %v1563_v7, 0.0  ;;  %v1567_v48 = vadd.f32 %v1566_v10, %v10433_v46  ;;  %2031 = vrot.lane.b32.xlu1 %v1941_v26, %s9301_s30 }
 0x2f3   : > { %v1568_v61 = vpop.f32.mrf.mxu1 }
 0x2f4   : > { %v1950_v21 = vmax.f32 %v1567_v48, 0.0  ;;  %v1569_v44 = vadd.f32 %v1568_v61, %v10433_v46  ;;  %2033 = vrot.lane.b32.xlu0 %v1942_v43, %s9301_s30 }
 0x2f6   : > { %v1951_v18 = vmax.f32 %v1569_v44, 0.0  ;;  %2049 = vrot.lane.b32.xlu1 %v1950_v21, %s9301_s30 }
 0x2f8   : > { %2051 = vrot.lane.b32.xlu0 %v1951_v18, %s9301_s30 }
 0x2fd   : > { %v1637_v1 = vpop.f32.mrf.mxu0 }
 0x2fe   : > { %v1638_v3 = vadd.f32 %v1637_v1, %v10435_v32 }
 0x2ff   : > { %v1639_v39 = vpop.f32.mrf.mxu0 }
 0x300   : > { %v1925_v38 = vmax.f32 %v1638_v3, 0.0  ;;  %v1640_v45 = vadd.f32 %v1639_v39, %v10435_v32 }
 0x301   : > { %v1643_v55 = vpop.f32.mrf.mxu0  ;;  %v1726_v41 = vpop.f32.mrf.mxu1 }
 0x302   : > { %v1926_v57 = vmax.f32 %v1640_v45, 0.0  ;;  %v1644_v30 = vadd.f32 %v1643_v55, %v10439_v8  ;;  %1999 = vrot.lane.b32.xlu1 %v1925_v38, %s9301_s30  ;;  %v1727_v37 = vadd.f32 %v1726_v41, %v10435_v32 }
 0x303   : > { %v1645_v25 = vpop.f32.mrf.mxu0  ;;  %v1728_v33 = vpop.f32.mrf.mxu1 }
 0x304   : > { %v1934_v14 = vmax.f32 %v1644_v30, 0.0  ;;  %v1646_v6 = vadd.f32 %v1645_v25, %v10439_v8  ;;  %2001 = vrot.lane.b32.xlu0 %v1926_v57, %s9301_s30  ;;  %v1729_v15 = vadd.f32 %v1728_v33, %v10435_v32  ;;  %v1927_v47 = vmax.f32 %v1727_v37, 0.0 }
 0x306   : > { %v1935_v20 = vmax.f32 %v1646_v6, 0.0  ;;  %v1649_v35 = vpop.f32.mrf.mxu0  ;;  %v1732_v5 = vpop.f32.mrf.mxu1  ;;  %2017 = vrot.lane.b32.xlu1 %v1934_v14, %s9301_s30  ;;  %v1928_v51 = vmax.f32 %v1729_v15, 0.0 }
 0x307   : > { %v1650_v19 = vadd.f32 %v1649_v35, %v10431_v34  ;;  %v1733_v31 = vadd.f32 %v1732_v5, %v10439_v8 }
 0x308   : > { %v1651_v0 = vpop.f32.mrf.mxu0  ;;  %v1734_v63 = vpop.f32.mrf.mxu1  ;;  %2019 = vrot.lane.b32.xlu0 %v1935_v20, %s9301_s30 }
 0x309   : > { %v1652_v27 = vadd.f32 %v1651_v0, %v10431_v34  ;;  %v1943_v22 = vmax.f32 %v1650_v19, 0.0  ;;  %v1735_v54 = vadd.f32 %v1734_v63, %v10439_v8  ;;  %v1936_v50 = vmax.f32 %v1733_v31, 0.0 }
 0x30a   : > { %2003 = vrot.lane.b32.xlu1 %v1927_v47, %s9301_s30  ;;  %v1655_v28 = vpop.f32.mrf.mxu0 }
 0x30b   : > { %v1738_v24 = vpop.f32.mrf.mxu1  ;;  %v1944_v17 = vmax.f32 %v1652_v27, 0.0  ;;  %v1656_v58 = vadd.f32 %v1655_v28, %v10433_v46  ;;  %v1937_v62 = vmax.f32 %v1735_v54, 0.0 }
 0x30c   : > { %2005 = vrot.lane.b32.xlu0 %v1928_v51, %s9301_s30  ;;  %v1657_v40 = vpop.f32.mrf.mxu0  ;;  %v1739_v42 = vadd.f32 %v1738_v24, %v10431_v34 }
 0x30d   : > { %v1740_v13 = vpop.f32.mrf.mxu1  ;;  %v1658_v56 = vadd.f32 %v1657_v40, %v10433_v46  ;;  %v1952_v16 = vmax.f32 %v1656_v58, 0.0 }
 0x30e   : > { %2035 = vrot.lane.b32.xlu1 %v1943_v22, %s9301_s30  ;;  %v1741_v59 = vadd.f32 %v1740_v13, %v10431_v34  ;;  %v1945_v7 = vmax.f32 %v1739_v42, 0.0 }
 0x30f   : > { %v1953_v53 = vmax.f32 %v1658_v56, 0.0 }
 0x310   : > { %2037 = vrot.lane.b32.xlu0 %v1944_v17, %s9301_s30  ;;  %v1744_v52 = vpop.f32.mrf.mxu1  ;;  %v1946_v43 = vmax.f32 %v1741_v59, 0.0 }
 0x311   : > { %v1745_v10 = vadd.f32 %v1744_v52, %v10433_v46 }
 0x312   : > { %2021 = vrot.lane.b32.xlu1 %v1936_v50, %s9301_s30  ;;  %v1746_v26 = vpop.f32.mrf.mxu1 }
 0x313   : > { %v1747_v48 = vadd.f32 %v1746_v26, %v10433_v46  ;;  %v1954_v61 = vmax.f32 %v1745_v10, 0.0 }
 0x314   : > { %2023 = vrot.lane.b32.xlu0 %v1937_v62, %s9301_s30 }
 0x315   : > { %v1955_v44 = vmax.f32 %v1747_v48, 0.0 }
 0x316   : > { %2053 = vrot.lane.b32.xlu1 %v1952_v16, %s9301_s30 }
 0x318   : > { %2055 = vrot.lane.b32.xlu0 %v1953_v53, %s9301_s30 }
 0x31a   : > { %2039 = vrot.lane.b32.xlu1 %v1945_v7, %s9301_s30 }
 0x31c   : > { %v10484_v21 = vpop.f32.mrf.mxu0  ;;  %2041 = vrot.lane.b32.xlu0 %v1946_v43, %s9301_s30 }
 0x31e   : > { %v10487_v18 = vpop.f32.mrf.mxu0  ;;  %2057 = vrot.lane.b32.xlu1 %v1954_v61, %s9301_s30 }
 0x320   : > { %v1821_v1 = vpop.f32.mrf.mxu0  ;;  %2059 = vrot.lane.b32.xlu0 %v1955_v44, %s9301_s30 }
 0x321   : > { %v1822_v3 = vadd.f32 %v1821_v1, %v10439_v8 }
 0x322   : > { %v10492_v39 = vpop.f32.mrf.mxu0 }
 0x323   : > { %v1938_v38 = vmax.f32 %v1822_v3, 0.0 }
 0x324   : > { %v1827_v45 = vpop.f32.mrf.mxu0 }
 0x325   : > { %v1828_v55 = vadd.f32 %v1827_v45, %v10431_v34  ;;  %2025 = vrot.lane.b32.xlu0 %v1938_v38, %s9301_s30 }
 0x326   : > { %v1829_v41 = vpop.f32.mrf.mxu0 }
 0x327   : > { %v1947_v57 = vmax.f32 %v1828_v55, 0.0  ;;  %v1830_v30 = vadd.f32 %v1829_v41, %v10431_v34 }
 0x328   : > { %v1833_v25 = vpop.f32.mrf.mxu0 }
 0x329   : > { %v1948_v33 = vmax.f32 %v1830_v30, 0.0  ;;  %v1834_v14 = vadd.f32 %v1833_v25, %v10433_v46  ;;  %2043 = vrot.lane.b32.xlu1 %v1947_v57, %s9301_s30 }
 0x32a   : > { %v1835_v37 = vpop.f32.mrf.mxu0 }
 0x32b   : > { %v1836_v6 = vadd.f32 %v1835_v37, %v10433_v46  ;;  %2045 = vrot.lane.b32.xlu0 %v1948_v33, %s9301_s30  ;;  %v1956_v20 = vmax.f32 %v1834_v14, 0.0 }
 0x32d   : > { %v1957_v15 = vmax.f32 %v1836_v6, 0.0 }
 0x32f   : > { %2061 = vrot.lane.b32.xlu0 %v1956_v20, %s9301_s30  ;;  %2063 = vrot.lane.b32.xlu1 %v1957_v15, %s9301_s30 }
 0x35c   : > { %v1996_v35 = vpop.permute.xlu1 %1995 }
 0x35d   : > { %v2136_v5 = vsel %vm9700_vm14, %v1996_v35, 0.0 }
 0x35e   : > { %v1998_v47 = vpop.permute.xlu0 %1997  ;;  %2312 = vrot.lane.b32.xlu0 %v2136_v5, %s9298_s24 }
 0x35f   : > { %v2068_v19 = vsel %vm2067_vm2, %v1996_v35, %v1998_v47 }
 0x360   : > { %v2137_v0 = vsel %vm9748_vm3, %v2068_v19, 0.0  ;;  %v2014_v63 = vpop.permute.xlu1 %2013 }
 0x361   : > { %2314 = vrot.lane.b32.xlu1 %v2137_v0, %s9298_s24  ;;  %v2145_v28 = vsel %vm9700_vm14, %v2014_v63, 0.0 }
 0x362   : > { %v2016_v51 = vpop.permute.xlu0 %2015  ;;  %2208 = vrot.lane.b32.xlu0 %v2136_v5, %s9297_s18 }
 0x363   : > { %v2076_v27 = vsel %vm2067_vm2, %v2014_v63, %v2016_v51 }
 0x364   : > { %v2146_v24 = vsel %vm9748_vm3, %v2076_v27, 0.0  ;;  %v2032_v22 = vpop.permute.xlu1 %2031 }
 0x365   : > { %2210 = vrot.lane.b32.xlu1 %v2137_v0, %s9297_s18  ;;  %v2154_v54 = vsel %vm9700_vm14, %v2032_v22, 0.0 }
 0x366   : > { %2330 = vrot.lane.b32.xlu0 %v2145_v28, %s9298_s24  ;;  %v2034_v31 = vpop.permute.xlu0 %2033 }
 0x367   : > { %v2084_v17 = vsel %vm2067_vm2, %v2032_v22, %v2034_v31 }
 0x368   : > { %v2155_v40 = vsel %vm9748_vm3, %v2084_v17, 0.0  ;;  %v2050_v13 = vpop.permute.xlu1 %2049 }
 0x369   : > { %2332 = vrot.lane.b32.xlu1 %v2146_v24, %s9298_s24  ;;  %v2163_v62 = vsel %vm9700_vm14, %v2050_v13, 0.0 }
 0x36a   : > { %2226 = vrot.lane.b32.xlu0 %v2145_v28, %s9297_s18  ;;  %v2052_v50 = vpop.permute.xlu0 %2051 }
 0x36b   : > { %v2092_v58 = vsel %vm2067_vm2, %v2050_v13, %v2052_v50 }
 0x36c   : > { %v2164_v52 = vsel %vm9748_vm3, %v2092_v58, 0.0 }
 0x36d   : > { %2228 = vrot.lane.b32.xlu1 %v2146_v24, %s9297_s18 }
 0x36e   : > { %2348 = vrot.lane.b32.xlu0 %v2154_v54, %s9298_s24 }
 0x371   : > { %2350 = vrot.lane.b32.xlu1 %v2155_v40, %s9298_s24 }
 0x372   : > { %2244 = vrot.lane.b32.xlu0 %v2154_v54, %s9297_s18 }
 0x374   : > { %v2000_v56 = vpop.permute.xlu1 %1999 }
 0x375   : > { %2246 = vrot.lane.b32.xlu1 %v2155_v40, %s9297_s18  ;;  %v2069_v16 = vsel %vm2067_vm2, %v1998_v47, %v2000_v56 }
 0x376   : > { %2366 = vrot.lane.b32.xlu0 %v2163_v62, %s9298_s24  ;;  %v2002_v42 = vpop.permute.xlu0 %2001  ;;  %v2138_v59 = vsel %vm9681_vm11, %v2069_v16, 0.0 }
 0x377   : > { %v2070_v53 = vsel %vm2067_vm2, %v2000_v56, %v2002_v42 }
 0x378   : > { %v2018_v26 = vpop.permute.xlu1 %2017  ;;  %v2139_v7 = vsel %vm9691_vm13, %v2070_v53, 0.0 }
 0x379   : > { %2368 = vrot.lane.b32.xlu1 %v2164_v52, %s9298_s24  ;;  %v2077_v10 = vsel %vm2067_vm2, %v2016_v51, %v2018_v26 }
 0x37a   : > { %2262 = vrot.lane.b32.xlu0 %v2163_v62, %s9297_s18  ;;  %v2020_v43 = vpop.permute.xlu0 %2019  ;;  %v2147_v44 = vsel %vm9681_vm11, %v2077_v10, 0.0 }
 0x37b   : > { %v2078_v48 = vsel %vm2067_vm2, %v2018_v26, %v2020_v43 }
 0x37c   : > { %v2004_v61 = vpop.permute.xlu1 %2003  ;;  %v2148_v1 = vsel %vm9691_vm13, %v2078_v48, 0.0 }
 0x37d   : > { %2264 = vrot.lane.b32.xlu1 %v2164_v52, %s9297_s18  ;;  %v2071_v3 = vsel %vm2067_vm2, %v2002_v42, %v2004_v61 }
 0x37e   : > { %2316 = vrot.lane.b32.xlu0 %v2138_v59, %s9298_s24  ;;  %v10559_v45 = vpop.permute.xlu0 %2005  ;;  %v2140_v55 = vsel %vm9869_vm9, %v2071_v3, 0.0 }
 0x37f   : > { %v2072_v57 = vsel %vm2067_vm2, %v2004_v61, %v10559_v45 }
 0x380   : > { %v2036_v38 = vpop.permute.xlu1 %2035  ;;  %v2141_v33 = vsel %vm9932_vm15, %v2072_v57, 0.0 }
 0x381   : > { %2318 = vrot.lane.b32.xlu1 %v2139_v7, %s9298_s24  ;;  %v2085_v41 = vsel %vm2067_vm2, %v2034_v31, %v2036_v38 }
 0x382   : > { %2212 = vrot.lane.b32.xlu0 %v2138_v59, %s9297_s18  ;;  %v2156_v30 = vsel %vm9681_vm11, %v2085_v41, 0.0  ;;  %v2038_v25 = vpop.permute.xlu0 %2037 }
 0x383   : > { %v2086_v14 = vsel %vm2067_vm2, %v2036_v38, %v2038_v25 }
 0x384   : > { %v2022_v37 = vpop.permute.xlu1 %2021  ;;  %v2157_v6 = vsel %vm9691_vm13, %v2086_v14, 0.0 }
 0x385   : > { %2214 = vrot.lane.b32.xlu1 %v2139_v7, %s9297_s18  ;;  %v2079_v20 = vsel %vm2067_vm2, %v2020_v43, %v2022_v37 }
 0x386   : > { %2334 = vrot.lane.b32.xlu0 %v2147_v44, %s9298_s24  ;;  %v10581_v15 = vpop.permute.xlu0 %2023  ;;  %v2149_v5 = vsel %vm9869_vm9, %v2079_v20, 0.0 }
 0x387   : > { %v2080_v35 = vsel %vm2067_vm2, %v2022_v37, %v10581_v15 }
 0x388   : > { %v2054_v47 = vpop.permute.xlu1 %2053  ;;  %v2150_v19 = vsel %vm9932_vm15, %v2080_v35, 0.0 }
 0x389   : > { %2336 = vrot.lane.b32.xlu1 %v2148_v1, %s9298_s24  ;;  %v2093_v0 = vsel %vm2067_vm2, %v2052_v50, %v2054_v47 }
 0x38a   : > { %2230 = vrot.lane.b32.xlu0 %v2147_v44, %s9297_s18  ;;  %v2056_v63 = vpop.permute.xlu0 %2055  ;;  %v2165_v27 = vsel %vm9681_vm11, %v2093_v0, 0.0 }
 0x38b   : > { %v2094_v51 = vsel %vm2067_vm2, %v2054_v47, %v2056_v63 }
 0x38c   : > { %v2040_v28 = vpop.permute.xlu1 %2039  ;;  %v2166_v24 = vsel %vm9691_vm13, %v2094_v51, 0.0 }
 0x38d   : > { %2232 = vrot.lane.b32.xlu1 %v2148_v1, %s9297_s18  ;;  %v2087_v22 = vsel %vm2067_vm2, %v2038_v25, %v2040_v28 }
 0x38e   : > { %2320 = vrot.lane.b32.xlu0 %v2140_v55, %s9298_s24  ;;  %v10604_v31 = vpop.permute.xlu0 %2041  ;;  %v2158_v54 = vsel %vm9869_vm9, %v2087_v22, 0.0 }
 0x38f   : > { %v2088_v17 = vsel %vm2067_vm2, %v2040_v28, %v10604_v31 }
 0x390   : > { %v2058_v40 = vpop.permute.xlu1 %2057  ;;  %v2159_v13 = vsel %vm9932_vm15, %v2088_v17, 0.0 }
 0x391   : > { %2216 = vrot.lane.b32.xlu1 %v2140_v55, %s9297_s18  ;;  %v2095_v50 = vsel %vm2067_vm2, %v2056_v63, %v2058_v40 }
 0x392   : > { %2352 = vrot.lane.b32.xlu0 %v2156_v30, %s9298_s24  ;;  %v10617_v58 = vpop.permute.xlu0 %2059  ;;  %v2167_v56 = vsel %vm9869_vm9, %v2095_v50, 0.0 }
 0x393   : > { %v2096_v62 = vsel %vm2067_vm2, %v2058_v40, %v10617_v58 }
 0x394   : > { %v2168_v52 = vsel %vm9932_vm15, %v2096_v62, 0.0 }
 0x395   : > { %2322 = vrot.lane.b32.xlu1 %v2141_v33, %s9298_s24 }
 0x396   : > { %2248 = vrot.lane.b32.xlu0 %v2156_v30, %s9297_s18 }
 0x397   : > { %v10631_v16 = vpop.permute.xlu0 %2025 }
 0x399   : > { %2354 = vrot.lane.b32.xlu1 %v2157_v6, %s9298_s24 }
 0x39a   : > { %2218 = vrot.lane.b32.xlu0 %v2141_v33, %s9297_s18 }
 0x39b   : > { %v10635_v53 = vpop.permute.xlu1 %2043 }
 0x39d   : > { %2250 = vrot.lane.b32.xlu1 %v2157_v6, %s9297_s18  ;;  %v10633_v42 = vpop.permute.xlu0 %2045 }
 0x39e   : > { %2338 = vrot.lane.b32.xlu0 %v2149_v5, %s9298_s24  ;;  %14074 = vst [vmem:[#allocation17_spill] sm:$0xff] %v10633_v42 }
 0x3a1   : > { %2340 = vrot.lane.b32.xlu1 %v2150_v19, %s9298_s24  ;;  %v10637_v59 = vpop.permute.xlu0 %2061  ;;  %v10639_v26 = vpop.permute.xlu1 %2063 }
 0x3a2   : > { %2234 = vrot.lane.b32.xlu0 %v2149_v5, %s9297_s18  ;;  %14075 = vst [vmem:[#allocation14_spill] sm:$0xff] %v10639_v26 }
 0x3a5   : > { %2236 = vrot.lane.b32.xlu1 %v2150_v19, %s9297_s18 }
 0x3a6   : > { %2370 = vrot.lane.b32.xlu0 %v2165_v27, %s9298_s24 }
 0x3a9   : > { %2372 = vrot.lane.b32.xlu1 %v2166_v24, %s9298_s24 }
 0x3aa   : > { %2266 = vrot.lane.b32.xlu0 %v2165_v27, %s9297_s18 }
 0x3ad   : > { %2268 = vrot.lane.b32.xlu1 %v2166_v24, %s9297_s18 }
 0x3ae   : > { %2356 = vrot.lane.b32.xlu0 %v2158_v54, %s9298_s24 }
 0x3b1   : > { %2358 = vrot.lane.b32.xlu1 %v2159_v13, %s9298_s24 }
 0x3b2   : > { %2252 = vrot.lane.b32.xlu0 %v2158_v54, %s9297_s18 }
 0x3b5   : > { %2254 = vrot.lane.b32.xlu1 %v2159_v13, %s9297_s18 }
 0x3b6   : > { %2374 = vrot.lane.b32.xlu0 %v2167_v56, %s9298_s24 }
 0x3b9   : > { %2376 = vrot.lane.b32.xlu1 %v2168_v52, %s9298_s24 }
 0x3ba   : > { %2270 = vrot.lane.b32.xlu0 %v2167_v56, %s9297_s18 }
 0x3bd   : > { %2272 = vrot.lane.b32.xlu1 %v2168_v52, %s9297_s18 }
 0x3d0   : > { %v2313_v7 = vpop.permute.xlu0 %2312 }
 0x3d3   : > { %v2315_v10 = vpop.permute.xlu1 %2314 }
 0x3d4   : > { %v10641_v43 = vpop.permute.xlu0 %2208  ;;  %v2384_v48 = vsel %vm557_vm1, %v2313_v7, %v2315_v10 }
 0x3d5   : > { %2516 = vrot.lane.b32.xlu0 %v2384_v48, %s9297_s18 }
 0x3d7   : > { %v10645_v61 = vpop.permute.xlu1 %2210 }
 0x3d8   : > { %v2331_v44 = vpop.permute.xlu0 %2330 }
 0x3db   : > { %v2333_v1 = vpop.permute.xlu1 %2332 }
 0x3dc   : > { %v2227_v3 = vpop.permute.xlu0 %2226  ;;  %v2392_v38 = vsel %vm557_vm1, %v2331_v44, %v2333_v1 }
 0x3dd   : > { %2534 = vrot.lane.b32.xlu1 %v2392_v38, %s9297_s18 }
 0x3df   : > { %v2229_v55 = vpop.permute.xlu1 %2228 }
 0x3e0   : > { %v2349_v41 = vpop.permute.xlu0 %2348  ;;  %v10650_v57 = vsel %vm485_vm0, %v2227_v3, %v2229_v55 }
 0x3e1   : > { %2462 = vrot.lane.b32.xlu1 %v10650_v57, %s9297_s18 }
 0x3e3   : > { %v2351_v30 = vpop.permute.xlu1 %2350 }
 0x3e4   : > { %v2245_v25 = vpop.permute.xlu0 %2244  ;;  %v2400_v33 = vsel %vm557_vm1, %v2349_v41, %v2351_v30 }
 0x3e5   : > { %2552 = vrot.lane.b32.xlu0 %v2400_v33, %s9297_s18 }
 0x3e7   : > { %v2247_v14 = vpop.permute.xlu1 %2246 }
 0x3e8   : > { %v2367_v37 = vpop.permute.xlu0 %2366  ;;  %v10657_v6 = vsel %vm485_vm0, %v2245_v25, %v2247_v14 }
 0x3e9   : > { %2480 = vrot.lane.b32.xlu0 %v10657_v6, %s9297_s18 }
 0x3eb   : > { %v2369_v20 = vpop.permute.xlu1 %2368 }
 0x3ec   : > { %v2263_v35 = vpop.permute.xlu0 %2262  ;;  %v2408_v5 = vsel %vm557_vm1, %v2367_v37, %v2369_v20 }
 0x3ed   : > { %2570 = vrot.lane.b32.xlu1 %v2408_v5, %s9297_s18 }
 0x3ef   : > { %v10663_v47 = vpop.permute.xlu1 %2264 }
 0x3f0   : > { %v2317_v19 = vpop.permute.xlu0 %2316  ;;  %v10667_v0 = vsel %vm485_vm0, %v2263_v35, %v10663_v47 }
 0x3f1   : > { %2498 = vrot.lane.b32.xlu1 %v10667_v0, %s9297_s18  ;;  %v2385_v63 = vsel %vm557_vm1, %v2315_v10, %v2317_v19 }
 0x3f2   : > { %2518 = vrot.lane.b32.xlu0 %v2385_v63, %s9297_s18 }
 0x3f3   : > { %v2319_v51 = vpop.permute.xlu1 %2318 }
 0x3f4   : > { %v2213_v27 = vpop.permute.xlu0 %2212  ;;  %v2386_v28 = vsel %vm557_vm1, %v2317_v19, %v2319_v51 }
 0x3f5   : > { %2520 = vrot.lane.b32.xlu1 %v2386_v28, %s9297_s18  ;;  %v10677_v24 = vsel %vm485_vm0, %v10645_v61, %v2213_v27 }
 0x3f6   : > { %2446 = vrot.lane.b32.xlu0 %v10677_v24, %s9297_s18 }
 0x3f7   : > { %v10681_v22 = vpop.permute.xlu1 %2214 }
 0x3f8   : > { %v2335_v17 = vpop.permute.xlu0 %2334  ;;  %v10685_v54 = vsel %vm485_vm0, %v2213_v27, %v10681_v22 }
 0x3f9   : > { %2448 = vrot.lane.b32.xlu1 %v10685_v54, %s9297_s18  ;;  %v2393_v50 = vsel %vm557_vm1, %v2333_v1, %v2335_v17 }
 0x3fb   : > { %v2337_v40 = vpop.permute.xlu1 %2336 }
 0x3fc   : > { %v2231_v13 = vpop.permute.xlu0 %2230  ;;  %v2394_v62 = vsel %vm557_vm1, %v2335_v17, %v2337_v40 }
 0x3fd   : > { %2536 = vrot.lane.b32.xlu1 %v2393_v50, %s9297_s18  ;;  %2538 = vrot.lane.b32.xlu0 %v2394_v62, %s9297_s18  ;;  %v10694_v7 = vsel %vm485_vm0, %v2229_v55, %v2231_v13 }
 0x3ff   : > { %v2233_v56 = vpop.permute.xlu1 %2232 }
 0x400   : > { %v2321_v52 = vpop.permute.xlu0 %2320  ;;  %v10697_v10 = vsel %vm485_vm0, %v2231_v13, %v2233_v56 }
 0x401   : > { %2464 = vrot.lane.b32.xlu1 %v10694_v7, %s9297_s18  ;;  %2466 = vrot.lane.b32.xlu0 %v10697_v10, %s9297_s18  ;;  %v2387_v1 = vsel %vm557_vm1, %v2319_v51, %v2321_v52 }
 0x403   : > { %v10703_v48 = vpop.permute.xlu1 %2216 }
 0x404   : > { %v2353_v44 = vpop.permute.xlu0 %2352 }
 0x405   : > { %2522 = vrot.lane.b32.xlu1 %v2387_v1, %s9297_s18  ;;  %v2401_v3 = vsel %vm557_vm1, %v2351_v30, %v2353_v44 }
 0x406   : > { %2554 = vrot.lane.b32.xlu0 %v2401_v3, %s9297_s18 }
 0x407   : > { %v10709_v38 = vpop.permute.xlu1 %2322 }
 0x408   : > { %14076 = vst [vmem:[#allocation25_spill] sm:$0xff] %v10709_v38  ;;  %v2249_v55 = vpop.permute.xlu0 %2248  ;;  %v2388_v41 = vsel %vm557_vm1, %v2321_v52, %v10709_v38 }
 0x409   : > { %v10719_v35 = vsel %vm485_vm0, %v2247_v14, %v2249_v55 }
 0x40a   : > { %2524 = vrot.lane.b32.xlu0 %v2388_v41, %s9297_s18 }
 0x40b   : > { %v2355_v25 = vpop.permute.xlu1 %2354 }
 0x40c   : > { %v10714_v33 = vpop.permute.xlu0 %2218  ;;  %v2402_v37 = vsel %vm557_vm1, %v2353_v44, %v2355_v25 }
 0x40d   : > { %14077 = vst [vmem:[#allocation24_spill] sm:$0xff] %v10714_v33  ;;  %2556 = vrot.lane.b32.xlu1 %v2402_v37, %s9297_s18 }
 0x40e   : > { %2482 = vrot.lane.b32.xlu0 %v10719_v35, %s9297_s18 }
 0x40f   : > { %v2251_v30 = vpop.permute.xlu1 %2250 }
 0x410   : > { %v2339_v5 = vpop.permute.xlu0 %2338  ;;  %v10724_v19 = vsel %vm485_vm0, %v2249_v55, %v2251_v30 }
 0x411   : > { %2484 = vrot.lane.b32.xlu1 %v10724_v19, %s9297_s18  ;;  %v2395_v63 = vsel %vm557_vm1, %v2337_v40, %v2339_v5 }
 0x412   : > { %2540 = vrot.lane.b32.xlu0 %v2395_v63, %s9297_s18 }
 0x413   : > { %v10730_v51 = vpop.permute.xlu1 %2340 }
 0x414   : > { %14078 = vst [vmem:[#allocation15_spill] sm:$0xff] %v10730_v51  ;;  %v2235_v27 = vpop.permute.xlu0 %2234 }
 0x415   : > { %v10733_v14 = vsel %vm485_vm0, %v2233_v56, %v2235_v27  ;;  %v2396_v56 = vsel %vm557_vm1, %v2339_v5, %v10730_v51 }
 0x416   : > { %2468 = vrot.lane.b32.xlu0 %v10733_v14, %s9297_s18 }
 0x417   : > { %v10737_v28 = vpop.permute.xlu1 %2236 }
 0x418   : > { %14079 = vst [vmem:[#allocation20_spill] sm:$0xff] %v10737_v28  ;;  %v2371_v17 = vpop.permute.xlu0 %2370  ;;  %v10764_v37 = vsel %vm485_vm0, %v2235_v27, %v10737_v28 }
 0x419   : > { %v2409_v13 = vsel %vm557_vm1, %v2369_v20, %v2371_v17  ;;  %14081 = vst [vmem:[#allocation23_spill] sm:$0xff] %v10764_v37 }
 0x41a   : > { %2572 = vrot.lane.b32.xlu1 %v2409_v13, %s9297_s18 }
 0x41b   : > { %v2373_v50 = vpop.permute.xlu1 %2372 }
 0x41c   : > { %v2267_v40 = vpop.permute.xlu0 %2266  ;;  %v2410_v62 = vsel %vm557_vm1, %v2371_v17, %v2373_v50 }
 0x41d   : > { %2574 = vrot.lane.b32.xlu0 %v2410_v62, %s9297_s18  ;;  %v10753_v20 = vsel %vm485_vm0, %v10663_v47, %v2267_v40 }
 0x41e   : > { %2542 = vrot.lane.b32.xlu1 %v2396_v56, %s9297_s18  ;;  %v1824_v56 = vadd.f32 %v10492_v39, %v10439_v8 }
 0x41f   : > { %v2269_v52 = vpop.permute.xlu1 %2268 }
 0x420   : > { %v2357_v44 = vpop.permute.xlu0 %2356  ;;  %v10747_v1 = vsel %vm485_vm0, %v2267_v40, %v2269_v52 }
 0x421   : > { %2502 = vrot.lane.b32.xlu0 %v10747_v1, %s9297_s18  ;;  %v2403_v17 = vsel %vm557_vm1, %v2355_v25, %v2357_v44 }
 0x422   : > { %2500 = vrot.lane.b32.xlu1 %v10753_v20, %s9297_s18 }
 0x423   : > { %v10757_v3 = vpop.permute.xlu1 %2358 }
 0x424   : > { %14080 = vst [vmem:[#allocation19_spill] sm:$0xff] %v10757_v3  ;;  %v2253_v55 = vpop.permute.xlu0 %2252  ;;  %v2404_v41 = vsel %vm557_vm1, %v2357_v44, %v10757_v3  ;;  %v10800_v44 = vsel %vm485_vm0, %v10641_v43, %v10645_v61 }
 0x425   : > { %2560 = vrot.lane.b32.xlu0 %v2404_v41, %s9297_s18  ;;  %v10781_v40 = vsel %vm485_vm0, %v2251_v30, %v2253_v55  ;;  %v1939_v30 = vmax.f32 %v1824_v56, 0.0  ;;  %v1816_v41 = vadd.f32 %v10484_v21, %v10435_v32  ;;  %v2090_v21 = vsel %vm2067_vm2, %v10635_v53, %v10633_v42 }
 0x426   : > { %2470 = vrot.lane.b32.xlu1 %v10764_v37, %s9297_s18  ;;  %v2089_v56 = vsel %vm2067_vm2, %v10604_v31, %v10635_v53 }
 0x427   : > { %v10768_v47 = vpop.permute.xlu1 %2254 }
 0x428   : > { %14082 = vst [vmem:[#allocation13_spill] sm:$0xff] %v10768_v47  ;;  %v2375_v5 = vpop.permute.xlu0 %2374  ;;  %v10772_v63 = vsel %vm485_vm0, %v2253_v55, %v10768_v47  ;;  %v10812_v55 = vsel %vm485_vm0, %v10703_v48, %v10714_v33 }
 0x429   : > { %14083 = vst [vmem:[#allocation22_spill] sm:$0xff] %v10772_v63  ;;  %2488 = vrot.lane.b32.xlu0 %v10772_v63, %s9297_s18  ;;  %v2411_v27 = vsel %vm557_vm1, %v2373_v50, %v2375_v5  ;;  %14086 = vst [vmem:[#allocation27_spill] sm:$0xff] %v10812_v55 }
 0x42a   : > { %2558 = vrot.lane.b32.xlu1 %v2403_v17, %s9297_s18  ;;  %v1929_v17 = vmax.f32 %v1816_v41, 0.0 }
 0x42b   : > { %v10783_v62 = vpop.permute.xlu1 %2376 }
 0x42c   : > { %v2271_v13 = vpop.permute.xlu0 %2270  ;;  %14084 = vst [vmem:[#allocation12_spill] sm:$0xff] %v10783_v62  ;;  %v2412_v50 = vsel %vm557_vm1, %v2375_v5, %v10783_v62  ;;  %v10831_v5 = vsel %vm485_vm0, %v10681_v22, %v10703_v48  ;;  %v2097_v22 = vsel %vm2067_vm2, %v10617_v58, %v10637_v59  ;;  %v10850_v48 = vsel %vm10020_vm10, %v2090_v21, 0.0 }
 0x42d   : > { %2576 = vrot.lane.b32.xlu0 %v2411_v27, %s9297_s18  ;;  %v10790_v25 = vsel %vm485_vm0, %v2269_v52, %v2271_v13  ;;  %v1818_v52 = vadd.f32 %v10487_v18, %v10435_v32  ;;  %v2098_v18 = vsel %vm2067_vm2, %v10637_v59, %v10639_v26  ;;  %v10865_v58 = vsel %vm9820_vm6, %v2089_v56, 0.0 }
 0x42e   : > { %2486 = vrot.lane.b32.xlu1 %v10781_v40, %s9297_s18  ;;  %v10837_v27 = vsel %vm10020_vm10, %v2098_v18, 0.0  ;;  %v2081_v59 = vsel %vm2067_vm2, %v10581_v15, %v10631_v16 }
 0x42f   : > { %v10804_v39 = vpop.permute.xlu1 %2272  ;;  %v1930_v61 = vmax.f32 %v1818_v52, 0.0 }
 0x430   : > { %14085 = vst [vmem:[#allocation26_spill] sm:$0xff] %v10804_v39  ;;  %v10818_v43 = vsel %vm485_vm0, %v2271_v13, %v10804_v39  ;;  %v10856_v13 = vsel %vm9820_vm6, %v2097_v22, 0.0 }
 0x431   : > { %2504 = vrot.lane.b32.xlu0 %v10790_v25, %s9297_s18  ;;  %14087 = vst [vmem:[#allocation28_spill] sm:$0xff] %v10818_v43 }
 0x432   : > { %2578 = vrot.lane.b32.xlu1 %v2412_v50, %s9297_s18  ;;  %v10874_v50 = vsel %vm9820_vm6, %v2081_v59, 0.0 }
 0x435   : > { %2444 = vrot.lane.b32.xlu0 %v10800_v44, %s9297_s18 }
 0x436   : > { %2027 = vrot.lane.b32.xlu1 %v1939_v30, %s9301_s30 }
 0x439   : > { %2452 = vrot.lane.b32.xlu0 %v10812_v55, %s9297_s18 }
 0x43a   : > { %2506 = vrot.lane.b32.xlu1 %v10818_v43, %s9297_s18 }
 0x43d   : > { %2009 = vrot.lane.b32.xlu0 %v1930_v61, %s9301_s30 }
 0x43e   : > { %2450 = vrot.lane.b32.xlu1 %v10831_v5, %s9297_s18 }
 0x441   : > { %2380 = vrot.lane.b32.xlu0 %v10837_v27, %s9298_s24 }
 0x442   : > { %2007 = vrot.lane.b32.xlu1 %v1929_v17, %s9301_s30 }
 0x445   : > { %2362 = vrot.lane.b32.xlu0 %v10850_v48, %s9298_s24 }
 0x446   : > { %2378 = vrot.lane.b32.xlu1 %v10856_v13, %s9298_s24 }
 0x447   : > { %v2517_v53 = vpop.permute.xlu0 %2516 }
 0x44a   : > { %2360 = vrot.lane.b32.xlu1 %v10865_v58, %s9298_s24 }
 0x44e   : > { %2342 = vrot.lane.b32.xlu1 %v10874_v50, %s9298_s24 }
 0x44f   : > { %v2535_v31 = vpop.permute.xlu1 %2534 }
 0x453   : > { %v2463_v30 = vpop.permute.xlu1 %2462 }
 0x457   : > { %v2553_v52 = vpop.permute.xlu0 %2552 }
 0x45b   : > { %v2481_v41 = vpop.permute.xlu0 %2480 }
 0x45f   : > { %v2571_v61 = vpop.permute.xlu1 %2570 }
 0x463   : > { %v2499_v18 = vpop.permute.xlu1 %2498 }
 0x464   : > { %v2519_v17 = vpop.permute.xlu0 %2518 }
 0x467   : > { %v10878_v21 = vpop.permute.xlu1 %2520 }
 0x468   : > { %v10880_v15 = vpop.permute.xlu0 %2446 }
 0x46b   : > { %v10882_v22 = vpop.permute.xlu1 %2448 }
 0x46f   : > { %v10884_v56 = vpop.permute.xlu0 %2538  ;;  %v2537_v59 = vpop.permute.xlu1 %2536 }
 0x470   : > { %v2629_v51 = vsel %vm485_vm0, %v2537_v59, %v10884_v56  ;;  %v2628_v38 = vsel %vm485_vm0, %v2535_v31, %v2537_v59 }
 0x473   : > { %v10886_v4 = vpop.permute.xlu0 %2466  ;;  %v2465_v60 = vpop.permute.xlu1 %2464 }
 0x477   : > { %v10890_v49 = vpop.permute.xlu1 %2522 }
 0x478   : > { %v2555_v23 = vpop.permute.xlu0 %2554 }
 0x479   : > { %v2636_v62 = vsel %vm485_vm0, %v2553_v52, %v2555_v23  ;;  %v2597_v52 = vsel %vm485_vm0, %v2465_v60, %v10886_v4 }
 0x47c   : > { %v10888_v9 = vpop.permute.xlu0 %2524 }
 0x47f   : > { %v2557_v55 = vpop.permute.xlu1 %2556 }
 0x480   : > { %v2483_v11 = vpop.permute.xlu0 %2482  ;;  %v2637_v39 = vsel %vm485_vm0, %v2555_v23, %v2557_v55 }
 0x481   : > { %v2604_v31 = vsel %vm485_vm0, %v2481_v41, %v2483_v11 }
 0x483   : > { %v10894_v63 = vpop.permute.xlu1 %2484 }
 0x484   : > { %v10892_v37 = vpop.permute.xlu0 %2540 }
 0x488   : > { %v10896_v43 = vpop.permute.xlu0 %2468 }
 0x48c   : > { %v2573_v2 = vpop.permute.xlu1 %2572 }
 0x48d   : > { %v2644_v28 = vsel %vm485_vm0, %v2571_v61, %v2573_v2  ;;  %v2596_v61 = vsel %vm485_vm0, %v2463_v30, %v2465_v60 }
 0x48f   : > { %v2575_v26 = vpop.permute.xlu0 %2574 }
 0x490   : > { %v10898_v42 = vpop.permute.xlu1 %2542  ;;  %v2645_v33 = vsel %vm485_vm0, %v2573_v2, %v2575_v26  ;;  %v2621_v2 = vsel %vm485_vm0, %v2519_v17, %v10878_v21 }
 0x491   : > { %2781 = vmatprep.subr.mxu0 %v2645_v33 }
 0x492   : > { %2782 = vmatpush1.msra.mxu0 %v2644_v28  ;;  %v2620_v28 = vsel %vm485_vm0, %v2517_v53, %v2519_v17 }
 0x493   : > { %v10903_v47 = vpop.permute.xlu0 %2502  ;;  %2783 = vmatprep.subr.mxu0 %v2637_v39 }
 0x494   : > { %2784 = vmatpush1.msra.mxu0 %v2636_v62  ;;  %v2501_v3 = vpop.permute.xlu1 %2500 }
 0x495   : > { %2785 = vmatprep.subr.mxu0 %v2629_v51  ;;  %v2613_v23 = vsel %vm485_vm0, %v2501_v3, %v10903_v47  ;;  %v2612_v51 = vsel %vm485_vm0, %v2499_v18, %v2501_v3  ;;  %v2589_v3 = vsel %vm485_vm0, %v10880_v15, %v10882_v22 }
 0x496   : > { %2786 = vmatpush1.msra.mxu0 %v2628_v38  ;;  %v2605_v38 = vsel %vm485_vm0, %v2483_v11, %v10894_v63 }
 0x497   : > { %v10911_v33 = vpop.permute.xlu0 %2560  ;;  %2787 = vmatprep.subr.mxu0 %v2621_v2 }
 0x498   : > { %2788 = vmatpush1.msra.mxu0 %v2620_v28  ;;  %v10914_v39 = vpop.permute.xlu1 %2470 }
 0x499   : > { %2789 = vmatprep.subr.mxu0 %v2613_v23 }
 0x49a   : > { %2790 = vmatpush1.msra.mxu0 %v2612_v51 }
 0x49b   : > { %v10921_v62 = vpop.permute.xlu0 %2488  ;;  %2791 = vmatprep.subr.mxu0 %v2605_v38 }
 0x49c   : > { %2792 = vmatpush1.msra.mxu0 %v2604_v31  ;;  %v2559_v53 = vpop.permute.xlu1 %2558 }
 0x49d   : > { %2793 = vmatprep.subr.mxu0 %v2597_v52  ;;  %v2639_v60 = vsel %vm485_vm0, %v2559_v53, %v10911_v33  ;;  %v2638_v51 = vsel %vm485_vm0, %v2557_v55, %v2559_v53  ;;  %v7726_v52 = vpop.f32.mrf.mxu1 }
 0x49e   : > { %2794 = vmatpush1.msra.mxu0 %v2596_v61 }
 0x49f   : > { %v2577_v18 = vpop.permute.xlu0 %2576  ;;  %2795 = vmatprep.subr.mxu0 %v2589_v3 }
 0x4a0   : > { %v2487_v17 = vpop.permute.xlu1 %2486  ;;  %v2646_v41 = vsel %vm485_vm0, %v2575_v26, %v2577_v18  ;;  %v2631_v26 = vsel %vm485_vm0, %v10892_v37, %v10898_v42 }
 0x4a3   : > { %v2505_v59 = vpop.permute.xlu0 %2504 }
 0x4a4   : > { %v10930_v2 = vpop.permute.xlu1 %2578 }
 0x4a5   : > { %v2647_v11 = vsel %vm485_vm0, %v2577_v18, %v10930_v2 }
 0x4a6   : > { %2870 = vmatprep.subr.mxu1 %v2647_v11  ;;  %v14088_v11 = vld [vmem:[#allocation25_spill] sm:$0xff] }
 0x4a7   : > { %v2445_v28 = vpop.permute.xlu0 %2444  ;;  %2871 = vmatpush1.msra.mxu1 %v2646_v41 }
 0x4a8   : > { %v2588_v30 = vsel %vm485_vm0, %v2445_v28, %v10880_v15  ;;  %2872 = vmatprep.subr.mxu1 %v2639_v60  ;;  %v10939_v23 = vpop.permute.xlu1 %2027  ;;  %v2630_v15 = vsel %vm485_vm0, %v10884_v56, %v10892_v37  ;;  %v2622_v37 = vsel %vm485_vm0, %v10878_v21, %v10890_v49 }
 0x4a9   : > { %v2082_v38 = vsel %vm2067_vm2, %v10631_v16, %v10939_v23  ;;  %2796 = vmatpush1.msra.mxu0 %v2588_v30  ;;  %2873 = vmatpush1.msra.mxu1 %v2638_v51  ;;  %v2623_v16 = vsel %vm485_vm0, %v10890_v49, %v10888_v9  ;;  %v2607_v49 = vsel %vm485_vm0, %v2487_v17, %v10921_v62  ;;  %v14089_v51 = vld [vmem:[#allocation15_spill] sm:$0xff] }
 0x4aa   : > { %2797 = vmatprep.subr.mxu0 %v10753_v20  ;;  %2874 = vmatprep.subr.mxu1 %v2631_v26  ;;  %v10954_v55 = vsel %vm10020_vm10, %v2082_v38, 0.0 }
 0x4ab   : > { %2798 = vmatpush1.msra.mxu0 %v10667_v0  ;;  %2875 = vmatpush1.msra.mxu1 %v2630_v15  ;;  %v10971_v56 = vpop.permute.xlu0 %2452 }
 0x4ac   : > { %2344 = vrot.lane.b32.xlu0 %v10954_v55, %s9298_s24  ;;  %2799 = vmatprep.subr.mxu0 %v10719_v35  ;;  %v10963_v20 = vpop.permute.xlu1 %2506  ;;  %v2614_v35 = vsel %vm485_vm0, %v10903_v47, %v2505_v59  ;;  %v11000_v47 = vld [vmem:[%s13903_s5 + $0x8] sm:$0xff] }
 0x4ad   : > { %2876 = vmatprep.subr.mxu1 %v2623_v16  ;;  %2800 = vmatpush1.msra.mxu0 %v10657_v6  ;;  %v2615_v0 = vsel %vm485_vm0, %v2505_v59, %v10963_v20  ;;  %v10980_v6 = vld [vmem:[%s13903_s5] sm:$0xff]  ;;  %v14090_v16 = vld [vmem:[#allocation19_spill] sm:$0xff] }
 0x4ae   : > { %2877 = vmatpush1.msra.mxu1 %v2622_v37  ;;  %2801 = vmatprep.subr.mxu0 %v10694_v7  ;;  %v2599_v7 = vsel %vm485_vm0, %v10896_v43, %v10914_v39 }
 0x4af   : > { %2878 = vmatprep.subr.mxu1 %v2615_v0  ;;  %2802 = vmatpush1.msra.mxu0 %v10650_v57  ;;  %v2606_v57 = vsel %vm485_vm0, %v10894_v63, %v2487_v17  ;;  %v11002_v63 = vpop.permute.xlu0 %2009 }
 0x4b0   : > { %2879 = vmatpush1.msra.mxu1 %v2614_v35  ;;  %2803 = vmatprep.subr.mxu0 %v10677_v24  ;;  %v2451_v21 = vpop.permute.xlu1 %2450  ;;  %v2598_v24 = vsel %vm485_vm0, %v10886_v4, %v10896_v43 }
 0x4b1   : > { %2880 = vmatprep.subr.mxu1 %v2607_v49  ;;  %2804 = vmatpush1.msra.mxu0 %v10800_v44  ;;  %v2591_v44 = vsel %vm485_vm0, %v2451_v21, %v10971_v56  ;;  %v2590_v43 = vsel %vm485_vm0, %v10882_v22, %v2451_v21  ;;  %v1904_v22 = vpop.f32.mrf.mxu1  ;;  %v14091_v21 = vld [vmem:[#allocation12_spill] sm:$0xff] }
 0x4b2   : > { %2881 = vmatpush1.msra.mxu1 %v2606_v57  ;;  %7087 = vmatmul.mubr.msk.f32.vlgmr.msra.gmra.mxu0 %vm2760_vm4, %v10980_v6 }
 0x4b3   : > { %2882 = vmatprep.subr.mxu1 %v2599_v7  ;;  %2843 = vmatprep.mubr.f32.mxu0 %v14038_v36 }
 0x4b4   : > { %2883 = vmatpush1.msra.mxu1 %v2598_v24  ;;  %v2008_v31 = vpop.permute.xlu1 %2007  ;;  %v14092_v24 = vld [vmem:[#allocation13_spill] sm:$0xff] }
 0x4b5   : > { %2884 = vmatprep.subr.mxu1 %v2591_v44  ;;  %v2073_v53 = vsel %vm2067_vm2, %v10559_v45, %v2008_v31  ;;  %v2074_v4 = vsel %vm2067_vm2, %v2008_v31, %v11002_v63  ;;  %v11023_v45 = vld [vmem:[%s13903_s5 + $0x10] sm:$0xff] }
 0x4b6   : > { %2885 = vmatpush1.msra.mxu1 %v2590_v43  ;;  %v2143_v61 = vsel %vm10020_vm10, %v2074_v4, 0.0  ;;  %v2142_v3 = vsel %vm9820_vm6, %v2073_v53, 0.0  ;;  %7088 = vmatmul.mubr.msk.f32.gmra.mxu0 %vm2760_vm4, %v11000_v47  ;;  %v14093_v43 = vld [vmem:[#allocation26_spill] sm:$0xff] }
 0x4b7   : > { %2886 = vmatprep.subr.mxu1 %v10790_v25  ;;  %2326 = vrot.lane.b32.xlu0 %v2143_v61, %s9298_s24 }
 0x4b8   : > { %2887 = vmatpush1.msra.mxu1 %v10747_v1  ;;  %2324 = vrot.lane.b32.xlu1 %v2142_v3, %s9298_s24  ;;  %v11038_v1 = vld [vmem:[%s13903_s5 + $0x18] sm:$0xff] }
 0x4b9   : > { %2888 = vmatprep.subr.mxu1 %v10781_v40  ;;  %2849 = vmatprep.mubr.f32.mxu0 %v14038_v36  ;;  %v1905_v40 = vadd.f32 %v1904_v22, %v10435_v32  ;;  %v2379_v32 = vpop.permute.xlu1 %2378 }
 0x4ba   : > { %2889 = vmatpush1.msra.mxu1 %v10724_v19  ;;  %7089 = vmatmul.mubr.msk.f32.gmra.mxu0 %vm2760_vm4, %v11023_v45  ;;  %v7729_v19 = vpop.f32.mrf.mxu1  ;;  %v2413_v57 = vsel %vm557_vm1, %v14091_v21, %v2379_v32 }
 0x4bb   : > { %2890 = vmatprep.subr.mxu1 %v10733_v14  ;;  %2276 = vrot.lane.b32.xlu0 %v10837_v27, %s9297_s18  ;;  %v1920_v14 = vadd.f32 %v7729_v19, %v10433_v46  ;;  %v14094_v19 = vld [vmem:[#allocation20_spill] sm:$0xff] }
 0x4bc   : > { %2891 = vmatpush1.msra.mxu1 %v10697_v10  ;;  %2274 = vrot.lane.b32.xlu1 %v10856_v13, %s9297_s18  ;;  %v1914_v10 = vpop.f32.mrf.mxu1 }
 0x4bd   : > { %2892 = vmatprep.subr.mxu1 %v10831_v5  ;;  %2855 = vmatprep.mubr.f32.mxu0 %v14038_v36  ;;  %v1910_v5 = vadd.f32 %v7726_v52, %v10439_v8  ;;  %v1958_v27 = vmax.f32 %v1920_v14, 0.0  ;;  %v2361_v8 = vpop.permute.xlu1 %2360  ;;  %v14095_v14 = vld [vmem:[#allocation24_spill] sm:$0xff] }
 0x4be   : > { %2893 = vmatpush1.msra.mxu1 %v10685_v54  ;;  %7090 = vmatmul.mubr.msk.f32.gmra.mxu0 %vm2760_vm4, %v11038_v1  ;;  %v1915_v54 = vadd.f32 %v1914_v10, %v10431_v34  ;;  %v1931_v34 = vmax.f32 %v1905_v40, 0.0  ;;  %v2405_v37 = vsel %vm557_vm1, %v14090_v16, %v2361_v8 }
 0x4bf   : > { %2258 = vrot.lane.b32.xlu0 %v10850_v48, %s9297_s18  ;;  %7091 = vmatmul.mubr.msk.f32.vlgmr.msra.gmra.mxu1 %vm2760_vm4, %v10980_v6  ;;  %v1940_v46 = vmax.f32 %v1910_v5, 0.0  ;;  %v11079_v48 = vpop.permute.xlu0 %2380 }
 0x4c0   : > { %2256 = vrot.lane.b32.xlu1 %v10865_v58, %s9297_s18  ;;  %2932 = vmatprep.mubr.f32.mxu1 %v14038_v36  ;;  %v1949_v25 = vmax.f32 %v1915_v54, 0.0  ;;  %v2414_v49 = vsel %vm557_vm1, %v2379_v32, %v11079_v48 }
 0x4c1   : > { %3015 = vmatprep.mubr.f32.mxu0 %v14038_v36 }
 0x4c3   : > { %2240 = vrot.lane.b32.xlu0 %v10954_v55, %s9297_s18  ;;  %7092 = vmatmul.mubr.msk.f32.gmra.mxu1 %vm2760_vm4, %v11000_v47  ;;  %v11081_v13 = vpop.permute.xlu0 %2362 }
 0x4c4   : > { %2238 = vrot.lane.b32.xlu1 %v10874_v50, %s9297_s18  ;;  %2938 = vmatprep.mubr.f32.mxu1 %v14038_v36  ;;  %v2343_v50 = vpop.permute.xlu1 %2342  ;;  %v2406_v55 = vsel %vm557_vm1, %v2361_v8, %v11081_v13 }
 0x4c5   : > { %v2397_v38 = vsel %vm557_vm1, %v14089_v51, %v2343_v50 }
 0x4c7   : > { %2222 = vrot.lane.b32.xlu0 %v2143_v61, %s9297_s18  ;;  %7093 = vmatmul.mubr.msk.f32.gmra.mxu1 %vm2760_vm4, %v11023_v45 }
 0x4c8   : > { %2220 = vrot.lane.b32.xlu1 %v2142_v3, %s9297_s18  ;;  %2944 = vmatprep.mubr.f32.mxu1 %v14038_v36 }
 0x4cb   : > { %2047 = vrot.lane.b32.xlu0 %v1949_v25, %s9301_s30  ;;  %7094 = vmatmul.mubr.msk.f32.gmra.mxu1 %vm2760_vm4, %v11038_v1  ;;  %v14096_v25 = vld [vmem:[#allocation17_spill] sm:$0xff] }
 0x4cc   : > { %2065 = vrot.lane.b32.xlu1 %v1958_v27, %s9301_s30  ;;  %3104 = vmatprep.mubr.f32.mxu1 %v14038_v36  ;;  %v14097_v27 = vld [vmem:[#allocation14_spill] sm:$0xff] }
 0x4cf   : > { %2011 = vrot.lane.b32.xlu0 %v1931_v34, %s9301_s30 }
 0x4d0   : > { %2029 = vrot.lane.b32.xlu1 %v1940_v46, %s9301_s30 }
 0x51e   : > { %v11083_v58 = vpop.permute.xlu0 %2344 }
 0x51f   : > { %v2398_v30 = vsel %vm557_vm1, %v2343_v50, %v11083_v58 }
 0x529   : > { %v11085_v18 = vpop.permute.xlu0 %2326 }
 0x52a   : > { %v2325_v17 = vpop.permute.xlu1 %2324 }
 0x52b   : > { %v2390_v59 = vsel %vm557_vm1, %v2325_v17, %v11085_v18  ;;  %v2389_v41 = vsel %vm557_vm1, %v14088_v11, %v2325_v17 }
 0x52c   : > { %2528 = vrot.lane.b32.xlu0 %v2390_v59, %s9297_s18  ;;  %2526 = vrot.lane.b32.xlu1 %v2389_v41, %s9297_s18 }
 0x52d   : > { %v11093_v28 = vpop.permute.xlu0 %2276 }
 0x52e   : > { %v2275_v60 = vpop.permute.xlu1 %2274 }
 0x52f   : > { %v11133_v4 = vsel %vm485_vm0, %v2275_v60, %v11093_v28  ;;  %v11137_v52 = vsel %vm485_vm0, %v14093_v43, %v2275_v60 }
 0x530   : > { %2546 = vrot.lane.b32.xlu0 %v2398_v30, %s9297_s18  ;;  %2544 = vrot.lane.b32.xlu1 %v2397_v38, %s9297_s18  ;;  %v2423_v30 = vld [vmem:[%s13904_s6 + $0x18] sm:$0xff] }
 0x531   : > { %v11101_v26 = vpop.permute.xlu0 %2258 }
 0x532   : > { %v2257_v15 = vpop.permute.xlu1 %2256 }
 0x533   : > { %v11119_v7 = vsel %vm485_vm0, %v2257_v15, %v11101_v26  ;;  %v11123_v44 = vsel %vm485_vm0, %v14092_v24, %v2257_v15 }
 0x534   : > { %2564 = vrot.lane.b32.xlu0 %v2406_v55, %s9297_s18  ;;  %2562 = vrot.lane.b32.xlu1 %v2405_v37, %s9297_s18 }
 0x535   : > { %v11109_v0 = vpop.permute.xlu0 %2240 }
 0x536   : > { %v2239_v35 = vpop.permute.xlu1 %2238 }
 0x537   : > { %v11145_v22 = vsel %vm485_vm0, %v2239_v35, %v11109_v0  ;;  %v11149_v10 = vsel %vm485_vm0, %v14094_v19, %v2239_v35 }
 0x538   : > { %2582 = vrot.lane.b32.xlu0 %v2414_v49, %s9297_s18  ;;  %2580 = vrot.lane.b32.xlu1 %v2413_v57, %s9297_s18 }
 0x539   : > { %v11129_v31 = vpop.permute.xlu0 %2222 }
 0x53a   : > { %v2221_v53 = vpop.permute.xlu1 %2220 }
 0x53b   : > { %v11157_v54 = vsel %vm485_vm0, %v2221_v53, %v11129_v31  ;;  %v11161_v40 = vsel %vm485_vm0, %v14095_v14, %v2221_v53 }
 0x53c   : > { %2492 = vrot.lane.b32.xlu0 %v11119_v7, %s9297_s18  ;;  %2490 = vrot.lane.b32.xlu1 %v11123_v44, %s9297_s18 }
 0x53d   : > { %v2048_v61 = vpop.permute.xlu0 %2047 }
 0x53e   : > { %v2066_v3 = vpop.permute.xlu1 %2065  ;;  %v2091_v5 = vsel %vm2067_vm2, %v14096_v25, %v2048_v61 }
 0x53f   : > { %v2099_v34 = vsel %vm2067_vm2, %v14097_v27, %v2066_v3  ;;  %v2162_v50 = vsel %vm10002_vm5, %v2091_v5, 0.0 }
 0x540   : > { %2510 = vrot.lane.b32.xlu0 %v11133_v4, %s9297_s18  ;;  %2508 = vrot.lane.b32.xlu1 %v11137_v52, %s9297_s18  ;;  %v2171_v17 = vsel %vm10002_vm5, %v2099_v34, 0.0 }
 0x541   : > { %v2012_v46 = vpop.permute.xlu0 %2011 }
 0x542   : > { %v2030_v32 = vpop.permute.xlu1 %2029  ;;  %v2075_v59 = vsel %vm2067_vm2, %v11002_v63, %v2012_v46  ;;  %v2421_v63 = vld [vmem:[%s13904_s6 + $0x8] sm:$0xff] }
 0x543   : > { %v2083_v11 = vsel %vm2067_vm2, %v10939_v23, %v2030_v32  ;;  %v2144_v41 = vsel %vm10002_vm5, %v2075_v59, 0.0  ;;  %v2420_v23 = vld [vmem:[%s13904_s6] sm:$0xff] }
 0x544   : > { %2474 = vrot.lane.b32.xlu0 %v11145_v22, %s9297_s18  ;;  %2472 = vrot.lane.b32.xlu1 %v11149_v10, %s9297_s18  ;;  %v2153_v60 = vsel %vm10002_vm5, %v2083_v11, 0.0 }
 0x548   : > { %2456 = vrot.lane.b32.xlu0 %v11157_v54, %s9297_s18  ;;  %2454 = vrot.lane.b32.xlu1 %v11161_v40, %s9297_s18 }
 0x54c   : > { %2364 = vrot.lane.b32.xlu0 %v2162_v50, %s9298_s24  ;;  %2382 = vrot.lane.b32.xlu1 %v2171_v17, %s9298_s24 }
 0x550   : > { %2328 = vrot.lane.b32.xlu0 %v2144_v41, %s9298_s24  ;;  %2346 = vrot.lane.b32.xlu1 %v2153_v60, %s9298_s24  ;;  %s9305_s24 = smov 64  }
 0x554   : > { %2260 = vrot.lane.b32.xlu0 %v2162_v50, %s9297_s18  ;;  %2278 = vrot.lane.b32.xlu1 %v2171_v17, %s9297_s18 }
 0x558   : > { %2224 = vrot.lane.b32.xlu0 %v2144_v41, %s9297_s18  ;;  %2242 = vrot.lane.b32.xlu1 %v2153_v60, %s9297_s18  ;;  %v14100_v60 = vld [vmem:[#allocation22_spill] sm:$0xff] }
 0x55c   : > { %2426 = vperm.xlu0 %8965, %v2420_v23   ;;  %2431 = vperm.xlu1 %8966, %v2421_v63  }
 0x560   : > { %2441 = vperm.xlu1 %8966, %v2423_v30  }
 0x59e   : > { %v11200_v51 = vpop.permute.xlu0 %2528  ;;  %v2527_v38 = vpop.permute.xlu1 %2526 }
 0x59f   : > { %v2625_v19 = vsel %vm485_vm0, %v2527_v38, %v11200_v51  ;;  %v2624_v5 = vsel %vm485_vm0, %v10888_v9, %v2527_v38 }
 0x5a2   : > { %v11202_v15 = vpop.permute.xlu0 %2546  ;;  %v2545_v55 = vpop.permute.xlu1 %2544 }
 0x5a3   : > { %v2633_v3 = vsel %vm485_vm0, %v2545_v55, %v11202_v15 }
 0x5a6   : > { %v11204_v16 = vpop.permute.xlu0 %2564  ;;  %v2563_v37 = vpop.permute.xlu1 %2562 }
 0x5a7   : > { %v2641_v24 = vsel %vm485_vm0, %v2563_v37, %v11204_v16  ;;  %v2640_v61 = vsel %vm485_vm0, %v10911_v33, %v2563_v37 }
 0x5aa   : > { %v11206_v35 = vpop.permute.xlu0 %2582  ;;  %v2581_v49 = vpop.permute.xlu1 %2580 }
 0x5ab   : > { %v2649_v21 = vsel %vm485_vm0, %v2581_v49, %v11206_v35  ;;  %v2648_v57 = vsel %vm485_vm0, %v10930_v2, %v2581_v49  ;;  %v2632_v2 = vsel %vm485_vm0, %v10898_v42, %v2545_v55  ;;  %v2928_v49 = vpop.f32.mrf.mxu1 }
 0x5ac   : > { %2959 = vmatprep.subr.mxu0 %v2649_v21 }
 0x5ad   : > { %2960 = vmatpush1.msra.mxu0 %v2648_v57 }
 0x5ae   : > { %v11214_v53 = vpop.permute.xlu0 %2492  ;;  %2961 = vmatprep.subr.mxu0 %v2641_v24  ;;  %v2491_v43 = vpop.permute.xlu1 %2490 }
 0x5af   : > { %2962 = vmatpush1.msra.mxu0 %v2640_v61  ;;  %v2609_v42 = vsel %vm485_vm0, %v2491_v43, %v11214_v53  ;;  %v2608_v32 = vsel %vm485_vm0, %v10921_v62, %v2491_v43 }
 0x5b0   : > { %2963 = vmatprep.subr.mxu0 %v2633_v3 }
 0x5b1   : > { %2964 = vmatpush1.msra.mxu0 %v2632_v2 }
 0x5b2   : > { %v11224_v14 = vpop.permute.xlu0 %2510  ;;  %2965 = vmatprep.subr.mxu0 %v2625_v19  ;;  %v2509_v25 = vpop.permute.xlu1 %2508 }
 0x5b3   : > { %2966 = vmatpush1.msra.mxu0 %v2624_v5  ;;  %v2617_v33 = vsel %vm485_vm0, %v2509_v25, %v11224_v14  ;;  %v2616_v27 = vsel %vm485_vm0, %v10963_v20, %v2509_v25 }
 0x5b4   : > { %2967 = vmatprep.subr.mxu0 %v2617_v33 }
 0x5b5   : > { %2968 = vmatpush1.msra.mxu0 %v2616_v27 }
 0x5b6   : > { %v11234_v34 = vpop.permute.xlu0 %2474  ;;  %2969 = vmatprep.subr.mxu0 %v2609_v42  ;;  %v2473_v46 = vpop.permute.xlu1 %2472 }
 0x5b7   : > { %2970 = vmatpush1.msra.mxu0 %v2608_v32  ;;  %v2601_v9 = vsel %vm485_vm0, %v2473_v46, %v11234_v34  ;;  %v2600_v50 = vsel %vm485_vm0, %v10914_v39, %v2473_v46  ;;  %v14099_v39 = vld [vmem:[#allocation28_spill] sm:$0xff] }
 0x5b8   : > { %2971 = vmatprep.subr.mxu0 %v2601_v9 }
 0x5b9   : > { %2972 = vmatpush1.msra.mxu0 %v2600_v50 }
 0x5ba   : > { %v11242_v20 = vpop.permute.xlu0 %2456  ;;  %v2455_v17 = vpop.permute.xlu1 %2454 }
 0x5bb   : > { %v2593_v59 = vsel %vm485_vm0, %v2455_v17, %v11242_v20  ;;  %v2592_v11 = vsel %vm485_vm0, %v10971_v56, %v2455_v17  ;;  %v14101_v56 = vld [vmem:[#allocation23_spill] sm:$0xff] }
 0x5bc   : > { %2973 = vmatprep.subr.mxu0 %v2593_v59 }
 0x5bd   : > { %2974 = vmatpush1.msra.mxu0 %v2592_v11 }
 0x5be   : > { %v2365_v62 = vpop.permute.xlu0 %2364  ;;  %2975 = vmatprep.subr.mxu0 %v11137_v52  ;;  %v2383_v41 = vpop.permute.xlu1 %2382 }
 0x5bf   : > { %2568 = vrot.lane.b32.xlu1 %v2365_v62, %s9297_s18  ;;  %2976 = vmatpush1.msra.mxu0 %v14099_v39  ;;  %v2407_v63 = vsel %vm557_vm1, %v11081_v13, %v2365_v62 }
 0x5c0   : > { %2586 = vrot.lane.b32.xlu0 %v2383_v41, %s9297_s18  ;;  %2977 = vmatprep.subr.mxu0 %v11123_v44  ;;  %v14102_v44 = vld [vmem:[#allocation27_spill] sm:$0xff] }
 0x5c1   : > { %2978 = vmatpush1.msra.mxu0 %v14100_v60 }
 0x5c2   : > { %2979 = vmatprep.subr.mxu0 %v11149_v10  ;;  %v2347_v23 = vpop.permute.xlu1 %2346  ;;  %v2329_v30 = vpop.permute.xlu0 %2328  ;;  %v2422_v10 = vld [vmem:[%s13904_s6 + $0x10] sm:$0xff] }
 0x5c3   : > { %2980 = vmatpush1.msra.mxu0 %v14101_v56  ;;  %v2399_v52 = vsel %vm557_vm1, %v11083_v58, %v2347_v23  ;;  %v2391_v13 = vsel %vm557_vm1, %v11085_v18, %v2329_v30  ;;  %v2415_v58 = vsel %vm557_vm1, %v11079_v48, %v2383_v41  ;;  %v2839_v48 = vpop.f32.mrf.mxu0  ;;  %vm3358_vm1 = vcmask 15360  }
 0x5c4   : > { %2566 = vrot.lane.b32.xlu0 %v2407_v63, %s9297_s18  ;;  %2981 = vmatprep.subr.mxu0 %v11161_v40 }
 0x5c5   : > { %2548 = vrot.lane.b32.xlu1 %v2399_v52, %s9297_s18  ;;  %2982 = vmatpush1.msra.mxu0 %v14102_v44  ;;  %v2841_v21 = vpop.f32.mrf.mxu0 }
 0x5c6   : > { %7095 = vmatmul.mubr.msk.f32.vlgmr.msra.gmra.mxu0 %vm2760_vm4, %v10980_v6  ;;  %v11279_v40 = vpop.permute.xlu0 %2260  ;;  %v11284_v18 = vpop.permute.xlu1 %2278 }
 0x5c7   : > { %3021 = vmatprep.mubr.f32.mxu0 %v14038_v36  ;;  %v11291_v38 = vsel %vm485_vm0, %v11101_v26, %v11279_v40  ;;  %v11306_v26 = vsel %vm485_vm0, %v11093_v28, %v11284_v18  ;;  %v2930_v28 = vpop.f32.mrf.mxu1  ;;  %v2845_v43 = vpop.f32.mrf.mxu0 }
 0x5c8   : > { %2436 = vperm.xlu0 %8965, %v2422_v10  }
 0x5c9   : > { %2530 = vrot.lane.b32.xlu1 %v2391_v13, %s9297_s18  ;;  %v2847_v19 = vpop.f32.mrf.mxu0 }
 0x5ca   : > { %7096 = vmatmul.mubr.msk.f32.gmra.mxu0 %vm2760_vm4, %v11000_v47  ;;  %v11299_v55 = vpop.permute.xlu0 %2224  ;;  %v11308_v37 = vpop.permute.xlu1 %2242 }
 0x5cb   : > { %3027 = vmatprep.mubr.f32.mxu0 %v14038_v36  ;;  %v11319_v24 = vsel %vm485_vm0, %v11109_v0, %v11308_v37  ;;  %v11331_v2 = vsel %vm485_vm0, %v11129_v31, %v11299_v55  ;;  %v2934_v0 = vpop.f32.mrf.mxu1  ;;  %v2851_v42 = vpop.f32.mrf.mxu0 }
 0x5cc   : > { %2550 = vrot.lane.b32.xlu0 %v2347_v23, %s9297_s18 }
 0x5cd   : > { %2584 = vrot.lane.b32.xlu1 %v2415_v58, %s9297_s18  ;;  %v2936_v27 = vpop.f32.mrf.mxu1  ;;  %v2853_v17 = vpop.f32.mrf.mxu0 }
 0x5ce   : > { %7097 = vmatmul.mubr.msk.f32.gmra.mxu0 %vm2760_vm4, %v11023_v45 }
 0x5cf   : > { %3033 = vmatprep.mubr.f32.mxu0 %v14038_v36  ;;  %v11344_v50 = vpop.f32.mrf.mxu1  ;;  %v2857_v23 = vpop.f32.mrf.mxu0 }
 0x5d0   : > { %2532 = vrot.lane.b32.xlu0 %v2329_v30, %s9297_s18 }
 0x5d1   : > { %2494 = vrot.lane.b32.xlu1 %v11291_v38, %s9297_s18  ;;  %v11352_v60 = vpop.f32.mrf.mxu1 }
 0x5d2   : > { %7098 = vmatmul.mubr.msk.f32.gmra.mxu0 %vm2760_vm4, %v11038_v1 }
 0x5d3   : > { %7754 = vmatprep.mubr.msk.f32.mxu0 %vm2760_vm4, %v10980_v6  ;;  %v2946_v30 = vpop.f32.mrf.mxu1 }
 0x5d4   : > { %2514 = vrot.lane.b32.xlu0 %v11284_v18, %s9297_s18 }
 0x5d5   : > { %2512 = vrot.lane.b32.xlu1 %v11306_v26, %s9297_s18 }
 0x5d7   : > { %v11312_v57 = vpop.permute.xlu0 %2426  ;;  %v11324_v3 = vpop.permute.xlu1 %2431 }
 0x5d8   : > { %2496 = vrot.lane.b32.xlu0 %v11279_v40, %s9297_s18  ;;  %v2840_v61 = vadd.f32 %v2839_v48, %v11312_v57  ;;  %v2842_v25 = vadd.f32 %v2841_v21, %v11312_v57  ;;  %v2846_v33 = vadd.f32 %v2845_v43, %v11324_v3  ;;  %v2848_v46 = vadd.f32 %v2847_v19, %v11324_v3 }
 0x5d9   : > { %2476 = vrot.lane.b32.xlu1 %v11319_v24, %s9297_s18  ;;  %v2929_v9 = vadd.f32 %v2928_v49, %v11312_v57  ;;  %v2931_v11 = vadd.f32 %v2930_v28, %v11312_v57  ;;  %v2935_v41 = vadd.f32 %v2934_v0, %v11324_v3 }
 0x5da   : > { %v3214_v5 = vmax.f32 %v2840_v61, 0.0  ;;  %v3215_v31 = vmax.f32 %v2842_v25, 0.0  ;;  %v3223_v32 = vmax.f32 %v2846_v33, 0.0  ;;  %v3224_v59 = vmax.f32 %v2848_v46, 0.0 }
 0x5db   : > { %v3216_v62 = vmax.f32 %v2929_v9, 0.0  ;;  %v11348_v39 = vpop.permute.xlu1 %2441  ;;  %v3217_v56 = vmax.f32 %v2931_v11, 0.0  ;;  %v3225_v63 = vmax.f32 %v2935_v41, 0.0 }
 0x5dc   : > { %2478 = vrot.lane.b32.xlu0 %v11308_v37, %s9297_s18  ;;  %v2858_v52 = vadd.f32 %v2857_v23, %v11348_v39  ;;  %v2947_v10 = vadd.f32 %v2946_v30, %v11348_v39 }
 0x5dd   : > { %2458 = vrot.lane.b32.xlu1 %v11331_v2, %s9297_s18 }
 0x5de   : > { %v3241_v44 = vmax.f32 %v2858_v52, 0.0  ;;  %v3243_v13 = vmax.f32 %v2947_v10, 0.0 }
 0x5e0   : > { %2460 = vrot.lane.b32.xlu0 %v11299_v55, %s9297_s18 }
 0x5e1   : > { %3286 = vrot.lane.b32.xlu1 %v3214_v5, %s9302_s21 }
 0x5e4   : > { %3288 = vrot.lane.b32.xlu0 %v3215_v31, %s9302_s21 }
 0x5e5   : > { %3304 = vrot.lane.b32.xlu1 %v3223_v32, %s9302_s21  ;;  %v2859_v32 = vpop.f32.mrf.mxu0 }
 0x5e8   : > { %3306 = vrot.lane.b32.xlu0 %v3224_v59, %s9302_s21 }
 0x5e9   : > { %3290 = vrot.lane.b32.xlu1 %v3216_v62, %s9302_s21 }
 0x5ec   : > { %3292 = vrot.lane.b32.xlu0 %v3217_v56, %s9302_s21 }
 0x5ed   : > { %3308 = vrot.lane.b32.xlu1 %v3225_v63, %s9302_s21 }
 0x5f1   : > { %3340 = vrot.lane.b32.xlu1 %v3241_v44, %s9302_s21 }
 0x5f5   : > { %3344 = vrot.lane.b32.xlu1 %v3243_v13, %s9302_s21 }
 0x631   : > { %v2569_v58 = vpop.permute.xlu1 %2568 }
 0x632   : > { %v2587_v48 = vpop.permute.xlu0 %2586 }
 0x633   : > { %7730 = vmatprep.subr.mxu0 %v2587_v48 }
 0x634   : > { %7731 = vmatpush3.msra.mxu0 %v2587_v48 }
 0x635   : > { %7732 = vmatprep.subr.mxu0 %v2569_v58 }
 0x636   : > { %7733 = vmatpush3.msra.mxu0 %v2569_v58  ;;  %v2567_v28 = vpop.permute.xlu0 %2566 }
 0x637   : > { %v2549_v49 = vpop.permute.xlu1 %2548  ;;  %v2643_v19 = vsel %vm485_vm0, %v2567_v28, %v2569_v58  ;;  %v2642_v33 = vsel %vm485_vm0, %v11204_v16, %v2567_v28 }
 0x638   : > { %v2634_v16 = vsel %vm485_vm0, %v11202_v15, %v2549_v49 }
 0x63b   : > { %v2531_v21 = vpop.permute.xlu1 %2530 }
 0x63c   : > { %v2626_v63 = vsel %vm485_vm0, %v11200_v51, %v2531_v21 }
 0x63f   : > { %v2585_v43 = vpop.permute.xlu1 %2584 }
 0x640   : > { %v2651_v61 = vsel %vm485_vm0, %v2585_v43, %v2587_v48  ;;  %v2650_v0 = vsel %vm485_vm0, %v11206_v35, %v2585_v43  ;;  %v2937_v35 = vadd.f32 %v2936_v27, %v11324_v3 }
 0x641   : > { %3048 = vmatprep.subr.mxu1 %v2651_v61 }
 0x642   : > { %3049 = vmatpush1.msra.mxu1 %v2650_v0 }
 0x643   : > { %v11364_v25 = vpop.permute.xlu0 %2436  ;;  %3050 = vmatprep.subr.mxu1 %v2643_v19  ;;  %v2495_v5 = vpop.permute.xlu1 %2494 }
 0x644   : > { %3051 = vmatpush1.msra.mxu1 %v2642_v33  ;;  %v2852_v31 = vadd.f32 %v2851_v42, %v11364_v25  ;;  %v2854_v46 = vadd.f32 %v2853_v17, %v11364_v25  ;;  %v3226_v42 = vmax.f32 %v2937_v35, 0.0  ;;  %v2860_v17 = vadd.f32 %v2859_v32, %v11348_v39 }
 0x645   : > { %v2941_v15 = vadd.f32 %v11344_v50, %v11364_v25 }
 0x646   : > { %v3232_v9 = vmax.f32 %v2852_v31, 0.0  ;;  %v3233_v59 = vmax.f32 %v2854_v46, 0.0  ;;  %v3242_v52 = vmax.f32 %v2860_v17, 0.0 }
 0x647   : > { %v2551_v11 = vpop.permute.xlu0 %2550  ;;  %v2513_v62 = vpop.permute.xlu1 %2512  ;;  %v3234_v58 = vmax.f32 %v2941_v15, 0.0 }
 0x648   : > { %3322 = vrot.lane.b32.xlu0 %v3232_v9, %s9302_s21  ;;  %3324 = vrot.lane.b32.xlu1 %v3233_v59, %s9302_s21  ;;  %v2635_v41 = vsel %vm485_vm0, %v2549_v49, %v2551_v11  ;;  %v2618_v13 = vsel %vm485_vm0, %v11224_v14, %v2513_v62  ;;  %v2610_v49 = vsel %vm485_vm0, %v11214_v53, %v2495_v5 }
 0x649   : > { %7734 = vmatprep.subr.mxu0 %v2551_v11  ;;  %3052 = vmatprep.subr.mxu1 %v2635_v41 }
 0x64a   : > { %7735 = vmatpush3.msra.mxu0 %v2551_v11  ;;  %3053 = vmatpush1.msra.mxu1 %v2634_v16 }
 0x64b   : > { %v2533_v23 = vpop.permute.xlu0 %2532  ;;  %v2477_v27 = vpop.permute.xlu1 %2476 }
 0x64c   : > { %3310 = vrot.lane.b32.xlu0 %v3226_v42, %s9302_s21  ;;  %7736 = vmatprep.subr.mxu0 %v2533_v23  ;;  %v2627_v56 = vsel %vm485_vm0, %v2531_v21, %v2533_v23  ;;  %v2602_v0 = vsel %vm485_vm0, %v11234_v34, %v2477_v27 }
 0x64d   : > { %3054 = vmatprep.subr.mxu1 %v2627_v56  ;;  %7737 = vmatpush3.msra.mxu0 %v2533_v23 }
 0x64e   : > { %3055 = vmatpush1.msra.mxu1 %v2626_v63 }
 0x64f   : > { %v2515_v30 = vpop.permute.xlu0 %2514  ;;  %v2459_v44 = vpop.permute.xlu1 %2458 }
 0x650   : > { %3342 = vrot.lane.b32.xlu0 %v3242_v52, %s9302_s21  ;;  %7738 = vmatprep.subr.mxu0 %v2515_v30  ;;  %v2619_v10 = vsel %vm485_vm0, %v2513_v62, %v2515_v30  ;;  %v2594_v33 = vsel %vm485_vm0, %v11242_v20, %v2459_v44 }
 0x651   : > { %3056 = vmatprep.subr.mxu1 %v2619_v10  ;;  %7739 = vmatpush3.msra.mxu0 %v2515_v30 }
 0x652   : > { %3057 = vmatpush1.msra.mxu1 %v2618_v13 }
 0x653   : > { %v2497_v51 = vpop.permute.xlu0 %2496  ;;  %v3287_v48 = vpop.permute.xlu1 %3286 }
 0x654   : > { %3326 = vrot.lane.b32.xlu0 %v3234_v58, %s9302_s21  ;;  %7740 = vmatprep.subr.mxu0 %v2497_v51  ;;  %v2611_v50 = vsel %vm485_vm0, %v2495_v5, %v2497_v51  ;;  %v11393_v43 = vsel %vm9700_vm14, %v3287_v48, 0.0 }
 0x655   : > { %3058 = vmatprep.subr.mxu1 %v2611_v50  ;;  %7741 = vmatpush3.msra.mxu0 %v2497_v51 }
 0x656   : > { %3059 = vmatpush1.msra.mxu1 %v2610_v49 }
 0x657   : > { %v2479_v21 = vpop.permute.xlu0 %2478  ;;  %v3305_v14 = vpop.permute.xlu1 %3304 }
 0x658   : > { %7742 = vmatprep.subr.mxu0 %v2479_v21  ;;  %3551 = vrot.lane.b32.xlu0 %v11393_v43, %s9297_s18  ;;  %v2603_v61 = vsel %vm485_vm0, %v2477_v27, %v2479_v21  ;;  %v11402_v19 = vsel %vm9700_vm14, %v3305_v14, 0.0 }
 0x659   : > { %3060 = vmatprep.subr.mxu1 %v2603_v61  ;;  %7743 = vmatpush3.msra.mxu0 %v2479_v21 }
 0x65a   : > { %3061 = vmatpush1.msra.mxu1 %v2602_v0 }
 0x65b   : > { %v2461_v53 = vpop.permute.xlu0 %2460  ;;  %v3291_v34 = vpop.permute.xlu1 %3290 }
 0x65c   : > { %7744 = vmatprep.subr.mxu0 %v2461_v53  ;;  %3569 = vrot.lane.b32.xlu0 %v11402_v19, %s9297_s18  ;;  %v2595_v5 = vsel %vm485_vm0, %v2459_v44, %v2461_v53 }
 0x65d   : > { %3062 = vmatprep.subr.mxu1 %v2595_v5  ;;  %7745 = vmatpush3.msra.mxu0 %v2461_v53 }
 0x65e   : > { %3063 = vmatpush1.msra.mxu1 %v2594_v33  ;;  %7746 = vmatprep.subr.mxu0 %v11284_v18 }
 0x65f   : > { %v3289_v31 = vpop.permute.xlu0 %3288  ;;  %3064 = vmatprep.subr.mxu1 %v11306_v26  ;;  %7747 = vmatpush3.msra.mxu0 %v11284_v18  ;;  %v3309_v18 = vpop.permute.xlu1 %3308 }
 0x660   : > { %v3359_v46 = vsel %vm3358_vm1, %v3287_v48, %v3289_v31  ;;  %v3360_v32 = vsel %vm3358_vm1, %v3289_v31, %v3291_v34  ;;  %3065 = vmatpush1.msra.mxu1 %v11133_v4  ;;  %7748 = vmatprep.subr.mxu0 %v11279_v40 }
 0x661   : > { %3066 = vmatprep.subr.mxu1 %v11291_v38  ;;  %7749 = vmatpush3.msra.mxu0 %v11279_v40  ;;  %v11420_v9 = vsel %vm9748_vm3, %v3359_v46, 0.0  ;;  %v11424_v26 = vsel %vm9681_vm11, %v3360_v32, 0.0 }
 0x662   : > { %3067 = vmatpush1.msra.mxu1 %v11119_v7  ;;  %7750 = vmatprep.subr.mxu0 %v11308_v37 }
 0x663   : > { %3553 = vrot.lane.b32.xlu1 %v11420_v9, %s9297_s18  ;;  %3555 = vrot.lane.b32.xlu0 %v11424_v26, %s9297_s18  ;;  %v3307_v4 = vpop.permute.xlu0 %3306 }
 0x664   : > { %v3367_v40 = vsel %vm3358_vm1, %v3305_v14, %v3307_v4  ;;  %3068 = vmatprep.subr.mxu1 %v11319_v24  ;;  %7751 = vmatpush3.msra.mxu0 %v11308_v37  ;;  %v3341_v37 = vpop.permute.xlu1 %3340  ;;  %v3368_v35 = vsel %vm3358_vm1, %v3307_v4, %v3309_v18 }
 0x665   : > { %3069 = vmatpush1.msra.mxu1 %v11145_v22  ;;  %7752 = vmatprep.subr.mxu0 %v11299_v55  ;;  %v11439_v7 = vsel %vm9748_vm3, %v3367_v40, 0.0 }
 0x666   : > { %3070 = vmatprep.subr.mxu1 %v11331_v2  ;;  %7753 = vmatpush3.msra.mxu0 %v11299_v55 }
 0x667   : > { %3071 = vmatpush1.msra.mxu1 %v11157_v54  ;;  %7755 = vmatmul.mubr.msk.f32.vlgmr.msra.gmra.mxu0 %vm2760_vm4, %v11000_v47  ;;  %v11446_v38 = vpop.permute.xlu0 %3292  ;;  %v11726_v54 = vld [vmem:[%s13905_s7] sm:$0xff] }
 0x668   : > { %3571 = vrot.lane.b32.xlu1 %v11439_v7, %s9297_s18  ;;  %v3361_v22 = vsel %vm3358_vm1, %v3291_v34, %v11446_v38  ;;  %7099 = vmatmul.mubr.msk.f32.vlgmr.msra.gmra.mxu1 %vm2760_vm4, %v10980_v6  ;;  %v3454_v6 = vsel %vm9700_vm14, %v3341_v37, 0.0  ;;  %v11482_v62 = vpop.permute.xlu1 %3344  ;;  %v2948_v34 = vpop.f32.mrf.mxu1 }
 0x669   : > { %7757 = vmatprep.mubr.msk.f32.mxu0 %vm2760_vm4, %v11023_v45  ;;  %3110 = vmatprep.mubr.f32.mxu1 %v14038_v36  ;;  %v11459_v55 = vsel %vm9691_vm13, %v3361_v22, 0.0  ;;  %v2949_v20 = vadd.f32 %v2948_v34, %v11348_v39 }
 0x66b   : > { %7758 = vmatmul.mubr.msk.f32.gmra.mxu0 %vm2760_vm4, %v11038_v1  ;;  %v3244_v4 = vmax.f32 %v2949_v20, 0.0 }
 0x66c   : > { %3557 = vrot.lane.b32.xlu1 %v11459_v55, %s9297_s18  ;;  %7100 = vmatmul.mubr.msk.f32.gmra.mxu1 %vm2760_vm4, %v11000_v47 }
 0x66d   : > { %3116 = vmatprep.mubr.f32.mxu1 %v14038_v36  ;;  %4093 = vmatprep.mubr.f32.mxu0 %v14038_v36 }
 0x670   : > { %3499 = vrot.lane.b32.xlu1 %v3454_v6, %s9301_s30  ;;  %7101 = vmatmul.mubr.msk.f32.gmra.mxu1 %vm2760_vm4, %v11023_v45 }
 0x671   : > { %3122 = vmatprep.mubr.f32.mxu1 %v14038_v36 }
 0x674   : > { %7102 = vmatmul.mubr.msk.f32.gmra.mxu1 %vm2760_vm4, %v11038_v1  ;;  %v3438_v1 = vsel %vm9681_vm11, %v3368_v35, 0.0 }
 0x675   : > { %3951 = vmatprep.mubr.f32.mxu1 %v14038_v36 }
 0x686   : > { %v3017_v47 = vpop.f32.mrf.mxu0 }
 0x687   : > { %v3018_v49 = vadd.f32 %v3017_v47, %v11312_v57 }
 0x688   : > { %v3019_v11 = vpop.f32.mrf.mxu0 }
 0x689   : > { %v3218_v14 = vmax.f32 %v3018_v49, 0.0  ;;  %v3020_v0 = vadd.f32 %v3019_v11, %v11312_v57  ;;  %v2943_v49 = vadd.f32 %v11352_v60, %v11364_v25 }
 0x68a   : > { %v3023_v16 = vpop.f32.mrf.mxu0 }
 0x68b   : > { %v3024_v48 = vadd.f32 %v3023_v16, %v11324_v3  ;;  %v3219_v5 = vmax.f32 %v3020_v0, 0.0 }
 0x68c   : > { %v3025_v63 = vpop.f32.mrf.mxu0 }
 0x68d   : > { %v3026_v10 = vadd.f32 %v3025_v63, %v11324_v3  ;;  %v3227_v21 = vmax.f32 %v3024_v48, 0.0 }
 0x68e   : > { %v11522_v28 = vpop.f32.mrf.mxu0 }
 0x68f   : > { %v3228_v50 = vmax.f32 %v3026_v10, 0.0 }
 0x690   : > { %v11526_v61 = vpop.f32.mrf.mxu0 }
 0x692   : > { %v3035_v53 = vpop.f32.mrf.mxu0 }
 0x693   : > { %v3036_v33 = vadd.f32 %v3035_v53, %v11348_v39 }
 0x695   : > { %v3245_v46 = vmax.f32 %v3036_v33, 0.0 }
 0x6ba   : > { %v3323_v24 = vpop.permute.xlu0 %3322  ;;  %v3325_v17 = vpop.permute.xlu1 %3324 }
 0x6bb   : > { %v3445_v2 = vsel %vm9700_vm14, %v3323_v24, 0.0  ;;  %v3375_v30 = vsel %vm3358_vm1, %v3323_v24, %v3325_v17  ;;  %vm9307_vm14 = vmmov 0  }
 0x6bc   : > { %3481 = vrot.lane.b32.xlu0 %v3445_v2, %s9301_s30  ;;  %v3446_v51 = vsel %vm9748_vm3, %v3375_v30, 0.0 }
 0x6be   : > { %v11484_v45 = vpop.permute.xlu0 %3310 }
 0x6bf   : > { %v3369_v41 = vsel %vm3358_vm1, %v3309_v18, %v11484_v45 }
 0x6c0   : > { %3573 = vrot.lane.b32.xlu0 %v3438_v1, %s9297_s18  ;;  %v11493_v42 = vsel %vm9691_vm13, %v3369_v41, 0.0 }
 0x6c1   : > { %3575 = vrot.lane.b32.xlu1 %v11493_v42, %s9297_s18 }
 0x6c2   : > { %v3343_v23 = vpop.permute.xlu0 %3342 }
 0x6c3   : > { %v3383_v27 = vsel %vm3358_vm1, %v3341_v37, %v3343_v23  ;;  %v3384_v56 = vsel %vm3358_vm1, %v3343_v23, %v11482_v62 }
 0x6c4   : > { %v3455_v52 = vsel %vm9748_vm3, %v3383_v27, 0.0  ;;  %v3456_v15 = vsel %vm9681_vm11, %v3384_v56, 0.0 }
 0x6c5   : > { %3501 = vrot.lane.b32.xlu0 %v3455_v52, %s9301_s30  ;;  %3503 = vrot.lane.b32.xlu1 %v3456_v15, %s9301_s30 }
 0x6c6   : > { %v11507_v44 = vpop.permute.xlu0 %3326 }
 0x6c7   : > { %v3376_v13 = vsel %vm3358_vm1, %v3325_v17, %v11507_v44 }
 0x6c8   : > { %v3447_v58 = vsel %vm9681_vm11, %v3376_v13, 0.0  ;;  %vm3754_vm11 = vcmask 1022976  }
 0x6c9   : > { %3485 = vrot.lane.b32.xlu0 %v3447_v58, %s9301_s30  ;;  %3483 = vrot.lane.b32.xlu1 %v3446_v51, %s9301_s30 }
 0x6ca   : > { %v3552_v32 = vpop.permute.xlu0 %3551 }
 0x6cd   : > { %3314 = vrot.lane.b32.xlu0 %v3228_v50, %s9302_s21  ;;  %3666 = vrot.lane.b32.xlu1 %v3455_v52, %s9303_s22 }
 0x6ce   : > { %v3570_v40 = vpop.permute.xlu0 %3569 }
 0x6d1   : > { %3648 = vrot.lane.b32.xlu0 %v3446_v51, %s9303_s22  ;;  %3312 = vrot.lane.b32.xlu1 %v3227_v21, %s9302_s21  ;;  %v3030_v51 = vadd.f32 %v11522_v28, %v11364_v25 }
 0x6d5   : > { %3294 = vrot.lane.b32.xlu0 %v3218_v14, %s9302_s21  ;;  %3664 = vrot.lane.b32.xlu1 %v3454_v6, %s9303_s22  ;;  %v3554_v31 = vpop.permute.xlu1 %3553  ;;  %v3556_v37 = vpop.permute.xlu0 %3555  ;;  %v3235_v14 = vmax.f32 %v2943_v49, 0.0 }
 0x6d6   : > { %v3587_v18 = vsel %vm485_vm0, %v3552_v32, %v3554_v31 }
 0x6d9   : > { %3646 = vrot.lane.b32.xlu0 %v3445_v2, %s9303_s22  ;;  %3650 = vrot.lane.b32.xlu1 %v3447_v58, %s9303_s22 }
 0x6da   : > { %v3572_v59 = vpop.permute.xlu1 %3571 }
 0x6db   : > { %v3595_v22 = vsel %vm485_vm0, %v3570_v40, %v3572_v59 }
 0x6dd   : > { %3632 = vrot.lane.b32.xlu0 %v3438_v1, %s9303_s22  ;;  %3296 = vrot.lane.b32.xlu1 %v3219_v5, %s9302_s21 }
 0x6de   : > { %v11544_v6 = vpop.permute.xlu1 %3557 }
 0x6df   : > { %v3589_v47 = vsel %vm485_vm0, %v3556_v37, %v11544_v6 }
 0x6e1   : > { %3348 = vrot.lane.b32.xlu0 %v3245_v46, %s9302_s21  ;;  %3630 = vrot.lane.b32.xlu1 %v11439_v7, %s9303_s22  ;;  %v3588_v7 = vsel %vm485_vm0, %v3554_v31, %v3556_v37 }
 0x6e2   : > { %v3500_v2 = vpop.permute.xlu1 %3499 }
 0x6e5   : > { %3668 = vrot.lane.b32.xlu0 %v3456_v15, %s9303_s22  ;;  %3346 = vrot.lane.b32.xlu1 %v3244_v4, %s9302_s21 }
 0x6e9   : > { %3718 = vrot.lane.b32.xlu0 %v3587_v18, %s9303_s22  ;;  %3736 = vrot.lane.b32.xlu1 %v3595_v22, %s9303_s22 }
 0x6ed   : > { %3720 = vrot.lane.b32.xlu0 %v3588_v7, %s9303_s22  ;;  %3722 = vrot.lane.b32.xlu1 %v3589_v47, %s9303_s22 }
 0x72e   : > { %v3482_v24 = vpop.permute.xlu0 %3481 }
 0x72f   : > { %3682 = vrot.lane.b32.xlu0 %v3482_v24, %s9303_s22 }
 0x732   : > { %v3574_v35 = vpop.permute.xlu0 %3573 }
 0x733   : > { %v11554_v11 = vpop.permute.xlu1 %3575  ;;  %v3596_v41 = vsel %vm485_vm0, %v3572_v59, %v3574_v35 }
 0x734   : > { %3738 = vrot.lane.b32.xlu1 %v3596_v41, %s9303_s22  ;;  %v3597_v30 = vsel %vm485_vm0, %v3574_v35, %v11554_v11 }
 0x737   : > { %v3502_v1 = vpop.permute.xlu0 %3501  ;;  %v11558_v16 = vpop.permute.xlu1 %3503 }
 0x738   : > { %3700 = vrot.lane.b32.xlu1 %v3500_v2, %s9303_s22  ;;  %v3525_v27 = vsel %vm2067_vm2, %v3500_v2, %v3502_v1  ;;  %v3526_v58 = vsel %vm2067_vm2, %v3502_v1, %v11558_v16 }
 0x73b   : > { %v11561_v17 = vpop.permute.xlu0 %3485  ;;  %v3484_v23 = vpop.permute.xlu1 %3483 }
 0x73c   : > { %3702 = vrot.lane.b32.xlu1 %v3525_v27, %s9303_s22  ;;  %v3517_v56 = vsel %vm2067_vm2, %v3482_v24, %v3484_v23  ;;  %v3518_v15 = vsel %vm2067_vm2, %v3484_v23, %v11561_v17  ;;  %v3106_v23 = vpop.f32.mrf.mxu1 }
 0x73d   : > { %3684 = vrot.lane.b32.xlu0 %v3517_v56, %s9303_s22 }
 0x73f   : > { %v11567_v63 = vpop.permute.xlu0 %3314  ;;  %v11569_v52 = vpop.permute.xlu1 %3666 }
 0x740   : > { %3686 = vrot.lane.b32.xlu1 %v3518_v15, %s9303_s22 }
 0x741   : > { %3740 = vrot.lane.b32.xlu0 %v3597_v30, %s9303_s22  ;;  %v11668_v30 = vpop.f32.mrf.mxu1 }
 0x743   : > { %v11577_v10 = vpop.permute.xlu0 %3648  ;;  %v3313_v13 = vpop.permute.xlu1 %3312 }
 0x744   : > { %3628 = vrot.lane.b32.xlu1 %v11402_v19, %s9303_s22  ;;  %v3236_v19 = vmax.f32 %v3030_v51, 0.0  ;;  %v3370_v0 = vsel %vm3358_vm1, %v11484_v45, %v3313_v13  ;;  %v3371_v45 = vsel %vm3358_vm1, %v3313_v13, %v11567_v63 }
 0x745   : > { %3704 = vrot.lane.b32.xlu0 %v3526_v58, %s9303_s22  ;;  %v11628_v31 = vsel %vm9932_vm15, %v3371_v45, 0.0 }
 0x747   : > { %v3295_v48 = vpop.permute.xlu0 %3294  ;;  %v11586_v50 = vpop.permute.xlu1 %3664 }
 0x748   : > { %3614 = vrot.lane.b32.xlu1 %v11424_v26, %s9303_s22  ;;  %v11606_v26 = vsel %vm9869_vm9, %v3370_v0, 0.0 }
 0x749   : > { %3612 = vrot.lane.b32.xlu0 %v11420_v9, %s9303_s22  ;;  %v3362_v9 = vsel %vm3358_vm1, %v11446_v38, %v3295_v48 }
 0x74a   : > { %v11622_v34 = vsel %vm9869_vm9, %v3362_v9, 0.0 }
 0x74b   : > { %v11594_v21 = vpop.permute.xlu1 %3650  ;;  %v11598_v28 = vpop.permute.xlu0 %3646 }
 0x74c   : > { %3330 = vrot.lane.b32.xlu1 %v3236_v19, %s9302_s21 }
 0x74d   : > { %3328 = vrot.lane.b32.xlu0 %v3235_v14, %s9302_s21  ;;  %v3112_v14 = vpop.f32.mrf.mxu1 }
 0x74f   : > { %v11602_v60 = vpop.permute.xlu1 %3296  ;;  %v11616_v5 = vpop.permute.xlu0 %3632 }
 0x750   : > { %3577 = vrot.lane.b32.xlu1 %v11606_v26, %s9297_s18  ;;  %v3363_v46 = vsel %vm3358_vm1, %v3295_v48, %v11602_v60 }
 0x751   : > { %3610 = vrot.lane.b32.xlu0 %v11393_v43, %s9303_s22  ;;  %v11640_v59 = vsel %vm9932_vm15, %v3363_v46, 0.0 }
 0x753   : > { %v11618_v33 = vpop.permute.xlu1 %3630  ;;  %v11634_v32 = vpop.permute.xlu0 %3348 }
 0x754   : > { %3559 = vrot.lane.b32.xlu1 %v11622_v34, %s9297_s18 }
 0x755   : > { %3579 = vrot.lane.b32.xlu0 %v11628_v31, %s9297_s18 }
 0x757   : > { %v3347_v43 = vpop.permute.xlu1 %3346  ;;  %v11658_v18 = vpop.permute.xlu0 %3668 }
 0x758   : > { %v3385_v20 = vsel %vm3358_vm1, %v11482_v62, %v3347_v43  ;;  %v3386_v4 = vsel %vm3358_vm1, %v3347_v43, %v11634_v32 }
 0x759   : > { %3561 = vrot.lane.b32.xlu0 %v11640_v59, %s9297_s18  ;;  %v11648_v40 = vsel %vm9691_vm13, %v3385_v20, 0.0  ;;  %v11654_v62 = vsel %vm9869_vm9, %v3386_v4, 0.0  ;;  %v3780_v20 = vsel %vm3754_vm11, %v11569_v52, %v11658_v18  ;;  %v3114_v4 = vpop.f32.mrf.mxu1 }
 0x75a   : > { %3505 = vrot.lane.b32.xlu1 %v11648_v40, %s9301_s30 }
 0x75b   : > { %v3737_v22 = vpop.permute.xlu1 %3736  ;;  %v3719_v37 = vpop.permute.xlu0 %3718 }
 0x75d   : > { %3507 = vrot.lane.b32.xlu0 %v11654_v62, %s9301_s30 }
 0x75f   : > { %v11660_v7 = vpop.permute.xlu1 %3722  ;;  %v3721_v24 = vpop.permute.xlu0 %3720 }
 0x760   : > { %v3804_v51 = vsel %vm3754_vm11, %v3721_v24, %v11660_v7  ;;  %v3803_v49 = vsel %vm3754_vm11, %v3719_v37, %v3721_v24  ;;  %v3037_v24 = vpop.f32.mrf.mxu0 }
 0x7a1   : > { %v3683_v35 = vpop.permute.xlu0 %3682 }
 0x7a6   : > { %v3739_v47 = vpop.permute.xlu1 %3738 }
 0x7a7   : > { %v3811_v13 = vsel %vm3754_vm11, %v3737_v22, %v3739_v47  ;;  %v3779_v22 = vsel %vm3754_vm11, %v11586_v50, %v11569_v52 }
 0x7aa   : > { %v3701_v2 = vpop.permute.xlu1 %3700 }
 0x7ae   : > { %v3703_v41 = vpop.permute.xlu1 %3702 }
 0x7af   : > { %v3685_v1 = vpop.permute.xlu0 %3684  ;;  %v3795_v0 = vsel %vm3754_vm11, %v3701_v2, %v3703_v41  ;;  %v3771_v2 = vsel %vm3754_vm11, %v11598_v28, %v11577_v10 }
 0x7b0   : > { %v3787_v43 = vsel %vm3754_vm11, %v3683_v35, %v3685_v1 }
 0x7b2   : > { %v11662_v27 = vpop.permute.xlu1 %3686 }
 0x7b3   : > { %v11664_v56 = vpop.permute.xlu0 %3740  ;;  %v3788_v45 = vsel %vm3754_vm11, %v3685_v1, %v11662_v27  ;;  %v3764_v1 = vsel %vm3754_vm11, %v11618_v33, %v11616_v5 }
 0x7b4   : > { %v3812_v15 = vsel %vm3754_vm11, %v3739_v47, %v11664_v56  ;;  %v3772_v47 = vsel %vm3754_vm11, %v11577_v10, %v11594_v21 }
 0x7b5   : > { %3903 = vmatprep.subr.mxu1 %v3812_v15  ;;  %v7756_v15 = vpop.f32.mrf.mxu0 }
 0x7b6   : > { %3904 = vmatpush1.msra.mxu1 %v3811_v13  ;;  %v3629_v58 = vpop.permute.xlu1 %3628  ;;  %v3115_v13 = vadd.f32 %v3114_v4, %v11324_v3  ;;  %v3201_v53 = vadd.f32 %v7756_v15, %v11324_v3 }
 0x7b7   : > { %v11673_v48 = vpop.permute.xlu0 %3704  ;;  %3905 = vmatprep.subr.mxu1 %v3804_v51  ;;  %v3118_v51 = vpop.f32.mrf.mxu1  ;;  %v3763_v10 = vsel %vm3754_vm11, %v3629_v58, %v11618_v33 }
 0x7b8   : > { %3906 = vmatpush1.msra.mxu1 %v3803_v49  ;;  %v3796_v19 = vsel %vm3754_vm11, %v3703_v41, %v11673_v48  ;;  %v3113_v41 = vadd.f32 %v3112_v14, %v11324_v3  ;;  %v3107_v14 = vadd.f32 %v3106_v23, %v11312_v57  ;;  %v3109_v3 = vadd.f32 %v11668_v30, %v11312_v57 }
 0x7b9   : > { %3907 = vmatprep.subr.mxu1 %v3796_v19 }
 0x7ba   : > { %3908 = vmatpush1.msra.mxu1 %v3795_v0  ;;  %v11679_v9 = vpop.permute.xlu1 %3614  ;;  %v3229_v58 = vmax.f32 %v3113_v41, 0.0  ;;  %v3230_v0 = vmax.f32 %v3115_v13, 0.0 }
 0x7bb   : > { %v3613_v46 = vpop.permute.xlu0 %3612  ;;  %3909 = vmatprep.subr.mxu1 %v3788_v45  ;;  %v3120_v45 = vpop.f32.mrf.mxu1 }
 0x7bc   : > { %3910 = vmatpush1.msra.mxu1 %v3787_v43  ;;  %v3756_v49 = vsel %vm3754_vm11, %v3613_v46, %v11679_v9  ;;  %v3195_v43 = vpop.f32.mrf.mxu0 }
 0x7bd   : > { %3911 = vmatprep.subr.mxu1 %v3780_v20  ;;  %v3231_v20 = vmax.f32 %v3201_v53, 0.0  ;;  %v3196_v23 = vadd.f32 %v3195_v43, %v11312_v57  ;;  %v3124_v4 = vpop.f32.mrf.mxu1 }
 0x7be   : > { %3912 = vmatpush1.msra.mxu1 %v3779_v22  ;;  %v11690_v37 = vpop.permute.xlu1 %3330  ;;  %v3038_v22 = vadd.f32 %v3037_v24, %v11348_v39  ;;  %v3032_v24 = vadd.f32 %v11526_v61, %v11364_v25 }
 0x7bf   : > { %v3329_v35 = vpop.permute.xlu0 %3328  ;;  %3913 = vmatprep.subr.mxu1 %v3772_v47  ;;  %v3221_v47 = vmax.f32 %v3109_v3, 0.0  ;;  %v3126_v41 = vpop.f32.mrf.mxu1 }
 0x7c0   : > { %v3377_v52 = vsel %vm3358_vm1, %v11507_v44, %v3329_v35  ;;  %v3378_v50 = vsel %vm3358_vm1, %v3329_v35, %v11690_v37  ;;  %3914 = vmatpush1.msra.mxu1 %v3771_v2  ;;  %v3222_v2 = vmax.f32 %v3196_v23, 0.0  ;;  %v3125_v35 = vadd.f32 %v3124_v4, %v11348_v39 }
 0x7c1   : > { %3915 = vmatprep.subr.mxu1 %v3764_v1  ;;  %v11711_v28 = vsel %vm9691_vm13, %v3377_v52, 0.0  ;;  %v11715_v44 = vsel %vm9869_vm9, %v3378_v50, 0.0  ;;  %vm3883_vm13 = vcmask 523264   ;;  %v7759_v52 = vpop.f32.mrf.mxu0  ;;  %v3246_v30 = vmax.f32 %v3038_v22, 0.0 }
 0x7c2   : > { %3487 = vrot.lane.b32.xlu1 %v11711_v28, %s9301_s30  ;;  %3916 = vmatpush1.msra.mxu1 %v3763_v10  ;;  %v3127_v57 = vadd.f32 %v3126_v41, %v11348_v39  ;;  %v3211_v50 = vadd.f32 %v7759_v52, %v11348_v39  ;;  %v3247_v1 = vmax.f32 %v3125_v35, 0.0  ;;  %v3119_v10 = vadd.f32 %v3118_v51, %v11364_v25  ;;  %v3578_v61 = vpop.permute.xlu1 %3577 }
 0x7c3   : > { %3489 = vrot.lane.b32.xlu0 %v11715_v44, %s9301_s30  ;;  %v3611_v33 = vpop.permute.xlu0 %3610  ;;  %3917 = vmatprep.subr.mxu1 %v3756_v49  ;;  %v3205_v49 = vpop.f32.mrf.mxu0  ;;  %v3121_v39 = vadd.f32 %v3120_v45, %v11364_v25 }
 0x7c4   : > { %v3755_v19 = vsel %vm3754_vm11, %v3611_v33, %v3613_v46  ;;  %v3220_v46 = vmax.f32 %v3107_v14, 0.0  ;;  %v3248_v15 = vmax.f32 %v3127_v57, 0.0  ;;  %v3249_v13 = vmax.f32 %v3211_v50, 0.0 }
 0x7c5   : > { %3918 = vmatpush1.msra.mxu1 %v3755_v19  ;;  %v3237_v33 = vmax.f32 %v3032_v24, 0.0  ;;  %v3206_v53 = vadd.f32 %v3205_v49, %v11364_v25  ;;  %v3239_v14 = vmax.f32 %v3121_v39, 0.0 }
 0x7c6   : > { %3316 = vrot.lane.b32.xlu1 %v3229_v58, %s9302_s21  ;;  %7107 = vmatmul.mubr.msk.f32.vlgmr.msra.gmra.mxu1 %vm3883_vm13, %v11726_v54  ;;  %v3238_v58 = vmax.f32 %v3119_v10, 0.0  ;;  %v3560_v43 = vpop.permute.xlu1 %3559 }
 0x7c7   : > { %3318 = vrot.lane.b32.xlu0 %v3230_v0, %s9302_s21  ;;  %4022 = vmatprep.mubr.f32.mxu1 %v14038_v36  ;;  %v11756_v19 = vpop.permute.xlu0 %3579  ;;  %v3240_v51 = vmax.f32 %v3206_v53, 0.0 }
 0x7c8   : > { %v3599_v45 = vsel %vm485_vm0, %v3578_v61, %v11756_v19 }
 0x7ca   : > { %3320 = vrot.lane.b32.xlu1 %v3231_v20, %s9302_s21 }
 0x7cb   : > { %3298 = vrot.lane.b32.xlu0 %v3220_v46, %s9302_s21  ;;  %v11761_v0 = vpop.permute.xlu0 %3561 }
 0x7cc   : > { %v3591_v25 = vsel %vm485_vm0, %v3560_v43, %v11761_v0  ;;  %v3506_v20 = vpop.permute.xlu1 %3505 }
 0x7ce   : > { %3300 = vrot.lane.b32.xlu1 %v3221_v47, %s9302_s21 }
 0x7cf   : > { %3302 = vrot.lane.b32.xlu0 %v3222_v2, %s9302_s21  ;;  %v11772_v3 = vpop.permute.xlu0 %3507  ;;  %v3527_v2 = vsel %vm2067_vm2, %v11558_v16, %v3506_v20  ;;  %v3598_v16 = vsel %vm485_vm0, %v11554_v11, %v3578_v61 }
 0x7d0   : > { %v3528_v35 = vsel %vm2067_vm2, %v3506_v20, %v11772_v3 }
 0x7d2   : > { %3350 = vrot.lane.b32.xlu1 %v3246_v30, %s9302_s21 }
 0x7d3   : > { %3352 = vrot.lane.b32.xlu0 %v3247_v1, %s9302_s21 }
 0x7d6   : > { %3354 = vrot.lane.b32.xlu1 %v3248_v15, %s9302_s21 }
 0x7d7   : > { %3356 = vrot.lane.b32.xlu0 %v3249_v13, %s9302_s21 }
 0x7da   : > { %3332 = vrot.lane.b32.xlu1 %v3237_v33, %s9302_s21 }
 0x7db   : > { %3334 = vrot.lane.b32.xlu0 %v3238_v58, %s9302_s21 }
 0x7de   : > { %3336 = vrot.lane.b32.xlu1 %v3239_v14, %s9302_s21 }
 0x7df   : > { %3338 = vrot.lane.b32.xlu0 %v3240_v51, %s9302_s21 }
 0x7e3   : > { %3726 = vrot.lane.b32.xlu0 %v3591_v25, %s9303_s22 }
 0x7e7   : > { %3672 = vrot.lane.b32.xlu0 %v11654_v62, %s9303_s22 }
 0x7eb   : > { %3744 = vrot.lane.b32.xlu0 %v3599_v45, %s9303_s22 }
 0x834   : > { %v3488_v46 = vpop.permute.xlu1 %3487 }
 0x835   : > { %v11774_v23 = vpop.permute.xlu0 %3489  ;;  %v3519_v4 = vsel %vm2067_vm2, %v11561_v17, %v3488_v46  ;;  %v3590_v17 = vsel %vm485_vm0, %v11544_v6, %v3560_v43 }
 0x836   : > { %v3520_v22 = vsel %vm2067_vm2, %v3488_v46, %v11774_v23  ;;  %3688 = vrot.lane.b32.xlu1 %v3519_v4, %s9303_s22 }
 0x837   : > { %3690 = vrot.lane.b32.xlu0 %v3520_v22, %s9303_s22 }
 0x838   : > { %v3317_v62 = vpop.permute.xlu1 %3316 }
 0x839   : > { %v3319_v47 = vpop.permute.xlu0 %3318 }
 0x83a   : > { %3706 = vrot.lane.b32.xlu1 %v3527_v2, %s9303_s22  ;;  %v3373_v6 = vsel %vm3358_vm1, %v3317_v62, %v3319_v47 }
 0x83b   : > { %3708 = vrot.lane.b32.xlu0 %v3528_v35, %s9303_s22  ;;  %v11807_v11 = vsel %vm10020_vm10, %v3373_v6, 0.0 }
 0x83c   : > { %v3321_v52 = vpop.permute.xlu1 %3320 }
 0x83d   : > { %v3299_v41 = vpop.permute.xlu0 %3298  ;;  %v3374_v13 = vsel %vm3358_vm1, %v3319_v47, %v3321_v52 }
 0x83e   : > { %3724 = vrot.lane.b32.xlu1 %v3590_v17, %s9303_s22  ;;  %v11849_v33 = vsel %vm10002_vm5, %v3374_v13, 0.0 }
 0x83f   : > { %3654 = vrot.lane.b32.xlu0 %v11715_v44, %s9303_s22 }
 0x840   : > { %v3301_v57 = vpop.permute.xlu1 %3300 }
 0x841   : > { %v3303_v30 = vpop.permute.xlu0 %3302  ;;  %v3365_v39 = vsel %vm3358_vm1, %v3299_v41, %v3301_v57 }
 0x842   : > { %3742 = vrot.lane.b32.xlu1 %v3598_v16, %s9303_s22  ;;  %v11863_v51 = vsel %vm10020_vm10, %v3365_v39, 0.0 }
 0x843   : > { %3636 = vrot.lane.b32.xlu0 %v11606_v26, %s9303_s22  ;;  %v3364_v26 = vsel %vm3358_vm1, %v11602_v60, %v3299_v41  ;;  %v3372_v60 = vsel %vm3358_vm1, %v11567_v63, %v3317_v62 }
 0x844   : > { %v3351_v44 = vpop.permute.xlu1 %3350  ;;  %v11835_v15 = vsel %vm9820_vm6, %v3372_v60, 0.0 }
 0x845   : > { %v3353_v50 = vpop.permute.xlu0 %3352  ;;  %v3387_v43 = vsel %vm3358_vm1, %v11634_v32, %v3351_v44 }
 0x846   : > { %3670 = vrot.lane.b32.xlu1 %v11648_v40, %s9303_s22  ;;  %v3366_v40 = vsel %vm3358_vm1, %v3301_v57, %v3303_v30  ;;  %v3388_v24 = vsel %vm3358_vm1, %v3351_v44, %v3353_v50  ;;  %v11878_v20 = vsel %vm9932_vm15, %v3387_v43, 0.0 }
 0x847   : > { %3618 = vrot.lane.b32.xlu0 %v11622_v34, %s9303_s22  ;;  %v11817_v34 = vsel %vm9820_vm6, %v3364_v26, 0.0 }
 0x848   : > { %v3355_v1 = vpop.permute.xlu1 %3354 }
 0x849   : > { %v3389_v46 = vsel %vm3358_vm1, %v3353_v50, %v3355_v1 }
 0x84a   : > { %3652 = vrot.lane.b32.xlu1 %v11711_v28, %s9303_s22  ;;  %v3357_v28 = vpop.permute.xlu0 %3356  ;;  %v11891_v29 = vsel %vm10020_vm10, %v3389_v46, 0.0 }
 0x84b   : > { %3583 = vrot.lane.b32.xlu0 %v11807_v11, %s9297_s18  ;;  %v3390_v49 = vsel %vm3358_vm1, %v3355_v1, %v3357_v28 }
 0x84c   : > { %v3333_v63 = vpop.permute.xlu1 %3332  ;;  %v11856_v53 = vsel %vm10002_vm5, %v3390_v49, 0.0 }
 0x84d   : > { %v3379_v4 = vsel %vm3358_vm1, %v11690_v37, %v3333_v63  ;;  %v3604_v37 = vld [vmem:[%s13906_s8] sm:$0xff] }
 0x84e   : > { %3634 = vrot.lane.b32.xlu1 %v11493_v42, %s9303_s22  ;;  %v11828_v42 = vsel %vm10002_vm5, %v3366_v40, 0.0  ;;  %v3335_v10 = vpop.permute.xlu0 %3334  ;;  %v11899_v22 = vsel %vm9932_vm15, %v3379_v4, 0.0 }
 0x84f   : > { %3563 = vrot.lane.b32.xlu0 %v11817_v34, %s9297_s18  ;;  %v3380_v58 = vsel %vm3358_vm1, %v3333_v63, %v3335_v10 }
 0x850   : > { %v3337_v14 = vpop.permute.xlu1 %3336  ;;  %v11871_v25 = vsel %vm9820_vm6, %v3380_v58, 0.0 }
 0x851   : > { %v3381_v8 = vsel %vm3358_vm1, %v3335_v10, %v3337_v14 }
 0x852   : > { %3616 = vrot.lane.b32.xlu1 %v11459_v55, %s9303_s22  ;;  %v11842_v55 = vsel %vm9820_vm6, %v3388_v24, 0.0  ;;  %v3339_v61 = vpop.permute.xlu0 %3338  ;;  %v11906_v62 = vsel %vm10020_vm10, %v3381_v8, 0.0 }
 0x853   : > { %3567 = vrot.lane.b32.xlu0 %v11828_v42, %s9297_s18  ;;  %v3382_v45 = vsel %vm3358_vm1, %v3337_v14, %v3339_v61 }
 0x854   : > { %v11885_v32 = vsel %vm10002_vm5, %v3382_v45, 0.0 }
 0x856   : > { %3581 = vrot.lane.b32.xlu1 %v11835_v15, %s9297_s18  ;;  %v11913_v38 = vpop.permute.xlu0 %3726 }
 0x857   : > { %3511 = vrot.lane.b32.xlu0 %v11842_v55, %s9301_s30 }
 0x85a   : > { %3585 = vrot.lane.b32.xlu1 %v11849_v33, %s9297_s18  ;;  %v11915_v47 = vpop.permute.xlu0 %3672 }
 0x85b   : > { %3515 = vrot.lane.b32.xlu0 %v11856_v53, %s9301_s30 }
 0x85e   : > { %3565 = vrot.lane.b32.xlu1 %v11863_v51, %s9297_s18  ;;  %v11917_v2 = vpop.permute.xlu0 %3744  ;;  %s12876_s18 = scalar_lea.vmem [#allocation2], %s6997_s25 }
 0x85f   : > { %3493 = vrot.lane.b32.xlu0 %v11871_v25, %s9301_s30  ;;  %s6917_s25 = sshll.u32 %s12876_s18, 4  ;;  %s13844_s25 = int_to_ptr.vmem [resolvable:$true] %s6917_s25 }
 0x862   : > { %3509 = vrot.lane.b32.xlu1 %v11878_v20, %s9301_s30 }
 0x863   : > { %3497 = vrot.lane.b32.xlu0 %v11885_v32, %s9301_s30 }
 0x866   : > { %3513 = vrot.lane.b32.xlu1 %v11891_v29, %s9301_s30 }
 0x86a   : > { %3491 = vrot.lane.b32.xlu1 %v11899_v22, %s9301_s30 }
 0x86e   : > { %3495 = vrot.lane.b32.xlu1 %v11906_v62, %s9301_s30  ;;  %s9304_s30 = smov 96  }
 0x872   : > { %3607 = vperm.xlu1 %8966, %v3604_v37  }
 0x8a8   : > { %v3689_v35 = vpop.permute.xlu1 %3688 }
 0x8a9   : > { %v11919_v17 = vpop.permute.xlu0 %3690  ;;  %v3789_v24 = vsel %vm3754_vm11, %v11662_v27, %v3689_v35 }
 0x8aa   : > { %v3790_v1 = vsel %vm3754_vm11, %v3689_v35, %v11919_v17 }
 0x8ac   : > { %v3707_v12 = vpop.permute.xlu1 %3706 }
 0x8ad   : > { %v11921_v41 = vpop.permute.xlu0 %3708 }
 0x8ae   : > { %v3798_v28 = vsel %vm3754_vm11, %v3707_v12, %v11921_v41 }
 0x8b0   : > { %v3725_v52 = vpop.permute.xlu1 %3724 }
 0x8b1   : > { %v11923_v16 = vpop.permute.xlu0 %3654  ;;  %v3806_v50 = vsel %vm3754_vm11, %v3725_v52, %v11913_v38  ;;  %v3805_v40 = vsel %vm3754_vm11, %v11660_v7, %v3725_v52 }
 0x8b4   : > { %v3743_v30 = vpop.permute.xlu1 %3742 }
 0x8b5   : > { %v3814_v57 = vsel %vm3754_vm11, %v3743_v30, %v11917_v2  ;;  %v3813_v6 = vsel %vm3754_vm11, %v11664_v56, %v3743_v30  ;;  %v11931_v44 = vpop.permute.xlu0 %3636  ;;  %v3797_v56 = vsel %vm3754_vm11, %v11673_v48, %v3707_v12 }
 0x8b6   : > { %3974 = vmatprep.subr.mxu1 %v3814_v57 }
 0x8b7   : > { %3975 = vmatpush1.msra.mxu1 %v3813_v6 }
 0x8b8   : > { %3976 = vmatprep.subr.mxu1 %v3806_v50  ;;  %v3671_v26 = vpop.permute.xlu1 %3670 }
 0x8b9   : > { %3977 = vmatpush1.msra.mxu1 %v3805_v40  ;;  %v3782_v7 = vsel %vm3754_vm11, %v3671_v26, %v11915_v47  ;;  %v11945_v13 = vpop.permute.xlu0 %3618  ;;  %v3781_v10 = vsel %vm3754_vm11, %v11658_v18, %v3671_v26 }
 0x8ba   : > { %3978 = vmatprep.subr.mxu1 %v3798_v28 }
 0x8bb   : > { %3979 = vmatpush1.msra.mxu1 %v3797_v56 }
 0x8bc   : > { %3980 = vmatprep.subr.mxu1 %v3790_v1  ;;  %v3653_v60 = vpop.permute.xlu1 %3652 }
 0x8bd   : > { %3981 = vmatpush1.msra.mxu1 %v3789_v24  ;;  %v3774_v48 = vsel %vm3754_vm11, %v3653_v60, %v11923_v16  ;;  %v3773_v49 = vsel %vm3754_vm11, %v11594_v21, %v3653_v60  ;;  %v3584_v58 = vpop.permute.xlu0 %3583 }
 0x8be   : > { %3982 = vmatprep.subr.mxu1 %v3782_v7 }
 0x8bf   : > { %3983 = vmatpush1.msra.mxu1 %v3781_v10 }
 0x8c0   : > { %3984 = vmatprep.subr.mxu1 %v3774_v48  ;;  %v3635_v63 = vpop.permute.xlu1 %3634 }
 0x8c1   : > { %3985 = vmatpush1.msra.mxu1 %v3773_v49  ;;  %v3766_v27 = vsel %vm3754_vm11, %v3635_v63, %v11931_v44  ;;  %v3765_v39 = vsel %vm3754_vm11, %v11616_v5, %v3635_v63  ;;  %v3564_v5 = vpop.permute.xlu0 %3563 }
 0x8c2   : > { %3986 = vmatprep.subr.mxu1 %v3766_v27  ;;  %v3592_v46 = vsel %vm485_vm0, %v11761_v0, %v3564_v5 }
 0x8c3   : > { %3987 = vmatpush1.msra.mxu1 %v3765_v39 }
 0x8c4   : > { %v3617_v18 = vpop.permute.xlu1 %3616 }
 0x8c5   : > { %v3758_v61 = vsel %vm3754_vm11, %v3617_v18, %v11945_v13  ;;  %v3757_v14 = vsel %vm3754_vm11, %v11679_v9, %v3617_v18  ;;  %v3568_v37 = vpop.permute.xlu0 %3567 }
 0x8c6   : > { %3988 = vmatprep.subr.mxu1 %v3758_v61 }
 0x8c7   : > { %3989 = vmatpush1.msra.mxu1 %v3757_v14 }
 0x8c8   : > { %7108 = vmatmul.mubr.msk.f32.vlgmr.msra.gmra.mxu1 %vm3883_vm13, %v11726_v54  ;;  %v3582_v21 = vpop.permute.xlu1 %3581 }
 0x8c9   : > { %v3600_v43 = vsel %vm485_vm0, %v11756_v19, %v3582_v21  ;;  %4164 = vmatprep.mubr.f32.mxu1 %v14038_v36  ;;  %v3512_v12 = vpop.permute.xlu0 %3511 }
 0x8ca   : > { %3746 = vrot.lane.b32.xlu0 %v3600_v43, %s9303_s22 }
 0x8cc   : > { %v3586_v45 = vpop.permute.xlu1 %3585 }
 0x8ce   : > { %3728 = vrot.lane.b32.xlu0 %v3592_v46, %s9303_s22 }
 0x8d0   : > { %v3566_v9 = vpop.permute.xlu1 %3565 }
 0x8d1   : > { %v3593_v4 = vsel %vm485_vm0, %v3564_v5, %v3566_v9  ;;  %v3594_v57 = vsel %vm485_vm0, %v3566_v9, %v3568_v37 }
 0x8d2   : > { %3730 = vrot.lane.b32.xlu1 %v3593_v4, %s9303_s22 }
 0x8d4   : > { %v3510_v8 = vpop.permute.xlu1 %3509 }
 0x8d6   : > { %3676 = vrot.lane.b32.xlu1 %v11842_v55, %s9303_s22  ;;  %v3516_v55 = vpop.permute.xlu0 %3515 }
 0x8d8   : > { %v3514_v19 = vpop.permute.xlu1 %3513 }
 0x8da   : > { %3680 = vrot.lane.b32.xlu1 %v11856_v53, %s9303_s22  ;;  %v3494_v53 = vpop.permute.xlu0 %3493 }
 0x8dc   : > { %v3492_v35 = vpop.permute.xlu1 %3491 }
 0x8dd   : > { %v3521_v0 = vsel %vm2067_vm2, %v11774_v23, %v3492_v35  ;;  %v3601_v23 = vsel %vm485_vm0, %v3582_v21, %v3584_v58 }
 0x8de   : > { %3658 = vrot.lane.b32.xlu1 %v11871_v25, %s9303_s22  ;;  %3692 = vrot.lane.b32.xlu0 %v3521_v0, %s9303_s22  ;;  %v3522_v25 = vsel %vm2067_vm2, %v3492_v35, %v3494_v53 }
 0x8e2   : > { %3662 = vrot.lane.b32.xlu1 %v11885_v32, %s9303_s22  ;;  %3674 = vrot.lane.b32.xlu0 %v11878_v20, %s9303_s22  ;;  %v3529_v20 = vsel %vm2067_vm2, %v11772_v3, %v3510_v8  ;;  %v3496_v32 = vpop.permute.xlu1 %3495  ;;  %v3602_v3 = vsel %vm485_vm0, %v3584_v58, %v3586_v45  ;;  %vm4200_vm0 = vcmask 261120  }
 0x8e6   : > { %3640 = vrot.lane.b32.xlu1 %v11835_v15, %s9303_s22  ;;  %3678 = vrot.lane.b32.xlu0 %v11891_v29, %s9303_s22  ;;  %v3530_v15 = vsel %vm2067_vm2, %v3510_v8, %v3512_v12  ;;  %v3523_v29 = vsel %vm2067_vm2, %v3494_v53, %v3496_v32 }
 0x8ea   : > { %3748 = vrot.lane.b32.xlu1 %v3601_v23, %s9303_s22  ;;  %3656 = vrot.lane.b32.xlu0 %v11899_v22, %s9303_s22  ;;  %v3531_v22 = vsel %vm2067_vm2, %v3512_v12, %v3514_v19 }
 0x8ed   : > { %v12017_v30 = vpop.permute.xlu1 %3607 }
 0x8ee   : > { %3694 = vrot.lane.b32.xlu1 %v3522_v25, %s9303_s22  ;;  %3660 = vrot.lane.b32.xlu0 %v11906_v62, %s9303_s22  ;;  %v3498_v62 = vpop.permute.xlu0 %3497 }
 0x8ef   : > { %v3524_v52 = vsel %vm2067_vm2, %v3496_v32, %v3498_v62 }
 0x8f2   : > { %3712 = vrot.lane.b32.xlu1 %v3530_v15, %s9303_s22  ;;  %3638 = vrot.lane.b32.xlu0 %v11628_v31, %s9303_s22  ;;  %v3532_v31 = vsel %vm2067_vm2, %v3514_v19, %v3516_v55 }
 0x8f6   : > { %3752 = vrot.lane.b32.xlu1 %v3586_v45, %s9303_s22  ;;  %3710 = vrot.lane.b32.xlu0 %v3529_v20, %s9303_s22 }
 0x8fa   : > { %3734 = vrot.lane.b32.xlu1 %v3568_v37, %s9303_s22  ;;  %3696 = vrot.lane.b32.xlu0 %v3523_v29, %s9303_s22 }
 0x8fe   : > { %3644 = vrot.lane.b32.xlu1 %v11849_v33, %s9303_s22  ;;  %3714 = vrot.lane.b32.xlu0 %v3531_v22, %s9303_s22  ;;  %v3953_v33 = vpop.f32.mrf.mxu1 }
 0x8ff   : > { %v12023_v6 = vadd.f32 %v3953_v33, %v12017_v30 }
 0x900   : > { %v3955_v28 = vpop.f32.mrf.mxu1 }
 0x901   : > { %v12030_v50 = vrot.slane %v12023_v6, 6  ;;  %v12039_v40 = vrot.slane %v12023_v6, 2 }
 0x902   : > { %3716 = vrot.lane.b32.xlu1 %v3532_v31, %s9303_s22  ;;  %3750 = vrot.lane.b32.xlu0 %v3602_v3, %s9303_s22 }
 0x903   : > { %v8972_v26 = vpack.i.bf16 %v12030_v50, %v12023_v6 }
 0x906   : > { %3698 = vrot.lane.b32.xlu1 %v3524_v52, %s9303_s22  ;;  %3732 = vrot.lane.b32.xlu0 %v3594_v57, %s9303_s22 }
 0x90a   : > { %3622 = vrot.lane.b32.xlu1 %v11817_v34, %s9303_s22  ;;  %3642 = vrot.lane.b32.xlu0 %v11807_v11, %s9303_s22  ;;  %v12042_v34 = vrot.slane %v12023_v6, 4  ;;  %v12048_v11 = vadd.f32 %v3955_v28, %v12017_v30 }
 0x90c   : > { %v12059_v56 = vrot.slane %v12048_v11, 2  ;;  %v12062_v1 = vrot.slane %v12048_v11, 4  ;;  %v12070_v24 = vrot.slane %v12048_v11, 6 }
 0x90e   : > { %3626 = vrot.lane.b32.xlu1 %v11828_v42, %s9303_s22  ;;  %3620 = vrot.lane.b32.xlu0 %v11640_v59, %s9303_s22  ;;  %v8982_v59 = vpack.i.bf16 %v12039_v40, %v12023_v6  ;;  %v8967_v42 = vpack.i.bf16 %v12042_v34, %v12039_v40  ;;  %v8992_v60 = vpack.i.bf16 %v12062_v1, %v12059_v56 }
 0x90f   : > { %v9002_v7 = vpack.i.bf16 %v12070_v24, %v12062_v1  ;;  %v8997_v10 = vpack.i.bf16 %v12070_v24, %v12048_v11  ;;  %v9007_v48 = vpack.i.bf16 %v12059_v56, %v12048_v11 }
 0x912   : > { %3624 = vrot.lane.b32.xlu0 %v11863_v51, %s9303_s22  ;;  %8973 = vrot.lane.b32.xlu1 %v8972_v26, %s9304_s30  ;;  %v8977_v51 = vpack.i.bf16 %v12030_v50, %v12042_v34 }
 0x916   : > { %8983 = vrot.lane.b32.xlu1 %v8982_v59, %s9305_s24  ;;  %8968 = vrot.lane.b32.xlu0 %v8967_v42, %s9306_s23 }
 0x91a   : > { %4443 = vrot.lane.b32.xlu1 %v12023_v6, %s9306_s23  ;;  %8978 = vrot.lane.b32.xlu0 %v8977_v51, %s9305_s24 }
 0x91e   : > { %8993 = vrot.lane.b32.xlu1 %v8992_v60, %s9306_s23  ;;  %8988 = vrot.lane.b32.xlu0 %v8967_v42, %s9304_s30 }
 0x922   : > { %9003 = vrot.lane.b32.xlu1 %v9002_v7, %s9305_s24  ;;  %4366 = vrot.lane.b32.xlu0 %v12030_v50, %s9306_s23 }
 0x926   : > { %9013 = vrot.lane.b32.xlu1 %v8992_v60, %s9304_s30  ;;  %8998 = vrot.lane.b32.xlu0 %v8997_v10, %s9304_s30 }
 0x92a   : > { %4705 = vrot.lane.b32.xlu1 %v12070_v24, %s9306_s23  ;;  %9008 = vrot.lane.b32.xlu0 %v9007_v48, %s9305_s24 }
 0x92e   : > { %4782 = vrot.lane.b32.xlu0 %v12048_v11, %s9306_s23 }
 0x93c   : > { %v3747_v49 = vpop.permute.xlu0 %3746 }
 0x93d   : > { %v3815_v4 = vsel %vm3754_vm11, %v11917_v2, %v3747_v49 }
 0x940   : > { %v3729_v39 = vpop.permute.xlu0 %3728 }
 0x941   : > { %v3807_v19 = vsel %vm3754_vm11, %v11913_v38, %v3729_v39 }
 0x944   : > { %v3731_v63 = vpop.permute.xlu1 %3730 }
 0x945   : > { %v3808_v8 = vsel %vm3754_vm11, %v3729_v39, %v3731_v63 }
 0x948   : > { %v12090_v27 = vpop.permute.xlu1 %3676 }
 0x94c   : > { %v12092_v58 = vpop.permute.xlu1 %3680 }
 0x950   : > { %v3693_v18 = vpop.permute.xlu0 %3692  ;;  %v12094_v61 = vpop.permute.xlu1 %3658 }
 0x951   : > { %v3791_v38 = vsel %vm3754_vm11, %v11919_v17, %v3693_v18 }
 0x954   : > { %v3675_v14 = vpop.permute.xlu0 %3674  ;;  %v12096_v21 = vpop.permute.xlu1 %3662 }
 0x955   : > { %v3784_v32 = vsel %vm3754_vm11, %v3675_v14, %v12090_v27  ;;  %v3783_v29 = vsel %vm3754_vm11, %v11915_v47, %v3675_v14 }
 0x958   : > { %v12098_v43 = vpop.permute.xlu0 %3678  ;;  %v12100_v5 = vpop.permute.xlu1 %3640 }
 0x959   : > { %v3786_v48 = vsel %vm3754_vm11, %v12098_v43, %v12092_v58 }
 0x95c   : > { %v3657_v45 = vpop.permute.xlu0 %3656  ;;  %v3749_v46 = vpop.permute.xlu1 %3748 }
 0x95d   : > { %v3816_v9 = vsel %vm3754_vm11, %v3747_v49, %v3749_v46  ;;  %v3775_v22 = vsel %vm3754_vm11, %v11923_v16, %v3657_v45 }
 0x95e   : > { %4045 = vmatprep.subr.mxu0 %v3816_v9  ;;  %v12167_v9 = vld [vmem:[%s13907_s9 + $0x70] sm:$0xff] }
 0x95f   : > { %4046 = vmatpush1.msra.mxu0 %v3815_v4 }
 0x960   : > { %v12108_v37 = vpop.permute.xlu0 %3660  ;;  %4047 = vmatprep.subr.mxu0 %v3808_v8  ;;  %v3695_v35 = vpop.permute.xlu1 %3694 }
 0x961   : > { %4048 = vmatpush1.msra.mxu0 %v3807_v19  ;;  %v3792_v25 = vsel %vm3754_vm11, %v3693_v18, %v3695_v35  ;;  %v3778_v14 = vsel %vm3754_vm11, %v12108_v37, %v12096_v21  ;;  %v3777_v58 = vsel %vm3754_vm11, %v12094_v61, %v12108_v37  ;;  %v12187_v19 = vld [vmem:[%s13907_s9 + $0x60] sm:$0xff] }
 0x964   : > { %v3639_v0 = vpop.permute.xlu0 %3638  ;;  %v3713_v12 = vpop.permute.xlu1 %3712 }
 0x965   : > { %v3768_v3 = vsel %vm3754_vm11, %v3639_v0, %v12100_v5  ;;  %v3767_v62 = vsel %vm3754_vm11, %v11931_v44, %v3639_v0 }
 0x968   : > { %v3711_v55 = vpop.permute.xlu0 %3710  ;;  %v3753_v23 = vpop.permute.xlu1 %3752 }
 0x969   : > { %v3799_v53 = vsel %vm3754_vm11, %v11921_v41, %v3711_v55  ;;  %v3800_v2 = vsel %vm3754_vm11, %v3711_v55, %v3713_v12  ;;  %v3776_v41 = vsel %vm3754_vm11, %v3657_v45, %v12094_v61 }
 0x96a   : > { %4049 = vmatprep.subr.mxu0 %v3800_v2 }
 0x96b   : > { %4050 = vmatpush1.msra.mxu0 %v3799_v53  ;;  %v12229_v53 = vld [vmem:[%s13907_s9 + $0x48] sm:$0xff] }
 0x96c   : > { %v3697_v15 = vpop.permute.xlu0 %3696  ;;  %4051 = vmatprep.subr.mxu0 %v3792_v25  ;;  %v3735_v20 = vpop.permute.xlu1 %3734 }
 0x96d   : > { %4052 = vmatpush1.msra.mxu0 %v3791_v38  ;;  %v3793_v7 = vsel %vm3754_vm11, %v3695_v35, %v3697_v15 }
 0x96e   : > { %4053 = vmatprep.subr.mxu0 %v3784_v32  ;;  %v12256_v32 = vld [vmem:[%s13907_s9 + $0x38] sm:$0xff] }
 0x96f   : > { %4054 = vmatpush1.msra.mxu0 %v3783_v29  ;;  %v12267_v29 = vld [vmem:[%s13907_s9 + $0x30] sm:$0xff] }
 0x970   : > { %v3715_v31 = vpop.permute.xlu0 %3714  ;;  %4055 = vmatprep.subr.mxu0 %v3776_v41  ;;  %v3645_v17 = vpop.permute.xlu1 %3644 }
 0x971   : > { %4056 = vmatpush1.msra.mxu0 %v3775_v22  ;;  %v3801_v42 = vsel %vm3754_vm11, %v3713_v12, %v3715_v31 }
 0x972   : > { %4057 = vmatprep.subr.mxu0 %v3768_v3 }
 0x973   : > { %4058 = vmatpush1.msra.mxu0 %v3767_v62  ;;  %v12298_v62 = vld [vmem:[%s13907_s9 + $0x20] sm:$0xff] }
 0x974   : > { %v3751_v47 = vpop.permute.xlu0 %3750  ;;  %v3717_v52 = vpop.permute.xlu1 %3716 }
 0x975   : > { %v3817_v57 = vsel %vm3754_vm11, %v3749_v46, %v3751_v47  ;;  %v3818_v33 = vsel %vm3754_vm11, %v3751_v47, %v3753_v23  ;;  %v3802_v44 = vsel %vm3754_vm11, %v3715_v31, %v3717_v52  ;;  %v12220_v23 = vld [vmem:[%s13907_s9 + $0x50] sm:$0xff]  ;;  %v12311_v52 = vld [vmem:[%s13907_s9 + $0x18] sm:$0xff] }
 0x976   : > { %4116 = vmatprep.subr.mxu1 %v3818_v33 }
 0x977   : > { %4117 = vmatpush1.msra.mxu1 %v3817_v57 }
 0x978   : > { %v3733_v16 = vpop.permute.xlu0 %3732  ;;  %v3699_v26 = vpop.permute.xlu1 %3698 }
 0x979   : > { %v3809_v28 = vsel %vm3754_vm11, %v3731_v63, %v3733_v16  ;;  %v3810_v59 = vsel %vm3754_vm11, %v3733_v16, %v3735_v20  ;;  %v3794_v60 = vsel %vm3754_vm11, %v3697_v15, %v3699_v26  ;;  %v3785_v63 = vsel %vm3754_vm11, %v12090_v27, %v12098_v43  ;;  %v12244_v15 = vld [vmem:[%s13907_s9 + $0x40] sm:$0xff] }
 0x97a   : > { %4118 = vmatprep.subr.mxu1 %v3810_v59 }
 0x97b   : > { %4119 = vmatpush1.msra.mxu1 %v3809_v28  ;;  %v12327_v28 = vld [vmem:[%s13907_s9 + $0x10] sm:$0xff] }
 0x97c   : > { %v3643_v51 = vpop.permute.xlu0 %3642  ;;  %4120 = vmatprep.subr.mxu1 %v3802_v44  ;;  %v3623_v10 = vpop.permute.xlu1 %3622  ;;  %v12336_v44 = vld [vmem:[%s13907_s9 + $0x8] sm:$0xff] }
 0x97d   : > { %4121 = vmatpush1.msra.mxu1 %v3801_v42  ;;  %v3770_v27 = vsel %vm3754_vm11, %v3643_v51, %v3645_v17  ;;  %v3769_v43 = vsel %vm3754_vm11, %v12100_v5, %v3643_v51  ;;  %v12174_v5 = vld [vmem:[%s13907_s9 + $0x68] sm:$0xff] }
 0x97e   : > { %4122 = vmatprep.subr.mxu1 %v3794_v60  ;;  %v12285_v17 = vld [vmem:[%s13907_s9 + $0x28] sm:$0xff] }
 0x97f   : > { %4123 = vmatpush1.msra.mxu1 %v3793_v7  ;;  %v12351_v7 = vld [vmem:[%s13907_s9] sm:$0xff] }
 0x980   : > { %v3621_v49 = vpop.permute.xlu0 %3620  ;;  %4124 = vmatprep.subr.mxu1 %v3786_v48  ;;  %v3627_v45 = vpop.permute.xlu1 %3626 }
 0x981   : > { %v3759_v39 = vsel %vm3754_vm11, %v11945_v13, %v3621_v49  ;;  %4125 = vmatpush1.msra.mxu1 %v3785_v63  ;;  %v3760_v18 = vsel %vm3754_vm11, %v3621_v49, %v3623_v10  ;;  %v12155_v13 = vld [vmem:[%s13907_s9 + $0x78] sm:$0xff] }
 0x982   : > { %4059 = vmatprep.subr.mxu0 %v3760_v18  ;;  %4126 = vmatprep.subr.mxu1 %v3778_v14 }
 0x983   : > { %4060 = vmatpush1.msra.mxu0 %v3759_v39  ;;  %4127 = vmatpush1.msra.mxu1 %v3777_v58 }
 0x984   : > { %v3625_v21 = vpop.permute.xlu0 %3624  ;;  %7109 = vmatmul.mubr.msk.f32.vlgmr.msra.gmra.mxu0 %vm3883_vm13, %v11726_v54  ;;  %4128 = vmatprep.subr.mxu1 %v3770_v27  ;;  %v8974_v42 = vpop.permute.xlu1 %8973 }
 0x985   : > { %v3761_v61 = vsel %vm3754_vm11, %v3623_v10, %v3625_v21  ;;  %7760 = vmatprep.subr.mxu0 %v14038_v36  ;;  %4129 = vmatpush1.msra.mxu1 %v3769_v43  ;;  %v3762_v46 = vsel %vm3754_vm11, %v3625_v21, %v3627_v45  ;;  %v8976_v48 = vunpack.i.h.bf16 %v8974_v42 }
 0x986   : > { %7761 = vmatpush3.msra.mxu0 %v12155_v13  ;;  %4130 = vmatprep.subr.mxu1 %v3762_v46 }
 0x987   : > { %7762 = vmatprep.subr.mxu0 %v14038_v36  ;;  %4131 = vmatpush1.msra.mxu1 %v3761_v61 }
 0x988   : > { %7763 = vmatpush3.msra.mxu0 %v12167_v9  ;;  %v4024_v4 = vpop.f32.mrf.mxu1  ;;  %7110 = vmatmul.mubr.msk.f32.vlgmr.msra.gmra.mxu1 %vm3883_vm13, %v11726_v54  ;;  %v12196_v54 = vld [vmem:[%s13907_s9 + $0x58] sm:$0xff]  ;;  %v12277_v31 = vpop.permute.xlu0 %8968 }
 0x989   : > { %v12180_v8 = vadd.f32 %v4024_v4, %v12017_v30  ;;  %7764 = vmatprep.subr.mxu0 %v14038_v36  ;;  %7795 = vmatprep.subr.mxu1 %v14038_v36  ;;  %v8970_v33 = vunpack.i.l.bf16 %v12277_v31  ;;  %v8971_v49 = vunpack.i.h.bf16 %v12277_v31  ;;  %v8984_v27 = vpop.permute.xlu1 %8983 }
 0x98a   : > { %7765 = vmatpush3.msra.mxu0 %v12174_v5  ;;  %7796 = vmatpush3.msra.mxu1 %v12155_v13  ;;  %v4026_v2 = vpop.f32.mrf.mxu1  ;;  %v8985_v45 = vunpack.i.l.bf16 %v8984_v27 }
 0x98b   : > { %7766 = vmatprep.subr.mxu0 %v14038_v36  ;;  %7797 = vmatprep.subr.mxu1 %v14038_v36  ;;  %v12199_v37 = vrot.slane %v12180_v8, 6  ;;  %v12202_v35 = vrot.slane %v12180_v8, 2  ;;  %v12207_v0 = vrot.slane %v12180_v8, 4  ;;  %v12249_v20 = vadd.f32 %v4026_v2, %v12017_v30 }
 0x98c   : > { %7767 = vmatpush3.msra.mxu0 %v12187_v19  ;;  %7798 = vmatpush3.msra.mxu1 %v12167_v9  ;;  %v8979_v57 = vpop.permute.xlu0 %8978  ;;  %v4201_v51 = vsel %vm4200_vm0, %v12023_v6, %v8970_v33  ;;  %v8975_v6 = vunpack.i.l.bf16 %v8974_v42 }
 0x98d   : > { %7768 = vmatprep.subr.mxu0 %v14038_v36  ;;  %7799 = vmatprep.subr.mxu1 %v14038_v36  ;;  %v9022_v12 = vpack.i.bf16 %v12199_v37, %v12180_v8  ;;  %v9017_v55 = vpack.i.bf16 %v12207_v0, %v12202_v35  ;;  %v9032_v25 = vpack.i.bf16 %v12202_v35, %v12180_v8  ;;  %v12272_v41 = vrot.slane %v12249_v20, 2  ;;  %v4444_v4 = vpop.permute.xlu1 %4443 }
 0x98e   : > { %7769 = vmatpush3.msra.mxu0 %v12196_v54  ;;  %7800 = vmatpush3.msra.mxu1 %v12174_v5  ;;  %v9027_v38 = vpack.i.bf16 %v12199_v37, %v12207_v0  ;;  %v12275_v22 = vrot.slane %v12249_v20, 4  ;;  %v12303_v47 = vrot.slane %v12249_v20, 6  ;;  %v8980_v59 = vunpack.i.l.bf16 %v8979_v57 }
 0x98f   : > { %7770 = vmatprep.subr.mxu0 %v14038_v36  ;;  %7801 = vmatprep.subr.mxu1 %v14038_v36  ;;  %v9057_v60 = vpack.i.bf16 %v12272_v41, %v12249_v20  ;;  %v8981_v39 = vunpack.i.h.bf16 %v8979_v57  ;;  %v4285_v18 = vsel %vm4200_vm0, %v8975_v6, %v12039_v40 }
 0x990   : > { %9023 = vrot.lane.b32.xlu1 %v9022_v12, %s9304_s30  ;;  %9018 = vrot.lane.b32.xlu0 %v9017_v55, %s9306_s23  ;;  %v9042_v3 = vpack.i.bf16 %v12275_v22, %v12272_v41  ;;  %v9052_v16 = vpack.i.bf16 %v12303_v47, %v12275_v22  ;;  %v9047_v26 = vpack.i.bf16 %v12303_v47, %v12249_v20  ;;  %v8989_v40 = vpop.permute.xlu0 %8988 }
 0x991   : > { %7771 = vmatpush3.msra.mxu0 %v12220_v23  ;;  %7802 = vmatpush3.msra.mxu1 %v12187_v19  ;;  %v4202_v10 = vsel %vm3883_vm13, %v4201_v51, %v8980_v59  ;;  %v4286_v14 = vsel %vm3883_vm13, %v4285_v18, %v8971_v49  ;;  %v8990_v43 = vunpack.i.l.bf16 %v8989_v40  ;;  %v8991_v12 = vunpack.i.h.bf16 %v8989_v40 }
 0x992   : > { %7772 = vmatprep.subr.mxu0 %v14038_v36  ;;  %7803 = vmatprep.subr.mxu1 %v14038_v36  ;;  %v4203_v63 = vsel %vm2760_vm4, %v4202_v10, %v8976_v48  ;;  %v4287_v58 = vsel %vm2760_vm4, %v4286_v14, %v8981_v39 }
 0x993   : > { %7773 = vmatpush3.msra.mxu0 %v12229_v53  ;;  %7804 = vmatpush3.msra.mxu1 %v12196_v54  ;;  %v4369_v21 = vsel %vm4200_vm0, %v8985_v45, %v8990_v43 }
 0x994   : > { %7774 = vmatprep.subr.mxu0 %v14038_v36  ;;  %7805 = vmatprep.subr.mxu1 %v14038_v36  ;;  %v4367_v61 = vpop.permute.xlu0 %4366  ;;  %v4370_v46 = vsel %vm3883_vm13, %v4369_v21, %v12042_v34 }
 0x995   : > { %9033 = vrot.lane.b32.xlu1 %v9032_v25, %s9305_s24  ;;  %9028 = vrot.lane.b32.xlu0 %v9027_v38, %s9305_s24  ;;  %v4371_v2 = vsel %vm2760_vm4, %v4370_v46, %v4367_v61 }
 0x996   : > { %7775 = vmatpush3.msra.mxu0 %v12244_v15  ;;  %7806 = vmatpush3.msra.mxu1 %v12220_v23 }
 0x997   : > { %7776 = vmatprep.subr.mxu0 %v14038_v36  ;;  %7807 = vmatprep.subr.mxu1 %v14038_v36 }
 0x998   : > { %7777 = vmatpush3.msra.mxu0 %v12256_v32  ;;  %7808 = vmatpush3.msra.mxu1 %v12229_v53 }
 0x999   : > { %7778 = vmatprep.subr.mxu0 %v14038_v36  ;;  %7809 = vmatprep.subr.mxu1 %v14038_v36 }
 0x99a   : > { %5121 = vrot.lane.b32.xlu1 %v12180_v8, %s9306_s23  ;;  %9038 = vrot.lane.b32.xlu0 %v9017_v55, %s9304_s30  ;;  %v8986_v55 = vunpack.i.h.bf16 %v8984_v27 }
 0x99b   : > { %7779 = vmatpush3.msra.mxu0 %v12267_v29  ;;  %7810 = vmatpush3.msra.mxu1 %v12244_v15 }
 0x99c   : > { %7780 = vmatprep.subr.mxu0 %v14038_v36  ;;  %7811 = vmatprep.subr.mxu1 %v14038_v36  ;;  %v4453_v34 = vsel %vm4200_vm0, %v4444_v4, %v8986_v55 }
 0x99d   : > { %7781 = vmatpush3.msra.mxu0 %v12285_v17  ;;  %7812 = vmatpush3.msra.mxu1 %v12256_v32  ;;  %v4454_v25 = vsel %vm3883_vm13, %v4453_v34, %v8991_v12 }
 0x99e   : > { %7782 = vmatprep.subr.mxu0 %v14038_v36  ;;  %7813 = vmatprep.subr.mxu1 %v14038_v36  ;;  %v4455_v38 = vsel %vm2760_vm4, %v4454_v25, %v12030_v50  ;;  %v8994_v50 = vpop.permute.xlu1 %8993 }
 0x99f   : > { %9043 = vrot.lane.b32.xlu1 %v9042_v3, %s9306_s23  ;;  %5044 = vrot.lane.b32.xlu0 %v12199_v37, %s9306_s23  ;;  %v8995_v57 = vunpack.i.l.bf16 %v8994_v50 }
 0x9a0   : > { %7783 = vmatpush3.msra.mxu0 %v12298_v62  ;;  %7814 = vmatpush3.msra.mxu1 %v12267_v29 }
 0x9a1   : > { %7784 = vmatprep.subr.mxu0 %v14038_v36  ;;  %7815 = vmatprep.subr.mxu1 %v14038_v36  ;;  %v4540_v59 = vsel %vm4200_vm0, %v12048_v11, %v8995_v57 }
 0x9a2   : > { %7785 = vmatpush3.msra.mxu0 %v12311_v52  ;;  %7816 = vmatpush3.msra.mxu1 %v12285_v17  ;;  %v9004_v31 = vpop.permute.xlu1 %9003 }
 0x9a3   : > { %7786 = vmatprep.subr.mxu0 %v14038_v36  ;;  %7817 = vmatprep.subr.mxu1 %v14038_v36  ;;  %v9005_v33 = vunpack.i.l.bf16 %v9004_v31  ;;  %v9006_v10 = vunpack.i.h.bf16 %v9004_v31 }
 0x9a4   : > { %9053 = vrot.lane.b32.xlu1 %v9052_v16, %s9305_s24  ;;  %9048 = vrot.lane.b32.xlu0 %v9047_v26, %s9304_s30 }
 0x9a5   : > { %7787 = vmatpush3.msra.mxu0 %v12327_v28  ;;  %7818 = vmatpush3.msra.mxu1 %v12298_v62  ;;  %v4541_v51 = vsel %vm3883_vm13, %v4540_v59, %v9005_v33 }
 0x9a6   : > { %7788 = vmatprep.subr.mxu0 %v14038_v36  ;;  %7819 = vmatprep.subr.mxu1 %v14038_v36 }
 0x9a7   : > { %7789 = vmatpush3.msra.mxu0 %v12336_v44  ;;  %7820 = vmatpush3.msra.mxu1 %v12311_v52 }
 0x9a8   : > { %7790 = vmatprep.subr.mxu0 %v14038_v36  ;;  %7821 = vmatprep.subr.mxu1 %v14038_v36 }
 0x9a9   : > { %9063 = vrot.lane.b32.xlu1 %v9042_v3, %s9304_s30  ;;  %9058 = vrot.lane.b32.xlu0 %v9057_v60, %s9305_s24  ;;  %v8999_v3 = vpop.permute.xlu0 %8998  ;;  %v8996_v60 = vunpack.i.h.bf16 %v8994_v50 }
 0x9aa   : > { %7791 = vmatpush3.msra.mxu0 %v12351_v7  ;;  %7792 = vmatprep.mubr.msk.f32.mxu0 %vm9307_vm14, %v14038_v36  ;;  %v9000_v16 = vunpack.i.l.bf16 %v8999_v3  ;;  %v9001_v26 = vunpack.i.h.bf16 %v8999_v3 }
 0x9ab   : > { %7822 = vmatpush3.msra.mxu1 %v12327_v28  ;;  %7793 = vmatmul.mubr.f32.vlgmr.msra.gmra.mxu0 %v4203_v63  ;;  %v9014_v63 = vpop.permute.xlu1 %9013 }
 0x9ac   : > { %7823 = vmatprep.subr.mxu1 %v14038_v36  ;;  %7830 = vmatprep.subr.mxu0 %v14038_v36  ;;  %v4624_v42 = vsel %vm4200_vm0, %v9000_v16, %v12059_v56  ;;  %v4542_v11 = vsel %vm2760_vm4, %v4541_v51, %v9001_v26  ;;  %v9015_v39 = vunpack.i.l.bf16 %v9014_v63  ;;  %v9016_v45 = vunpack.i.h.bf16 %v9014_v63  ;;  %v12832_v63 = vld [vmem:[%s13907_s9 + $0x50] sm:$0xff] }
 0x9ad   : > { %7824 = vmatpush3.msra.mxu1 %v12336_v44  ;;  %7831 = vmatpush3.msra.mxu0 %v12155_v13  ;;  %v4625_v56 = vsel %vm3883_vm13, %v4624_v42, %v8996_v60  ;;  %v9009_v6 = vpop.permute.xlu0 %9008  ;;  %v12804_v60 = vld [vmem:[%s13907_s9 + $0x60] sm:$0xff] }
 0x9ae   : > { %7825 = vmatprep.subr.mxu1 %v14038_v36  ;;  %7832 = vmatprep.subr.mxu0 %v14038_v36  ;;  %v4626_v48 = vsel %vm2760_vm4, %v4625_v56, %v9006_v10  ;;  %v9010_v49 = vunpack.i.l.bf16 %v9009_v6  ;;  %v12813_v56 = vld [vmem:[%s13907_s9 + $0x58] sm:$0xff] }
 0x9af   : > { %5383 = vrot.lane.b32.xlu1 %v12303_v47, %s9306_s23  ;;  %5460 = vrot.lane.b32.xlu0 %v12249_v20, %s9306_s23  ;;  %v4706_v27 = vpop.permute.xlu1 %4705 }
 0x9b0   : > { %7826 = vmatpush3.msra.mxu1 %v12351_v7  ;;  %7827 = vmatprep.mubr.msk.f32.mxu1 %vm9307_vm14, %v14038_v36  ;;  %v4708_v18 = vsel %vm4200_vm0, %v9010_v49, %v9015_v39  ;;  %v12843_v49 = vld [vmem:[%s13907_s9 + $0x48] sm:$0xff] }
 0x9b1   : > { %7833 = vmatpush3.msra.mxu0 %v12167_v9  ;;  %7828 = vmatmul.mubr.f32.vlgmr.msra.gmra.mxu1 %v4287_v58  ;;  %v4783_v14 = vpop.permute.xlu0 %4782  ;;  %v9011_v58 = vunpack.i.h.bf16 %v9009_v6  ;;  %v4709_v40 = vsel %vm3883_vm13, %v4708_v18, %v12062_v1 }
 0x9b2   : > { %7834 = vmatprep.subr.mxu0 %v14038_v36  ;;  %7865 = vmatprep.subr.mxu1 %v14038_v36  ;;  %v4710_v21 = vsel %vm2760_vm4, %v4709_v40, %v4706_v27  ;;  %v12870_v27 = vld [vmem:[%s13907_s9 + $0x38] sm:$0xff] }
 0x9b3   : > { %7835 = vmatpush3.msra.mxu0 %v12174_v5  ;;  %7866 = vmatpush3.msra.mxu1 %v12155_v13  ;;  %v4792_v43 = vsel %vm4200_vm0, %v4783_v14, %v9011_v58  ;;  %v12861_v14 = vld [vmem:[%s13907_s9 + $0x40] sm:$0xff] }
 0x9b4   : > { %7836 = vmatprep.subr.mxu0 %v14038_v36  ;;  %7867 = vmatprep.subr.mxu1 %v14038_v36  ;;  %v4793_v1 = vsel %vm3883_vm13, %v4792_v43, %v9016_v45 }
 0x9b5   : > { %7837 = vmatpush3.msra.mxu0 %v12187_v19  ;;  %7868 = vmatpush3.msra.mxu1 %v12167_v9  ;;  %v4794_v61 = vsel %vm2760_vm4, %v4793_v1, %v12070_v24 }
 0x9b6   : > { %7838 = vmatprep.subr.mxu0 %v14038_v36  ;;  %7869 = vmatprep.subr.mxu1 %v14038_v36 }
 0x9b7   : > { %7839 = vmatpush3.msra.mxu0 %v12196_v54  ;;  %7870 = vmatpush3.msra.mxu1 %v12174_v5 }
 0x9b8   : > { %7840 = vmatprep.subr.mxu0 %v14038_v36  ;;  %7871 = vmatprep.subr.mxu1 %v14038_v36 }
 0x9b9   : > { %7841 = vmatpush3.msra.mxu0 %v12220_v23  ;;  %7872 = vmatpush3.msra.mxu1 %v12187_v19 }
 0x9ba   : > { %7842 = vmatprep.subr.mxu0 %v14038_v36  ;;  %7873 = vmatprep.subr.mxu1 %v14038_v36 }
 0x9bb   : > { %7843 = vmatpush3.msra.mxu0 %v12229_v53  ;;  %7874 = vmatpush3.msra.mxu1 %v12196_v54 }
 0x9bc   : > { %7844 = vmatprep.subr.mxu0 %v14038_v36  ;;  %7875 = vmatprep.subr.mxu1 %v14038_v36 }
 0x9bd   : > { %7845 = vmatpush3.msra.mxu0 %v12244_v15  ;;  %7876 = vmatpush3.msra.mxu1 %v12220_v23 }
 0x9be   : > { %7846 = vmatprep.subr.mxu0 %v14038_v36  ;;  %7877 = vmatprep.subr.mxu1 %v14038_v36 }
 0x9bf   : > { %7847 = vmatpush3.msra.mxu0 %v12256_v32  ;;  %7878 = vmatpush3.msra.mxu1 %v12229_v53 }
 0x9c0   : > { %7848 = vmatprep.subr.mxu0 %v14038_v36  ;;  %7879 = vmatprep.subr.mxu1 %v14038_v36 }
 0x9c1   : > { %7849 = vmatpush3.msra.mxu0 %v12267_v29  ;;  %7880 = vmatpush3.msra.mxu1 %v12244_v15 }
 0x9c2   : > { %7850 = vmatprep.subr.mxu0 %v14038_v36  ;;  %7881 = vmatprep.subr.mxu1 %v14038_v36 }
 0x9c3   : > { %7851 = vmatpush3.msra.mxu0 %v12285_v17  ;;  %7882 = vmatpush3.msra.mxu1 %v12256_v32 }
 0x9c4   : > { %7852 = vmatprep.subr.mxu0 %v14038_v36  ;;  %7883 = vmatprep.subr.mxu1 %v14038_v36 }
 0x9c5   : > { %7853 = vmatpush3.msra.mxu0 %v12298_v62  ;;  %7884 = vmatpush3.msra.mxu1 %v12267_v29 }
 0x9c6   : > { %7854 = vmatprep.subr.mxu0 %v14038_v36  ;;  %7885 = vmatprep.subr.mxu1 %v14038_v36 }
 0x9c7   : > { %7855 = vmatpush3.msra.mxu0 %v12311_v52  ;;  %7886 = vmatpush3.msra.mxu1 %v12285_v17 }
 0x9c8   : > { %7856 = vmatprep.subr.mxu0 %v14038_v36  ;;  %7887 = vmatprep.subr.mxu1 %v14038_v36 }
 0x9c9   : > { %7857 = vmatpush3.msra.mxu0 %v12327_v28  ;;  %7888 = vmatpush3.msra.mxu1 %v12298_v62 }
 0x9ca   : > { %7858 = vmatprep.subr.mxu0 %v14038_v36  ;;  %7889 = vmatprep.subr.mxu1 %v14038_v36 }
 0x9cb   : > { %7859 = vmatpush3.msra.mxu0 %v12336_v44  ;;  %7890 = vmatpush3.msra.mxu1 %v12311_v52 }
 0x9cc   : > { %7860 = vmatprep.subr.mxu0 %v14038_v36  ;;  %7891 = vmatprep.subr.mxu1 %v14038_v36 }
 0x9cd   : > { %7861 = vmatpush3.msra.mxu0 %v12351_v7  ;;  %7862 = vmatprep.mubr.msk.f32.mxu0 %vm9307_vm14, %v14038_v36 }
 0x9ce   : > { %7892 = vmatpush3.msra.mxu1 %v12327_v28  ;;  %7863 = vmatmul.mubr.f32.vlgmr.msra.gmra.mxu0 %v4371_v2 }
 0x9cf   : > { %7893 = vmatprep.subr.mxu1 %v14038_v36  ;;  %7900 = vmatprep.subr.mxu0 %v14038_v36 }
 0x9d0   : > { %7894 = vmatpush3.msra.mxu1 %v12336_v44  ;;  %7901 = vmatpush3.msra.mxu0 %v12155_v13 }
 0x9d1   : > { %7895 = vmatprep.subr.mxu1 %v14038_v36  ;;  %7902 = vmatprep.subr.mxu0 %v14038_v36 }
 0x9d2   : > { %7896 = vmatpush3.msra.mxu1 %v12351_v7  ;;  %7897 = vmatprep.mubr.msk.f32.mxu1 %vm9307_vm14, %v14038_v36 }
 0x9d3   : > { %7903 = vmatpush3.msra.mxu0 %v12167_v9  ;;  %7898 = vmatmul.mubr.f32.vlgmr.msra.gmra.mxu1 %v4455_v38 }
 0x9d4   : > { %7904 = vmatprep.subr.mxu0 %v14038_v36  ;;  %7935 = vmatprep.subr.mxu1 %v14038_v36 }
 0x9d5   : > { %7905 = vmatpush3.msra.mxu0 %v12174_v5  ;;  %7936 = vmatpush3.msra.mxu1 %v12155_v13 }
 0x9d6   : > { %7906 = vmatprep.subr.mxu0 %v14038_v36  ;;  %7937 = vmatprep.subr.mxu1 %v14038_v36 }
 0x9d7   : > { %7907 = vmatpush3.msra.mxu0 %v12187_v19  ;;  %7938 = vmatpush3.msra.mxu1 %v12167_v9 }
 0x9d8   : > { %7908 = vmatprep.subr.mxu0 %v14038_v36  ;;  %7939 = vmatprep.subr.mxu1 %v14038_v36 }
 0x9d9   : > { %7909 = vmatpush3.msra.mxu0 %v12196_v54  ;;  %7940 = vmatpush3.msra.mxu1 %v12174_v5 }
 0x9da   : > { %7910 = vmatprep.subr.mxu0 %v14038_v36  ;;  %7941 = vmatprep.subr.mxu1 %v14038_v36 }
 0x9db   : > { %7911 = vmatpush3.msra.mxu0 %v12220_v23  ;;  %7942 = vmatpush3.msra.mxu1 %v12187_v19 }
 0x9dc   : > { %7912 = vmatprep.subr.mxu0 %v14038_v36  ;;  %7943 = vmatprep.subr.mxu1 %v14038_v36 }
 0x9dd   : > { %7913 = vmatpush3.msra.mxu0 %v12229_v53  ;;  %7944 = vmatpush3.msra.mxu1 %v12196_v54 }
 0x9de   : > { %7914 = vmatprep.subr.mxu0 %v14038_v36  ;;  %7945 = vmatprep.subr.mxu1 %v14038_v36 }
 0x9df   : > { %7915 = vmatpush3.msra.mxu0 %v12244_v15  ;;  %7946 = vmatpush3.msra.mxu1 %v12220_v23 }
 0x9e0   : > { %7916 = vmatprep.subr.mxu0 %v14038_v36  ;;  %7947 = vmatprep.subr.mxu1 %v14038_v36 }
 0x9e1   : > { %7917 = vmatpush3.msra.mxu0 %v12256_v32  ;;  %7948 = vmatpush3.msra.mxu1 %v12229_v53 }
 0x9e2   : > { %7918 = vmatprep.subr.mxu0 %v14038_v36  ;;  %7949 = vmatprep.subr.mxu1 %v14038_v36 }
 0x9e3   : > { %7919 = vmatpush3.msra.mxu0 %v12267_v29  ;;  %7950 = vmatpush3.msra.mxu1 %v12244_v15 }
 0x9e4   : > { %7920 = vmatprep.subr.mxu0 %v14038_v36  ;;  %7951 = vmatprep.subr.mxu1 %v14038_v36 }
 0x9e5   : > { %7921 = vmatpush3.msra.mxu0 %v12285_v17  ;;  %7952 = vmatpush3.msra.mxu1 %v12256_v32 }
 0x9e6   : > { %7922 = vmatprep.subr.mxu0 %v14038_v36  ;;  %7953 = vmatprep.subr.mxu1 %v14038_v36 }
 0x9e7   : > { %7923 = vmatpush3.msra.mxu0 %v12298_v62  ;;  %7954 = vmatpush3.msra.mxu1 %v12267_v29 }
 0x9e8   : > { %7924 = vmatprep.subr.mxu0 %v14038_v36  ;;  %7955 = vmatprep.subr.mxu1 %v14038_v36 }
 0x9e9   : > { %7925 = vmatpush3.msra.mxu0 %v12311_v52  ;;  %7956 = vmatpush3.msra.mxu1 %v12285_v17 }
 0x9ea   : > { %7926 = vmatprep.subr.mxu0 %v14038_v36  ;;  %7957 = vmatprep.subr.mxu1 %v14038_v36 }
 0x9eb   : > { %7927 = vmatpush3.msra.mxu0 %v12327_v28  ;;  %7958 = vmatpush3.msra.mxu1 %v12298_v62 }
 0x9ec   : > { %7928 = vmatprep.subr.mxu0 %v14038_v36  ;;  %7959 = vmatprep.subr.mxu1 %v14038_v36 }
 0x9ed   : > { %7929 = vmatpush3.msra.mxu0 %v12336_v44  ;;  %7960 = vmatpush3.msra.mxu1 %v12311_v52 }
 0x9ee   : > { %7930 = vmatprep.subr.mxu0 %v14038_v36  ;;  %7961 = vmatprep.subr.mxu1 %v14038_v36 }
 0x9ef   : > { %7931 = vmatpush3.msra.mxu0 %v12351_v7  ;;  %7932 = vmatprep.mubr.msk.f32.mxu0 %vm9307_vm14, %v14038_v36 }
 0x9f0   : > { %7962 = vmatpush3.msra.mxu1 %v12327_v28  ;;  %7933 = vmatmul.mubr.f32.vlgmr.msra.gmra.mxu0 %v4542_v11 }
 0x9f1   : > { %7963 = vmatprep.subr.mxu1 %v14038_v36  ;;  %7970 = vmatprep.subr.mxu0 %v14038_v36 }
 0x9f2   : > { %7964 = vmatpush3.msra.mxu1 %v12336_v44  ;;  %7971 = vmatpush3.msra.mxu0 %v12155_v13 }
 0x9f3   : > { %7965 = vmatprep.subr.mxu1 %v14038_v36  ;;  %7972 = vmatprep.subr.mxu0 %v14038_v36 }
 0x9f4   : > { %7966 = vmatpush3.msra.mxu1 %v12351_v7  ;;  %7967 = vmatprep.mubr.msk.f32.mxu1 %vm9307_vm14, %v14038_v36 }
 0x9f5   : > { %7973 = vmatpush3.msra.mxu0 %v12167_v9  ;;  %7968 = vmatmul.mubr.f32.vlgmr.msra.gmra.mxu1 %v4626_v48 }
 0x9f6   : > { %7974 = vmatprep.subr.mxu0 %v14038_v36  ;;  %8005 = vmatprep.subr.mxu1 %v14038_v36 }
 0x9f7   : > { %7975 = vmatpush3.msra.mxu0 %v12174_v5  ;;  %8006 = vmatpush3.msra.mxu1 %v12155_v13 }
 0x9f8   : > { %7976 = vmatprep.subr.mxu0 %v14038_v36  ;;  %8007 = vmatprep.subr.mxu1 %v14038_v36 }
 0x9f9   : > { %7977 = vmatpush3.msra.mxu0 %v12187_v19  ;;  %8008 = vmatpush3.msra.mxu1 %v12167_v9 }
 0x9fa   : > { %7978 = vmatprep.subr.mxu0 %v14038_v36  ;;  %8009 = vmatprep.subr.mxu1 %v14038_v36 }
 0x9fb   : > { %7979 = vmatpush3.msra.mxu0 %v12196_v54  ;;  %8010 = vmatpush3.msra.mxu1 %v12174_v5 }
 0x9fc   : > { %7980 = vmatprep.subr.mxu0 %v14038_v36  ;;  %8011 = vmatprep.subr.mxu1 %v14038_v36 }
 0x9fd   : > { %7981 = vmatpush3.msra.mxu0 %v12220_v23  ;;  %8012 = vmatpush3.msra.mxu1 %v12187_v19 }
 0x9fe   : > { %7982 = vmatprep.subr.mxu0 %v14038_v36  ;;  %8013 = vmatprep.subr.mxu1 %v14038_v36 }
 0x9ff   : > { %7983 = vmatpush3.msra.mxu0 %v12229_v53  ;;  %8014 = vmatpush3.msra.mxu1 %v12196_v54 }
 0xa00   : > { %7984 = vmatprep.subr.mxu0 %v14038_v36  ;;  %8015 = vmatprep.subr.mxu1 %v14038_v36 }
 0xa01   : > { %7985 = vmatpush3.msra.mxu0 %v12244_v15  ;;  %8016 = vmatpush3.msra.mxu1 %v12220_v23 }
 0xa02   : > { %7986 = vmatprep.subr.mxu0 %v14038_v36  ;;  %8017 = vmatprep.subr.mxu1 %v14038_v36  ;;  %v9019_v24 = vpop.permute.xlu0 %9018  ;;  %v9024_v55 = vpop.permute.xlu1 %9023 }
 0xa03   : > { %7987 = vmatpush3.msra.mxu0 %v12256_v32  ;;  %8018 = vmatpush3.msra.mxu1 %v12229_v53  ;;  %v9020_v4 = vunpack.i.l.bf16 %v9019_v24  ;;  %v9025_v34 = vunpack.i.l.bf16 %v9024_v55  ;;  %v9026_v38 = vunpack.i.h.bf16 %v9024_v55 }
 0xa04   : > { %7988 = vmatprep.subr.mxu0 %v14038_v36  ;;  %8019 = vmatprep.subr.mxu1 %v14038_v36 }
 0xa05   : > { %7989 = vmatpush3.msra.mxu0 %v12267_v29  ;;  %8020 = vmatpush3.msra.mxu1 %v12244_v15  ;;  %v4879_v2 = vsel %vm4200_vm0, %v12180_v8, %v9020_v4  ;;  %v9021_v8 = vunpack.i.h.bf16 %v9019_v24  ;;  %v4963_v31 = vsel %vm4200_vm0, %v9025_v34, %v12202_v35  ;;  %v12894_v24 = vld [vmem:[%s13907_s9 + $0x30] sm:$0xff] }
 0xa06   : > { %7990 = vmatprep.subr.mxu0 %v14038_v36  ;;  %8021 = vmatprep.subr.mxu1 %v14038_v36 }
 0xa07   : > { %7991 = vmatpush3.msra.mxu0 %v12285_v17  ;;  %8022 = vmatpush3.msra.mxu1 %v12256_v32  ;;  %v9029_v46 = vpop.permute.xlu0 %9028  ;;  %v4964_v57 = vsel %vm3883_vm13, %v4963_v31, %v9021_v8  ;;  %v12929_v8 = vld [vmem:[%s13907_s9 + $0x18] sm:$0xff] }
 0xa08   : > { %7992 = vmatprep.subr.mxu0 %v14038_v36  ;;  %8023 = vmatprep.subr.mxu1 %v14038_v36  ;;  %v9030_v12 = vunpack.i.l.bf16 %v9029_v46  ;;  %v9031_v3 = vunpack.i.h.bf16 %v9029_v46  ;;  %v12903_v46 = vld [vmem:[%s13907_s9 + $0x28] sm:$0xff] }
 0xa09   : > { %7993 = vmatpush3.msra.mxu0 %v12298_v62  ;;  %8024 = vmatpush3.msra.mxu1 %v12267_v29 }
 0xa0a   : > { %7994 = vmatprep.subr.mxu0 %v14038_v36  ;;  %8025 = vmatprep.subr.mxu1 %v14038_v36  ;;  %v4880_v25 = vsel %vm3883_vm13, %v4879_v2, %v9030_v12  ;;  %v4965_v35 = vsel %vm2760_vm4, %v4964_v57, %v9031_v3 }
 0xa0b   : > { %7995 = vmatpush3.msra.mxu0 %v12311_v52  ;;  %8026 = vmatpush3.msra.mxu1 %v12285_v17  ;;  %v4881_v50 = vsel %vm2760_vm4, %v4880_v25, %v9026_v38  ;;  %v12919_v25 = vld [vmem:[%s13907_s9 + $0x20] sm:$0xff] }
 0xa0c   : > { %7996 = vmatprep.subr.mxu0 %v14038_v36  ;;  %8027 = vmatprep.subr.mxu1 %v14038_v36 }
 0xa0d   : > { %7997 = vmatpush3.msra.mxu0 %v12327_v28  ;;  %8028 = vmatpush3.msra.mxu1 %v12298_v62 }
 0xa0e   : > { %7998 = vmatprep.subr.mxu0 %v14038_v36  ;;  %8029 = vmatprep.subr.mxu1 %v14038_v36 }
 0xa0f   : > { %7999 = vmatpush3.msra.mxu0 %v12336_v44  ;;  %8030 = vmatpush3.msra.mxu1 %v12311_v52 }
 0xa10   : > { %8000 = vmatprep.subr.mxu0 %v14038_v36  ;;  %8031 = vmatprep.subr.mxu1 %v14038_v36 }
 0xa11   : > { %8001 = vmatpush3.msra.mxu0 %v12351_v7  ;;  %8002 = vmatprep.mubr.msk.f32.mxu0 %vm9307_vm14, %v14038_v36 }
 0xa12   : > { %8032 = vmatpush3.msra.mxu1 %v12327_v28  ;;  %8003 = vmatmul.mubr.f32.vlgmr.msra.gmra.mxu0 %v4710_v21 }
 0xa13   : > { %8033 = vmatprep.subr.mxu1 %v14038_v36  ;;  %8040 = vmatprep.subr.mxu0 %v14038_v36 }
 0xa14   : > { %8034 = vmatpush3.msra.mxu1 %v12336_v44  ;;  %8041 = vmatpush3.msra.mxu0 %v12155_v13 }
 0xa15   : > { %8035 = vmatprep.subr.mxu1 %v14038_v36  ;;  %8042 = vmatprep.subr.mxu0 %v14038_v36 }
 0xa16   : > { %8036 = vmatpush3.msra.mxu1 %v12351_v7  ;;  %8037 = vmatprep.mubr.msk.f32.mxu1 %vm9307_vm14, %v14038_v36 }
 0xa17   : > { %8043 = vmatpush3.msra.mxu0 %v12167_v9  ;;  %8038 = vmatmul.mubr.f32.vlgmr.msra.gmra.mxu1 %v4794_v61 }
 0xa18   : > { %8044 = vmatprep.subr.mxu0 %v14038_v36  ;;  %8075 = vmatprep.subr.mxu1 %v14038_v36 }
 0xa19   : > { %8045 = vmatpush3.msra.mxu0 %v12174_v5  ;;  %8076 = vmatpush3.msra.mxu1 %v12155_v13 }
 0xa1a   : > { %8046 = vmatprep.subr.mxu0 %v14038_v36  ;;  %8077 = vmatprep.subr.mxu1 %v14038_v36 }
 0xa1b   : > { %8047 = vmatpush3.msra.mxu0 %v12187_v19  ;;  %8078 = vmatpush3.msra.mxu1 %v12167_v9 }
 0xa1c   : > { %8048 = vmatprep.subr.mxu0 %v14038_v36  ;;  %8079 = vmatprep.subr.mxu1 %v14038_v36 }
 0xa1d   : > { %8049 = vmatpush3.msra.mxu0 %v12196_v54  ;;  %8080 = vmatpush3.msra.mxu1 %v12174_v5 }
 0xa1e   : > { %8050 = vmatprep.subr.mxu0 %v14038_v36  ;;  %8081 = vmatprep.subr.mxu1 %v14038_v36 }
 0xa1f   : > { %8051 = vmatpush3.msra.mxu0 %v12220_v23  ;;  %8082 = vmatpush3.msra.mxu1 %v12187_v19 }
 0xa20   : > { %8052 = vmatprep.subr.mxu0 %v14038_v36  ;;  %8083 = vmatprep.subr.mxu1 %v14038_v36 }
 0xa21   : > { %8053 = vmatpush3.msra.mxu0 %v12229_v53  ;;  %8084 = vmatpush3.msra.mxu1 %v12196_v54 }
 0xa22   : > { %8054 = vmatprep.subr.mxu0 %v14038_v36  ;;  %8085 = vmatprep.subr.mxu1 %v14038_v36 }
 0xa23   : > { %8055 = vmatpush3.msra.mxu0 %v12244_v15  ;;  %8086 = vmatpush3.msra.mxu1 %v12220_v23 }
 0xa24   : > { %8056 = vmatprep.subr.mxu0 %v14038_v36  ;;  %8087 = vmatprep.subr.mxu1 %v14038_v36 }
 0xa25   : > { %8057 = vmatpush3.msra.mxu0 %v12256_v32  ;;  %8088 = vmatpush3.msra.mxu1 %v12229_v53 }
 0xa26   : > { %8058 = vmatprep.subr.mxu0 %v14038_v36  ;;  %8089 = vmatprep.subr.mxu1 %v14038_v36 }
 0xa27   : > { %8059 = vmatpush3.msra.mxu0 %v12267_v29  ;;  %8090 = vmatpush3.msra.mxu1 %v12244_v15 }
 0xa28   : > { %8060 = vmatprep.subr.mxu0 %v14038_v36  ;;  %8091 = vmatprep.subr.mxu1 %v14038_v36 }
 0xa29   : > { %8061 = vmatpush3.msra.mxu0 %v12285_v17  ;;  %8092 = vmatpush3.msra.mxu1 %v12256_v32 }
 0xa2a   : > { %8062 = vmatprep.subr.mxu0 %v14038_v36  ;;  %8093 = vmatprep.subr.mxu1 %v14038_v36 }
 0xa2b   : > { %8063 = vmatpush3.msra.mxu0 %v12298_v62  ;;  %8094 = vmatpush3.msra.mxu1 %v12267_v29 }
 0xa2c   : > { %8064 = vmatprep.subr.mxu0 %v14038_v36  ;;  %8095 = vmatprep.subr.mxu1 %v14038_v36 }
 0xa2d   : > { %8065 = vmatpush3.msra.mxu0 %v12311_v52  ;;  %8096 = vmatpush3.msra.mxu1 %v12285_v17 }
 0xa2e   : > { %8066 = vmatprep.subr.mxu0 %v14038_v36  ;;  %8097 = vmatprep.subr.mxu1 %v14038_v36 }
 0xa2f   : > { %8067 = vmatpush3.msra.mxu0 %v12327_v28  ;;  %8098 = vmatpush3.msra.mxu1 %v12298_v62 }
 0xa30   : > { %8068 = vmatprep.subr.mxu0 %v14038_v36  ;;  %8099 = vmatprep.subr.mxu1 %v14038_v36 }
 0xa31   : > { %8069 = vmatpush3.msra.mxu0 %v12336_v44  ;;  %8100 = vmatpush3.msra.mxu1 %v12311_v52 }
 0xa32   : > { %8070 = vmatprep.subr.mxu0 %v14038_v36  ;;  %8101 = vmatprep.subr.mxu1 %v14038_v36 }
 0xa33   : > { %8071 = vmatpush3.msra.mxu0 %v12351_v7  ;;  %8072 = vmatprep.mubr.msk.f32.mxu0 %vm9307_vm14, %v14038_v36 }
 0xa34   : > { %8102 = vmatpush3.msra.mxu1 %v12327_v28  ;;  %8073 = vmatmul.mubr.f32.vlgmr.msra.gmra.mxu0 %v4881_v50 }
 0xa35   : > { %8103 = vmatprep.subr.mxu1 %v14038_v36  ;;  %8110 = vmatprep.subr.mxu0 %v14038_v36 }
 0xa36   : > { %8104 = vmatpush3.msra.mxu1 %v12336_v44  ;;  %8111 = vmatpush3.msra.mxu0 %v12155_v13 }
 0xa37   : > { %8105 = vmatprep.subr.mxu1 %v14038_v36  ;;  %8112 = vmatprep.subr.mxu0 %v14038_v36 }
 0xa38   : > { %8106 = vmatpush3.msra.mxu1 %v12351_v7  ;;  %8107 = vmatprep.mubr.msk.f32.mxu1 %vm9307_vm14, %v14038_v36 }
 0xa39   : > { %8113 = vmatpush3.msra.mxu0 %v12167_v9  ;;  %8108 = vmatmul.mubr.f32.vlgmr.msra.gmra.mxu1 %v4965_v35  ;;  %v12945_v35 = vld [vmem:[%s13907_s9 + $0x10] sm:$0xff] }
 0xa3a   : > { %8114 = vmatprep.subr.mxu0 %v14038_v36  ;;  %8145 = vmatprep.subr.mxu1 %v14038_v36 }
 0xa3b   : > { %8115 = vmatpush3.msra.mxu0 %v12174_v5  ;;  %8146 = vmatpush3.msra.mxu1 %v12155_v13  ;;  %v9039_v13 = vpop.permute.xlu0 %9038 }
 0xa3c   : > { %8116 = vmatprep.subr.mxu0 %v14038_v36  ;;  %8147 = vmatprep.subr.mxu1 %v14038_v36 }
 0xa3d   : > { %8117 = vmatpush3.msra.mxu0 %v12187_v19  ;;  %8148 = vmatpush3.msra.mxu1 %v12167_v9  ;;  %v9034_v9 = vpop.permute.xlu1 %9033 }
 0xa3e   : > { %8118 = vmatprep.subr.mxu0 %v14038_v36  ;;  %8149 = vmatprep.subr.mxu1 %v14038_v36 }
 0xa3f   : > { %8119 = vmatpush3.msra.mxu0 %v12196_v54  ;;  %8150 = vmatpush3.msra.mxu1 %v12174_v5  ;;  %v9040_v5 = vunpack.i.l.bf16 %v9039_v13 }
 0xa40   : > { %8120 = vmatprep.subr.mxu0 %v14038_v36  ;;  %8151 = vmatprep.subr.mxu1 %v14038_v36 }
 0xa41   : > { %8121 = vmatpush3.msra.mxu0 %v12220_v23  ;;  %8152 = vmatpush3.msra.mxu1 %v12187_v19  ;;  %v9035_v19 = vunpack.i.l.bf16 %v9034_v9 }
 0xa42   : > { %8122 = vmatprep.subr.mxu0 %v14038_v36  ;;  %8153 = vmatprep.subr.mxu1 %v14038_v36 }
 0xa43   : > { %8123 = vmatpush3.msra.mxu0 %v12229_v53  ;;  %8154 = vmatpush3.msra.mxu1 %v12196_v54  ;;  %v5047_v54 = vsel %vm4200_vm0, %v9035_v19, %v9040_v5  ;;  %v12956_v19 = vld [vmem:[%s13907_s9 + $0x8] sm:$0xff] }
 0xa44   : > { %8124 = vmatprep.subr.mxu0 %v14038_v36  ;;  %8155 = vmatprep.subr.mxu1 %v14038_v36 }
 0xa45   : > { %8125 = vmatpush3.msra.mxu0 %v12244_v15  ;;  %8156 = vmatpush3.msra.mxu1 %v12220_v23  ;;  %v4095_v23 = vpop.f32.mrf.mxu0 }
 0xa46   : > { %8126 = vmatprep.subr.mxu0 %v14038_v36  ;;  %8157 = vmatprep.subr.mxu1 %v14038_v36  ;;  %v12742_v33 = vadd.f32 %v4095_v23, %v12017_v30 }
 0xa47   : > { %8127 = vmatpush3.msra.mxu0 %v12256_v32  ;;  %8158 = vmatpush3.msra.mxu1 %v12229_v53  ;;  %v5122_v53 = vpop.permute.xlu1 %5121  ;;  %v4097_v11 = vpop.f32.mrf.mxu0 }
 0xa48   : > { %8128 = vmatprep.subr.mxu0 %v14038_v36  ;;  %8159 = vmatprep.subr.mxu1 %v14038_v36  ;;  %v12759_v26 = vrot.slane %v12742_v33, 2  ;;  %v12762_v59 = vrot.slane %v12742_v33, 4  ;;  %v12825_v6 = vadd.f32 %v4097_v11, %v12017_v30  ;;  %v4166_v58 = vpop.f32.mrf.mxu1 }
 0xa49   : > { %8129 = vmatpush3.msra.mxu0 %v12267_v29  ;;  %8160 = vmatpush3.msra.mxu1 %v12244_v15  ;;  %v9036_v15 = vunpack.i.h.bf16 %v9034_v9  ;;  %v12940_v57 = vadd.f32 %v4166_v58, %v12017_v30 }
 0xa4a   : > { %8130 = vmatprep.subr.mxu0 %v14038_v36  ;;  %8161 = vmatprep.subr.mxu1 %v14038_v36  ;;  %v9082_v10 = vpack.i.bf16 %v12759_v26, %v12742_v33  ;;  %v12850_v39 = vrot.slane %v12825_v6, 2  ;;  %v12853_v18 = vrot.slane %v12825_v6, 4  ;;  %v12882_v45 = vrot.slane %v12825_v6, 6  ;;  %v12889_v61 = vpop.f32.mrf.mxu1 }
 0xa4b   : > { %8131 = vmatpush3.msra.mxu0 %v12285_v17  ;;  %8162 = vmatpush3.msra.mxu1 %v12256_v32  ;;  %v5045_v32 = vpop.permute.xlu0 %5044  ;;  %v5131_v16 = vsel %vm4200_vm0, %v5122_v53, %v9036_v15  ;;  %v12884_v1 = vpop.permute.xlu1 %9043  ;;  %v12971_v23 = vrot.slane %v12940_v57, 2  ;;  %v12974_v53 = vrot.slane %v12940_v57, 4  ;;  %v13019_v11 = vadd.f32 %v12889_v61, %v12017_v30 }
 0xa4c   : > { %8132 = vmatprep.subr.mxu0 %v14038_v36  ;;  %8163 = vmatprep.subr.mxu1 %v14038_v36  ;;  %v9092_v43 = vpack.i.bf16 %v12853_v18, %v12850_v39  ;;  %v9102_v4 = vpack.i.bf16 %v12882_v45, %v12853_v18  ;;  %v9097_v12 = vpack.i.bf16 %v12882_v45, %v12825_v6  ;;  %v9045_v38 = vunpack.i.l.bf16 %v12884_v1 }
 0xa4d   : > { %8133 = vmatpush3.msra.mxu0 %v12298_v62  ;;  %8164 = vmatpush3.msra.mxu1 %v12267_v29  ;;  %v5048_v29 = vsel %vm3883_vm13, %v5047_v54, %v12207_v0  ;;  %v9107_v50 = vpack.i.bf16 %v12850_v39, %v12825_v6  ;;  %v13032_v30 = vrot.slane %v13019_v11, 2 }
 0xa4e   : > { %8134 = vmatprep.subr.mxu0 %v14038_v36  ;;  %8165 = vmatprep.subr.mxu1 %v14038_v36  ;;  %v5049_v0 = vsel %vm2760_vm4, %v5048_v29, %v5045_v32  ;;  %v12981_v32 = vld [vmem:[%s13907_s9] sm:$0xff] }
 0xa4f   : > { %8135 = vmatpush3.msra.mxu0 %v12311_v52  ;;  %8166 = vmatpush3.msra.mxu1 %v12285_v17  ;;  %v9041_v17 = vunpack.i.h.bf16 %v9039_v13  ;;  %v9054_v34 = vpop.permute.xlu1 %9053  ;;  %v9049_v31 = vpop.permute.xlu0 %9048  ;;  %v5218_v13 = vsel %vm4200_vm0, %v12249_v20, %v9045_v38  ;;  %v12968_v20 = vrot.slane %v12940_v57, 6 }
 0xa50   : > { %8136 = vmatprep.subr.mxu0 %v14038_v36  ;;  %8167 = vmatprep.subr.mxu1 %v14038_v36  ;;  %v9055_v3 = vunpack.i.l.bf16 %v9054_v34  ;;  %v9051_v9 = vunpack.i.h.bf16 %v9049_v31  ;;  %v9050_v5 = vunpack.i.l.bf16 %v9049_v31 }
 0xa51   : > { %8137 = vmatpush3.msra.mxu0 %v12327_v28  ;;  %8168 = vmatpush3.msra.mxu1 %v12298_v62  ;;  %v5132_v62 = vsel %vm3883_vm13, %v5131_v16, %v9041_v17  ;;  %v9046_v17 = vunpack.i.h.bf16 %v12884_v1  ;;  %v9117_v16 = vpack.i.bf16 %v12974_v53, %v12971_v23 }
 0xa52   : > { %8138 = vmatprep.subr.mxu0 %v14038_v36  ;;  %8169 = vmatprep.subr.mxu1 %v14038_v36  ;;  %v5133_v42 = vsel %vm2760_vm4, %v5132_v62, %v12199_v37  ;;  %v12793_v37 = vld [vmem:[%s13907_s9 + $0x68] sm:$0xff]  ;;  %v5219_v54 = vsel %vm3883_vm13, %v5218_v13, %v9055_v3  ;;  %v5302_v15 = vsel %vm4200_vm0, %v9050_v5, %v12272_v41  ;;  %v9056_v62 = vunpack.i.h.bf16 %v9054_v34 }
 0xa53   : > { %8139 = vmatpush3.msra.mxu0 %v12336_v44  ;;  %8170 = vmatpush3.msra.mxu1 %v12311_v52  ;;  %v12756_v52 = vrot.slane %v12742_v33, 6  ;;  %v5220_v29 = vsel %vm2760_vm4, %v5219_v54, %v9051_v9  ;;  %v9122_v41 = vpack.i.bf16 %v12968_v20, %v12940_v57 }
 0xa54   : > { %8140 = vmatprep.subr.mxu0 %v14038_v36  ;;  %8171 = vmatprep.subr.mxu1 %v14038_v36 }
 0xa55   : > { %8141 = vmatpush3.msra.mxu0 %v12351_v7  ;;  %8142 = vmatprep.mubr.msk.f32.mxu0 %vm9307_vm14, %v14038_v36  ;;  %v9072_v51 = vpack.i.bf16 %v12756_v52, %v12742_v33  ;;  %v9077_v48 = vpack.i.bf16 %v12756_v52, %v12762_v59 }
 0xa56   : > { %8172 = vmatpush3.msra.mxu1 %v12327_v28  ;;  %8143 = vmatmul.mubr.f32.vlgmr.msra.gmra.mxu0 %v5049_v0  ;;  %v12768_v28 = vld [vmem:[%s13907_s9 + $0x78] sm:$0xff]  ;;  %v5303_v0 = vsel %vm3883_vm13, %v5302_v15, %v9046_v17 }
 0xa57   : > { %8173 = vmatprep.subr.mxu1 %v14038_v36  ;;  %8180 = vmatprep.subr.mxu0 %v14038_v36 }
 0xa58   : > { %8174 = vmatpush3.msra.mxu1 %v12336_v44  ;;  %8181 = vmatpush3.msra.mxu0 %v12768_v28  ;;  %v12781_v44 = vld [vmem:[%s13907_s9 + $0x70] sm:$0xff] }
 0xa59   : > { %8175 = vmatprep.subr.mxu1 %v14038_v36  ;;  %8182 = vmatprep.subr.mxu0 %v14038_v36 }
 0xa5a   : > { %8176 = vmatpush3.msra.mxu1 %v12351_v7  ;;  %8177 = vmatprep.mubr.msk.f32.mxu1 %vm9307_vm14, %v14038_v36  ;;  %v9067_v7 = vpack.i.bf16 %v12762_v59, %v12759_v26 }
 0xa5b   : > { %8183 = vmatpush3.msra.mxu0 %v12781_v44  ;;  %8178 = vmatmul.mubr.f32.vlgmr.msra.gmra.mxu1 %v5133_v42  ;;  %v5304_v42 = vsel %vm2760_vm4, %v5303_v0, %v9056_v62 }
 0xa5c   : > { %8184 = vmatprep.subr.mxu0 %v14038_v36  ;;  %8215 = vmatprep.subr.mxu1 %v14038_v36 }
 0xa5d   : > { %8185 = vmatpush3.msra.mxu0 %v12793_v37  ;;  %8216 = vmatpush3.msra.mxu1 %v12768_v28 }
 0xa5e   : > { %8186 = vmatprep.subr.mxu0 %v14038_v36  ;;  %8217 = vmatprep.subr.mxu1 %v14038_v36 }
 0xa5f   : > { %9073 = vrot.lane.b32.xlu1 %v9072_v51, %s9304_s30  ;;  %9068 = vrot.lane.b32.xlu0 %v9067_v7, %s9306_s23  ;;  %v9132_v51 = vpack.i.bf16 %v12971_v23, %v12940_v57 }
 0xa60   : > { %8187 = vmatpush3.msra.mxu0 %v12804_v60  ;;  %8218 = vmatpush3.msra.mxu1 %v12781_v44 }
 0xa61   : > { %8188 = vmatprep.subr.mxu0 %v14038_v36  ;;  %8219 = vmatprep.subr.mxu1 %v14038_v36 }
 0xa62   : > { %8189 = vmatpush3.msra.mxu0 %v12813_v56  ;;  %8220 = vmatpush3.msra.mxu1 %v12793_v37 }
 0xa63   : > { %8190 = vmatprep.subr.mxu0 %v14038_v36  ;;  %8221 = vmatprep.subr.mxu1 %v14038_v36 }
 0xa64   : > { %9083 = vrot.lane.b32.xlu1 %v9082_v10, %s9305_s24  ;;  %9078 = vrot.lane.b32.xlu0 %v9077_v48, %s9305_s24  ;;  %v13035_v10 = vrot.slane %v13019_v11, 4 }
 0xa65   : > { %8191 = vmatpush3.msra.mxu0 %v12832_v63  ;;  %8222 = vmatpush3.msra.mxu1 %v12804_v60 }
 0xa66   : > { %8192 = vmatprep.subr.mxu0 %v14038_v36  ;;  %8223 = vmatprep.subr.mxu1 %v14038_v36 }
 0xa67   : > { %8193 = vmatpush3.msra.mxu0 %v12843_v49  ;;  %8224 = vmatpush3.msra.mxu1 %v12813_v56 }
 0xa68   : > { %8194 = vmatprep.subr.mxu0 %v14038_v36  ;;  %8225 = vmatprep.subr.mxu1 %v14038_v36 }
 0xa69   : > { %5799 = vrot.lane.b32.xlu1 %v12742_v33, %s9306_s23  ;;  %9088 = vrot.lane.b32.xlu0 %v9067_v7, %s9304_s30  ;;  %v9127_v7 = vpack.i.bf16 %v12968_v20, %v12974_v53 }
 0xa6a   : > { %8195 = vmatpush3.msra.mxu0 %v12861_v14  ;;  %8226 = vmatpush3.msra.mxu1 %v12832_v63 }
 0xa6b   : > { %8196 = vmatprep.subr.mxu0 %v14038_v36  ;;  %8227 = vmatprep.subr.mxu1 %v14038_v36  ;;  %v4270_v40 = vpop.f32.mrf.mxu0 }
 0xa6c   : > { %8197 = vmatpush3.msra.mxu0 %v12870_v27  ;;  %8228 = vmatpush3.msra.mxu1 %v12843_v49  ;;  %4274 = vst [vmem:[%s12876_s18] sm:$0x3] %v4270_v40  ;;  %v9142_v40 = vpack.i.bf16 %v13035_v10, %v13032_v30 }
 0xa6d   : > { %8198 = vmatprep.subr.mxu0 %v14038_v36  ;;  %8229 = vmatprep.subr.mxu1 %v14038_v36  ;;  %v7794_v21 = vpop.f32.mrf.mxu0 }
 0xa6e   : > { %9093 = vrot.lane.b32.xlu1 %v9092_v43, %s9306_s23  ;;  %5722 = vrot.lane.b32.xlu0 %v12756_v52, %s9306_s23 }
 0xa6f   : > { %8199 = vmatpush3.msra.mxu0 %v12894_v24  ;;  %8230 = vmatpush3.msra.mxu1 %v12861_v14 }
 0xa70   : > { %8200 = vmatprep.subr.mxu0 %v14038_v36  ;;  %8231 = vmatprep.subr.mxu1 %v14038_v36 }
 0xa71   : > { %8201 = vmatpush3.msra.mxu0 %v12903_v46  ;;  %8232 = vmatpush3.msra.mxu1 %v12870_v27  ;;  %v4354_v55 = vpop.f32.mrf.mxu1 }
 0xa72   : > { %8202 = vmatprep.subr.mxu0 %v14038_v36  ;;  %8233 = vmatprep.subr.mxu1 %v14038_v36  ;;  %4358 = vst [vmem:[%s12876_s18 + $0x2] sm:$0x3] %v4354_v55  ;;  %v9064_v55 = vpop.permute.xlu1 %9063 }
 0xa73   : > { %9103 = vrot.lane.b32.xlu1 %v9102_v4, %s9305_s24  ;;  %9098 = vrot.lane.b32.xlu0 %v9097_v12, %s9304_s30  ;;  %v7829_v2 = vpop.f32.mrf.mxu1  ;;  %v9059_v12 = vpop.permute.xlu0 %9058  ;;  %v9065_v38 = vunpack.i.l.bf16 %v9064_v55  ;;  %v9066_v54 = vunpack.i.h.bf16 %v9064_v55 }
 0xa74   : > { %8203 = vmatpush3.msra.mxu0 %v12919_v25  ;;  %8234 = vmatpush3.msra.mxu1 %v12894_v24  ;;  %v9157_v2 = vpack.i.bf16 %v13032_v30, %v13019_v11  ;;  %v9060_v34 = vunpack.i.l.bf16 %v9059_v12  ;;  %v9061_v3 = vunpack.i.h.bf16 %v9059_v12 }
 0xa75   : > { %8204 = vmatprep.subr.mxu0 %v14038_v36  ;;  %8235 = vmatprep.subr.mxu1 %v14038_v36 }
 0xa76   : > { %8205 = vmatpush3.msra.mxu0 %v12929_v8  ;;  %8236 = vmatpush3.msra.mxu1 %v12903_v46  ;;  %v5384_v13 = vpop.permute.xlu1 %5383 }
 0xa77   : > { %8206 = vmatprep.subr.mxu0 %v14038_v36  ;;  %8237 = vmatprep.subr.mxu1 %v14038_v36  ;;  %v5461_v31 = vpop.permute.xlu0 %5460 }
 0xa78   : > { %9113 = vrot.lane.b32.xlu1 %v9092_v43, %s9304_s30  ;;  %9108 = vrot.lane.b32.xlu0 %v9107_v50, %s9305_s24  ;;  %v13052_v43 = vrot.slane %v13019_v11, 6  ;;  %v5386_v50 = vsel %vm4200_vm0, %v9060_v34, %v9065_v38  ;;  %v5470_v5 = vsel %vm4200_vm0, %v5461_v31, %v9061_v3 }
 0xa79   : > { %8207 = vmatpush3.msra.mxu0 %v12945_v35  ;;  %8238 = vmatpush3.msra.mxu1 %v12919_v25  ;;  %v5387_v9 = vsel %vm3883_vm13, %v5386_v50, %v12275_v22  ;;  %v5471_v22 = vsel %vm3883_vm13, %v5470_v5, %v9066_v54 }
 0xa7a   : > { %8208 = vmatprep.subr.mxu0 %v14038_v36  ;;  %8239 = vmatprep.subr.mxu1 %v14038_v36  ;;  %v9152_v61 = vpack.i.bf16 %v13052_v43, %v13035_v10  ;;  %v9147_v4 = vpack.i.bf16 %v13052_v43, %v13019_v11  ;;  %v5388_v15 = vsel %vm2760_vm4, %v5387_v9, %v5384_v13 }
 0xa7b   : > { %8209 = vmatpush3.msra.mxu0 %v12956_v19  ;;  %8240 = vmatpush3.msra.mxu1 %v12929_v8 }
 0xa7c   : > { %8210 = vmatprep.subr.mxu0 %v14038_v36  ;;  %8241 = vmatprep.subr.mxu1 %v14038_v36 }
 0xa7d   : > { %6061 = vrot.lane.b32.xlu1 %v12882_v45, %s9306_s23  ;;  %6138 = vrot.lane.b32.xlu0 %v12825_v6, %s9306_s23 }
 0xa7e   : > { %8211 = vmatpush3.msra.mxu0 %v12981_v32  ;;  %8212 = vmatprep.mubr.msk.f32.mxu0 %vm9307_vm14, %v14038_v36 }
 0xa7f   : > { %8242 = vmatpush3.msra.mxu1 %v12945_v35  ;;  %8213 = vmatmul.mubr.f32.vlgmr.msra.gmra.mxu0 %v5220_v29  ;;  %v5472_v29 = vsel %vm2760_vm4, %v5471_v22, %v12303_v47 }
 0xa80   : > { %8243 = vmatprep.subr.mxu1 %v14038_v36  ;;  %8250 = vmatprep.subr.mxu0 %v14038_v36 }
 0xa81   : > { %8244 = vmatpush3.msra.mxu1 %v12956_v19  ;;  %8251 = vmatpush3.msra.mxu0 %v12768_v28 }
 0xa82   : > { %8245 = vmatprep.subr.mxu1 %v14038_v36  ;;  %8252 = vmatprep.subr.mxu0 %v14038_v36 }
 0xa83   : > { %9123 = vrot.lane.b32.xlu1 %v9122_v41, %s9304_s30  ;;  %9118 = vrot.lane.b32.xlu0 %v9117_v16, %s9306_s23 }
 0xa84   : > { %8246 = vmatpush3.msra.mxu1 %v12981_v32  ;;  %8247 = vmatprep.mubr.msk.f32.mxu1 %vm9307_vm14, %v14038_v36 }
 0xa85   : > { %8253 = vmatpush3.msra.mxu0 %v12781_v44  ;;  %8248 = vmatmul.mubr.f32.vlgmr.msra.gmra.mxu1 %v5304_v42 }
 0xa86   : > { %8254 = vmatprep.subr.mxu0 %v14038_v36  ;;  %8285 = vmatprep.subr.mxu1 %v14038_v36 }
 0xa87   : > { %8255 = vmatpush3.msra.mxu0 %v12793_v37  ;;  %8286 = vmatpush3.msra.mxu1 %v12768_v28 }
 0xa88   : > { %8256 = vmatprep.subr.mxu0 %v14038_v36  ;;  %8287 = vmatprep.subr.mxu1 %v14038_v36 }
 0xa89   : > { %9133 = vrot.lane.b32.xlu1 %v9132_v51, %s9305_s24  ;;  %9128 = vrot.lane.b32.xlu0 %v9127_v7, %s9305_s24 }
 0xa8a   : > { %8257 = vmatpush3.msra.mxu0 %v12804_v60  ;;  %8288 = vmatpush3.msra.mxu1 %v12781_v44 }
 0xa8b   : > { %8258 = vmatprep.subr.mxu0 %v14038_v36  ;;  %8289 = vmatprep.subr.mxu1 %v14038_v36 }
 0xa8c   : > { %8259 = vmatpush3.msra.mxu0 %v12813_v56  ;;  %8290 = vmatpush3.msra.mxu1 %v12793_v37 }
 0xa8d   : > { %8260 = vmatprep.subr.mxu0 %v14038_v36  ;;  %8291 = vmatprep.subr.mxu1 %v14038_v36 }
 0xa8e   : > { %6477 = vrot.lane.b32.xlu1 %v12940_v57, %s9306_s23  ;;  %9138 = vrot.lane.b32.xlu0 %v9117_v16, %s9304_s30  ;;  %v4438_v48 = vpop.f32.mrf.mxu0 }
 0xa8f   : > { %8261 = vmatpush3.msra.mxu0 %v12832_v63  ;;  %8292 = vmatpush3.msra.mxu1 %v12804_v60  ;;  %4442 = vst [vmem:[%s12876_s18 + $0x4] sm:$0x3] %v4438_v48 }
 0xa90   : > { %8262 = vmatprep.subr.mxu0 %v14038_v36  ;;  %8293 = vmatprep.subr.mxu1 %v14038_v36  ;;  %v7864_v58 = vpop.f32.mrf.mxu0 }
 0xa91   : > { %8263 = vmatpush3.msra.mxu0 %v12843_v49  ;;  %8294 = vmatpush3.msra.mxu1 %v12813_v56 }
 0xa92   : > { %8264 = vmatprep.subr.mxu0 %v14038_v36  ;;  %8295 = vmatprep.subr.mxu1 %v14038_v36 }
 0xa93   : > { %9143 = vrot.lane.b32.xlu1 %v9142_v40, %s9306_s23  ;;  %6400 = vrot.lane.b32.xlu0 %v12968_v20, %s9306_s23  ;;  %v4522_v21 = vpop.f32.mrf.mxu1 }
 0xa94   : > { %8265 = vmatpush3.msra.mxu0 %v12861_v14  ;;  %8296 = vmatpush3.msra.mxu1 %v12832_v63  ;;  %4526 = vst [vmem:[%s12876_s18 + $0x6] sm:$0x3] %v4522_v21 }
 0xa95   : > { %8266 = vmatprep.subr.mxu0 %v14038_v36  ;;  %8297 = vmatprep.subr.mxu1 %v14038_v36  ;;  %v7899_v1 = vpop.f32.mrf.mxu1 }
 0xa96   : > { %8267 = vmatpush3.msra.mxu0 %v12870_v27  ;;  %8298 = vmatpush3.msra.mxu1 %v12843_v49 }
 0xa97   : > { %8268 = vmatprep.subr.mxu0 %v14038_v36  ;;  %8299 = vmatprep.subr.mxu1 %v14038_v36 }
 0xa98   : > { %9153 = vrot.lane.b32.xlu1 %v9152_v61, %s9305_s24  ;;  %9148 = vrot.lane.b32.xlu0 %v9147_v4, %s9304_s30 }
 0xa99   : > { %8269 = vmatpush3.msra.mxu0 %v12894_v24  ;;  %8300 = vmatpush3.msra.mxu1 %v12861_v14 }
 0xa9a   : > { %8270 = vmatprep.subr.mxu0 %v14038_v36  ;;  %8301 = vmatprep.subr.mxu1 %v14038_v36 }
 0xa9b   : > { %8271 = vmatpush3.msra.mxu0 %v12903_v46  ;;  %8302 = vmatpush3.msra.mxu1 %v12870_v27 }
 0xa9c   : > { %8272 = vmatprep.subr.mxu0 %v14038_v36  ;;  %8303 = vmatprep.subr.mxu1 %v14038_v36 }
 0xa9d   : > { %9163 = vrot.lane.b32.xlu1 %v9142_v40, %s9304_s30  ;;  %9158 = vrot.lane.b32.xlu0 %v9157_v2, %s9305_s24  ;;  %s7112_s30 = sshll.u32 %s9279_s16, 5  ;;  %s7113_s24 = sshll.u32 %s9283_s17, 7 }
 0xa9e   : > { %8273 = vmatpush3.msra.mxu0 %v12919_v25  ;;  %8304 = vmatpush3.msra.mxu1 %v12894_v24  ;;  %s6901_s16 = scalar_lea.sflag [#allocation3], %s364_s12  ;;  %s9203_s17 = scalar_lea.vmem %s13844_s25, 1024 }
 0xa9f   : > { %8274 = vmatprep.subr.mxu0 %v14038_v36  ;;  %8305 = vmatprep.subr.mxu1 %v14038_v36  ;;  %p9204_p13 = scmp.ne.s32.totalorder %s13844_s25, %s9203_s17 }
 0xaa0   : > { %8275 = vmatpush3.msra.mxu0 %v12929_v8  ;;  %8306 = vmatpush3.msra.mxu1 %v12903_v46 }
 0xaa1   : > { %8276 = vmatprep.subr.mxu0 %v14038_v36  ;;  %8307 = vmatprep.subr.mxu1 %v14038_v36  ;;  %p9205_p0 = pnand %p9204_p13, %p9415_p3 }
 0xaa2   : > { %6739 = vrot.lane.b32.xlu1 %v13052_v43, %s9306_s23  ;;  %6816 = vrot.lane.b32.xlu0 %v13019_v11, %s9306_s23  ;;  %s6913_s23 = sadd.s32 %s7113_s24, %s7112_s30  ;;  %s9308_s30 = smov [#allocation2]  }
 0xaa3   : > { %8277 = vmatpush3.msra.mxu0 %v12945_v35  ;;  %8308 = vmatpush3.msra.mxu1 %v12919_v25  ;;  %s7114_s28 = sshll.u32 %s6913_s23, 5  ;;  %p9206_p1 = pneg %p9205_p0 }
 0xaa4   : > { %8278 = vmatprep.subr.mxu0 %v14038_v36  ;;  %8309 = vmatprep.subr.mxu1 %v14038_v36  ;;  %s13842_s22 = scalar_lea.hbm %s13908_s10, %s7114_s28  ;;  %s9207_s24 = sshll.u32 %s9308_s30, 4  ;;  %s9208_s24 = int_to_ptr.vmem [resolvable:$false] %s9207_s24 }
 0xaa5   : > { %8279 = vmatpush3.msra.mxu0 %v12956_v19  ;;  %8310 = vmatpush3.msra.mxu1 %v12929_v8  ;;  %s9209_s23 = scalar_lea.vmem %s9208_s24, 2048  ;;  %p9210_p2 = scmp.lt.s32.totalorder %s13844_s25, %s9208_s24 }
 0xaa6   : > { %8280 = vmatprep.subr.mxu0 %v14038_v36  ;;  %8311 = vmatprep.subr.mxu1 %v14038_v36  ;;  %p9211_p4 = scmp.lt.s32.totalorder %s9209_s23, %s9203_s17 }
 0xaa7   : > { %8281 = vmatpush3.msra.mxu0 %v12981_v32  ;;  %8282 = vmatprep.mubr.msk.f32.mxu0 %vm9307_vm14, %v14038_v36 }
 0xaa8   : > { %8312 = vmatpush3.msra.mxu1 %v12945_v35  ;;  %8283 = vmatmul.mubr.f32.vlgmr.msra.gmra.mxu0 %v5388_v15  ;;  %p9212_p5 = por %p9211_p4, %p9210_p2 }
 0xaa9   : > { %8313 = vmatprep.subr.mxu1 %v14038_v36  ;;  %8317 = vmatprep.mubr.msk.f32.mxu1 %vm9307_vm14, %v14038_v36 }
 0xaaa   : > { %8314 = vmatpush3.msra.mxu1 %v12956_v19  ;;  %8320 = vmatprep.subr.mxu0 %v14038_v36  ;;  %p9213_p6 = pnand %p9212_p5, %p9206_p1 }
 0xaab   : > { %8315 = vmatprep.subr.mxu1 %v14038_v36  ;;  %8321 = vmatpush3.msra.mxu0 %v12768_v28 }
 0xaac   : > { %8316 = vmatpush3.msra.mxu1 %v12981_v32  ;;  %8322 = vmatprep.subr.mxu0 %v14038_v36 }
 0xaad   : > { %8318 = vmatmul.mubr.f32.vlgmr.msra.gmra.mxu1 %v5472_v29  ;;  %8355 = vmatprep.subr.mxu1 %v14038_v36 }
 0xaae   : > { %8356 = vmatpush3.msra.mxu1 %v12768_v28  ;;  %8323 = vmatpush3.msra.mxu0 %v12781_v44 }
 0xaaf   : > { %8357 = vmatprep.subr.mxu1 %v14038_v36  ;;  %8324 = vmatprep.subr.mxu0 %v14038_v36 }
 0xab0   : > { %v4609_v17 = vpop.f32.mrf.mxu0  ;;  %8358 = vmatpush3.msra.mxu1 %v12781_v44  ;;  %8325 = vmatpush3.msra.mxu0 %v12793_v37 }
 0xab1   : > { %4613 = vst [vmem:[%s12876_s18 + $0x8] sm:$0x3] %v4609_v17  ;;  %8359 = vmatprep.subr.mxu1 %v14038_v36  ;;  %8326 = vmatprep.subr.mxu0 %v14038_v36 }
 0xab2   : > { %v7934_v47 = vpop.f32.mrf.mxu0  ;;  %8360 = vmatpush3.msra.mxu1 %v12793_v37  ;;  %8327 = vmatpush3.msra.mxu0 %v12804_v60 }
 0xab3   : > { %8361 = vmatprep.subr.mxu1 %v14038_v36  ;;  %8328 = vmatprep.subr.mxu0 %v14038_v36 }
 0xab4   : > { %8362 = vmatpush3.msra.mxu1 %v12804_v60  ;;  %8329 = vmatpush3.msra.mxu0 %v12813_v56 }
 0xab5   : > { %v4693_v41 = vpop.f32.mrf.mxu1  ;;  %8363 = vmatprep.subr.mxu1 %v14038_v36  ;;  %8330 = vmatprep.subr.mxu0 %v14038_v36 }
 0xab6   : > { %4697 = vst [vmem:[%s12876_s18 + $0xa] sm:$0x3] %v4693_v41  ;;  %8364 = vmatpush3.msra.mxu1 %v12813_v56  ;;  %8331 = vmatpush3.msra.mxu0 %v12832_v63 }
 0xab7   : > { %v7969_v16 = vpop.f32.mrf.mxu1  ;;  %8365 = vmatprep.subr.mxu1 %v14038_v36  ;;  %8332 = vmatprep.subr.mxu0 %v14038_v36 }
 0xab8   : > { %8366 = vmatpush3.msra.mxu1 %v12832_v63  ;;  %8333 = vmatpush3.msra.mxu0 %v12843_v49 }
 0xab9   : > { %8367 = vmatprep.subr.mxu1 %v14038_v36  ;;  %8334 = vmatprep.subr.mxu0 %v14038_v36 }
 0xaba   : > { %8368 = vmatpush3.msra.mxu1 %v12843_v49  ;;  %8335 = vmatpush3.msra.mxu0 %v12861_v14 }
 0xabb   : > { %8369 = vmatprep.subr.mxu1 %v14038_v36  ;;  %8336 = vmatprep.subr.mxu0 %v14038_v36 }
 0xabc   : > { %8370 = vmatpush3.msra.mxu1 %v12861_v14  ;;  %8337 = vmatpush3.msra.mxu0 %v12870_v27 }
 0xabd   : > { %8371 = vmatprep.subr.mxu1 %v14038_v36  ;;  %8338 = vmatprep.subr.mxu0 %v14038_v36 }
 0xabe   : > { %8372 = vmatpush3.msra.mxu1 %v12870_v27  ;;  %8339 = vmatpush3.msra.mxu0 %v12894_v24 }
 0xabf   : > { %8373 = vmatprep.subr.mxu1 %v14038_v36  ;;  %8340 = vmatprep.subr.mxu0 %v14038_v36 }
 0xac0   : > { %8374 = vmatpush3.msra.mxu1 %v12894_v24  ;;  %8341 = vmatpush3.msra.mxu0 %v12903_v46 }
 0xac1   : > { %8375 = vmatprep.subr.mxu1 %v14038_v36  ;;  %8342 = vmatprep.subr.mxu0 %v14038_v36 }
 0xac2   : > { %8376 = vmatpush3.msra.mxu1 %v12903_v46  ;;  %8343 = vmatpush3.msra.mxu0 %v12919_v25 }
 0xac3   : > { %8377 = vmatprep.subr.mxu1 %v14038_v36  ;;  %8344 = vmatprep.subr.mxu0 %v14038_v36 }
 0xac4   : > { %8378 = vmatpush3.msra.mxu1 %v12919_v25  ;;  %8345 = vmatpush3.msra.mxu0 %v12929_v8 }
 0xac5   : > { %8379 = vmatprep.subr.mxu1 %v14038_v36  ;;  %8346 = vmatprep.subr.mxu0 %v14038_v36 }
 0xac6   : > { %8380 = vmatpush3.msra.mxu1 %v12929_v8  ;;  %8347 = vmatpush3.msra.mxu0 %v12945_v35 }
 0xac7   : > { %8381 = vmatprep.subr.mxu1 %v14038_v36  ;;  %8348 = vmatprep.subr.mxu0 %v14038_v36 }
 0xac8   : > { %8382 = vmatpush3.msra.mxu1 %v12945_v35  ;;  %8349 = vmatpush3.msra.mxu0 %v12956_v19 }
 0xac9   : > { %8383 = vmatprep.subr.mxu1 %v14038_v36  ;;  %8350 = vmatprep.subr.mxu0 %v14038_v36 }
 0xaca   : > { %8384 = vmatpush3.msra.mxu1 %v12956_v19  ;;  %8351 = vmatpush3.msra.mxu0 %v12981_v32 }
 0xacb   : > { %8385 = vmatprep.subr.mxu1 %v14038_v36  ;;  %8387 = vmatprep.mubr.msk.f32.mxu1 %vm9307_vm14, %v14038_v36 }
 0xacc   : > { %8386 = vmatpush3.msra.mxu1 %v12981_v32  ;;  %8352 = vmatprep.mubr.msk.f32.mxu0 %vm9307_vm14, %v14038_v36 }
 0xacd   : > { %8425 = vmatprep.subr.mxu1 %v14038_v36  ;;  %8390 = vmatprep.subr.mxu0 %v14038_v36 }
 0xad1   : > { %v9069_v0 = vpop.permute.xlu0 %9068  ;;  %v9074_v62 = vpop.permute.xlu1 %9073 }
 0xad2   : > { %v9075_v42 = vunpack.i.l.bf16 %v9074_v62  ;;  %v4777_v51 = vpop.f32.mrf.mxu0  ;;  %v9071_v7 = vunpack.i.h.bf16 %v9069_v0  ;;  %v9070_v48 = vunpack.i.l.bf16 %v9069_v0  ;;  %v9076_v55 = vunpack.i.h.bf16 %v9074_v62 }
 0xad3   : > { %4781 = vst [vmem:[%s12876_s18 + $0xc] sm:$0x3] %v4777_v51 }
 0xad4   : > { %v8004_v58 = vpop.f32.mrf.mxu0  ;;  %v5641_v40 = vsel %vm4200_vm0, %v9075_v42, %v12759_v26  ;;  %v5557_v12 = vsel %vm4200_vm0, %v12742_v33, %v9070_v48 }
 0xad5   : > { %v5642_v2 = vsel %vm3883_vm13, %v5641_v40, %v9071_v7 }
 0xad6   : > { %v9079_v21 = vpop.permute.xlu0 %9078  ;;  %v9084_v33 = vpop.permute.xlu1 %9083 }
 0xad7   : > { %v9081_v1 = vunpack.i.h.bf16 %v9079_v21  ;;  %v9080_v61 = vunpack.i.l.bf16 %v9079_v21  ;;  %v4861_v4 = vpop.f32.mrf.mxu1  ;;  %v9086_v9 = vunpack.i.h.bf16 %v9084_v33  ;;  %v9085_v5 = vunpack.i.l.bf16 %v9084_v33 }
 0xad8   : > { %4865 = vst [vmem:[%s12876_s18 + $0xe] sm:$0x3] %v4861_v4 }
 0xad9   : > { %v5643_v34 = vsel %vm2760_vm4, %v5642_v2, %v9081_v1  ;;  %v5558_v38 = vsel %vm3883_vm13, %v5557_v12, %v9080_v61  ;;  %v8039_v50 = vpop.f32.mrf.mxu1  ;;  %v13363_v2 = vld [vmem:[%s13907_s9 + $0x78] sm:$0xff] }
 0xada   : > { %8388 = vmatmul.mubr.f32.vlgmr.msra.gmra.mxu1 %v5643_v34  ;;  %v5559_v31 = vsel %vm2760_vm4, %v5558_v38, %v9076_v55  ;;  %v13372_v34 = vld [vmem:[%s13907_s9 + $0x70] sm:$0xff]  ;;  %v13381_v38 = vld [vmem:[%s13907_s9 + $0x68] sm:$0xff]  ;;  %v13390_v50 = vld [vmem:[%s13907_s9 + $0x60] sm:$0xff] }
 0xadb   : > { %8426 = vmatpush3.msra.mxu1 %v12768_v28  ;;  %8353 = vmatmul.mubr.f32.vlgmr.msra.gmra.mxu0 %v5559_v31  ;;  %v9089_v26 = vpop.permute.xlu0 %9088  ;;  %v5800_v13 = vpop.permute.xlu1 %5799  ;;  %v13399_v31 = vld [vmem:[%s13907_s9 + $0x58] sm:$0xff] }
 0xadc   : > { %8391 = vmatpush3.msra.mxu0 %v12768_v28  ;;  %8427 = vmatprep.subr.mxu1 %v14038_v36  ;;  %v9090_v3 = vunpack.i.l.bf16 %v9089_v26  ;;  %v9091_v54 = vunpack.i.h.bf16 %v9089_v26  ;;  %v5809_v15 = vsel %vm4200_vm0, %v5800_v13, %v9086_v9 }
 0xadd   : > { %8392 = vmatprep.subr.mxu0 %v14038_v36  ;;  %8428 = vmatpush3.msra.mxu1 %v12781_v44 }
 0xade   : > { %8393 = vmatpush3.msra.mxu0 %v12781_v44  ;;  %8429 = vmatprep.subr.mxu1 %v14038_v36  ;;  %v5725_v29 = vsel %vm4200_vm0, %v9085_v5, %v9090_v3  ;;  %v5810_v47 = vsel %vm3883_vm13, %v5809_v15, %v9091_v54  ;;  %v13495_v54 = vld [vmem:[%s13907_s9 + $0x48] sm:$0xff]  ;;  %v13504_v15 = vld [vmem:[%s13907_s9 + $0x40] sm:$0xff] }
 0xadf   : > { %8394 = vmatprep.subr.mxu0 %v14038_v36  ;;  %8430 = vmatpush3.msra.mxu1 %v12793_v37  ;;  %v5726_v16 = vsel %vm3883_vm13, %v5725_v29, %v12762_v59  ;;  %v5811_v62 = vsel %vm2760_vm4, %v5810_v47, %v12756_v52  ;;  %v13513_v29 = vld [vmem:[%s13907_s9 + $0x38] sm:$0xff] }
 0xae0   : > { %8395 = vmatpush3.msra.mxu0 %v12793_v37  ;;  %8431 = vmatprep.subr.mxu1 %v14038_v36  ;;  %v5723_v41 = vpop.permute.xlu0 %5722  ;;  %v9094_v52 = vpop.permute.xlu1 %9093 }
 0xae1   : > { %8396 = vmatprep.subr.mxu0 %v14038_v36  ;;  %8432 = vmatpush3.msra.mxu1 %v12804_v60  ;;  %v5727_v59 = vsel %vm2760_vm4, %v5726_v16, %v5723_v41  ;;  %v9096_v48 = vunpack.i.h.bf16 %v9094_v52  ;;  %v13531_v41 = vld [vmem:[%s13907_s9 + $0x28] sm:$0xff] }
 0xae2   : > { %8397 = vmatpush3.msra.mxu0 %v12804_v60  ;;  %8433 = vmatprep.subr.mxu1 %v14038_v36 }
 0xae3   : > { %8398 = vmatprep.subr.mxu0 %v14038_v36  ;;  %8434 = vmatpush3.msra.mxu1 %v12813_v56 }
 0xae4   : > { %8399 = vmatpush3.msra.mxu0 %v12813_v56  ;;  %8435 = vmatprep.subr.mxu1 %v14038_v36 }
 0xae5   : > { %8400 = vmatprep.subr.mxu0 %v14038_v36  ;;  %8436 = vmatpush3.msra.mxu1 %v12832_v63 }
 0xae6   : > { %8401 = vmatpush3.msra.mxu0 %v12832_v63  ;;  %8437 = vmatprep.subr.mxu1 %v14038_v36 }
 0xae7   : > { %8402 = vmatprep.subr.mxu0 %v14038_v36  ;;  %8438 = vmatpush3.msra.mxu1 %v12843_v49 }
 0xae8   : > { %8403 = vmatpush3.msra.mxu0 %v12843_v49  ;;  %8439 = vmatprep.subr.mxu1 %v14038_v36 }
 0xae9   : > { %8404 = vmatprep.subr.mxu0 %v14038_v36  ;;  %8440 = vmatpush3.msra.mxu1 %v12861_v14 }
 0xaea   : > { %8405 = vmatpush3.msra.mxu0 %v12861_v14  ;;  %8441 = vmatprep.subr.mxu1 %v14038_v36 }
 0xaeb   : > { %8406 = vmatprep.subr.mxu0 %v14038_v36  ;;  %8442 = vmatpush3.msra.mxu1 %v12870_v27 }
 0xaec   : > { %8407 = vmatpush3.msra.mxu0 %v12870_v27  ;;  %8443 = vmatprep.subr.mxu1 %v14038_v36 }
 0xaed   : > { %8408 = vmatprep.subr.mxu0 %v14038_v36  ;;  %8444 = vmatpush3.msra.mxu1 %v12894_v24 }
 0xaee   : > { %8409 = vmatpush3.msra.mxu0 %v12894_v24  ;;  %8445 = vmatprep.subr.mxu1 %v14038_v36 }
 0xaef   : > { %8410 = vmatprep.subr.mxu0 %v14038_v36  ;;  %8446 = vmatpush3.msra.mxu1 %v12903_v46 }
 0xaf0   : > { %8411 = vmatpush3.msra.mxu0 %v12903_v46  ;;  %8447 = vmatprep.subr.mxu1 %v14038_v36 }
 0xaf1   : > { %8412 = vmatprep.subr.mxu0 %v14038_v36  ;;  %8448 = vmatpush3.msra.mxu1 %v12919_v25 }
 0xaf2   : > { %8413 = vmatpush3.msra.mxu0 %v12919_v25  ;;  %8449 = vmatprep.subr.mxu1 %v14038_v36 }
 0xaf3   : > { %8414 = vmatprep.subr.mxu0 %v14038_v36  ;;  %8450 = vmatpush3.msra.mxu1 %v12929_v8 }
 0xaf4   : > { %8415 = vmatpush3.msra.mxu0 %v12929_v8  ;;  %8451 = vmatprep.subr.mxu1 %v14038_v36  ;;  %v4948_v22 = vpop.f32.mrf.mxu0 }
 0xaf5   : > { %8416 = vmatprep.subr.mxu0 %v14038_v36  ;;  %8452 = vmatpush3.msra.mxu1 %v12945_v35  ;;  %4952 = vst [vmem:[%s12876_s18 + $0x10] sm:$0x3] %v4948_v22 }
 0xaf6   : > { %8417 = vmatpush3.msra.mxu0 %v12945_v35  ;;  %8453 = vmatprep.subr.mxu1 %v14038_v36  ;;  %v8074_v17 = vpop.f32.mrf.mxu0 }
 0xaf7   : > { %8418 = vmatprep.subr.mxu0 %v14038_v36  ;;  %8454 = vmatpush3.msra.mxu1 %v12956_v19  ;;  %v13522_v17 = vld [vmem:[%s13907_s9 + $0x30] sm:$0xff] }
 0xaf8   : > { %8419 = vmatpush3.msra.mxu0 %v12956_v19  ;;  %8455 = vmatprep.subr.mxu1 %v14038_v36 }
 0xaf9   : > { %8420 = vmatprep.subr.mxu0 %v14038_v36  ;;  %8456 = vmatpush3.msra.mxu1 %v12981_v32  ;;  %v5032_v0 = vpop.f32.mrf.mxu1 }
 0xafa   : > { %8457 = vmatprep.mubr.msk.f32.mxu1 %vm9307_vm14, %v14038_v36  ;;  %8421 = vmatpush3.msra.mxu0 %v12981_v32  ;;  %5036 = vst [vmem:[%s12876_s18 + $0x12] sm:$0x3] %v5032_v0  ;;  %v13540_v0 = vld [vmem:[%s13907_s9 + $0x20] sm:$0xff] }
 0xafb   : > { %8422 = vmatprep.mubr.msk.f32.mxu0 %vm9307_vm14, %v14038_v36  ;;  %8458 = vmatmul.mubr.f32.vlgmr.msra.gmra.mxu1 %v5811_v62  ;;  %v8109_v42 = vpop.f32.mrf.mxu1 }
 0xafc   : > { %8495 = vmatprep.subr.mxu1 %v14038_v36  ;;  %8423 = vmatmul.mubr.f32.vlgmr.msra.gmra.mxu0 %v5727_v59  ;;  %v13549_v42 = vld [vmem:[%s13907_s9 + $0x18] sm:$0xff] }
 0xafd   : > { %8460 = vmatprep.subr.mxu0 %v14038_v36  ;;  %8496 = vmatpush3.msra.mxu1 %v12768_v28 }
 0xafe   : > { %8461 = vmatpush3.msra.mxu0 %v12768_v28  ;;  %8497 = vmatprep.subr.mxu1 %v14038_v36  ;;  %v9099_v28 = vpop.permute.xlu0 %9098 }
 0xaff   : > { %8462 = vmatprep.subr.mxu0 %v14038_v36  ;;  %8498 = vmatpush3.msra.mxu1 %v12781_v44  ;;  %v9101_v40 = vunpack.i.h.bf16 %v9099_v28 }
 0xb00   : > { %8463 = vmatpush3.msra.mxu0 %v12781_v44  ;;  %8499 = vmatprep.subr.mxu1 %v14038_v36  ;;  %v9100_v44 = vunpack.i.l.bf16 %v9099_v28 }
 0xb01   : > { %8464 = vmatprep.subr.mxu0 %v14038_v36  ;;  %8500 = vmatpush3.msra.mxu1 %v12793_v37 }
 0xb02   : > { %8465 = vmatpush3.msra.mxu0 %v12793_v37  ;;  %8501 = vmatprep.subr.mxu1 %v14038_v36  ;;  %v9104_v37 = vpop.permute.xlu1 %9103  ;;  %v9109_v33 = vpop.permute.xlu0 %9108 }
 0xb03   : > { %8466 = vmatprep.subr.mxu0 %v14038_v36  ;;  %8502 = vmatpush3.msra.mxu1 %v12804_v60  ;;  %v9105_v51 = vunpack.i.l.bf16 %v9104_v37  ;;  %v9106_v1 = vunpack.i.h.bf16 %v9104_v37  ;;  %v9111_v26 = vunpack.i.h.bf16 %v9109_v33 }
 0xb04   : > { %8467 = vmatpush3.msra.mxu0 %v12804_v60  ;;  %8503 = vmatprep.subr.mxu1 %v14038_v36  ;;  %v9095_v60 = vunpack.i.l.bf16 %v9094_v52 }
 0xb05   : > { %8468 = vmatprep.subr.mxu0 %v14038_v36  ;;  %8504 = vmatpush3.msra.mxu1 %v12813_v56 }
 0xb06   : > { %8469 = vmatpush3.msra.mxu0 %v12813_v56  ;;  %8505 = vmatprep.subr.mxu1 %v14038_v36  ;;  %v5980_v56 = vsel %vm4200_vm0, %v9100_v44, %v12850_v39  ;;  %v5896_v39 = vsel %vm4200_vm0, %v12825_v6, %v9095_v60  ;;  %v13558_v44 = vld [vmem:[%s13907_s9 + $0x10] sm:$0xff] }
 0xb07   : > { %8470 = vmatprep.subr.mxu0 %v14038_v36  ;;  %8506 = vmatpush3.msra.mxu1 %v12832_v63  ;;  %v5981_v21 = vsel %vm3883_vm13, %v5980_v56, %v9096_v48  ;;  %v5897_v61 = vsel %vm3883_vm13, %v5896_v39, %v9105_v51  ;;  %v13571_v51 = vld [vmem:[%s13907_s9 + $0x8] sm:$0xff] }
 0xb08   : > { %8471 = vmatpush3.msra.mxu0 %v12832_v63  ;;  %8507 = vmatprep.subr.mxu1 %v14038_v36  ;;  %v5982_v6 = vsel %vm2760_vm4, %v5981_v21, %v9106_v1  ;;  %v5898_v12 = vsel %vm2760_vm4, %v5897_v61, %v9101_v40 }
 0xb09   : > { %8472 = vmatprep.subr.mxu0 %v14038_v36  ;;  %8508 = vmatpush3.msra.mxu1 %v12843_v49 }
 0xb0a   : > { %8473 = vmatpush3.msra.mxu0 %v12843_v49  ;;  %8509 = vmatprep.subr.mxu1 %v14038_v36 }
 0xb0b   : > { %8474 = vmatprep.subr.mxu0 %v14038_v36  ;;  %8510 = vmatpush3.msra.mxu1 %v12861_v14 }
 0xb0c   : > { %8475 = vmatpush3.msra.mxu0 %v12861_v14  ;;  %8511 = vmatprep.subr.mxu1 %v14038_v36 }
 0xb0d   : > { %8476 = vmatprep.subr.mxu0 %v14038_v36  ;;  %8512 = vmatpush3.msra.mxu1 %v12870_v27 }
 0xb0e   : > { %8477 = vmatpush3.msra.mxu0 %v12870_v27  ;;  %8513 = vmatprep.subr.mxu1 %v14038_v36 }
 0xb0f   : > { %8478 = vmatprep.subr.mxu0 %v14038_v36  ;;  %8514 = vmatpush3.msra.mxu1 %v12894_v24 }
 0xb10   : > { %8479 = vmatpush3.msra.mxu0 %v12894_v24  ;;  %8515 = vmatprep.subr.mxu1 %v14038_v36 }
 0xb11   : > { %8480 = vmatprep.subr.mxu0 %v14038_v36  ;;  %8516 = vmatpush3.msra.mxu1 %v12903_v46 }
 0xb12   : > { %8481 = vmatpush3.msra.mxu0 %v12903_v46  ;;  %8517 = vmatprep.subr.mxu1 %v14038_v36 }
 0xb13   : > { %8482 = vmatprep.subr.mxu0 %v14038_v36  ;;  %8518 = vmatpush3.msra.mxu1 %v12919_v25 }
 0xb14   : > { %8483 = vmatpush3.msra.mxu0 %v12919_v25  ;;  %8519 = vmatprep.subr.mxu1 %v14038_v36 }
 0xb15   : > { %8484 = vmatprep.subr.mxu0 %v14038_v36  ;;  %8520 = vmatpush3.msra.mxu1 %v12929_v8 }
 0xb16   : > { %8485 = vmatpush3.msra.mxu0 %v12929_v8  ;;  %8521 = vmatprep.subr.mxu1 %v14038_v36  ;;  %v5116_v7 = vpop.f32.mrf.mxu0 }
 0xb17   : > { %8486 = vmatprep.subr.mxu0 %v14038_v36  ;;  %8522 = vmatpush3.msra.mxu1 %v12945_v35  ;;  %5120 = vst [vmem:[%s12876_s18 + $0x14] sm:$0x3] %v5116_v7 }
 0xb18   : > { %8487 = vmatpush3.msra.mxu0 %v12945_v35  ;;  %8523 = vmatprep.subr.mxu1 %v14038_v36  ;;  %v8144_v58 = vpop.f32.mrf.mxu0 }
 0xb19   : > { %8488 = vmatprep.subr.mxu0 %v14038_v36  ;;  %8524 = vmatpush3.msra.mxu1 %v12956_v19 }
 0xb1a   : > { %8489 = vmatpush3.msra.mxu0 %v12956_v19  ;;  %8525 = vmatprep.subr.mxu1 %v14038_v36 }
 0xb1b   : > { %8490 = vmatprep.subr.mxu0 %v14038_v36  ;;  %8526 = vmatpush3.msra.mxu1 %v12981_v32  ;;  %v5200_v4 = vpop.f32.mrf.mxu1 }
 0xb1c   : > { %8527 = vmatprep.mubr.msk.f32.mxu1 %vm9307_vm14, %v14038_v36  ;;  %8491 = vmatpush3.msra.mxu0 %v12981_v32  ;;  %5204 = vst [vmem:[%s12876_s18 + $0x16] sm:$0x3] %v5200_v4 }
 0xb1d   : > { %8492 = vmatprep.mubr.msk.f32.mxu0 %vm9307_vm14, %v14038_v36  ;;  %8528 = vmatmul.mubr.f32.vlgmr.msra.gmra.mxu1 %v5982_v6  ;;  %v8179_v55 = vpop.f32.mrf.mxu1 }
 0xb1e   : > { %8565 = vmatprep.subr.mxu1 %v14038_v36  ;;  %8493 = vmatmul.mubr.f32.vlgmr.msra.gmra.mxu0 %v5898_v12 }
 0xb1f   : > { %8530 = vmatprep.subr.mxu0 %v14038_v36  ;;  %8566 = vmatpush3.msra.mxu1 %v13363_v2 }
 0xb20   : > { %8531 = vmatpush3.msra.mxu0 %v13363_v2  ;;  %8567 = vmatprep.subr.mxu1 %v14038_v36 }
 0xb21   : > { %8532 = vmatprep.subr.mxu0 %v14038_v36  ;;  %8568 = vmatpush3.msra.mxu1 %v13372_v34 }
 0xb22   : > { %8533 = vmatpush3.msra.mxu0 %v13372_v34  ;;  %8569 = vmatprep.subr.mxu1 %v14038_v36 }
 0xb23   : > { %8534 = vmatprep.subr.mxu0 %v14038_v36  ;;  %8570 = vmatpush3.msra.mxu1 %v13381_v38 }
 0xb24   : > { %8535 = vmatpush3.msra.mxu0 %v13381_v38  ;;  %8571 = vmatprep.subr.mxu1 %v14038_v36 }
 0xb25   : > { %8536 = vmatprep.subr.mxu0 %v14038_v36  ;;  %8572 = vmatpush3.msra.mxu1 %v13390_v50 }
 0xb26   : > { %8537 = vmatpush3.msra.mxu0 %v13390_v50  ;;  %8573 = vmatprep.subr.mxu1 %v14038_v36 }
 0xb27   : > { %8538 = vmatprep.subr.mxu0 %v14038_v36  ;;  %8574 = vmatpush3.msra.mxu1 %v13399_v31 }
 0xb28   : > { %8539 = vmatpush3.msra.mxu0 %v13399_v31  ;;  %8575 = vmatprep.subr.mxu1 %v14038_v36 }
 0xb29   : > { %8540 = vmatprep.subr.mxu0 %v14038_v36  ;;  %8576 = vmatpush3.msra.mxu1 %v12832_v63 }
 0xb2a   : > { %8541 = vmatpush3.msra.mxu0 %v12832_v63  ;;  %8577 = vmatprep.subr.mxu1 %v14038_v36  ;;  %v9114_v63 = vpop.permute.xlu1 %9113 }
 0xb2b   : > { %8542 = vmatprep.subr.mxu0 %v14038_v36  ;;  %8578 = vmatpush3.msra.mxu1 %v12843_v49 }
 0xb2c   : > { %8543 = vmatpush3.msra.mxu0 %v12843_v49  ;;  %8579 = vmatprep.subr.mxu1 %v14038_v36  ;;  %v9110_v49 = vunpack.i.l.bf16 %v9109_v33 }
 0xb2d   : > { %8544 = vmatprep.subr.mxu0 %v14038_v36  ;;  %8580 = vmatpush3.msra.mxu1 %v12861_v14 }
 0xb2e   : > { %8545 = vmatpush3.msra.mxu0 %v12861_v14  ;;  %8581 = vmatprep.subr.mxu1 %v14038_v36  ;;  %v9115_v14 = vunpack.i.l.bf16 %v9114_v63 }
 0xb2f   : > { %8546 = vmatprep.subr.mxu0 %v14038_v36  ;;  %8582 = vmatpush3.msra.mxu1 %v12870_v27 }
 0xb30   : > { %8547 = vmatpush3.msra.mxu0 %v12870_v27  ;;  %8583 = vmatprep.subr.mxu1 %v14038_v36  ;;  %v6139_v27 = vpop.permute.xlu0 %6138  ;;  %v6064_v3 = vsel %vm4200_vm0, %v9110_v49, %v9115_v14 }
 0xb31   : > { %8548 = vmatprep.subr.mxu0 %v14038_v36  ;;  %8584 = vmatpush3.msra.mxu1 %v12894_v24  ;;  %v6065_v13 = vsel %vm3883_vm13, %v6064_v3, %v12853_v18 }
 0xb32   : > { %8549 = vmatpush3.msra.mxu0 %v12894_v24  ;;  %8585 = vmatprep.subr.mxu1 %v14038_v36  ;;  %v6148_v24 = vsel %vm4200_vm0, %v6139_v27, %v9111_v26 }
 0xb33   : > { %8550 = vmatprep.subr.mxu0 %v14038_v36  ;;  %8586 = vmatpush3.msra.mxu1 %v12903_v46 }
 0xb34   : > { %8551 = vmatpush3.msra.mxu0 %v12903_v46  ;;  %8587 = vmatprep.subr.mxu1 %v14038_v36  ;;  %v9116_v46 = vunpack.i.h.bf16 %v9114_v63  ;;  %v9119_v22 = vpop.permute.xlu0 %9118 }
 0xb35   : > { %8552 = vmatprep.subr.mxu0 %v14038_v36  ;;  %8588 = vmatpush3.msra.mxu1 %v12919_v25  ;;  %v9120_v59 = vunpack.i.l.bf16 %v9119_v22  ;;  %v9121_v28 = vunpack.i.h.bf16 %v9119_v22 }
 0xb36   : > { %8553 = vmatpush3.msra.mxu0 %v12919_v25  ;;  %8589 = vmatprep.subr.mxu1 %v14038_v36  ;;  %v6149_v25 = vsel %vm3883_vm13, %v6148_v24, %v9116_v46 }
 0xb37   : > { %8554 = vmatprep.subr.mxu0 %v14038_v36  ;;  %8590 = vmatpush3.msra.mxu1 %v12929_v8  ;;  %v6235_v56 = vsel %vm4200_vm0, %v12940_v57, %v9120_v59  ;;  %v13581_v57 = vld [vmem:[%s13907_s9] sm:$0xff] }
 0xb38   : > { %8555 = vmatpush3.msra.mxu0 %v12929_v8  ;;  %8591 = vmatprep.subr.mxu1 %v14038_v36  ;;  %v6062_v8 = vpop.permute.xlu1 %6061  ;;  %v9129_v16 = vpop.permute.xlu0 %9128 }
 0xb39   : > { %8556 = vmatprep.subr.mxu0 %v14038_v36  ;;  %8592 = vmatpush3.msra.mxu1 %v12945_v35  ;;  %v6066_v9 = vsel %vm2760_vm4, %v6065_v13, %v6062_v8  ;;  %v9130_v52 = vunpack.i.l.bf16 %v9129_v16  ;;  %v9131_v60 = vunpack.i.h.bf16 %v9129_v16 }
 0xb3a   : > { %8557 = vmatpush3.msra.mxu0 %v12945_v35  ;;  %8593 = vmatprep.subr.mxu1 %v14038_v36  ;;  %v6150_v35 = vsel %vm2760_vm4, %v6149_v25, %v12882_v45 }
 0xb3b   : > { %8558 = vmatprep.subr.mxu0 %v14038_v36  ;;  %8594 = vmatpush3.msra.mxu1 %v12956_v19 }
 0xb3c   : > { %8559 = vmatpush3.msra.mxu0 %v12956_v19  ;;  %8595 = vmatprep.subr.mxu1 %v14038_v36  ;;  %v9124_v47 = vpop.permute.xlu1 %9123  ;;  %v9139_v6 = vpop.permute.xlu0 %9138 }
 0xb3d   : > { %8560 = vmatprep.subr.mxu0 %v14038_v36  ;;  %8596 = vmatpush3.msra.mxu1 %v12981_v32  ;;  %v9125_v62 = vunpack.i.l.bf16 %v9124_v47  ;;  %v9126_v7 = vunpack.i.h.bf16 %v9124_v47  ;;  %v9140_v12 = vunpack.i.l.bf16 %v9139_v6  ;;  %v9141_v49 = vunpack.i.h.bf16 %v9139_v6 }
 0xb3e   : > { %8597 = vmatprep.mubr.msk.f32.mxu1 %vm9307_vm14, %v14038_v36  ;;  %8561 = vmatpush3.msra.mxu0 %v12981_v32  ;;  %v13486_v32 = vld [vmem:[%s13907_s9 + $0x50] sm:$0xff] }
 0xb3f   : > { %v5287_v5 = vpop.f32.mrf.mxu0  ;;  %8562 = vmatprep.mubr.msk.f32.mxu0 %vm9307_vm14, %v14038_v36  ;;  %8598 = vmatmul.mubr.f32.vlgmr.msra.gmra.mxu1 %v6150_v35  ;;  %v6319_v37 = vsel %vm4200_vm0, %v9125_v62, %v12971_v23  ;;  %v6236_v23 = vsel %vm3883_vm13, %v6235_v56, %v9130_v52 }
 0xb40   : > { %5291 = vst [vmem:[%s12876_s18 + $0x18] sm:$0x3] %v5287_v5  ;;  %8635 = vmatprep.subr.mxu1 %v14038_v36  ;;  %8563 = vmatmul.mubr.f32.vlgmr.msra.gmra.mxu0 %v6066_v9  ;;  %v6320_v48 = vsel %vm3883_vm13, %v6319_v37, %v9121_v28  ;;  %v6237_v39 = vsel %vm2760_vm4, %v6236_v23, %v9126_v7  ;;  %v9134_v4 = vpop.permute.xlu1 %9133  ;;  %v6401_v24 = vpop.permute.xlu0 %6400 }
 0xb41   : > { %8600 = vmatprep.subr.mxu0 %v14038_v36  ;;  %8636 = vmatpush3.msra.mxu1 %v13363_v2  ;;  %v8214_v18 = vpop.f32.mrf.mxu0  ;;  %v6321_v58 = vsel %vm2760_vm4, %v6320_v48, %v9131_v60  ;;  %v9136_v33 = vunpack.i.h.bf16 %v9134_v4  ;;  %v9135_v63 = vunpack.i.l.bf16 %v9134_v4 }
 0xb42   : > { %8601 = vmatpush3.msra.mxu0 %v13363_v2  ;;  %8637 = vmatprep.subr.mxu1 %v14038_v36 }
 0xb43   : > { %8602 = vmatprep.subr.mxu0 %v14038_v36  ;;  %8638 = vmatpush3.msra.mxu1 %v13372_v34  ;;  %v6403_v27 = vsel %vm4200_vm0, %v9135_v63, %v9140_v12 }
 0xb44   : > { %8603 = vmatpush3.msra.mxu0 %v13372_v34  ;;  %8639 = vmatprep.subr.mxu1 %v14038_v36  ;;  %v6478_v55 = vpop.permute.xlu1 %6477  ;;  %v6404_v46 = vsel %vm3883_vm13, %v6403_v27, %v12974_v53  ;;  %v9149_v53 = vpop.permute.xlu0 %9148 }
 0xb45   : > { %v5371_v45 = vpop.f32.mrf.mxu1  ;;  %8604 = vmatprep.subr.mxu0 %v14038_v36  ;;  %8640 = vmatpush3.msra.mxu1 %v13381_v38  ;;  %v6487_v14 = vsel %vm4200_vm0, %v6478_v55, %v9136_v33  ;;  %v6405_v25 = vsel %vm2760_vm4, %v6404_v46, %v6401_v24  ;;  %v9150_v8 = vunpack.i.l.bf16 %v9149_v53  ;;  %v9151_v62 = vunpack.i.h.bf16 %v9149_v53 }
 0xb46   : > { %5375 = vst [vmem:[%s12876_s18 + $0x1a] sm:$0x3] %v5371_v45  ;;  %8605 = vmatpush3.msra.mxu0 %v13381_v38  ;;  %8641 = vmatprep.subr.mxu1 %v14038_v36  ;;  %v6488_v26 = vsel %vm3883_vm13, %v6487_v14, %v9141_v49 }
 0xb47   : > { %v8249_v19 = vpop.f32.mrf.mxu1  ;;  %8606 = vmatprep.subr.mxu0 %v14038_v36  ;;  %8642 = vmatpush3.msra.mxu1 %v13390_v50  ;;  %v6489_v3 = vsel %vm2760_vm4, %v6488_v26, %v12968_v20 }
 0xb48   : > { %8607 = vmatpush3.msra.mxu0 %v13390_v50  ;;  %8643 = vmatprep.subr.mxu1 %v14038_v36  ;;  %v9144_v20 = vpop.permute.xlu1 %9143  ;;  %v6658_v19 = vsel %vm4200_vm0, %v9150_v8, %v13032_v30 }
 0xb49   : > { %8608 = vmatprep.subr.mxu0 %v14038_v36  ;;  %8644 = vmatpush3.msra.mxu1 %v13399_v31  ;;  %v9145_v18 = vunpack.i.l.bf16 %v9144_v20  ;;  %v9146_v47 = vunpack.i.h.bf16 %v9144_v20 }
 0xb4a   : > { %8609 = vmatpush3.msra.mxu0 %v13399_v31  ;;  %8645 = vmatprep.subr.mxu1 %v14038_v36 }
 0xb4b   : > { %8610 = vmatprep.subr.mxu0 %v14038_v36  ;;  %8646 = vmatpush3.msra.mxu1 %v13486_v32  ;;  %v6574_v16 = vsel %vm4200_vm0, %v13019_v11, %v9145_v18  ;;  %v6659_v30 = vsel %vm3883_vm13, %v6658_v19, %v9146_v47 }
 0xb4c   : > { %8611 = vmatpush3.msra.mxu0 %v13486_v32  ;;  %8647 = vmatprep.subr.mxu1 %v14038_v36  ;;  %v9154_v35 = vpop.permute.xlu1 %9153 }
 0xb4d   : > { %8612 = vmatprep.subr.mxu0 %v14038_v36  ;;  %8648 = vmatpush3.msra.mxu1 %v13495_v54  ;;  %v9155_v22 = vunpack.i.l.bf16 %v9154_v35  ;;  %v9156_v59 = vunpack.i.h.bf16 %v9154_v35 }
 0xb4e   : > { %8613 = vmatpush3.msra.mxu0 %v13495_v54  ;;  %8649 = vmatprep.subr.mxu1 %v14038_v36 }
 0xb4f   : > { %8614 = vmatprep.subr.mxu0 %v14038_v36  ;;  %8650 = vmatpush3.msra.mxu1 %v13504_v15  ;;  %v6575_v52 = vsel %vm3883_vm13, %v6574_v16, %v9155_v22  ;;  %v6660_v11 = vsel %vm2760_vm4, %v6659_v30, %v9156_v59 }
 0xb50   : > { %8615 = vmatpush3.msra.mxu0 %v13504_v15  ;;  %8651 = vmatprep.subr.mxu1 %v14038_v36  ;;  %v6576_v28 = vsel %vm2760_vm4, %v6575_v52, %v9151_v62 }
 0xb51   : > { %8616 = vmatprep.subr.mxu0 %v14038_v36  ;;  %8652 = vmatpush3.msra.mxu1 %v13513_v29 }
 0xb52   : > { %8617 = vmatpush3.msra.mxu0 %v13513_v29  ;;  %8653 = vmatprep.subr.mxu1 %v14038_v36 }
 0xb53   : > { %8618 = vmatprep.subr.mxu0 %v14038_v36  ;;  %8654 = vmatpush3.msra.mxu1 %v13522_v17 }
 0xb54   : > { %8619 = vmatpush3.msra.mxu0 %v13522_v17  ;;  %8655 = vmatprep.subr.mxu1 %v14038_v36 }
 0xb55   : > { %8620 = vmatprep.subr.mxu0 %v14038_v36  ;;  %8656 = vmatpush3.msra.mxu1 %v13531_v41 }
 0xb56   : > { %8621 = vmatpush3.msra.mxu0 %v13531_v41  ;;  %8657 = vmatprep.subr.mxu1 %v14038_v36 }
 0xb57   : > { %8622 = vmatprep.subr.mxu0 %v14038_v36  ;;  %8658 = vmatpush3.msra.mxu1 %v13540_v0 }
 0xb58   : > { %8623 = vmatpush3.msra.mxu0 %v13540_v0  ;;  %8659 = vmatprep.subr.mxu1 %v14038_v36 }
 0xb59   : > { %8624 = vmatprep.subr.mxu0 %v14038_v36  ;;  %8660 = vmatpush3.msra.mxu1 %v13549_v42 }
 0xb5a   : > { %8625 = vmatpush3.msra.mxu0 %v13549_v42  ;;  %8661 = vmatprep.subr.mxu1 %v14038_v36 }
 0xb5b   : > { %8626 = vmatprep.subr.mxu0 %v14038_v36  ;;  %8662 = vmatpush3.msra.mxu1 %v13558_v44 }
 0xb5c   : > { %8627 = vmatpush3.msra.mxu0 %v13558_v44  ;;  %8663 = vmatprep.subr.mxu1 %v14038_v36 }
 0xb5d   : > { %8628 = vmatprep.subr.mxu0 %v14038_v36  ;;  %8664 = vmatpush3.msra.mxu1 %v13571_v51 }
 0xb5e   : > { %8629 = vmatpush3.msra.mxu0 %v13571_v51  ;;  %8665 = vmatprep.subr.mxu1 %v14038_v36 }
 0xb5f   : > { %8630 = vmatprep.subr.mxu0 %v14038_v36  ;;  %8666 = vmatpush3.msra.mxu1 %v13581_v57 }
 0xb60   : > { %8667 = vmatprep.mubr.msk.f32.mxu1 %vm9307_vm14, %v14038_v36  ;;  %8631 = vmatpush3.msra.mxu0 %v13581_v57 }
 0xb61   : > { %8632 = vmatprep.mubr.msk.f32.mxu0 %vm9307_vm14, %v14038_v36  ;;  %8668 = vmatmul.mubr.f32.vlgmr.msra.gmra.mxu1 %v6321_v58 }
 0xb62   : > { %8705 = vmatprep.subr.mxu1 %v14038_v36  ;;  %8633 = vmatmul.mubr.f32.vlgmr.msra.gmra.mxu0 %v6237_v39 }
 0xb63   : > { %8670 = vmatprep.subr.mxu0 %v14038_v36  ;;  %8706 = vmatpush3.msra.mxu1 %v13363_v2 }
 0xb64   : > { %8671 = vmatpush3.msra.mxu0 %v13363_v2  ;;  %8707 = vmatprep.subr.mxu1 %v14038_v36 }
 0xb65   : > { %8672 = vmatprep.subr.mxu0 %v14038_v36  ;;  %8708 = vmatpush3.msra.mxu1 %v13372_v34 }
 0xb66   : > { %8673 = vmatpush3.msra.mxu0 %v13372_v34  ;;  %8709 = vmatprep.subr.mxu1 %v14038_v36 }
 0xb67   : > { %8674 = vmatprep.subr.mxu0 %v14038_v36  ;;  %8710 = vmatpush3.msra.mxu1 %v13381_v38 }
 0xb68   : > { %v5455_v40 = vpop.f32.mrf.mxu0  ;;  %8675 = vmatpush3.msra.mxu0 %v13381_v38  ;;  %8711 = vmatprep.subr.mxu1 %v14038_v36 }
 0xb69   : > { %5459 = vst [vmem:[%s12876_s18 + $0x1c] sm:$0x3] %v5455_v40  ;;  %8676 = vmatprep.subr.mxu0 %v14038_v36  ;;  %8712 = vmatpush3.msra.mxu1 %v13390_v50 }
 0xb6a   : > { %v8284_v21 = vpop.f32.mrf.mxu0  ;;  %8677 = vmatpush3.msra.mxu0 %v13390_v50  ;;  %8713 = vmatprep.subr.mxu1 %v14038_v36 }
 0xb6b   : > { %8678 = vmatprep.subr.mxu0 %v14038_v36  ;;  %8714 = vmatpush3.msra.mxu1 %v13399_v31 }
 0xb6c   : > { %8679 = vmatpush3.msra.mxu0 %v13399_v31  ;;  %8715 = vmatprep.subr.mxu1 %v14038_v36 }
 0xb6d   : > { %v5539_v1 = vpop.f32.mrf.mxu1  ;;  %8680 = vmatprep.subr.mxu0 %v14038_v36  ;;  %8716 = vmatpush3.msra.mxu1 %v13486_v32 }
 0xb6e   : > { %5543 = vst [vmem:[%s12876_s18 + $0x1e] sm:$0x3] %v5539_v1  ;;  %8681 = vmatpush3.msra.mxu0 %v13486_v32  ;;  %8717 = vmatprep.subr.mxu1 %v14038_v36 }
 0xb6f   : > { %v8319_v61 = vpop.f32.mrf.mxu1  ;;  %8682 = vmatprep.subr.mxu0 %v14038_v36  ;;  %8718 = vmatpush3.msra.mxu1 %v13495_v54 }
 0xb70   : > { %8683 = vmatpush3.msra.mxu0 %v13495_v54  ;;  %8719 = vmatprep.subr.mxu1 %v14038_v36 }
 0xb71   : > { %8684 = vmatprep.subr.mxu0 %v14038_v36  ;;  %8720 = vmatpush3.msra.mxu1 %v13504_v15 }
 0xb72   : > { %8685 = vmatpush3.msra.mxu0 %v13504_v15  ;;  %8721 = vmatprep.subr.mxu1 %v14038_v36 }
 0xb73   : > { %8686 = vmatprep.subr.mxu0 %v14038_v36  ;;  %8722 = vmatpush3.msra.mxu1 %v13513_v29 }
 0xb74   : > { %8687 = vmatpush3.msra.mxu0 %v13513_v29  ;;  %8723 = vmatprep.subr.mxu1 %v14038_v36 }
 0xb75   : > { %8688 = vmatprep.subr.mxu0 %v14038_v36  ;;  %8724 = vmatpush3.msra.mxu1 %v13522_v17 }
 0xb76   : > { %8689 = vmatpush3.msra.mxu0 %v13522_v17  ;;  %8725 = vmatprep.subr.mxu1 %v14038_v36 }
 0xb77   : > { %8690 = vmatprep.subr.mxu0 %v14038_v36  ;;  %8726 = vmatpush3.msra.mxu1 %v13531_v41 }
 0xb78   : > { %8691 = vmatpush3.msra.mxu0 %v13531_v41  ;;  %8727 = vmatprep.subr.mxu1 %v14038_v36 }
 0xb79   : > { %8692 = vmatprep.subr.mxu0 %v14038_v36  ;;  %8728 = vmatpush3.msra.mxu1 %v13540_v0 }
 0xb7a   : > { %8693 = vmatpush3.msra.mxu0 %v13540_v0  ;;  %8729 = vmatprep.subr.mxu1 %v14038_v36 }
 0xb7b   : > { %8694 = vmatprep.subr.mxu0 %v14038_v36  ;;  %8730 = vmatpush3.msra.mxu1 %v13549_v42 }
 0xb7c   : > { %8695 = vmatpush3.msra.mxu0 %v13549_v42  ;;  %8731 = vmatprep.subr.mxu1 %v14038_v36 }
 0xb7d   : > { %8696 = vmatprep.subr.mxu0 %v14038_v36  ;;  %8732 = vmatpush3.msra.mxu1 %v13558_v44 }
 0xb7e   : > { %8697 = vmatpush3.msra.mxu0 %v13558_v44  ;;  %8733 = vmatprep.subr.mxu1 %v14038_v36 }
 0xb7f   : > { %8698 = vmatprep.subr.mxu0 %v14038_v36  ;;  %8734 = vmatpush3.msra.mxu1 %v13571_v51 }
 0xb80   : > { %8699 = vmatpush3.msra.mxu0 %v13571_v51  ;;  %8735 = vmatprep.subr.mxu1 %v14038_v36 }
 0xb81   : > { %8700 = vmatprep.subr.mxu0 %v14038_v36  ;;  %8736 = vmatpush3.msra.mxu1 %v13581_v57 }
 0xb82   : > { %8737 = vmatprep.mubr.msk.f32.mxu1 %vm9307_vm14, %v14038_v36  ;;  %8701 = vmatpush3.msra.mxu0 %v13581_v57 }
 0xb83   : > { %8702 = vmatprep.mubr.msk.f32.mxu0 %vm9307_vm14, %v14038_v36  ;;  %8738 = vmatmul.mubr.f32.vlgmr.msra.gmra.mxu1 %v6489_v3 }
 0xb84   : > { %8775 = vmatprep.subr.mxu1 %v14038_v36  ;;  %8703 = vmatmul.mubr.f32.vlgmr.msra.gmra.mxu0 %v6405_v25 }
 0xb85   : > { %8740 = vmatprep.subr.mxu0 %v14038_v36  ;;  %8776 = vmatpush3.msra.mxu1 %v13363_v2 }
 0xb86   : > { %8741 = vmatpush3.msra.mxu0 %v13363_v2  ;;  %8777 = vmatprep.subr.mxu1 %v14038_v36 }
 0xb87   : > { %8742 = vmatprep.subr.mxu0 %v14038_v36  ;;  %8778 = vmatpush3.msra.mxu1 %v13372_v34 }
 0xb88   : > { %8743 = vmatpush3.msra.mxu0 %v13372_v34  ;;  %8779 = vmatprep.subr.mxu1 %v14038_v36 }
 0xb89   : > { %8744 = vmatprep.subr.mxu0 %v14038_v36  ;;  %8780 = vmatpush3.msra.mxu1 %v13381_v38 }
 0xb8a   : > { %8745 = vmatpush3.msra.mxu0 %v13381_v38  ;;  %8781 = vmatprep.subr.mxu1 %v14038_v36 }
 0xb8b   : > { %8746 = vmatprep.subr.mxu0 %v14038_v36  ;;  %8782 = vmatpush3.msra.mxu1 %v13390_v50 }
 0xb8c   : > { %8747 = vmatpush3.msra.mxu0 %v13390_v50  ;;  %8783 = vmatprep.subr.mxu1 %v14038_v36 }
 0xb8d   : > { %8748 = vmatprep.subr.mxu0 %v14038_v36  ;;  %8784 = vmatpush3.msra.mxu1 %v13399_v31 }
 0xb8e   : > { %8749 = vmatpush3.msra.mxu0 %v13399_v31  ;;  %8785 = vmatprep.subr.mxu1 %v14038_v36 }
 0xb8f   : > { %8750 = vmatprep.subr.mxu0 %v14038_v36  ;;  %8786 = vmatpush3.msra.mxu1 %v13486_v32 }
 0xb90   : > { %8751 = vmatpush3.msra.mxu0 %v13486_v32  ;;  %8787 = vmatprep.subr.mxu1 %v14038_v36 }
 0xb91   : > { %8752 = vmatprep.subr.mxu0 %v14038_v36  ;;  %8788 = vmatpush3.msra.mxu1 %v13495_v54 }
 0xb92   : > { %8753 = vmatpush3.msra.mxu0 %v13495_v54  ;;  %8789 = vmatprep.subr.mxu1 %v14038_v36 }
 0xb93   : > { %8754 = vmatprep.subr.mxu0 %v14038_v36  ;;  %8790 = vmatpush3.msra.mxu1 %v13504_v15 }
 0xb94   : > { %8755 = vmatpush3.msra.mxu0 %v13504_v15  ;;  %8791 = vmatprep.subr.mxu1 %v14038_v36 }
 0xb95   : > { %8756 = vmatprep.subr.mxu0 %v14038_v36  ;;  %8792 = vmatpush3.msra.mxu1 %v13513_v29 }
 0xb96   : > { %8757 = vmatpush3.msra.mxu0 %v13513_v29  ;;  %8793 = vmatprep.subr.mxu1 %v14038_v36 }
 0xb97   : > { %8758 = vmatprep.subr.mxu0 %v14038_v36  ;;  %8794 = vmatpush3.msra.mxu1 %v13522_v17 }
 0xb98   : > { %8759 = vmatpush3.msra.mxu0 %v13522_v17  ;;  %8795 = vmatprep.subr.mxu1 %v14038_v36 }
 0xb99   : > { %8760 = vmatprep.subr.mxu0 %v14038_v36  ;;  %8796 = vmatpush3.msra.mxu1 %v13531_v41 }
 0xb9a   : > { %8761 = vmatpush3.msra.mxu0 %v13531_v41  ;;  %8797 = vmatprep.subr.mxu1 %v14038_v36  ;;  %v5710_v13 = vpop.f32.mrf.mxu1 }
 0xb9b   : > { %8762 = vmatprep.subr.mxu0 %v14038_v36  ;;  %8798 = vmatpush3.msra.mxu1 %v13540_v0  ;;  %5714 = vst [vmem:[%s12876_s18 + $0x22] sm:$0x3] %v5710_v13  ;;  %v5626_v9 = vpop.f32.mrf.mxu0 }
 0xb9c   : > { %8763 = vmatpush3.msra.mxu0 %v13540_v0  ;;  %8799 = vmatprep.subr.mxu1 %v14038_v36  ;;  %5630 = vst [vmem:[%s12876_s18 + $0x20] sm:$0x3] %v5626_v9  ;;  %v8389_v5 = vpop.f32.mrf.mxu1 }
 0xb9d   : > { %8764 = vmatprep.subr.mxu0 %v14038_v36  ;;  %8800 = vmatpush3.msra.mxu1 %v13549_v42  ;;  %v8354_v45 = vpop.f32.mrf.mxu0 }
 0xb9e   : > { %8765 = vmatpush3.msra.mxu0 %v13549_v42  ;;  %8801 = vmatprep.subr.mxu1 %v14038_v36 }
 0xb9f   : > { %8766 = vmatprep.subr.mxu0 %v14038_v36  ;;  %8802 = vmatpush3.msra.mxu1 %v13558_v44 }
 0xba0   : > { %8767 = vmatpush3.msra.mxu0 %v13558_v44  ;;  %8803 = vmatprep.subr.mxu1 %v14038_v36 }
 0xba1   : > { %8768 = vmatprep.subr.mxu0 %v14038_v36  ;;  %8804 = vmatpush3.msra.mxu1 %v13571_v51 }
 0xba2   : > { %8769 = vmatpush3.msra.mxu0 %v13571_v51  ;;  %8805 = vmatprep.subr.mxu1 %v14038_v36 }
 0xba3   : > { %8770 = vmatprep.subr.mxu0 %v14038_v36  ;;  %8806 = vmatpush3.msra.mxu1 %v13581_v57 }
 0xba4   : > { %8807 = vmatprep.mubr.msk.f32.mxu1 %vm9307_vm14, %v14038_v36  ;;  %8771 = vmatpush3.msra.mxu0 %v13581_v57 }
 0xba5   : > { %8772 = vmatprep.mubr.msk.f32.mxu0 %vm9307_vm14, %v14038_v36  ;;  %8808 = vmatmul.mubr.f32.vlgmr.msra.gmra.mxu1 %v6660_v11 }
 0xba6   : > { %8845 = vmatprep.subr.mxu1 %v14038_v36  ;;  %8773 = vmatmul.mubr.f32.vlgmr.msra.gmra.mxu0 %v6576_v28 }
 0xba7   : > { %8810 = vmatprep.subr.mxu0 %v14038_v36  ;;  %8846 = vmatpush3.msra.mxu1 %v13363_v2 }
 0xba8   : > { %8811 = vmatpush3.msra.mxu0 %v13363_v2  ;;  %8847 = vmatprep.subr.mxu1 %v14038_v36  ;;  %v9159_v2 = vpop.permute.xlu0 %9158 }
 0xba9   : > { %8812 = vmatprep.subr.mxu0 %v14038_v36  ;;  %8848 = vmatpush3.msra.mxu1 %v13372_v34 }
 0xbaa   : > { %8813 = vmatpush3.msra.mxu0 %v13372_v34  ;;  %8849 = vmatprep.subr.mxu1 %v14038_v36  ;;  %v9164_v34 = vpop.permute.xlu1 %9163 }
 0xbab   : > { %8814 = vmatprep.subr.mxu0 %v14038_v36  ;;  %8850 = vmatpush3.msra.mxu1 %v13381_v38  ;;  %v9166_v37 = vunpack.i.h.bf16 %v9164_v34 }
 0xbac   : > { %8815 = vmatpush3.msra.mxu0 %v13381_v38  ;;  %8851 = vmatprep.subr.mxu1 %v14038_v36 }
 0xbad   : > { %8816 = vmatprep.subr.mxu0 %v14038_v36  ;;  %8852 = vmatpush3.msra.mxu1 %v13390_v50 }
 0xbae   : > { %8817 = vmatpush3.msra.mxu0 %v13390_v50  ;;  %8853 = vmatprep.subr.mxu1 %v14038_v36 }
 0xbaf   : > { %8818 = vmatprep.subr.mxu0 %v14038_v36  ;;  %8854 = vmatpush3.msra.mxu1 %v13399_v31 }
 0xbb0   : > { %8819 = vmatpush3.msra.mxu0 %v13399_v31  ;;  %8855 = vmatprep.subr.mxu1 %v14038_v36  ;;  %v9160_v31 = vunpack.i.l.bf16 %v9159_v2 }
 0xbb1   : > { %8820 = vmatprep.subr.mxu0 %v14038_v36  ;;  %8856 = vmatpush3.msra.mxu1 %v13486_v32 }
 0xbb2   : > { %8821 = vmatpush3.msra.mxu0 %v13486_v32  ;;  %8857 = vmatprep.subr.mxu1 %v14038_v36  ;;  %v9165_v32 = vunpack.i.l.bf16 %v9164_v34 }
 0xbb3   : > { %8822 = vmatprep.subr.mxu0 %v14038_v36  ;;  %8858 = vmatpush3.msra.mxu1 %v13495_v54 }
 0xbb4   : > { %8823 = vmatpush3.msra.mxu0 %v13495_v54  ;;  %8859 = vmatprep.subr.mxu1 %v14038_v36  ;;  %v6817_v54 = vpop.permute.xlu0 %6816  ;;  %v6742_v60 = vsel %vm4200_vm0, %v9160_v31, %v9165_v32 }
 0xbb5   : > { %8824 = vmatprep.subr.mxu0 %v14038_v36  ;;  %8860 = vmatpush3.msra.mxu1 %v13504_v15  ;;  %v6743_v56 = vsel %vm3883_vm13, %v6742_v60, %v13035_v10 }
 0xbb6   : > { %8825 = vmatpush3.msra.mxu0 %v13504_v15  ;;  %8861 = vmatprep.subr.mxu1 %v14038_v36 }
 0xbb7   : > { %8826 = vmatprep.subr.mxu0 %v14038_v36  ;;  %8862 = vmatpush3.msra.mxu1 %v13513_v29 }
 0xbb8   : > { %8827 = vmatpush3.msra.mxu0 %v13513_v29  ;;  %8863 = vmatprep.subr.mxu1 %v14038_v36  ;;  %v9161_v29 = vunpack.i.h.bf16 %v9159_v2 }
 0xbb9   : > { %8828 = vmatprep.subr.mxu0 %v14038_v36  ;;  %8864 = vmatpush3.msra.mxu1 %v13522_v17 }
 0xbba   : > { %8829 = vmatpush3.msra.mxu0 %v13522_v17  ;;  %8865 = vmatprep.subr.mxu1 %v14038_v36 }
 0xbbb   : > { %8830 = vmatprep.subr.mxu0 %v14038_v36  ;;  %8866 = vmatpush3.msra.mxu1 %v13531_v41  ;;  %v5878_v38 = vpop.f32.mrf.mxu1 }
 0xbbc   : > { %8831 = vmatpush3.msra.mxu0 %v13531_v41  ;;  %8867 = vmatprep.subr.mxu1 %v14038_v36  ;;  %5882 = vst [vmem:[%s12876_s18 + $0x26] sm:$0x3] %v5878_v38  ;;  %v5794_v50 = vpop.f32.mrf.mxu0  ;;  %v6826_v41 = vsel %vm4200_vm0, %v6817_v54, %v9161_v29 }
 0xbbd   : > { %8832 = vmatprep.subr.mxu0 %v14038_v36  ;;  %8868 = vmatpush3.msra.mxu1 %v13540_v0  ;;  %5798 = vst [vmem:[%s12876_s18 + $0x24] sm:$0x3] %v5794_v50  ;;  %v8459_v15 = vpop.f32.mrf.mxu1 }
 0xbbe   : > { %8833 = vmatpush3.msra.mxu0 %v13540_v0  ;;  %8869 = vmatprep.subr.mxu1 %v14038_v36  ;;  %v8424_v17 = vpop.f32.mrf.mxu0  ;;  %v6827_v0 = vsel %vm3883_vm13, %v6826_v41, %v9166_v37 }
 0xbbf   : > { %8834 = vmatprep.subr.mxu0 %v14038_v36  ;;  %8870 = vmatpush3.msra.mxu1 %v13549_v42 }
 0xbc0   : > { %8835 = vmatpush3.msra.mxu0 %v13549_v42  ;;  %8871 = vmatprep.subr.mxu1 %v14038_v36  ;;  %v6740_v42 = vpop.permute.xlu1 %6739 }
 0xbc1   : > { %8836 = vmatprep.subr.mxu0 %v14038_v36  ;;  %8872 = vmatpush3.msra.mxu1 %v13558_v44  ;;  %v6744_v10 = vsel %vm2760_vm4, %v6743_v56, %v6740_v42 }
 0xbc2   : > { %8837 = vmatpush3.msra.mxu0 %v13558_v44  ;;  %8873 = vmatprep.subr.mxu1 %v14038_v36  ;;  %v6828_v44 = vsel %vm2760_vm4, %v6827_v0, %v13052_v43 }
 0xbc3   : > { %8838 = vmatprep.subr.mxu0 %v14038_v36  ;;  %8874 = vmatpush3.msra.mxu1 %v13571_v51 }
 0xbc4   : > { %8839 = vmatpush3.msra.mxu0 %v13571_v51  ;;  %8875 = vmatprep.subr.mxu1 %v14038_v36 }
 0xbc5   : > { %8840 = vmatprep.subr.mxu0 %v14038_v36  ;;  %8876 = vmatpush3.msra.mxu1 %v13581_v57 }
 0xbc6   : > { %8877 = vmatprep.mubr.msk.f32.mxu1 %vm9307_vm14, %v14038_v36  ;;  %8841 = vmatpush3.msra.mxu0 %v13581_v57 }
 0xbc7   : > { %8842 = vmatprep.mubr.msk.f32.mxu0 %vm9307_vm14, %v14038_v36  ;;  %8878 = vmatmul.mubr.f32.vlgmr.msra.gmra.mxu1 %v6828_v44 }
 0xbc8   : > { %8843 = vmatmul.mubr.f32.vlgmr.msra.gmra.mxu0 %v6744_v10 }
 0xbdd   : > { %v6049_v51 = vpop.f32.mrf.mxu1 }
 0xbde   : > { %6053 = vst [vmem:[%s12876_s18 + $0x2a] sm:$0x3] %v6049_v51  ;;  %v5965_v23 = vpop.f32.mrf.mxu0 }
 0xbdf   : > { %5969 = vst [vmem:[%s12876_s18 + $0x28] sm:$0x3] %v5965_v23  ;;  %v8529_v7 = vpop.f32.mrf.mxu1 }
 0xbe0   : > { %v8494_v48 = vpop.f32.mrf.mxu0 }
 0xbff   : > { %v6217_v57 = vpop.f32.mrf.mxu1 }
 0xc00   : > { %6221 = vst [vmem:[%s12876_s18 + $0x2e] sm:$0x3] %v6217_v57  ;;  %v6133_v43 = vpop.f32.mrf.mxu0 }
 0xc01   : > { %6137 = vst [vmem:[%s12876_s18 + $0x2c] sm:$0x3] %v6133_v43  ;;  %v8599_v58 = vpop.f32.mrf.mxu1 }
 0xc02   : > { %v8564_v39 = vpop.f32.mrf.mxu0 }
 0xc21   : > { %v6388_v36 = vpop.f32.mrf.mxu1 }
 0xc22   : > { %6392 = vst [vmem:[%s12876_s18 + $0x32] sm:$0x3] %v6388_v36  ;;  %v6304_v40 = vpop.f32.mrf.mxu0 }
 0xc23   : > { %6308 = vst [vmem:[%s12876_s18 + $0x30] sm:$0x3] %v6304_v40  ;;  %v8669_v21 = vpop.f32.mrf.mxu1 }
 0xc24   : > { %v8634_v1 = vpop.f32.mrf.mxu0 }
 0xc43   : > { %v6556_v61 = vpop.f32.mrf.mxu1 }
 0xc44   : > { %6560 = vst [vmem:[%s12876_s18 + $0x36] sm:$0x3] %v6556_v61  ;;  %v6472_v4 = vpop.f32.mrf.mxu0 }
 0xc45   : > { %6476 = vst [vmem:[%s12876_s18 + $0x34] sm:$0x3] %v6472_v4  ;;  %v8739_v6 = vpop.f32.mrf.mxu1 }
 0xc46   : > { %v8704_v12 = vpop.f32.mrf.mxu0 }
 0xc65   : > { %v6727_v55 = vpop.f32.mrf.mxu1 }
 0xc66   : > { %6731 = vst [vmem:[%s12876_s18 + $0x3a] sm:$0x3] %v6727_v55  ;;  %v6643_v33 = vpop.f32.mrf.mxu0 }
 0xc67   : > { %6647 = vst [vmem:[%s12876_s18 + $0x38] sm:$0x3] %v6643_v33  ;;  %v8809_v63 = vpop.f32.mrf.mxu1 }
 0xc68   : > { %v8774_v49 = vpop.f32.mrf.mxu0 }
 0xc87   : > { %v6895_v14 = vpop.f32.mrf.mxu1 }
 0xc88   : > { %6899 = vst [vmem:[%s12876_s18 + $0x3e] sm:$0x3] %v6895_v14  ;;  %v6811_v27 = vpop.f32.mrf.mxu0 }
 0xc89   : > { %6815 = vst [vmem:[%s12876_s18 + $0x3c] sm:$0x3] %v6811_v27  ;;  %v8879_v26 = vpop.f32.mrf.mxu1 }
 0xc8a   : > { %v8844_v24 = vpop.f32.mrf.mxu0 }
 0xc8b   : > { %9216 = shalt.err (!%p9213_p6)
}
 0xc8c   : > { %s9217_s18 = scalar_lea.hbm %s13842_s22, 1024  ;;  %s9221_s29 = scalar_lea.hbm %s13908_s10, 8192 }
 0xc8d   : > { %p9218_p7 = scmp.ne.s32.totalorder %s13842_s22, %s9217_s18  ;;  %p9222_p11 = scmp.lt.s32.totalorder %s13842_s22, %s13908_s10 }
 0xc8e   : > { %p9223_p12 = scmp.lt.s32.totalorder %s9221_s29, %s9217_s18 }
 0xc8f   : > { %p9219_p9 = pnand %p9218_p7, %p9415_p3 }
 0xc90   : > { %p9224_p13 = por %p9223_p12, %p9222_p11 }
 0xc91   : > { %p9220_p10 = pneg %p9219_p9 }
 0xc93   : > { %p9225_p0 = pnand %p9224_p13, %p9220_p10 }
 0xc95   : > { %9228 = shalt.err (!%p9225_p0)
}
 0xc96   : > { %8883 = dma.vmem_to_hbm [thread:$0]  (%p9415_p3), %s13844_s25, 1024, %s13842_s22, %s6901_s16  }
 0xc97 PF: > { %p8889_p1 = scmp.ge.s32.totalorder %s9295_s20, 2  ;;  %s6929_s17 = sand.u32 1, %s9267_s13  }
 0xc98   : > { %s6930_s24 = scalar_lea.sflag [#allocation3], %s6929_s17 }
 0xc99   : > { %p8886_p2 = pnand %p8889_p1, %p9424_p8 }
 0xc9b   : > { %p8887_p4 = pneg %p8886_p2 }
 0xc9d   : > { %9262 = dma.done.wait (%p8887_p4), %s6930_s24, 1024  }
 0xc9e   : > { %9264 = vsyncadd (%p8887_p4), %s6930_s24, 4294966272  ;;  %s23_s20 = sadd.s32 1, %s9295_s20   ;;  %s14109_s16 = sld [smem:[#allocation5_spill]] }
 0xc9f   : > { %p20_p5 = scmp.ge.s32.totalorder %s23_s20, 10   ;;  %s14110_s18 = sld [smem:[#allocation6_spill]] }
 0xca0   : > { %s14111_s26 = sld [smem:[#allocation7_spill]]  ;;  %s14112_s13 = smov %s9271_s14 }
 0xca1   : > { %s14113_s14 = smov %s9275_s15  ;;  %s14114_s15 = smov %s9433_s11 }
 0xca2   : > { %s14115_s17 = smov %s9291_s19  ;;  %22 = sbr.rel (!%p20_p5) target bundleno = 5 (0x5), region = 96 }
 0xca6   : > { %s14116_s19 = smov %s14111_s26 }
 0xca7   :  { %6935 = vsyncpa [#allocation3], 1 }
 0xca8   :  { %6937 = vsyncpa [#allocation3 + $0x1], 1 }

</bundles_post_ra>
